<compile_context>
chip_gen: v5e
topology: v5e:2x2
jax: 0.10.0
libtpu: 0.0.40
codegen_flags: <defaults>
</compile_context>

<pallas_src>
import functools

import numpy as np
import jax
import jax.numpy as jnp
from jax import lax
from jax.experimental import pallas as pl
from jax.experimental.pallas import tpu as pltpu

# -------------------- model hyperparameters (module defaults) --------------------
DEPTH = 4
INPUT_DIM = 196
HIDDEN_SIZE = 64
NUM_HEADS = 4
OUTPUT_DIM = 2
MLP_RATIO = 1.0
MLP_HIDDEN = int(HIDDEN_SIZE * MLP_RATIO)
LN_EPS = 1e-6
NEG_INF = -1e30
FLOW_PAD = 128            # lane-dense flow-head width; sliced back to OUTPUT_DIM outside


# ------------------------------- kernel helpers ----------------------------------
def _layernorm(x):
    # Non-affine LayerNorm (elementwise_affine=False, eps=1e-6) as in the cotracker AttnBlock.
    mu = jnp.mean(x, axis=-1, keepdims=True)
    xc = x - mu
    var = jnp.mean(xc * xc, axis=-1, keepdims=True)
    return xc * lax.rsqrt(var + LN_EPS)


def _attn_block(x, attn_bias, num_heads, act_dtype,
                qkv_w, qkv_b, proj_w, proj_b, fc1_w, fc1_b, fc2_w, fc2_b):
    """Pre-LN MHSA + MLP block on a (Ntok, C) f32 slab with masked self-attention.

    x: (Ntok, C) f32; weights bf16; biases f32 (1, dim); attn_bias (Ntok, Ntok) f32
    additive mask (0 inside a sequence, -1e30 outside).  qkv_w columns are head-major
    ([q_h|k_h|v_h] per head) with the 1/sqrt(dh) scale pre-folded into the Q columns.
    """
    ntok, C = x.shape
    dh = C // num_heads

    # --- attention branch ---
    xn = _layernorm(x).astype(jnp.bfloat16)
    qkv = jnp.dot(xn, qkv_w, preferred_element_type=jnp.float32) + qkv_b     # (Ntok, 3C)

    ctx_heads = []
    for h in range(num_heads):                       # static, small unroll over heads
        base = h * 3 * dh
        qh = qkv[:, base            : base + dh].astype(jnp.bfloat16)
        kh = qkv[:, base + dh       : base + 2 * dh].astype(jnp.bfloat16)
        vh = qkv[:, base + 2 * dh   : base + 3 * dh].astype(jnp.bfloat16)
        s = lax.dot_general(qh, kh, (((1,), (1,)), ((), ())),
                            preferred_element_type=jnp.float32)              # (Ntok, Ntok)
        s = s + attn_bias                            # block mask (time or space groups)
        m = jnp.max(s, axis=-1, keepdims=True)
        p = jnp.exp(s - m)
        denom = jnp.sum(p, axis=-1, keepdims=True)
        p = (p * pl.reciprocal(denom, approx=True)).astype(jnp.bfloat16)
        ctx_heads.append(jnp.dot(p, vh, preferred_element_type=jnp.float32))  # (Ntok, dh)

    # re-assemble the full context and do ONE K=C output projection matmul
    ctx = jnp.concatenate(ctx_heads, axis=-1).astype(jnp.bfloat16)            # (Ntok, C)
    x = x + jnp.dot(ctx, proj_w, preferred_element_type=jnp.float32) + proj_b

    # --- MLP branch ---
    xn2 = _layernorm(x).astype(jnp.bfloat16)
    h1 = jnp.dot(xn2, fc1_w, preferred_element_type=jnp.float32) + fc1_b
    # tanh GELU (cotracker uses nn.GELU(approximate="tanh")); bf16 on v6e/v7x, f32 on v5e.
    h1 = jax.nn.gelu(h1.astype(act_dtype), approximate=True).astype(jnp.bfloat16)
    h2 = jnp.dot(h1, fc2_w, preferred_element_type=jnp.float32) + fc2_b
    return x + h2


# --------------------------------- fused kernel -----------------------------------
def _former_kernel(x_ref, tbias_ref, sbias_ref, in_w_ref, in_b_ref,
                   qkv_w_ref, qkv_b_ref, proj_w_ref, proj_b_ref,
                   fc1_w_ref, fc1_b_ref, fc2_w_ref, fc2_b_ref,
                   flow_w_ref, flow_b_ref, o_ref,
                   *, depth, num_heads, act_dtype):
    # input projection (contraction dim zero-padded to a lane multiple in the wrapper)
    tokens = (jnp.dot(x_ref[...], in_w_ref[...], preferred_element_type=jnp.float32)
              + in_b_ref[...])                                     # (Ntok, C) f32

    time_bias = tbias_ref[...]
    space_bias = sbias_ref[...]

    # stacked block params: indices [0, depth) = time blocks, [depth, 2*depth) = space.
    def run_block(i, tok, bias):
        return _attn_block(tok, bias, num_heads, act_dtype,
                           qkv_w_ref[i], qkv_b_ref[i], proj_w_ref[i], proj_b_ref[i],
                           fc1_w_ref[i], fc1_b_ref[i], fc2_w_ref[i], fc2_b_ref[i])

    def depth_body(d, tok):
        tok = run_block(d, tok, time_bias)            # attend over frames of each track
        tok = run_block(depth + d, tok, space_bias)   # attend over tracks of each frame
        return tok

    tokens = lax.fori_loop(0, depth, depth_body, tokens)

    flow = (jnp.dot(tokens.astype(jnp.bfloat16), flow_w_ref[...],
                    preferred_element_type=jnp.float32) + flow_b_ref[...])
    o_ref[...] = flow.astype(o_ref.dtype)


# ---------------------------------- wrapper ----------------------------------------
def _elementwise_act_dtype():
    """bf16 GELU on chips with bf16 VPU/EUP (v6e / v7x); f32 elsewhere (v5e, v4, ...)."""
    try:
        kind = jax.devices()[0].device_kind.lower()
    except Exception:
        return jnp.float32
    if any(tag in kind for tag in ("v6", "v7", "7x")):
        return jnp.bfloat16
    return jnp.float32


def efficient_update_former(params, input_tensor):
    """input_tensor: (B, N, T, input_dim)  ->  flow: (B, N, T, output_dim)."""
    B, N, T, Din = input_tensor.shape
    C, Hm, NB = HIDDEN_SIZE, MLP_HIDDEN, 2 * DEPTH
    dh = C // NUM_HEADS
    ntok = B * N * T                                  # batch folded into M (single TC step)
    kpad = ((Din + 127) // 128) * 128                 # 196 -> 256 (lane-aligned K)

    x2d = input_tensor.reshape(ntok, Din)
    x_p = jnp.pad(x2d, ((0, 0), (0, kpad - Din))).astype(jnp.bfloat16)
    in_w = jnp.pad(params["in_w"], ((0, kpad - Din), (0, 0))).astype(jnp.bfloat16)

    # additive attention masks, built once in the wrapper (hoisted out of the kernel).
    # token i is (batch b = i // (N*T), track n = (i // T) % N, frame t = i % T).
    idx = jnp.arange(ntok, dtype=jnp.int32)
    trk = idx // T                                    # global (b, n) track id
    frm = idx % T
    bat = idx // (N * T)
    time_bias = jnp.where(trk[:, None] == trk[None, :],
                          0.0, NEG_INF).astype(jnp.float32)            # same track: over frames
    space_bias = jnp.where((bat[:, None] == bat[None, :]) &
                           (frm[:, None] == frm[None, :]),
                           0.0, NEG_INF).astype(jnp.float32)           # same batch & frame: over tracks

    # qkv weights: fold 1/sqrt(dh) into the Q columns, then permute columns head-major
    # so each head's (q, k, v) is a contiguous slab of the qkv matmul output.
    scale = dh ** -0.5
    col_scale = jnp.concatenate([jnp.full((C,), scale, jnp.float32),
                                 jnp.ones((2 * C,), jnp.float32)])
    qkv_w = params["qkv_w"] * col_scale[None, None, :]
    qkv_b = params["qkv_b"] * col_scale[None, :]
    perm = np.concatenate([
        np.concatenate([w * C + h * dh + np.arange(dh) for w in range(3)])
        for h in range(NUM_HEADS)]).astype(np.int32)
    qkv_w = qkv_w[:, :, perm]
    qkv_b = qkv_b[:, perm]

    # lane-dense flow head: pad the 2 output lanes to 128, slice outside the kernel.
    flow_w = jnp.pad(params["flow_w"],
                     ((0, 0), (0, FLOW_PAD - OUTPUT_DIM))).astype(jnp.bfloat16)
    flow_b = jnp.pad(params["flow_b"], ((0, FLOW_PAD - OUTPUT_DIM),)).reshape(1, FLOW_PAD)

    bf16 = lambda a: a.astype(jnp.bfloat16)
    args = (
        x_p, time_bias, space_bias, in_w, params["in_b"].reshape(1, C),
        bf16(qkv_w), qkv_b.reshape(NB, 1, 3 * C),
        bf16(params["proj_w"]), params["proj_b"].reshape(NB, 1, C),
        bf16(params["fc1_w"]), params["fc1_b"].reshape(NB, 1, Hm),
        bf16(params["fc2_w"]), params["fc2_b"].reshape(NB, 1, Hm if Hm == C else C),
        flow_w, flow_b,
    )
    # (fc2_b has width C; Hm == C for mlp_ratio=1.0 — keep explicit shape below)
    args = list(args)
    args[12] = params["fc2_b"].reshape(NB, 1, C)

    c2 = lambda i: (0, 0)
    c3 = lambda i: (0, 0, 0)
    in_specs = [
        pl.BlockSpec((ntok, kpad), c2),              # x (all batch elements, one step)
        pl.BlockSpec((ntok, ntok), c2),              # time_bias
        pl.BlockSpec((ntok, ntok), c2),              # space_bias
        pl.BlockSpec((kpad, C), c2),                 # in_w
        pl.BlockSpec((1, C), c2),                    # in_b
        pl.BlockSpec((NB, C, 3 * C), c3),            # qkv_w (all 8 blocks, resident)
        pl.BlockSpec((NB, 1, 3 * C), c3),            # qkv_b
        pl.BlockSpec((NB, C, C), c3),                # proj_w
        pl.BlockSpec((NB, 1, C), c3),                # proj_b
        pl.BlockSpec((NB, C, Hm), c3),               # fc1_w
        pl.BlockSpec((NB, 1, Hm), c3),               # fc1_b
        pl.BlockSpec((NB, Hm, C), c3),               # fc2_w
        pl.BlockSpec((NB, 1, C), c3),                # fc2_b
        pl.BlockSpec((C, FLOW_PAD), c2),             # flow_w (padded lanes)
        pl.BlockSpec((1, FLOW_PAD), c2),             # flow_b (padded lanes)
    ]

    kernel = functools.partial(_former_kernel, depth=DEPTH, num_heads=NUM_HEADS,
                               act_dtype=_elementwise_act_dtype())
    out = pl.pallas_call(
        kernel,
        out_shape=jax.ShapeDtypeStruct((ntok, FLOW_PAD), jnp.float32),
        grid=(1,),
        in_specs=in_specs,
        out_specs=pl.BlockSpec((ntok, FLOW_PAD), c2),
        compiler_params=pltpu.CompilerParams(dimension_semantics=("arbitrary",)),
    )(*args)
    return out[:, :OUTPUT_DIM].reshape(B, N, T, OUTPUT_DIM)


# ------------------------------ parameter init ------------------------------------
def init_params(key):
    """Block params stacked along dim 0 as [time_0..time_3, space_0..space_3]."""
    C, Hm, NB = HIDDEN_SIZE, MLP_HIDDEN, 2 * DEPTH
    ks = jax.random.split(key, 12)
    s = 0.02
    return {
        "in_w": s * jax.random.normal(ks[0], (INPUT_DIM, C), jnp.float32),
        "in_b": s * jax.random.normal(ks[1], (C,), jnp.float32),
        "qkv_w": s * jax.random.normal(ks[2], (NB, C, 3 * C), jnp.float32),
        "qkv_b": s * jax.random.normal(ks[3], (NB, 3 * C), jnp.float32),
        "proj_w": s * jax.random.normal(ks[4], (NB, C, C), jnp.float32),
        "proj_b": s * jax.random.normal(ks[5], (NB, C), jnp.float32),
        "fc1_w": s * jax.random.normal(ks[6], (NB, C, Hm), jnp.float32),
        "fc1_b": s * jax.random.normal(ks[7], (NB, Hm), jnp.float32),
        "fc2_w": s * jax.random.normal(ks[8], (NB, Hm, C), jnp.float32),
        "fc2_b": s * jax.random.normal(ks[9], (NB, C), jnp.float32),
        "flow_w": s * jax.random.normal(ks[10], (C, OUTPUT_DIM), jnp.float32),
        "flow_b": s * jax.random.normal(ks[11], (OUTPUT_DIM,), jnp.float32),
    }


# ----------------------------------- main ------------------------------------------
if __name__ == "__main__":
    key = jax.random.PRNGKey(0)
    k_params, k_x = jax.random.split(key)

    params = init_params(k_params)

    B, N, T = 2, 8, 8  # small shapes: 2 videos, 8 tracks, 8 frames -> 128 tokens total
    x = jax.random.normal(k_x, (B, N, T, INPUT_DIM), jnp.float32)

    fwd = jax.jit(efficient_update_former)
    flow = fwd(params, x)
    jax.block_until_ready(flow)

    assert flow.shape == (B, N, T, OUTPUT_DIM), flow.shape
    assert flow.dtype == jnp.float32
    assert bool(jnp.all(jnp.isfinite(flow)))
    print("KERNEL_OK")
</pallas_src>

<mosaic_0001>
module attributes {stable_mosaic.version = 11 : i64} {
  func.func @_former_kernel(%arg0: i32, %arg1: memref<128x256xbf16, #tpu.memory_space<vmem>>, %arg2: memref<128x128xf32, #tpu.memory_space<vmem>>, %arg3: memref<128x128xf32, #tpu.memory_space<vmem>>, %arg4: memref<256x64xbf16, #tpu.memory_space<vmem>>, %arg5: memref<1x64xf32, #tpu.memory_space<vmem>>, %arg6: memref<8x64x192xbf16, #tpu.memory_space<vmem>>, %arg7: memref<8x1x192xf32, #tpu.memory_space<vmem>>, %arg8: memref<8x64x64xbf16, #tpu.memory_space<vmem>>, %arg9: memref<8x1x64xf32, #tpu.memory_space<vmem>>, %arg10: memref<8x64x64xbf16, #tpu.memory_space<vmem>>, %arg11: memref<8x1x64xf32, #tpu.memory_space<vmem>>, %arg12: memref<8x64x64xbf16, #tpu.memory_space<vmem>>, %arg13: memref<8x1x64xf32, #tpu.memory_space<vmem>>, %arg14: memref<64x128xbf16, #tpu.memory_space<vmem>>, %arg15: memref<1x128xf32, #tpu.memory_space<vmem>>, %arg16: memref<128x128xf32, #tpu.memory_space<vmem>>) attributes {dimension_semantics = [#tpu.dimension_semantics<arbitrary>], iteration_bounds = array<i64: 1>, scalar_prefetch = 0 : i64, scratch_operands = 0 : i64, tpu.core_type = #tpu.core_type<tc>, window_params = [{pipeline_mode = #tpu.pipeline_mode<synchronous>, transform_indices = @transform_0, window_bounds = array<i64: 128, 256>}, {pipeline_mode = #tpu.pipeline_mode<synchronous>, transform_indices = @transform_1, window_bounds = array<i64: 128, 128>}, {pipeline_mode = #tpu.pipeline_mode<synchronous>, transform_indices = @transform_2, window_bounds = array<i64: 128, 128>}, {pipeline_mode = #tpu.pipeline_mode<synchronous>, transform_indices = @transform_3, window_bounds = array<i64: 256, 64>}, {pipeline_mode = #tpu.pipeline_mode<synchronous>, transform_indices = @transform_4, window_bounds = array<i64: 1, 64>}, {pipeline_mode = #tpu.pipeline_mode<synchronous>, transform_indices = @transform_5, window_bounds = array<i64: 8, 64, 192>}, {pipeline_mode = #tpu.pipeline_mode<synchronous>, transform_indices = @transform_6, window_bounds = array<i64: 8, 1, 192>}, {pipeline_mode = #tpu.pipeline_mode<synchronous>, transform_indices = @transform_7, window_bounds = array<i64: 8, 64, 64>}, {pipeline_mode = #tpu.pipeline_mode<synchronous>, transform_indices = @transform_8, window_bounds = array<i64: 8, 1, 64>}, {pipeline_mode = #tpu.pipeline_mode<synchronous>, transform_indices = @transform_9, window_bounds = array<i64: 8, 64, 64>}, {pipeline_mode = #tpu.pipeline_mode<synchronous>, transform_indices = @transform_10, window_bounds = array<i64: 8, 1, 64>}, {pipeline_mode = #tpu.pipeline_mode<synchronous>, transform_indices = @transform_11, window_bounds = array<i64: 8, 64, 64>}, {pipeline_mode = #tpu.pipeline_mode<synchronous>, transform_indices = @transform_12, window_bounds = array<i64: 8, 1, 64>}, {pipeline_mode = #tpu.pipeline_mode<synchronous>, transform_indices = @transform_13, window_bounds = array<i64: 64, 128>}, {pipeline_mode = #tpu.pipeline_mode<synchronous>, transform_indices = @transform_14, window_bounds = array<i64: 1, 128>}, {pipeline_mode = #tpu.pipeline_mode<synchronous>, transform_indices = @transform_15, window_bounds = array<i64: 128, 128>}]} {
    %c0 = arith.constant 0 : index
    %c0_0 = arith.constant 0 : index
    %0 = vector.load %arg1[%c0, %c0_0] : memref<128x256xbf16, #tpu.memory_space<vmem>>, vector<128x256xbf16>
    %c0_1 = arith.constant 0 : index
    %c0_2 = arith.constant 0 : index
    %1 = vector.load %arg4[%c0_1, %c0_2] : memref<256x64xbf16, #tpu.memory_space<vmem>>, vector<256x64xbf16>
    %cst = arith.constant dense<0.000000e+00> : vector<128x64xf32>
    %2 = tpu.matmul %0, %1, %cst {dimension_numbers = #tpu.dot_dimension_numbers<[1], [0], [0], [1], [0, 0, 1, 1], [], []>} : vector<128x256xbf16>, vector<256x64xbf16>, vector<128x64xf32> -> vector<128x64xf32>
    %c0_3 = arith.constant 0 : index
    %c0_4 = arith.constant 0 : index
    %3 = vector.load %arg5[%c0_3, %c0_4] : memref<1x64xf32, #tpu.memory_space<vmem>>, vector<1x64xf32>
    %4 = vector.broadcast %3 : vector<1x64xf32> to vector<128x64xf32>
    %5 = arith.addf %2, %4 : vector<128x64xf32>
    %c0_5 = arith.constant 0 : index
    %c0_6 = arith.constant 0 : index
    %6 = vector.load %arg2[%c0_5, %c0_6] : memref<128x128xf32, #tpu.memory_space<vmem>>, vector<128x128xf32>
    %c0_7 = arith.constant 0 : index
    %c0_8 = arith.constant 0 : index
    %7 = vector.load %arg3[%c0_7, %c0_8] : memref<128x128xf32, #tpu.memory_space<vmem>>, vector<128x128xf32>
    %c0_i32 = arith.constant 0 : i32
    %c4_i32 = arith.constant 4 : i32
    %8 = arith.addi %c0_i32, %c4_i32 : i32
    %c1_i32 = arith.constant 1 : i32
    %9 = scf.for %arg17 = %c0_i32 to %8 step %c1_i32 iter_args(%arg18 = %5) -> (vector<128x64xf32>)  : i32 {
      %17 = arith.index_cast %arg17 : i32 to index
      %c0_17 = arith.constant 0 : index
      %c0_18 = arith.constant 0 : index
      %18 = vector.load %arg6[%17, %c0_17, %c0_18] : memref<8x64x192xbf16, #tpu.memory_space<vmem>>, vector<1x64x192xbf16>
      %19 = vector.shape_cast %18 : vector<1x64x192xbf16> to vector<64x192xbf16>
      %20 = arith.index_cast %arg17 : i32 to index
      %c0_19 = arith.constant 0 : index
      %c0_20 = arith.constant 0 : index
      %21 = vector.load %arg7[%20, %c0_19, %c0_20] : memref<8x1x192xf32, #tpu.memory_space<vmem>>, vector<1x1x192xf32>
      %22 = vector.shape_cast %21 : vector<1x1x192xf32> to vector<1x192xf32>
      %23 = arith.index_cast %arg17 : i32 to index
      %c0_21 = arith.constant 0 : index
      %c0_22 = arith.constant 0 : index
      %24 = vector.load %arg8[%23, %c0_21, %c0_22] : memref<8x64x64xbf16, #tpu.memory_space<vmem>>, vector<1x64x64xbf16>
      %25 = vector.shape_cast %24 : vector<1x64x64xbf16> to vector<64x64xbf16>
      %26 = arith.index_cast %arg17 : i32 to index
      %c0_23 = arith.constant 0 : index
      %c0_24 = arith.constant 0 : index
      %27 = vector.load %arg9[%26, %c0_23, %c0_24] : memref<8x1x64xf32, #tpu.memory_space<vmem>>, vector<1x1x64xf32>
      %28 = vector.shape_cast %27 : vector<1x1x64xf32> to vector<1x64xf32>
      %29 = arith.index_cast %arg17 : i32 to index
      %c0_25 = arith.constant 0 : index
      %c0_26 = arith.constant 0 : index
      %30 = vector.load %arg10[%29, %c0_25, %c0_26] : memref<8x64x64xbf16, #tpu.memory_space<vmem>>, vector<1x64x64xbf16>
      %31 = vector.shape_cast %30 : vector<1x64x64xbf16> to vector<64x64xbf16>
      %32 = arith.index_cast %arg17 : i32 to index
      %c0_27 = arith.constant 0 : index
      %c0_28 = arith.constant 0 : index
      %33 = vector.load %arg11[%32, %c0_27, %c0_28] : memref<8x1x64xf32, #tpu.memory_space<vmem>>, vector<1x1x64xf32>
      %34 = vector.shape_cast %33 : vector<1x1x64xf32> to vector<1x64xf32>
      %35 = arith.index_cast %arg17 : i32 to index
      %c0_29 = arith.constant 0 : index
      %c0_30 = arith.constant 0 : index
      %36 = vector.load %arg12[%35, %c0_29, %c0_30] : memref<8x64x64xbf16, #tpu.memory_space<vmem>>, vector<1x64x64xbf16>
      %37 = vector.shape_cast %36 : vector<1x64x64xbf16> to vector<64x64xbf16>
      %38 = arith.index_cast %arg17 : i32 to index
      %c0_31 = arith.constant 0 : index
      %c0_32 = arith.constant 0 : index
      %39 = vector.load %arg13[%38, %c0_31, %c0_32] : memref<8x1x64xf32, #tpu.memory_space<vmem>>, vector<1x1x64xf32>
      %40 = vector.shape_cast %39 : vector<1x1x64xf32> to vector<1x64xf32>
      %cst_33 = arith.constant dense<0.000000e+00> : vector<128xf32>
      %41 = vector.multi_reduction <add>, %arg18, %cst_33 [1] : vector<128x64xf32> to vector<128xf32>
      %42 = vector.shape_cast %41 : vector<128xf32> to vector<128x1xf32>
      %cst_34 = arith.constant 6.400000e+01 : f32
      %43 = vector.broadcast %cst_34 : f32 to vector<128x1xf32>
      %44 = arith.divf %42, %43 : vector<128x1xf32>
      %45 = vector.broadcast %44 : vector<128x1xf32> to vector<128x64xf32>
      %46 = arith.subf %arg18, %45 : vector<128x64xf32>
      %47 = arith.mulf %46, %46 : vector<128x64xf32>
      %cst_35 = arith.constant dense<0.000000e+00> : vector<128xf32>
      %48 = vector.multi_reduction <add>, %47, %cst_35 [1] : vector<128x64xf32> to vector<128xf32>
      %49 = vector.shape_cast %48 : vector<128xf32> to vector<128x1xf32>
      %cst_36 = arith.constant 6.400000e+01 : f32
      %50 = vector.broadcast %cst_36 : f32 to vector<128x1xf32>
      %51 = arith.divf %49, %50 : vector<128x1xf32>
      %cst_37 = arith.constant 9.99999997E-7 : f32
      %52 = vector.broadcast %cst_37 : f32 to vector<128x1xf32>
      %53 = arith.addf %51, %52 : vector<128x1xf32>
      %54 = math.rsqrt %53 : vector<128x1xf32>
      %55 = vector.broadcast %54 : vector<128x1xf32> to vector<128x64xf32>
      %56 = arith.mulf %46, %55 : vector<128x64xf32>
      %57 = arith.truncf %56 : vector<128x64xf32> to vector<128x64xbf16>
      %cst_38 = arith.constant dense<0.000000e+00> : vector<128x192xf32>
      %58 = tpu.matmul %57, %19, %cst_38 {dimension_numbers = #tpu.dot_dimension_numbers<[1], [0], [0], [1], [0, 0, 1, 1], [], []>} : vector<128x64xbf16>, vector<64x192xbf16>, vector<128x192xf32> -> vector<128x192xf32>
      %59 = vector.broadcast %22 : vector<1x192xf32> to vector<128x192xf32>
      %60 = arith.addf %58, %59 : vector<128x192xf32>
      %61 = vector.extract_strided_slice %60 {offsets = [0, 0], sizes = [128, 16], strides = [1, 1]} : vector<128x192xf32> to vector<128x16xf32>
      %62 = arith.truncf %61 : vector<128x16xf32> to vector<128x16xbf16>
      %63 = vector.extract_strided_slice %60 {offsets = [0, 16], sizes = [128, 16], strides = [1, 1]} : vector<128x192xf32> to vector<128x16xf32>
      %64 = arith.truncf %63 : vector<128x16xf32> to vector<128x16xbf16>
      %65 = vector.extract_strided_slice %60 {offsets = [0, 32], sizes = [128, 16], strides = [1, 1]} : vector<128x192xf32> to vector<128x16xf32>
      %66 = arith.truncf %65 : vector<128x16xf32> to vector<128x16xbf16>
      %cst_39 = arith.constant dense<0.000000e+00> : vector<128x128xf32>
      %67 = tpu.matmul %62, %64, %cst_39 {dimension_numbers = #tpu.dot_dimension_numbers<[1], [1], [0], [0], [0, 0, 1, 0], [], []>} : vector<128x16xbf16>, vector<128x16xbf16>, vector<128x128xf32> -> vector<128x128xf32>
      %68 = arith.addf %67, %6 : vector<128x128xf32>
      %cst_40 = arith.constant dense<0xFF800000> : vector<128xf32>
      %69 = vector.multi_reduction <maximumf>, %68, %cst_40 [1] : vector<128x128xf32> to vector<128xf32>
      %70 = vector.shape_cast %69 : vector<128xf32> to vector<128x1xf32>
      %71 = vector.broadcast %70 : vector<128x1xf32> to vector<128x128xf32>
      %72 = arith.subf %68, %71 : vector<128x128xf32>
      %73 = math.exp %72 : vector<128x128xf32>
      %cst_41 = arith.constant dense<0.000000e+00> : vector<128xf32>
      %74 = vector.multi_reduction <add>, %73, %cst_41 [1] : vector<128x128xf32> to vector<128xf32>
      %75 = vector.shape_cast %74 : vector<128xf32> to vector<128x1xf32>
      %76 = tpu.reciprocal %75 {approx = true} : vector<128x1xf32> -> vector<128x1xf32>
      %77 = vector.broadcast %76 : vector<128x1xf32> to vector<128x128xf32>
      %78 = arith.mulf %73, %77 : vector<128x128xf32>
      %79 = arith.truncf %78 : vector<128x128xf32> to vector<128x128xbf16>
      %cst_42 = arith.constant dense<0.000000e+00> : vector<128x16xf32>
      %80 = tpu.matmul %79, %66, %cst_42 {dimension_numbers = #tpu.dot_dimension_numbers<[1], [0], [0], [1], [0, 0, 1, 1], [], []>} : vector<128x128xbf16>, vector<128x16xbf16>, vector<128x16xf32> -> vector<128x16xf32>
      %81 = vector.extract_strided_slice %60 {offsets = [0, 48], sizes = [128, 16], strides = [1, 1]} : vector<128x192xf32> to vector<128x16xf32>
      %82 = arith.truncf %81 : vector<128x16xf32> to vector<128x16xbf16>
      %83 = vector.extract_strided_slice %60 {offsets = [0, 64], sizes = [128, 16], strides = [1, 1]} : vector<128x192xf32> to vector<128x16xf32>
      %84 = arith.truncf %83 : vector<128x16xf32> to vector<128x16xbf16>
      %85 = vector.extract_strided_slice %60 {offsets = [0, 80], sizes = [128, 16], strides = [1, 1]} : vector<128x192xf32> to vector<128x16xf32>
      %86 = arith.truncf %85 : vector<128x16xf32> to vector<128x16xbf16>
      %cst_43 = arith.constant dense<0.000000e+00> : vector<128x128xf32>
      %87 = tpu.matmul %82, %84, %cst_43 {dimension_numbers = #tpu.dot_dimension_numbers<[1], [1], [0], [0], [0, 0, 1, 0], [], []>} : vector<128x16xbf16>, vector<128x16xbf16>, vector<128x128xf32> -> vector<128x128xf32>
      %88 = arith.addf %87, %6 : vector<128x128xf32>
      %cst_44 = arith.constant dense<0xFF800000> : vector<128xf32>
      %89 = vector.multi_reduction <maximumf>, %88, %cst_44 [1] : vector<128x128xf32> to vector<128xf32>
      %90 = vector.shape_cast %89 : vector<128xf32> to vector<128x1xf32>
      %91 = vector.broadcast %90 : vector<128x1xf32> to vector<128x128xf32>
      %92 = arith.subf %88, %91 : vector<128x128xf32>
      %93 = math.exp %92 : vector<128x128xf32>
      %cst_45 = arith.constant dense<0.000000e+00> : vector<128xf32>
      %94 = vector.multi_reduction <add>, %93, %cst_45 [1] : vector<128x128xf32> to vector<128xf32>
      %95 = vector.shape_cast %94 : vector<128xf32> to vector<128x1xf32>
      %96 = tpu.reciprocal %95 {approx = true} : vector<128x1xf32> -> vector<128x1xf32>
      %97 = vector.broadcast %96 : vector<128x1xf32> to vector<128x128xf32>
      %98 = arith.mulf %93, %97 : vector<128x128xf32>
      %99 = arith.truncf %98 : vector<128x128xf32> to vector<128x128xbf16>
      %cst_46 = arith.constant dense<0.000000e+00> : vector<128x16xf32>
      %100 = tpu.matmul %99, %86, %cst_46 {dimension_numbers = #tpu.dot_dimension_numbers<[1], [0], [0], [1], [0, 0, 1, 1], [], []>} : vector<128x128xbf16>, vector<128x16xbf16>, vector<128x16xf32> -> vector<128x16xf32>
      %101 = vector.extract_strided_slice %60 {offsets = [0, 96], sizes = [128, 16], strides = [1, 1]} : vector<128x192xf32> to vector<128x16xf32>
      %102 = arith.truncf %101 : vector<128x16xf32> to vector<128x16xbf16>
      %103 = vector.extract_strided_slice %60 {offsets = [0, 112], sizes = [128, 16], strides = [1, 1]} : vector<128x192xf32> to vector<128x16xf32>
      %104 = arith.truncf %103 : vector<128x16xf32> to vector<128x16xbf16>
      %105 = vector.extract_strided_slice %60 {offsets = [0, 128], sizes = [128, 16], strides = [1, 1]} : vector<128x192xf32> to vector<128x16xf32>
      %106 = arith.truncf %105 : vector<128x16xf32> to vector<128x16xbf16>
      %cst_47 = arith.constant dense<0.000000e+00> : vector<128x128xf32>
      %107 = tpu.matmul %102, %104, %cst_47 {dimension_numbers = #tpu.dot_dimension_numbers<[1], [1], [0], [0], [0, 0, 1, 0], [], []>} : vector<128x16xbf16>, vector<128x16xbf16>, vector<128x128xf32> -> vector<128x128xf32>
      %108 = arith.addf %107, %6 : vector<128x128xf32>
      %cst_48 = arith.constant dense<0xFF800000> : vector<128xf32>
      %109 = vector.multi_reduction <maximumf>, %108, %cst_48 [1] : vector<128x128xf32> to vector<128xf32>
      %110 = vector.shape_cast %109 : vector<128xf32> to vector<128x1xf32>
      %111 = vector.broadcast %110 : vector<128x1xf32> to vector<128x128xf32>
      %112 = arith.subf %108, %111 : vector<128x128xf32>
      %113 = math.exp %112 : vector<128x128xf32>
      %cst_49 = arith.constant dense<0.000000e+00> : vector<128xf32>
      %114 = vector.multi_reduction <add>, %113, %cst_49 [1] : vector<128x128xf32> to vector<128xf32>
      %115 = vector.shape_cast %114 : vector<128xf32> to vector<128x1xf32>
      %116 = tpu.reciprocal %115 {approx = true} : vector<128x1xf32> -> vector<128x1xf32>
      %117 = vector.broadcast %116 : vector<128x1xf32> to vector<128x128xf32>
      %118 = arith.mulf %113, %117 : vector<128x128xf32>
      %119 = arith.truncf %118 : vector<128x128xf32> to vector<128x128xbf16>
      %cst_50 = arith.constant dense<0.000000e+00> : vector<128x16xf32>
      %120 = tpu.matmul %119, %106, %cst_50 {dimension_numbers = #tpu.dot_dimension_numbers<[1], [0], [0], [1], [0, 0, 1, 1], [], []>} : vector<128x128xbf16>, vector<128x16xbf16>, vector<128x16xf32> -> vector<128x16xf32>
      %121 = vector.extract_strided_slice %60 {offsets = [0, 144], sizes = [128, 16], strides = [1, 1]} : vector<128x192xf32> to vector<128x16xf32>
      %122 = arith.truncf %121 : vector<128x16xf32> to vector<128x16xbf16>
      %123 = vector.extract_strided_slice %60 {offsets = [0, 160], sizes = [128, 16], strides = [1, 1]} : vector<128x192xf32> to vector<128x16xf32>
      %124 = arith.truncf %123 : vector<128x16xf32> to vector<128x16xbf16>
      %125 = vector.extract_strided_slice %60 {offsets = [0, 176], sizes = [128, 16], strides = [1, 1]} : vector<128x192xf32> to vector<128x16xf32>
      %126 = arith.truncf %125 : vector<128x16xf32> to vector<128x16xbf16>
      %cst_51 = arith.constant dense<0.000000e+00> : vector<128x128xf32>
      %127 = tpu.matmul %122, %124, %cst_51 {dimension_numbers = #tpu.dot_dimension_numbers<[1], [1], [0], [0], [0, 0, 1, 0], [], []>} : vector<128x16xbf16>, vector<128x16xbf16>, vector<128x128xf32> -> vector<128x128xf32>
      %128 = arith.addf %127, %6 : vector<128x128xf32>
      %cst_52 = arith.constant dense<0xFF800000> : vector<128xf32>
      %129 = vector.multi_reduction <maximumf>, %128, %cst_52 [1] : vector<128x128xf32> to vector<128xf32>
      %130 = vector.shape_cast %129 : vector<128xf32> to vector<128x1xf32>
      %131 = vector.broadcast %130 : vector<128x1xf32> to vector<128x128xf32>
      %132 = arith.subf %128, %131 : vector<128x128xf32>
      %133 = math.exp %132 : vector<128x128xf32>
      %cst_53 = arith.constant dense<0.000000e+00> : vector<128xf32>
      %134 = vector.multi_reduction <add>, %133, %cst_53 [1] : vector<128x128xf32> to vector<128xf32>
      %135 = vector.shape_cast %134 : vector<128xf32> to vector<128x1xf32>
      %136 = tpu.reciprocal %135 {approx = true} : vector<128x1xf32> -> vector<128x1xf32>
      %137 = vector.broadcast %136 : vector<128x1xf32> to vector<128x128xf32>
      %138 = arith.mulf %133, %137 : vector<128x128xf32>
      %139 = arith.truncf %138 : vector<128x128xf32> to vector<128x128xbf16>
      %cst_54 = arith.constant dense<0.000000e+00> : vector<128x16xf32>
      %140 = tpu.matmul %139, %126, %cst_54 {dimension_numbers = #tpu.dot_dimension_numbers<[1], [0], [0], [1], [0, 0, 1, 1], [], []>} : vector<128x128xbf16>, vector<128x16xbf16>, vector<128x16xf32> -> vector<128x16xf32>
      %141 = tpu.concatenate %80, %100, %120, %140 in 1 : vector<128x16xf32>, vector<128x16xf32>, vector<128x16xf32>, vector<128x16xf32> -> vector<128x64xf32>
      %142 = arith.truncf %141 : vector<128x64xf32> to vector<128x64xbf16>
      %cst_55 = arith.constant dense<0.000000e+00> : vector<128x64xf32>
      %143 = tpu.matmul %142, %25, %cst_55 {dimension_numbers = #tpu.dot_dimension_numbers<[1], [0], [0], [1], [0, 0, 1, 1], [], []>} : vector<128x64xbf16>, vector<64x64xbf16>, vector<128x64xf32> -> vector<128x64xf32>
      %144 = arith.addf %arg18, %143 : vector<128x64xf32>
      %145 = vector.broadcast %28 : vector<1x64xf32> to vector<128x64xf32>
      %146 = arith.addf %144, %145 : vector<128x64xf32>
      %cst_56 = arith.constant dense<0.000000e+00> : vector<128xf32>
      %147 = vector.multi_reduction <add>, %146, %cst_56 [1] : vector<128x64xf32> to vector<128xf32>
      %148 = vector.shape_cast %147 : vector<128xf32> to vector<128x1xf32>
      %cst_57 = arith.constant 6.400000e+01 : f32
      %149 = vector.broadcast %cst_57 : f32 to vector<128x1xf32>
      %150 = arith.divf %148, %149 : vector<128x1xf32>
      %151 = vector.broadcast %150 : vector<128x1xf32> to vector<128x64xf32>
      %152 = arith.subf %146, %151 : vector<128x64xf32>
      %153 = arith.mulf %152, %152 : vector<128x64xf32>
      %cst_58 = arith.constant dense<0.000000e+00> : vector<128xf32>
      %154 = vector.multi_reduction <add>, %153, %cst_58 [1] : vector<128x64xf32> to vector<128xf32>
      %155 = vector.shape_cast %154 : vector<128xf32> to vector<128x1xf32>
      %cst_59 = arith.constant 6.400000e+01 : f32
      %156 = vector.broadcast %cst_59 : f32 to vector<128x1xf32>
      %157 = arith.divf %155, %156 : vector<128x1xf32>
      %cst_60 = arith.constant 9.99999997E-7 : f32
      %158 = vector.broadcast %cst_60 : f32 to vector<128x1xf32>
      %159 = arith.addf %157, %158 : vector<128x1xf32>
      %160 = math.rsqrt %159 : vector<128x1xf32>
      %161 = vector.broadcast %160 : vector<128x1xf32> to vector<128x64xf32>
      %162 = arith.mulf %152, %161 : vector<128x64xf32>
      %163 = arith.truncf %162 : vector<128x64xf32> to vector<128x64xbf16>
      %cst_61 = arith.constant dense<0.000000e+00> : vector<128x64xf32>
      %164 = tpu.matmul %163, %31, %cst_61 {dimension_numbers = #tpu.dot_dimension_numbers<[1], [0], [0], [1], [0, 0, 1, 1], [], []>} : vector<128x64xbf16>, vector<64x64xbf16>, vector<128x64xf32> -> vector<128x64xf32>
      %165 = vector.broadcast %34 : vector<1x64xf32> to vector<128x64xf32>
      %166 = arith.addf %164, %165 : vector<128x64xf32>
      %167 = arith.mulf %166, %166 : vector<128x64xf32>
      %168 = arith.mulf %166, %167 : vector<128x64xf32>
      %cst_62 = arith.constant 4.471500e-02 : f32
      %169 = vector.broadcast %cst_62 : f32 to vector<128x64xf32>
      %170 = arith.mulf %169, %168 : vector<128x64xf32>
      %171 = arith.addf %166, %170 : vector<128x64xf32>
      %cst_63 = arith.constant 0.797884583 : f32
      %172 = vector.broadcast %cst_63 : f32 to vector<128x64xf32>
      %173 = arith.mulf %172, %171 : vector<128x64xf32>
      %174 = math.tanh %173 : vector<128x64xf32>
      %cst_64 = arith.constant 1.000000e+00 : f32
      %175 = vector.broadcast %cst_64 : f32 to vector<128x64xf32>
      %176 = arith.addf %175, %174 : vector<128x64xf32>
      %cst_65 = arith.constant 5.000000e-01 : f32
      %177 = vector.broadcast %cst_65 : f32 to vector<128x64xf32>
      %178 = arith.mulf %177, %176 : vector<128x64xf32>
      %179 = arith.mulf %166, %178 : vector<128x64xf32>
      %180 = arith.truncf %179 : vector<128x64xf32> to vector<128x64xbf16>
      %cst_66 = arith.constant dense<0.000000e+00> : vector<128x64xf32>
      %181 = tpu.matmul %180, %37, %cst_66 {dimension_numbers = #tpu.dot_dimension_numbers<[1], [0], [0], [1], [0, 0, 1, 1], [], []>} : vector<128x64xbf16>, vector<64x64xbf16>, vector<128x64xf32> -> vector<128x64xf32>
      %182 = vector.broadcast %40 : vector<1x64xf32> to vector<128x64xf32>
      %183 = arith.addf %181, %182 : vector<128x64xf32>
      %184 = arith.addf %146, %183 : vector<128x64xf32>
      %c4_i32_67 = arith.constant 4 : i32
      %185 = arith.addi %c4_i32_67, %arg17 : i32
      %186 = arith.index_cast %185 : i32 to index
      %c0_68 = arith.constant 0 : index
      %c0_69 = arith.constant 0 : index
      %187 = vector.load %arg6[%186, %c0_68, %c0_69] : memref<8x64x192xbf16, #tpu.memory_space<vmem>>, vector<1x64x192xbf16>
      %188 = vector.shape_cast %187 : vector<1x64x192xbf16> to vector<64x192xbf16>
      %189 = arith.index_cast %185 : i32 to index
      %c0_70 = arith.constant 0 : index
      %c0_71 = arith.constant 0 : index
      %190 = vector.load %arg7[%189, %c0_70, %c0_71] : memref<8x1x192xf32, #tpu.memory_space<vmem>>, vector<1x1x192xf32>
      %191 = vector.shape_cast %190 : vector<1x1x192xf32> to vector<1x192xf32>
      %192 = arith.index_cast %185 : i32 to index
      %c0_72 = arith.constant 0 : index
      %c0_73 = arith.constant 0 : index
      %193 = vector.load %arg8[%192, %c0_72, %c0_73] : memref<8x64x64xbf16, #tpu.memory_space<vmem>>, vector<1x64x64xbf16>
      %194 = vector.shape_cast %193 : vector<1x64x64xbf16> to vector<64x64xbf16>
      %195 = arith.index_cast %185 : i32 to index
      %c0_74 = arith.constant 0 : index
      %c0_75 = arith.constant 0 : index
      %196 = vector.load %arg9[%195, %c0_74, %c0_75] : memref<8x1x64xf32, #tpu.memory_space<vmem>>, vector<1x1x64xf32>
      %197 = vector.shape_cast %196 : vector<1x1x64xf32> to vector<1x64xf32>
      %198 = arith.index_cast %185 : i32 to index
      %c0_76 = arith.constant 0 : index
      %c0_77 = arith.constant 0 : index
      %199 = vector.load %arg10[%198, %c0_76, %c0_77] : memref<8x64x64xbf16, #tpu.memory_space<vmem>>, vector<1x64x64xbf16>
      %200 = vector.shape_cast %199 : vector<1x64x64xbf16> to vector<64x64xbf16>
      %201 = arith.index_cast %185 : i32 to index
      %c0_78 = arith.constant 0 : index
      %c0_79 = arith.constant 0 : index
      %202 = vector.load %arg11[%201, %c0_78, %c0_79] : memref<8x1x64xf32, #tpu.memory_space<vmem>>, vector<1x1x64xf32>
      %203 = vector.shape_cast %202 : vector<1x1x64xf32> to vector<1x64xf32>
      %204 = arith.index_cast %185 : i32 to index
      %c0_80 = arith.constant 0 : index
      %c0_81 = arith.constant 0 : index
      %205 = vector.load %arg12[%204, %c0_80, %c0_81] : memref<8x64x64xbf16, #tpu.memory_space<vmem>>, vector<1x64x64xbf16>
      %206 = vector.shape_cast %205 : vector<1x64x64xbf16> to vector<64x64xbf16>
      %207 = arith.index_cast %185 : i32 to index
      %c0_82 = arith.constant 0 : index
      %c0_83 = arith.constant 0 : index
      %208 = vector.load %arg13[%207, %c0_82, %c0_83] : memref<8x1x64xf32, #tpu.memory_space<vmem>>, vector<1x1x64xf32>
      %209 = vector.shape_cast %208 : vector<1x1x64xf32> to vector<1x64xf32>
      %cst_84 = arith.constant dense<0.000000e+00> : vector<128xf32>
      %210 = vector.multi_reduction <add>, %184, %cst_84 [1] : vector<128x64xf32> to vector<128xf32>
      %211 = vector.shape_cast %210 : vector<128xf32> to vector<128x1xf32>
      %cst_85 = arith.constant 6.400000e+01 : f32
      %212 = vector.broadcast %cst_85 : f32 to vector<128x1xf32>
      %213 = arith.divf %211, %212 : vector<128x1xf32>
      %214 = vector.broadcast %213 : vector<128x1xf32> to vector<128x64xf32>
      %215 = arith.subf %184, %214 : vector<128x64xf32>
      %216 = arith.mulf %215, %215 : vector<128x64xf32>
      %cst_86 = arith.constant dense<0.000000e+00> : vector<128xf32>
      %217 = vector.multi_reduction <add>, %216, %cst_86 [1] : vector<128x64xf32> to vector<128xf32>
      %218 = vector.shape_cast %217 : vector<128xf32> to vector<128x1xf32>
      %cst_87 = arith.constant 6.400000e+01 : f32
      %219 = vector.broadcast %cst_87 : f32 to vector<128x1xf32>
      %220 = arith.divf %218, %219 : vector<128x1xf32>
      %cst_88 = arith.constant 9.99999997E-7 : f32
      %221 = vector.broadcast %cst_88 : f32 to vector<128x1xf32>
      %222 = arith.addf %220, %221 : vector<128x1xf32>
      %223 = math.rsqrt %222 : vector<128x1xf32>
      %224 = vector.broadcast %223 : vector<128x1xf32> to vector<128x64xf32>
      %225 = arith.mulf %215, %224 : vector<128x64xf32>
      %226 = arith.truncf %225 : vector<128x64xf32> to vector<128x64xbf16>
      %cst_89 = arith.constant dense<0.000000e+00> : vector<128x192xf32>
      %227 = tpu.matmul %226, %188, %cst_89 {dimension_numbers = #tpu.dot_dimension_numbers<[1], [0], [0], [1], [0, 0, 1, 1], [], []>} : vector<128x64xbf16>, vector<64x192xbf16>, vector<128x192xf32> -> vector<128x192xf32>
      %228 = vector.broadcast %191 : vector<1x192xf32> to vector<128x192xf32>
      %229 = arith.addf %227, %228 : vector<128x192xf32>
      %230 = vector.extract_strided_slice %229 {offsets = [0, 0], sizes = [128, 16], strides = [1, 1]} : vector<128x192xf32> to vector<128x16xf32>
      %231 = arith.truncf %230 : vector<128x16xf32> to vector<128x16xbf16>
      %232 = vector.extract_strided_slice %229 {offsets = [0, 16], sizes = [128, 16], strides = [1, 1]} : vector<128x192xf32> to vector<128x16xf32>
      %233 = arith.truncf %232 : vector<128x16xf32> to vector<128x16xbf16>
      %234 = vector.extract_strided_slice %229 {offsets = [0, 32], sizes = [128, 16], strides = [1, 1]} : vector<128x192xf32> to vector<128x16xf32>
      %235 = arith.truncf %234 : vector<128x16xf32> to vector<128x16xbf16>
      %cst_90 = arith.constant dense<0.000000e+00> : vector<128x128xf32>
      %236 = tpu.matmul %231, %233, %cst_90 {dimension_numbers = #tpu.dot_dimension_numbers<[1], [1], [0], [0], [0, 0, 1, 0], [], []>} : vector<128x16xbf16>, vector<128x16xbf16>, vector<128x128xf32> -> vector<128x128xf32>
      %237 = arith.addf %236, %7 : vector<128x128xf32>
      %cst_91 = arith.constant dense<0xFF800000> : vector<128xf32>
      %238 = vector.multi_reduction <maximumf>, %237, %cst_91 [1] : vector<128x128xf32> to vector<128xf32>
      %239 = vector.shape_cast %238 : vector<128xf32> to vector<128x1xf32>
      %240 = vector.broadcast %239 : vector<128x1xf32> to vector<128x128xf32>
      %241 = arith.subf %237, %240 : vector<128x128xf32>
      %242 = math.exp %241 : vector<128x128xf32>
      %cst_92 = arith.constant dense<0.000000e+00> : vector<128xf32>
      %243 = vector.multi_reduction <add>, %242, %cst_92 [1] : vector<128x128xf32> to vector<128xf32>
      %244 = vector.shape_cast %243 : vector<128xf32> to vector<128x1xf32>
      %245 = tpu.reciprocal %244 {approx = true} : vector<128x1xf32> -> vector<128x1xf32>
      %246 = vector.broadcast %245 : vector<128x1xf32> to vector<128x128xf32>
      %247 = arith.mulf %242, %246 : vector<128x128xf32>
      %248 = arith.truncf %247 : vector<128x128xf32> to vector<128x128xbf16>
      %cst_93 = arith.constant dense<0.000000e+00> : vector<128x16xf32>
      %249 = tpu.matmul %248, %235, %cst_93 {dimension_numbers = #tpu.dot_dimension_numbers<[1], [0], [0], [1], [0, 0, 1, 1], [], []>} : vector<128x128xbf16>, vector<128x16xbf16>, vector<128x16xf32> -> vector<128x16xf32>
      %250 = vector.extract_strided_slice %229 {offsets = [0, 48], sizes = [128, 16], strides = [1, 1]} : vector<128x192xf32> to vector<128x16xf32>
      %251 = arith.truncf %250 : vector<128x16xf32> to vector<128x16xbf16>
      %252 = vector.extract_strided_slice %229 {offsets = [0, 64], sizes = [128, 16], strides = [1, 1]} : vector<128x192xf32> to vector<128x16xf32>
      %253 = arith.truncf %252 : vector<128x16xf32> to vector<128x16xbf16>
      %254 = vector.extract_strided_slice %229 {offsets = [0, 80], sizes = [128, 16], strides = [1, 1]} : vector<128x192xf32> to vector<128x16xf32>
      %255 = arith.truncf %254 : vector<128x16xf32> to vector<128x16xbf16>
      %cst_94 = arith.constant dense<0.000000e+00> : vector<128x128xf32>
      %256 = tpu.matmul %251, %253, %cst_94 {dimension_numbers = #tpu.dot_dimension_numbers<[1], [1], [0], [0], [0, 0, 1, 0], [], []>} : vector<128x16xbf16>, vector<128x16xbf16>, vector<128x128xf32> -> vector<128x128xf32>
      %257 = arith.addf %256, %7 : vector<128x128xf32>
      %cst_95 = arith.constant dense<0xFF800000> : vector<128xf32>
      %258 = vector.multi_reduction <maximumf>, %257, %cst_95 [1] : vector<128x128xf32> to vector<128xf32>
      %259 = vector.shape_cast %258 : vector<128xf32> to vector<128x1xf32>
      %260 = vector.broadcast %259 : vector<128x1xf32> to vector<128x128xf32>
      %261 = arith.subf %257, %260 : vector<128x128xf32>
      %262 = math.exp %261 : vector<128x128xf32>
      %cst_96 = arith.constant dense<0.000000e+00> : vector<128xf32>
      %263 = vector.multi_reduction <add>, %262, %cst_96 [1] : vector<128x128xf32> to vector<128xf32>
      %264 = vector.shape_cast %263 : vector<128xf32> to vector<128x1xf32>
      %265 = tpu.reciprocal %264 {approx = true} : vector<128x1xf32> -> vector<128x1xf32>
      %266 = vector.broadcast %265 : vector<128x1xf32> to vector<128x128xf32>
      %267 = arith.mulf %262, %266 : vector<128x128xf32>
      %268 = arith.truncf %267 : vector<128x128xf32> to vector<128x128xbf16>
      %cst_97 = arith.constant dense<0.000000e+00> : vector<128x16xf32>
      %269 = tpu.matmul %268, %255, %cst_97 {dimension_numbers = #tpu.dot_dimension_numbers<[1], [0], [0], [1], [0, 0, 1, 1], [], []>} : vector<128x128xbf16>, vector<128x16xbf16>, vector<128x16xf32> -> vector<128x16xf32>
      %270 = vector.extract_strided_slice %229 {offsets = [0, 96], sizes = [128, 16], strides = [1, 1]} : vector<128x192xf32> to vector<128x16xf32>
      %271 = arith.truncf %270 : vector<128x16xf32> to vector<128x16xbf16>
      %272 = vector.extract_strided_slice %229 {offsets = [0, 112], sizes = [128, 16], strides = [1, 1]} : vector<128x192xf32> to vector<128x16xf32>
      %273 = arith.truncf %272 : vector<128x16xf32> to vector<128x16xbf16>
      %274 = vector.extract_strided_slice %229 {offsets = [0, 128], sizes = [128, 16], strides = [1, 1]} : vector<128x192xf32> to vector<128x16xf32>
      %275 = arith.truncf %274 : vector<128x16xf32> to vector<128x16xbf16>
      %cst_98 = arith.constant dense<0.000000e+00> : vector<128x128xf32>
      %276 = tpu.matmul %271, %273, %cst_98 {dimension_numbers = #tpu.dot_dimension_numbers<[1], [1], [0], [0], [0, 0, 1, 0], [], []>} : vector<128x16xbf16>, vector<128x16xbf16>, vector<128x128xf32> -> vector<128x128xf32>
      %277 = arith.addf %276, %7 : vector<128x128xf32>
      %cst_99 = arith.constant dense<0xFF800000> : vector<128xf32>
      %278 = vector.multi_reduction <maximumf>, %277, %cst_99 [1] : vector<128x128xf32> to vector<128xf32>
      %279 = vector.shape_cast %278 : vector<128xf32> to vector<128x1xf32>
      %280 = vector.broadcast %279 : vector<128x1xf32> to vector<128x128xf32>
      %281 = arith.subf %277, %280 : vector<128x128xf32>
      %282 = math.exp %281 : vector<128x128xf32>
      %cst_100 = arith.constant dense<0.000000e+00> : vector<128xf32>
      %283 = vector.multi_reduction <add>, %282, %cst_100 [1] : vector<128x128xf32> to vector<128xf32>
      %284 = vector.shape_cast %283 : vector<128xf32> to vector<128x1xf32>
      %285 = tpu.reciprocal %284 {approx = true} : vector<128x1xf32> -> vector<128x1xf32>
      %286 = vector.broadcast %285 : vector<128x1xf32> to vector<128x128xf32>
      %287 = arith.mulf %282, %286 : vector<128x128xf32>
      %288 = arith.truncf %287 : vector<128x128xf32> to vector<128x128xbf16>
      %cst_101 = arith.constant dense<0.000000e+00> : vector<128x16xf32>
      %289 = tpu.matmul %288, %275, %cst_101 {dimension_numbers = #tpu.dot_dimension_numbers<[1], [0], [0], [1], [0, 0, 1, 1], [], []>} : vector<128x128xbf16>, vector<128x16xbf16>, vector<128x16xf32> -> vector<128x16xf32>
      %290 = vector.extract_strided_slice %229 {offsets = [0, 144], sizes = [128, 16], strides = [1, 1]} : vector<128x192xf32> to vector<128x16xf32>
      %291 = arith.truncf %290 : vector<128x16xf32> to vector<128x16xbf16>
      %292 = vector.extract_strided_slice %229 {offsets = [0, 160], sizes = [128, 16], strides = [1, 1]} : vector<128x192xf32> to vector<128x16xf32>
      %293 = arith.truncf %292 : vector<128x16xf32> to vector<128x16xbf16>
      %294 = vector.extract_strided_slice %229 {offsets = [0, 176], sizes = [128, 16], strides = [1, 1]} : vector<128x192xf32> to vector<128x16xf32>
      %295 = arith.truncf %294 : vector<128x16xf32> to vector<128x16xbf16>
      %cst_102 = arith.constant dense<0.000000e+00> : vector<128x128xf32>
      %296 = tpu.matmul %291, %293, %cst_102 {dimension_numbers = #tpu.dot_dimension_numbers<[1], [1], [0], [0], [0, 0, 1, 0], [], []>} : vector<128x16xbf16>, vector<128x16xbf16>, vector<128x128xf32> -> vector<128x128xf32>
      %297 = arith.addf %296, %7 : vector<128x128xf32>
      %cst_103 = arith.constant dense<0xFF800000> : vector<128xf32>
      %298 = vector.multi_reduction <maximumf>, %297, %cst_103 [1] : vector<128x128xf32> to vector<128xf32>
      %299 = vector.shape_cast %298 : vector<128xf32> to vector<128x1xf32>
      %300 = vector.broadcast %299 : vector<128x1xf32> to vector<128x128xf32>
      %301 = arith.subf %297, %300 : vector<128x128xf32>
      %302 = math.exp %301 : vector<128x128xf32>
      %cst_104 = arith.constant dense<0.000000e+00> : vector<128xf32>
      %303 = vector.multi_reduction <add>, %302, %cst_104 [1] : vector<128x128xf32> to vector<128xf32>
      %304 = vector.shape_cast %303 : vector<128xf32> to vector<128x1xf32>
      %305 = tpu.reciprocal %304 {approx = true} : vector<128x1xf32> -> vector<128x1xf32>
      %306 = vector.broadcast %305 : vector<128x1xf32> to vector<128x128xf32>
      %307 = arith.mulf %302, %306 : vector<128x128xf32>
      %308 = arith.truncf %307 : vector<128x128xf32> to vector<128x128xbf16>
      %cst_105 = arith.constant dense<0.000000e+00> : vector<128x16xf32>
      %309 = tpu.matmul %308, %295, %cst_105 {dimension_numbers = #tpu.dot_dimension_numbers<[1], [0], [0], [1], [0, 0, 1, 1], [], []>} : vector<128x128xbf16>, vector<128x16xbf16>, vector<128x16xf32> -> vector<128x16xf32>
      %310 = tpu.concatenate %249, %269, %289, %309 in 1 : vector<128x16xf32>, vector<128x16xf32>, vector<128x16xf32>, vector<128x16xf32> -> vector<128x64xf32>
      %311 = arith.truncf %310 : vector<128x64xf32> to vector<128x64xbf16>
      %cst_106 = arith.constant dense<0.000000e+00> : vector<128x64xf32>
      %312 = tpu.matmul %311, %194, %cst_106 {dimension_numbers = #tpu.dot_dimension_numbers<[1], [0], [0], [1], [0, 0, 1, 1], [], []>} : vector<128x64xbf16>, vector<64x64xbf16>, vector<128x64xf32> -> vector<128x64xf32>
      %313 = arith.addf %184, %312 : vector<128x64xf32>
      %314 = vector.broadcast %197 : vector<1x64xf32> to vector<128x64xf32>
      %315 = arith.addf %313, %314 : vector<128x64xf32>
      %cst_107 = arith.constant dense<0.000000e+00> : vector<128xf32>
      %316 = vector.multi_reduction <add>, %315, %cst_107 [1] : vector<128x64xf32> to vector<128xf32>
      %317 = vector.shape_cast %316 : vector<128xf32> to vector<128x1xf32>
      %cst_108 = arith.constant 6.400000e+01 : f32
      %318 = vector.broadcast %cst_108 : f32 to vector<128x1xf32>
      %319 = arith.divf %317, %318 : vector<128x1xf32>
      %320 = vector.broadcast %319 : vector<128x1xf32> to vector<128x64xf32>
      %321 = arith.subf %315, %320 : vector<128x64xf32>
      %322 = arith.mulf %321, %321 : vector<128x64xf32>
      %cst_109 = arith.constant dense<0.000000e+00> : vector<128xf32>
      %323 = vector.multi_reduction <add>, %322, %cst_109 [1] : vector<128x64xf32> to vector<128xf32>
      %324 = vector.shape_cast %323 : vector<128xf32> to vector<128x1xf32>
      %cst_110 = arith.constant 6.400000e+01 : f32
      %325 = vector.broadcast %cst_110 : f32 to vector<128x1xf32>
      %326 = arith.divf %324, %325 : vector<128x1xf32>
      %cst_111 = arith.constant 9.99999997E-7 : f32
      %327 = vector.broadcast %cst_111 : f32 to vector<128x1xf32>
      %328 = arith.addf %326, %327 : vector<128x1xf32>
      %329 = math.rsqrt %328 : vector<128x1xf32>
      %330 = vector.broadcast %329 : vector<128x1xf32> to vector<128x64xf32>
      %331 = arith.mulf %321, %330 : vector<128x64xf32>
      %332 = arith.truncf %331 : vector<128x64xf32> to vector<128x64xbf16>
      %cst_112 = arith.constant dense<0.000000e+00> : vector<128x64xf32>
      %333 = tpu.matmul %332, %200, %cst_112 {dimension_numbers = #tpu.dot_dimension_numbers<[1], [0], [0], [1], [0, 0, 1, 1], [], []>} : vector<128x64xbf16>, vector<64x64xbf16>, vector<128x64xf32> -> vector<128x64xf32>
      %334 = vector.broadcast %203 : vector<1x64xf32> to vector<128x64xf32>
      %335 = arith.addf %333, %334 : vector<128x64xf32>
      %336 = arith.mulf %335, %335 : vector<128x64xf32>
      %337 = arith.mulf %335, %336 : vector<128x64xf32>
      %cst_113 = arith.constant 4.471500e-02 : f32
      %338 = vector.broadcast %cst_113 : f32 to vector<128x64xf32>
      %339 = arith.mulf %338, %337 : vector<128x64xf32>
      %340 = arith.addf %335, %339 : vector<128x64xf32>
      %cst_114 = arith.constant 0.797884583 : f32
      %341 = vector.broadcast %cst_114 : f32 to vector<128x64xf32>
      %342 = arith.mulf %341, %340 : vector<128x64xf32>
      %343 = math.tanh %342 : vector<128x64xf32>
      %cst_115 = arith.constant 1.000000e+00 : f32
      %344 = vector.broadcast %cst_115 : f32 to vector<128x64xf32>
      %345 = arith.addf %344, %343 : vector<128x64xf32>
      %cst_116 = arith.constant 5.000000e-01 : f32
      %346 = vector.broadcast %cst_116 : f32 to vector<128x64xf32>
      %347 = arith.mulf %346, %345 : vector<128x64xf32>
      %348 = arith.mulf %335, %347 : vector<128x64xf32>
      %349 = arith.truncf %348 : vector<128x64xf32> to vector<128x64xbf16>
      %cst_117 = arith.constant dense<0.000000e+00> : vector<128x64xf32>
      %350 = tpu.matmul %349, %206, %cst_117 {dimension_numbers = #tpu.dot_dimension_numbers<[1], [0], [0], [1], [0, 0, 1, 1], [], []>} : vector<128x64xbf16>, vector<64x64xbf16>, vector<128x64xf32> -> vector<128x64xf32>
      %351 = vector.broadcast %209 : vector<1x64xf32> to vector<128x64xf32>
      %352 = arith.addf %350, %351 : vector<128x64xf32>
      %353 = arith.addf %315, %352 : vector<128x64xf32>
      scf.yield %353 : vector<128x64xf32>
    }
    %c4_i32_9 = arith.constant 4 : i32
    %10 = arith.truncf %9 : vector<128x64xf32> to vector<128x64xbf16>
    %c0_10 = arith.constant 0 : index
    %c0_11 = arith.constant 0 : index
    %11 = vector.load %arg14[%c0_10, %c0_11] : memref<64x128xbf16, #tpu.memory_space<vmem>>, vector<64x128xbf16>
    %cst_12 = arith.constant dense<0.000000e+00> : vector<128x128xf32>
    %12 = tpu.matmul %10, %11, %cst_12 {dimension_numbers = #tpu.dot_dimension_numbers<[1], [0], [0], [1], [0, 0, 1, 1], [], []>} : vector<128x64xbf16>, vector<64x128xbf16>, vector<128x128xf32> -> vector<128x128xf32>
    %c0_13 = arith.constant 0 : index
    %c0_14 = arith.constant 0 : index
    %13 = vector.load %arg15[%c0_13, %c0_14] : memref<1x128xf32, #tpu.memory_space<vmem>>, vector<1x128xf32>
    %14 = vector.broadcast %13 : vector<1x128xf32> to vector<128x128xf32>
    %15 = arith.addf %12, %14 : vector<128x128xf32>
    %c0_15 = arith.constant 0 : index
    %c0_16 = arith.constant 0 : index
    %16 = vector.load %arg16[%c0_15, %c0_16] : memref<128x128xf32, #tpu.memory_space<vmem>>, vector<128x128xf32>
    tpu.vector_store %arg16[%c0_15, %c0_16], %15 {strides = array<i32>} : memref<128x128xf32, #tpu.memory_space<vmem>>, vector<128x128xf32>,
    return
  }
  func.func @transform_0(%arg0: i32) -> (i32, i32) {
    %c0_i32 = arith.constant 0 : i32
    %c0_i32_0 = arith.constant 0 : i32
    %c0_i32_1 = arith.constant 0 : i32
    return %c0_i32, %c0_i32_0 : i32, i32
  }
  func.func @transform_1(%arg0: i32) -> (i32, i32) {
    %c0_i32 = arith.constant 0 : i32
    %c0_i32_0 = arith.constant 0 : i32
    %c0_i32_1 = arith.constant 0 : i32
    return %c0_i32, %c0_i32_0 : i32, i32
  }
  func.func @transform_2(%arg0: i32) -> (i32, i32) {
    %c0_i32 = arith.constant 0 : i32
    %c0_i32_0 = arith.constant 0 : i32
    %c0_i32_1 = arith.constant 0 : i32
    return %c0_i32, %c0_i32_0 : i32, i32
  }
  func.func @transform_3(%arg0: i32) -> (i32, i32) {
    %c0_i32 = arith.constant 0 : i32
    %c0_i32_0 = arith.constant 0 : i32
    %c0_i32_1 = arith.constant 0 : i32
    return %c0_i32, %c0_i32_0 : i32, i32
  }
  func.func @transform_4(%arg0: i32) -> (i32, i32) {
    %c0_i32 = arith.constant 0 : i32
    %c0_i32_0 = arith.constant 0 : i32
    %c0_i32_1 = arith.constant 0 : i32
    return %c0_i32, %c0_i32_0 : i32, i32
  }
  func.func @transform_5(%arg0: i32) -> (i32, i32, i32) {
    %c0_i32 = arith.constant 0 : i32
    %c0_i32_0 = arith.constant 0 : i32
    %c0_i32_1 = arith.constant 0 : i32
    %c0_i32_2 = arith.constant 0 : i32
    return %c0_i32, %c0_i32_0, %c0_i32_1 : i32, i32, i32
  }
  func.func @transform_6(%arg0: i32) -> (i32, i32, i32) {
    %c0_i32 = arith.constant 0 : i32
    %c0_i32_0 = arith.constant 0 : i32
    %c0_i32_1 = arith.constant 0 : i32
    %c0_i32_2 = arith.constant 0 : i32
    return %c0_i32, %c0_i32_0, %c0_i32_1 : i32, i32, i32
  }
  func.func @transform_7(%arg0: i32) -> (i32, i32, i32) {
    %c0_i32 = arith.constant 0 : i32
    %c0_i32_0 = arith.constant 0 : i32
    %c0_i32_1 = arith.constant 0 : i32
    %c0_i32_2 = arith.constant 0 : i32
    return %c0_i32, %c0_i32_0, %c0_i32_1 : i32, i32, i32
  }
  func.func @transform_8(%arg0: i32) -> (i32, i32, i32) {
    %c0_i32 = arith.constant 0 : i32
    %c0_i32_0 = arith.constant 0 : i32
    %c0_i32_1 = arith.constant 0 : i32
    %c0_i32_2 = arith.constant 0 : i32
    return %c0_i32, %c0_i32_0, %c0_i32_1 : i32, i32, i32
  }
  func.func @transform_9(%arg0: i32) -> (i32, i32, i32) {
    %c0_i32 = arith.constant 0 : i32
    %c0_i32_0 = arith.constant 0 : i32
    %c0_i32_1 = arith.constant 0 : i32
    %c0_i32_2 = arith.constant 0 : i32
    return %c0_i32, %c0_i32_0, %c0_i32_1 : i32, i32, i32
  }
  func.func @transform_10(%arg0: i32) -> (i32, i32, i32) {
    %c0_i32 = arith.constant 0 : i32
    %c0_i32_0 = arith.constant 0 : i32
    %c0_i32_1 = arith.constant 0 : i32
    %c0_i32_2 = arith.constant 0 : i32
    return %c0_i32, %c0_i32_0, %c0_i32_1 : i32, i32, i32
  }
  func.func @transform_11(%arg0: i32) -> (i32, i32, i32) {
    %c0_i32 = arith.constant 0 : i32
    %c0_i32_0 = arith.constant 0 : i32
    %c0_i32_1 = arith.constant 0 : i32
    %c0_i32_2 = arith.constant 0 : i32
    return %c0_i32, %c0_i32_0, %c0_i32_1 : i32, i32, i32
  }
  func.func @transform_12(%arg0: i32) -> (i32, i32, i32) {
    %c0_i32 = arith.constant 0 : i32
    %c0_i32_0 = arith.constant 0 : i32
    %c0_i32_1 = arith.constant 0 : i32
    %c0_i32_2 = arith.constant 0 : i32
    return %c0_i32, %c0_i32_0, %c0_i32_1 : i32, i32, i32
  }
  func.func @transform_13(%arg0: i32) -> (i32, i32) {
    %c0_i32 = arith.constant 0 : i32
    %c0_i32_0 = arith.constant 0 : i32
    %c0_i32_1 = arith.constant 0 : i32
    return %c0_i32, %c0_i32_0 : i32, i32
  }
  func.func @transform_14(%arg0: i32) -> (i32, i32) {
    %c0_i32 = arith.constant 0 : i32
    %c0_i32_0 = arith.constant 0 : i32
    %c0_i32_1 = arith.constant 0 : i32
    return %c0_i32, %c0_i32_0 : i32, i32
  }
  func.func @transform_15(%arg0: i32) -> (i32, i32) {
    %c0_i32 = arith.constant 0 : i32
    %c0_i32_0 = arith.constant 0 : i32
    %c0_i32_1 = arith.constant 0 : i32
    return %c0_i32, %c0_i32_0 : i32, i32
  }
}

</mosaic_0001>

<bundles_post_ra>
// kernel: efficient_update_former.1
= control target key start
LH: loop header
LB: loop body
LE: loop exit
PB: predicated region body
PF: predicated region fallthrough
CT: control target
= control target key end

     0   :  { %s13323_s3 = inlined_call_operand.vmem [shape: bf16[256,64], index: 3, kind: input, shape index: {}]   ;;  %s13324_s5 = inlined_call_operand.vmem [shape: bf16[8,64,192], index: 5, kind: input, shape index: {}]   ;;  %s13325_s6 = inlined_call_operand.vmem [shape: f32[8,1,192], index: 6, kind: input, shape index: {}]   ;;  %s13326_s7 = inlined_call_operand.vmem [shape: bf16[8,64,64], index: 7, kind: input, shape index: {}]   ;;  %s13327_s8 = inlined_call_operand.vmem [shape: f32[8,1,64], index: 8, kind: input, shape index: {}]   ;;  %s13328_s9 = inlined_call_operand.vmem [shape: bf16[8,64,64], index: 9, kind: input, shape index: {}]   ;;  %s13329_s10 = inlined_call_operand.vmem [shape: f32[8,1,64], index: 10, kind: input, shape index: {}]   ;;  %s13330_s11 = inlined_call_operand.vmem [shape: bf16[8,64,64], index: 11, kind: input, shape index: {}]   ;;  %s13331_s12 = inlined_call_operand.vmem [shape: f32[8,1,64], index: 12, kind: input, shape index: {}]   ;;  %s13332_s13 = inlined_call_operand.vmem [shape: bf16[64,128], index: 13, kind: input, shape index: {}]   ;;  %s13333_s14 = inlined_call_operand.vmem [shape: f32[1,128], index: 14, kind: input, shape index: {}]   ;;  %s13334_s15 = inlined_call_operand.vmem [shape: f32[128,128], index: 15, kind: output, shape index: {}]   ;;  %s13335_s4 = inlined_call_operand.vmem [shape: f32[1,64], index: 4, kind: input, shape index: {}]   ;;  %s13336_s0 = inlined_call_operand.vmem [shape: bf16[128,256], index: 0, kind: input, shape index: {}]   ;;  %s13337_s1 = inlined_call_operand.vmem [shape: f32[128,128], index: 1, kind: input, shape index: {}]   ;;  %s13338_s2 = inlined_call_operand.vmem [shape: f32[128,128], index: 2, kind: input, shape index: {}]  }
   0x1   :  { %v7383_v0 = vld [vmem:[%s13323_s3 + $0x38] sm:$0xff]  ;;  %v7382_v2 = vld [vmem:[%s13323_s3 + $0x30] sm:$0xff]  ;;  %v7381_v4 = vld [vmem:[%s13323_s3 + $0x28] sm:$0xff] }
   0x2   :  { %v7391_v1 = vld [vmem:[%s13323_s3 + $0x78] sm:$0xff]  ;;  %279 = vmatpush.bf16.msra.mxu0 %v7383_v0  ;;  %7440 = vmatpush.bf16.msra.mxu2 %v7383_v0  ;;  %v7390_v3 = vld [vmem:[%s13323_s3 + $0x70] sm:$0xff]  ;;  %v7389_v5 = vld [vmem:[%s13323_s3 + $0x68] sm:$0xff] }
   0x3   :  { %328 = vmatpush.bf16.msra.mxu1 %v7391_v1  ;;  %7448 = vmatpush.bf16.msra.mxu3 %v7391_v1  ;;  %v7380_v6 = vld [vmem:[%s13323_s3 + $0x20] sm:$0xff]  ;;  %v7379_v8 = vld [vmem:[%s13323_s3 + $0x18] sm:$0xff]  ;;  %v7378_v10 = vld [vmem:[%s13323_s3 + $0x10] sm:$0xff] }
   0x4   :  { %v7388_v7 = vld [vmem:[%s13323_s3 + $0x60] sm:$0xff]  ;;  %v7387_v9 = vld [vmem:[%s13323_s3 + $0x58] sm:$0xff]  ;;  %v7386_v11 = vld [vmem:[%s13323_s3 + $0x50] sm:$0xff] }
   0x5   :  { %v7377_v12 = vld [vmem:[%s13323_s3 + $0x8] sm:$0xff]  ;;  %v7376_v14 = vld [vmem:[%s13323_s3] sm:$0xff]  ;;  %v6866_v28 = vld [vmem:[%s13336_s0 + $0x10] sm:$0xf] }
   0x6   :  { %280 = vmatpush.bf16.msra.mxu0 %v7382_v2  ;;  %7441 = vmatpush.bf16.msra.mxu2 %v7382_v2  ;;  %v7385_v13 = vld [vmem:[%s13323_s3 + $0x48] sm:$0xff]  ;;  %v7384_v15 = vld [vmem:[%s13323_s3 + $0x40] sm:$0xff]  ;;  %v7363_v29 = vld [vmem:[%s13336_s0 + $0x14] sm:$0xf0] }
   0x7   :  { %329 = vmatpush.bf16.msra.mxu1 %v7390_v3  ;;  %7449 = vmatpush.bf16.msra.mxu3 %v7390_v3  ;;  %v6858_v16 = vld [vmem:[%s13336_s0] sm:$0xf]  ;;  %v7361_v17 = vld [vmem:[%s13336_s0 + $0x4] sm:$0xf0]  ;;  %v7360_v20 = vld [vmem:[%s13336_s0 + $0x4] sm:$0xf]  ;;  %v6867_v36 = vor.u32 %v7363_v29, %v6866_v28 }
   0x8   :  { %v6890_v18 = vld [vmem:[%s13336_s0 + $0x40] sm:$0xf]  ;;  %v7369_v19 = vld [vmem:[%s13336_s0 + $0x44] sm:$0xf0]  ;;  %v6860_v21 = vld [vmem:[%s13336_s0 + $0x8] sm:$0xf0]  ;;  %v6859_v24 = vor.u32 %v7361_v17, %v6858_v16 }
   0x9   :  { %v7368_v22 = vld [vmem:[%s13336_s0 + $0x44] sm:$0xf]  ;;  %v6892_v23 = vld [vmem:[%s13336_s0 + $0x48] sm:$0xf0]  ;;  %v6891_v25 = vor.u32 %v7369_v19, %v6890_v18  ;;  %v6863_v26 = vor.u32 %v7360_v20, %v6860_v21  ;;  %v6898_v30 = vld [vmem:[%s13336_s0 + $0x50] sm:$0xf] }
   0xa   :  { %281 = vmatpush.bf16.msra.mxu0 %v7381_v4  ;;  %7442 = vmatpush.bf16.msra.mxu2 %v7381_v4  ;;  %v6895_v27 = vor.u32 %v7368_v22, %v6892_v23  ;;  %v7371_v31 = vld [vmem:[%s13336_s0 + $0x54] sm:$0xf0]  ;;  %v7362_v32 = vld [vmem:[%s13336_s0 + $0x14] sm:$0xf]  ;;  %v6868_v33 = vld [vmem:[%s13336_s0 + $0x18] sm:$0xf0] }
   0xb   :  { %330 = vmatpush.bf16.msra.mxu1 %v7389_v5  ;;  %7450 = vmatpush.bf16.msra.mxu3 %v7389_v5  ;;  %v7370_v34 = vld [vmem:[%s13336_s0 + $0x54] sm:$0xf]  ;;  %v6900_v35 = vld [vmem:[%s13336_s0 + $0x58] sm:$0xf0]  ;;  %v6899_v37 = vor.u32 %v7371_v31, %v6898_v30  ;;  %v6871_v38 = vor.u32 %v7362_v32, %v6868_v33  ;;  %v6874_v40 = vld [vmem:[%s13336_s0 + $0x20] sm:$0xf] }
   0xc   :  { %v6903_v39 = vor.u32 %v7370_v34, %v6900_v35  ;;  %v7365_v41 = vld [vmem:[%s13336_s0 + $0x24] sm:$0xf0]  ;;  %v6906_v42 = vld [vmem:[%s13336_s0 + $0x60] sm:$0xf]  ;;  %v7364_v44 = vld [vmem:[%s13336_s0 + $0x24] sm:$0xf] }
   0xd   :  { %v7373_v43 = vld [vmem:[%s13336_s0 + $0x64] sm:$0xf0]  ;;  %v6876_v45 = vld [vmem:[%s13336_s0 + $0x28] sm:$0xf0]  ;;  %v7372_v46 = vld [vmem:[%s13336_s0 + $0x64] sm:$0xf]  ;;  %v6875_v48 = vor.u32 %v7365_v41, %v6874_v40 }
   0xe   :  { %282 = vmatpush.bf16.msra.mxu0 %v7380_v6  ;;  %7443 = vmatpush.bf16.msra.mxu2 %v7380_v6  ;;  %v6908_v47 = vld [vmem:[%s13336_s0 + $0x68] sm:$0xf0]  ;;  %v6907_v49 = vor.u32 %v7373_v43, %v6906_v42  ;;  %v6879_v50 = vor.u32 %v7364_v44, %v6876_v45  ;;  %v6882_v52 = vld [vmem:[%s13336_s0 + $0x30] sm:$0xf]  ;;  %v7367_v53 = vld [vmem:[%s13336_s0 + $0x34] sm:$0xf0] }
   0xf   :  { %331 = vmatpush.bf16.msra.mxu1 %v7388_v7  ;;  %7451 = vmatpush.bf16.msra.mxu3 %v7388_v7  ;;  %v6911_v51 = vor.u32 %v7372_v46, %v6908_v47  ;;  %v6914_v54 = vld [vmem:[%s13336_s0 + $0x70] sm:$0xf]  ;;  %v7375_v55 = vld [vmem:[%s13336_s0 + $0x74] sm:$0xf0]  ;;  %v7366_v56 = vld [vmem:[%s13336_s0 + $0x34] sm:$0xf]  ;;  %v6883_v60 = vor.u32 %v7367_v53, %v6882_v52 }
  0x10   :  { %v6884_v57 = vld [vmem:[%s13336_s0 + $0x38] sm:$0xf0]  ;;  %v7374_v58 = vld [vmem:[%s13336_s0 + $0x74] sm:$0xf]  ;;  %v6915_v61 = vor.u32 %v7375_v55, %v6914_v54  ;;  %v8945_v0 = vld [vmem:[%s13335_s4] ss:$0 sm:$0xff] }
  0x11   :  { %v6916_v59 = vld [vmem:[%s13336_s0 + $0x78] sm:$0xf0]  ;;  %v6887_v62 = vor.u32 %v7366_v56, %v6884_v57  ;;  %v8995_v40 = vld [vmem:[%s13337_s1 + $0x20] sm:$0xff]  ;;  %v9000_v41 = vld [vmem:[%s13337_s1 + $0x28] sm:$0xff] }
  0x12   :  { %283 = vmatpush.bf16.msra.mxu0 %v7379_v8  ;;  %7444 = vmatpush.bf16.msra.mxu2 %v7379_v8  ;;  %v6919_v63 = vor.u32 %v7374_v58, %v6916_v59  ;;  %13457 = vst [vmem:[#allocation6_spill] sm:$0xff] %v8995_v40  ;;  %v9007_v43 = vld [vmem:[%s13337_s1 + $0x30] sm:$0xff]  ;;  %v9012_v44 = vld [vmem:[%s13337_s1 + $0x38] sm:$0xff]  ;;  %v9017_v45 = vld [vmem:[%s13337_s1 + $0x40] sm:$0xff] }
  0x13   :  { %332 = vmatpush.bf16.msra.mxu1 %v7387_v9  ;;  %7452 = vmatpush.bf16.msra.mxu3 %v7387_v9  ;;  %13458 = vst [vmem:[#allocation7_spill] sm:$0xff] %v9000_v41  ;;  %v9022_v46 = vld [vmem:[%s13337_s1 + $0x48] sm:$0xff]  ;;  %v9027_v47 = vld [vmem:[%s13337_s1 + $0x50] sm:$0xff]  ;;  %v9052_v53 = vld [vmem:[%s13337_s1 + $0x78] sm:$0xff] }
  0x14   :  { %13459 = vst [vmem:[#allocation8_spill] sm:$0xff] %v9007_v43  ;;  %v9057_v54 = vld [vmem:[%s13338_s2] sm:$0xff]  ;;  %v9062_v55 = vld [vmem:[%s13338_s2 + $0x8] sm:$0xff]  ;;  %v9068_v58 = vld [vmem:[%s13338_s2 + $0x10] sm:$0xff] }
  0x15   :  { %13460 = vst [vmem:[#allocation9_spill] sm:$0xff] %v9012_v44  ;;  %v9073_v59 = vld [vmem:[%s13338_s2 + $0x18] sm:$0xff] }
  0x16   :  { %284 = vmatpush.bf16.msra.mxu0 %v7378_v10  ;;  %7445 = vmatpush.bf16.msra.mxu2 %v7378_v10  ;;  %13461 = vst [vmem:[#allocation10_spill] sm:$0xff] %v9017_v45 }
  0x17   :  { %333 = vmatpush.bf16.msra.mxu1 %v7386_v11  ;;  %7453 = vmatpush.bf16.msra.mxu3 %v7386_v11  ;;  %13462 = vst [vmem:[#allocation11_spill] sm:$0xff] %v9022_v46 }
  0x18   :  { %13463 = vst [vmem:[#allocation12_spill] sm:$0xff] %v9027_v47 }
  0x19   :  { %13468 = vst [vmem:[#allocation17_spill] sm:$0xff] %v9052_v53 }
  0x1a   :  { %285 = vmatpush.bf16.msra.mxu0 %v7377_v12  ;;  %7446 = vmatpush.bf16.msra.mxu2 %v7377_v12  ;;  %13469 = vst [vmem:[#allocation18_spill] sm:$0xff] %v9057_v54 }
  0x1b   :  { %334 = vmatpush.bf16.msra.mxu1 %v7385_v13  ;;  %7454 = vmatpush.bf16.msra.mxu3 %v7385_v13  ;;  %13470 = vst [vmem:[#allocation19_spill] sm:$0xff] %v9062_v55 }
  0x1c   :  { %13471 = vst [vmem:[#allocation20_spill] sm:$0xff] %v9068_v58 }
  0x1d   :  { %13472 = vst [vmem:[#allocation21_spill] sm:$0xff] %v9073_v59 }
  0x1e   :  { %286 = vmatpush.bf16.msra.mxu0 %v7376_v14  ;;  %7447 = vmatpush.bf16.msra.mxu2 %v7376_v14 }
  0x1f   :  { %335 = vmatpush.bf16.msra.mxu1 %v7384_v15  ;;  %7455 = vmatpush.bf16.msra.mxu3 %v7384_v15 }
  0x21   :  { %287 = vmatmul.bf16.vlgmr.msra.gmra.mxu0 %v6859_v24  ;;  %307 = vmatmul.bf16.vlgmr.msra.gmra.mxu2 %v6891_v25 }
  0x22   :  { %336 = vmatmul.bf16.vlgmr.msra.gmra.mxu1 %v6863_v26  ;;  %356 = vmatmul.bf16.vlgmr.msra.gmra.mxu3 %v6895_v27 }
  0x31   :  { %292 = vmatmul.bf16.gmra.mxu0 %v6867_v36  ;;  %312 = vmatmul.bf16.gmra.mxu2 %v6899_v37  ;;  %v8975_v36 = vld [vmem:[%s13337_s1] sm:$0xff]  ;;  %v8980_v37 = vld [vmem:[%s13337_s1 + $0x8] sm:$0xff] }
  0x32   :  { %341 = vmatmul.bf16.gmra.mxu1 %v6871_v38  ;;  %361 = vmatmul.bf16.gmra.mxu3 %v6903_v39  ;;  %13453 = vst [vmem:[#allocation2_spill] sm:$0xff] %v8975_v36  ;;  %v8985_v38 = vld [vmem:[%s13337_s1 + $0x10] sm:$0xff]  ;;  %v8990_v39 = vld [vmem:[%s13337_s1 + $0x18] sm:$0xff] }
  0x33   :  { %13454 = vst [vmem:[#allocation3_spill] sm:$0xff] %v8980_v37 }
  0x34   :  { %13455 = vst [vmem:[#allocation4_spill] sm:$0xff] %v8985_v38 }
  0x35   :  { %13456 = vst [vmem:[#allocation5_spill] sm:$0xff] %v8990_v39 }
  0x41   :  { %297 = vmatmul.bf16.gmra.mxu0 %v6875_v48  ;;  %317 = vmatmul.bf16.gmra.mxu2 %v6907_v49  ;;  %v9032_v48 = vld [vmem:[%s13337_s1 + $0x58] sm:$0xff]  ;;  %v9037_v49 = vld [vmem:[%s13337_s1 + $0x60] sm:$0xff] }
  0x42   :  { %346 = vmatmul.bf16.gmra.mxu1 %v6879_v50  ;;  %366 = vmatmul.bf16.gmra.mxu3 %v6911_v51  ;;  %13464 = vst [vmem:[#allocation13_spill] sm:$0xff] %v9032_v48  ;;  %v9042_v50 = vld [vmem:[%s13337_s1 + $0x68] sm:$0xff]  ;;  %v9047_v51 = vld [vmem:[%s13337_s1 + $0x70] sm:$0xff] }
  0x43   :  { %13465 = vst [vmem:[#allocation14_spill] sm:$0xff] %v9037_v49 }
  0x44   :  { %13466 = vst [vmem:[#allocation15_spill] sm:$0xff] %v9042_v50 }
  0x45   :  { %13467 = vst [vmem:[#allocation16_spill] sm:$0xff] %v9047_v51 }
  0x51   :  { %302 = vmatmul.bf16.gmra.mxu0 %v6883_v60  ;;  %322 = vmatmul.bf16.gmra.mxu2 %v6915_v61  ;;  %v9078_v60 = vld [vmem:[%s13338_s2 + $0x20] sm:$0xff] }
  0x52   :  { %351 = vmatmul.bf16.gmra.mxu1 %v6887_v62  ;;  %371 = vmatmul.bf16.gmra.mxu3 %v6919_v63  ;;  %13473 = vst [vmem:[#allocation22_spill] sm:$0xff] %v9078_v60  ;;  %v9083_v62 = vld [vmem:[%s13338_s2 + $0x28] sm:$0xff]  ;;  %v9088_v63 = vld [vmem:[%s13338_s2 + $0x30] sm:$0xff] }
  0x53   :  { %13474 = vst [vmem:[#allocation23_spill] sm:$0xff] %v9083_v62 }
  0x54   :  { %13475 = vst [vmem:[#allocation24_spill] sm:$0xff] %v9088_v63 }
  0x9e   :  { %v288_v1 = vpop.f32.mrf.mxu0 }
  0x9f   :  { %v289_v2 = vadd.f32 %v8945_v0, %v288_v1  ;;  %v337_v3 = vpop.f32.mrf.mxu1  ;;  %v9093_v1 = vld [vmem:[%s13338_s2 + $0x38] sm:$0xff] }
  0xa0   :  { %13476 = vst [vmem:[#allocation25_spill] sm:$0xff] %v9093_v1 }
  0xa1   :  { %v8948_v4 = vadd.f32 %v337_v3, %v289_v2  }
  0xa4   :  { %v308_v5 = vpop.f32.mrf.mxu2 }
  0xa5   :  { %v309_v6 = vadd.f32 %v8945_v0, %v308_v5  ;;  %v357_v7 = vpop.f32.mrf.mxu3 }
  0xa6   :  { %v290_v8 = vpop.f32.mrf.mxu0 }
  0xa7   :  { %v8951_v9 = vadd.f32 %v357_v7, %v309_v6   ;;  %v291_v10 = vadd.f32 %v8945_v0, %v290_v8  ;;  %v339_v11 = vpop.f32.mrf.mxu1  ;;  %v9099_v6 = vld [vmem:[%s13338_s2 + $0x40] sm:$0xff]  ;;  %v9104_v7 = vld [vmem:[%s13338_s2 + $0x48] sm:$0xff]  ;;  %v9109_v8 = vld [vmem:[%s13338_s2 + $0x50] sm:$0xff] }
  0xa8   :  { %13477 = vst [vmem:[#allocation26_spill] sm:$0xff] %v9099_v6 }
  0xa9   :  { %v8954_v12 = vadd.f32 %v339_v11, %v291_v10   ;;  %13478 = vst [vmem:[#allocation27_spill] sm:$0xff] %v9104_v7  ;;  %v9114_v10 = vld [vmem:[%s13338_s2 + $0x58] sm:$0xff]  ;;  %v9119_v11 = vld [vmem:[%s13338_s2 + $0x60] sm:$0xff] }
  0xaa   :  { %13479 = vst [vmem:[#allocation28_spill] sm:$0xff] %v9109_v8 }
  0xab   :  { %13480 = vst [vmem:[#allocation29_spill] sm:$0xff] %v9114_v10 }
  0xac   :  { %v310_v13 = vpop.f32.mrf.mxu2  ;;  %13481 = vst [vmem:[#allocation30_spill] sm:$0xff] %v9119_v11 }
  0xad   :  { %v311_v14 = vadd.f32 %v8945_v0, %v310_v13  ;;  %v359_v15 = vpop.f32.mrf.mxu3  ;;  %v9124_v13 = vld [vmem:[%s13338_s2 + $0x68] sm:$0xff] }
  0xae   :  { %v293_v16 = vpop.f32.mrf.mxu0  ;;  %13482 = vst [vmem:[#allocation31_spill] sm:$0xff] %v9124_v13 }
  0xaf   :  { %v8957_v17 = vadd.f32 %v359_v15, %v311_v14   ;;  %v294_v18 = vadd.f32 %v8945_v0, %v293_v16  ;;  %v342_v19 = vpop.f32.mrf.mxu1  ;;  %v9129_v15 = vld [vmem:[%s13338_s2 + $0x70] sm:$0xff]  ;;  %v9134_v16 = vld [vmem:[%s13338_s2 + $0x78] sm:$0xff]  ;;  %s9182_s2 = smov 0  }
  0xb0   :  { %13483 = vst [vmem:[#allocation32_spill] sm:$0xff] %v9129_v15 }
  0xb1   :  { %v8960_v20 = vadd.f32 %v342_v19, %v294_v18   ;;  %13484 = vst [vmem:[#allocation33_spill] sm:$0xff] %v9134_v16 }
  0xb4   :  { %v313_v21 = vpop.f32.mrf.mxu2 }
  0xb5   :  { %v314_v22 = vadd.f32 %v8945_v0, %v313_v21  ;;  %v362_v23 = vpop.f32.mrf.mxu3 }
  0xb6   :  { %v295_v24 = vpop.f32.mrf.mxu0 }
  0xb7   :  { %v8963_v25 = vadd.f32 %v362_v23, %v314_v22   ;;  %v296_v26 = vadd.f32 %v8945_v0, %v295_v24  ;;  %v344_v27 = vpop.f32.mrf.mxu1 }
  0xb9   :  { %v8966_v28 = vadd.f32 %v344_v27, %v296_v26  }
  0xbc   :  { %v315_v29 = vpop.f32.mrf.mxu2 }
  0xbd   :  { %v316_v30 = vadd.f32 %v8945_v0, %v315_v29  ;;  %v364_v31 = vpop.f32.mrf.mxu3 }
  0xbe   :  { %v298_v32 = vpop.f32.mrf.mxu0 }
  0xbf   :  { %v8969_v33 = vadd.f32 %v364_v31, %v316_v30   ;;  %v299_v34 = vadd.f32 %v8945_v0, %v298_v32  ;;  %v347_v35 = vpop.f32.mrf.mxu1 }
  0xc1   :  { %v9002_v42 = vadd.f32 %v347_v35, %v299_v34  }
  0xc4   :  { %v318_v52 = vpop.f32.mrf.mxu2 }
  0xc5   :  { %v319_v56 = vadd.f32 %v8945_v0, %v318_v52  ;;  %v367_v57 = vpop.f32.mrf.mxu3 }
  0xc6   :  { %v300_v61 = vpop.f32.mrf.mxu0 }
  0xc7   :  { %v368_v2 = vadd.f32 %v367_v57, %v319_v56   ;;  %v301_v3 = vadd.f32 %v8945_v0, %v300_v61  ;;  %v349_v5 = vpop.f32.mrf.mxu1 }
  0xc9   :  { %v350_v14 = vadd.f32 %v349_v5, %v301_v3  }
  0xcc   :  { %v320_v18 = vpop.f32.mrf.mxu2 }
  0xcd   :  { %v321_v19 = vadd.f32 %v8945_v0, %v320_v18  ;;  %v369_v21 = vpop.f32.mrf.mxu3 }
  0xce   :  { %v303_v22 = vpop.f32.mrf.mxu0 }
  0xcf   :  { %v370_v23 = vadd.f32 %v369_v21, %v321_v19   ;;  %v304_v24 = vadd.f32 %v8945_v0, %v303_v22  ;;  %v352_v26 = vpop.f32.mrf.mxu1 }
  0xd1   :  { %v353_v27 = vadd.f32 %v352_v26, %v304_v24  }
  0xd4   :  { %v323_v29 = vpop.f32.mrf.mxu2 }
  0xd5   :  { %v324_v30 = vadd.f32 %v8945_v0, %v323_v29  ;;  %v372_v31 = vpop.f32.mrf.mxu3 }
  0xd6   :  { %v305_v32 = vpop.f32.mrf.mxu0 }
  0xd7   :  { %v373_v34 = vadd.f32 %v372_v31, %v324_v30   ;;  %v306_v35 = vadd.f32 %v8945_v0, %v305_v32  ;;  %v354_v52 = vpop.f32.mrf.mxu1 }
  0xd9   :  { %v355_v56 = vadd.f32 %v354_v52, %v306_v35  }
  0xdc   :  { %v325_v57 = vpop.f32.mrf.mxu2 }
  0xdd   :  { %v326_v61 = vadd.f32 %v8945_v0, %v325_v57  ;;  %v374_v3 = vpop.f32.mrf.mxu3 }
  0xdf   :  { %v375_v5 = vadd.f32 %v374_v3, %v326_v61  }
  0xe0 LB: > { %v13485_v51 = vld [vmem:[#allocation16_spill] sm:$0xff]  ;;  %v13486_v50 = vld [vmem:[#allocation15_spill] sm:$0xff]  ;;  %v13489_v45 = vld [vmem:[#allocation10_spill] sm:$0xff]  ;;  %13498 = vst [vmem:[#allocation34_spill] sm:$0xff] %v8644_v5  ;;  %vm482_vm0 = vcmask 523264   ;;  %v8710_v32 = vmov 64.0   ;;  %s10743_s29 = scalar_lea.vmem %s13327_s8, %s8708_s2  ;;  %s11081_s26 = scalar_lea.vmem %s13331_s12, %s8708_s2  ;;  %v8692_v28 = vphi %v8966_v28, %v13724_v28   ;;  %v8688_v42 = vphi %v9002_v42, %v13723_v42   ;;  %v8684_v14 = vphi %v350_v14, %v13722_v14   ;;  %v8680_v27 = vphi %v353_v27, %v13721_v27   ;;  %v8676_v56 = vphi %v355_v56, %v13720_v56   ;;  %v8672_v9 = vphi %v8951_v9, %v13719_v9   ;;  %v8668_v17 = vphi %v8957_v17, %v13718_v17   ;;  %v8664_v25 = vphi %v8963_v25, %v13717_v25   ;;  %v8660_v33 = vphi %v8969_v33, %v13716_v33   ;;  %v8656_v2 = vphi %v368_v2, %v13715_v2   ;;  %v8652_v23 = vphi %v370_v23, %v13714_v23   ;;  %v8648_v34 = vphi %v373_v34, %v13713_v34   ;;  %v8644_v5 = vphi %v375_v5, %v13712_v5   ;;  %s8708_s2 = sphi %s9182_s2, %s414_s2   ;;  %v8704_v4 = vphi %v8948_v4, %v13727_v4   ;;  %v8700_v12 = vphi %v8954_v12, %v13726_v12   ;;  %v8696_v20 = vphi %v8960_v20, %v13725_v20  }
  0xe1   : > { %v13487_v47 = vld [vmem:[#allocation12_spill] sm:$0xff]  ;;  %v13488_v46 = vld [vmem:[#allocation11_spill] sm:$0xff]  ;;  %v13490_v44 = vld [vmem:[#allocation9_spill] sm:$0xff]  ;;  %13499 = vst [vmem:[#allocation35_spill] sm:$0xff] %v8648_v34  ;;  %v507_v0 = vsel %vm482_vm0, %v8672_v9, 0.0  ;;  %v519_v18 = vsel %vm482_vm0, %v8656_v2, 0.0  ;;  %7867 = vrcp.f32 %v8710_v32 }
  0xe2   : > { %v13491_v43 = vld [vmem:[#allocation8_spill] sm:$0xff]  ;;  %v13492_v41 = vld [vmem:[#allocation7_spill] sm:$0xff]  ;;  %v13493_v40 = vld [vmem:[#allocation6_spill] sm:$0xff]  ;;  %13500 = vst [vmem:[#allocation36_spill] sm:$0xff] %v8652_v23  ;;  %508 = vadd.xlane.f32.xlu0 %v507_v0  ;;  %520 = vadd.xlane.f32.xlu2 %v519_v18  ;;  %v513_v19 = vsel %vm482_vm0, %v8664_v25, 0.0  ;;  %v510_v21 = vsel %vm482_vm0, %v8668_v17, 0.0 }
  0xe3   : > { %v13494_v39 = vld [vmem:[#allocation5_spill] sm:$0xff]  ;;  %v13495_v38 = vld [vmem:[#allocation4_spill] sm:$0xff]  ;;  %v13496_v37 = vld [vmem:[#allocation3_spill] sm:$0xff]  ;;  %13501 = vst [vmem:[#allocation37_spill] sm:$0xff] %v8656_v2  ;;  %514 = vadd.xlane.f32.xlu1 %v513_v19  ;;  %v522_v22 = vsel %vm482_vm0, %v8652_v23, 0.0  ;;  %v516_v24 = vsel %vm482_vm0, %v8660_v33, 0.0 }
  0xe4   : > { %v13497_v36 = vld [vmem:[#allocation2_spill] sm:$0xff]  ;;  %13502 = vst [vmem:[#allocation38_spill] sm:$0xff] %v8660_v33  ;;  %v483_v26 = vsel %vm482_vm0, %v8704_v4, 0.0  ;;  %v486_v29 = vsel %vm482_vm0, %v8700_v12, 0.0  ;;  %v525_v30 = vsel %vm482_vm0, %v8648_v34, 0.0  ;;  %v492_v31 = vsel %vm482_vm0, %v8692_v28, 0.0 }
  0xe5   : > { %13503 = vst [vmem:[#allocation39_spill] sm:$0xff] %v8664_v25  ;;  %v495_v35 = vsel %vm482_vm0, %v8688_v42, 0.0  ;;  %v501_v16 = vsel %vm482_vm0, %v8680_v27, 0.0  ;;  %s7392_s28 = sshll.u32 %s8708_s2, 6  ;;  %s6986_s16 = sshll.u32 %s8708_s2, 1 }
  0xe6   : > { %13504 = vst [vmem:[#allocation40_spill] sm:$0xff] %v8668_v17  ;;  %s9343_s30 = scalar_lea.vmem %s13324_s5, %s7392_s28  ;;  %s9523_s19 = scalar_lea.vmem %s13325_s6, %s6986_s16 }
  0xe7   : > { %13505 = vst [vmem:[#allocation41_spill] sm:$0xff] %v8672_v9  ;;  %v7868_v52 = vpop.eup %7867  ;;  %v7011_v8 = vld [vmem:[%s9343_s30 + $0x28] sm:$0xf0]  ;;  %s8711_s20 = smov 112   ;;  %s8712_s21 = smov 64  }
  0xe8   : > { %13506 = vst [vmem:[#allocation42_spill] sm:$0xff] %v8676_v56  ;;  %v532_v57 = vmul.f32 64.0, %v7868_v52  ;;  %vm536_vm1 = vweird.f32 %v7868_v52  ;;  %v6995_v1 = vld [vmem:[%s9343_s30 + $0x8] sm:$0xf0]  ;;  %s8713_s0 = smov 96   ;;  %s8714_s4 = smov 80  }
  0xe9   : > { %13507 = vst [vmem:[#allocation43_spill] sm:$0xff] %v8680_v27  ;;  %s8715_s1 = smov 16   ;;  %s8716_s22 = smov 32  }
  0xea   : > { %13508 = vst [vmem:[#allocation44_spill] sm:$0xff] %v8684_v14  ;;  %511 = vadd.xlane.f32.xlu0 %v510_v21  ;;  %523 = vadd.xlane.f32.xlu2 %v522_v22  ;;  %v533_v61 = vsub.f32 1.0, %v532_v57  ;;  %s8717_s23 = smov 48   ;;  %s10707_s24 = sshll.u32 %s8708_s2, 5 }
  0xeb   : > { %13509 = vst [vmem:[#allocation45_spill] sm:$0xff] %v8688_v42  ;;  %517 = vadd.xlane.f32.xlu1 %v516_v24  ;;  %s10714_s27 = scalar_lea.vmem %s13326_s7, %s10707_s24  ;;  %s10952_s18 = scalar_lea.vmem %s13328_s9, %s10707_s24 }
  0xec   : > { %13510 = vst [vmem:[#allocation46_spill] sm:$0xff] %v8692_v28  ;;  %v534_v3 = vmul.f32 %v7868_v52, %v533_v61  ;;  %s10992_s28 = scalar_lea.vmem %s13329_s10, %s8708_s2  ;;  %s11064_s17 = scalar_lea.vmem %s13330_s11, %s10707_s24 }
  0xed   : > { %13511 = vst [vmem:[#allocation47_spill] sm:$0xff] %v8696_v20  ;;  %s414_s2 = sadd.s32 1, %s8708_s2  }
  0xee   : > { %13512 = vst [vmem:[#allocation48_spill] sm:$0xff] %v8700_v12  ;;  %v535_v0 = vadd.f32 %v7868_v52, %v534_v3  ;;  %p13188_p0 = scmp.ge.s32.totalorder %s414_s2, 4  }
  0xef   : > { %13513 = vst [vmem:[#allocation49_spill] sm:$0xff] %v8704_v4 }
  0xf0   : > { %v9257_v18 = vsel %vm536_vm1, %v7868_v52, %v535_v0 }
  0xf1   : > { %13514 = vst [vmem:[#allocation50_spill] sm:$0xff] %v9257_v18 }
  0xf2   : > { %484 = vadd.xlane.f32.xlu0 %v483_v26 }
  0xf3   : > { %487 = vadd.xlane.f32.xlu1 %v486_v29 }
  0xfb   : > { %526 = vadd.xlane.f32.xlu1 %v525_v30 }
 0x103   : > { %493 = vadd.xlane.f32.xlu1 %v492_v31 }
 0x10b   : > { %496 = vadd.xlane.f32.xlu1 %v495_v35 }
 0x155   : > { %v509_v19 = vpop.xlane.xlu0 %508  ;;  %v521_v21 = vpop.xlane.xlu2 %520 }
 0x156   : > { %v546_v22 = vmul.f32 %v9257_v18, %v509_v19  ;;  %v515_v26 = vpop.xlane.xlu1 %514 }
 0x157   : > { %v548_v57 = vmul.f32 %v9257_v18, %v515_v26 }
 0x158   : > { %v9261_v24 = vsub.f32 %v8672_v9, %v546_v22 }
 0x159   : > { %v9280_v22 = vsub.f32 %v8664_v25, %v548_v57 }
 0x15a   : > { %v578_v29 = vmul.f32 %v9261_v24, %v9261_v24 }
 0x15c   : > { %v610_v30 = vsel %vm482_vm0, %v578_v29, 0.0  ;;  %v528_v29 = vsel %vm482_vm0, %v8644_v5, 0.0 }
 0x15d   : > { %v512_v31 = vpop.xlane.xlu0 %511  ;;  %611 = vadd.xlane.f32.xlu2 %v610_v30  ;;  %v524_v32 = vpop.xlane.xlu2 %523 }
 0x15e   : > { %v547_v35 = vmul.f32 %v9257_v18, %v512_v31  ;;  %v551_v52 = vmul.f32 %v9257_v18, %v524_v32  ;;  %v518_v30 = vpop.xlane.xlu1 %517 }
 0x15f   : > { %v549_v32 = vmul.f32 %v9257_v18, %v518_v30 }
 0x160   : > { %v9270_v61 = vsub.f32 %v8668_v17, %v547_v35  ;;  %v9273_v3 = vsub.f32 %v8652_v23, %v551_v52  ;;  %v580_v35 = vmul.f32 %v9280_v22, %v9280_v22  ;;  %v489_v52 = vsel %vm482_vm0, %v8696_v20, 0.0 }
 0x161   : > { %v9292_v57 = vsub.f32 %v8660_v33, %v549_v32 }
 0x162   : > { %v579_v0 = vmul.f32 %v9270_v61, %v9270_v61  ;;  %v583_v19 = vmul.f32 %v9273_v3, %v9273_v3 }
 0x163   : > { %v581_v30 = vmul.f32 %v9292_v57, %v9292_v57 }
 0x164   : > { %v613_v26 = vsel %vm482_vm0, %v579_v0, 0.0  ;;  %v625_v31 = vsel %vm482_vm0, %v583_v19, 0.0  ;;  %v616_v0 = vsel %vm482_vm0, %v580_v35, 0.0 }
 0x165   : > { %614 = vadd.xlane.f32.xlu0 %v613_v26  ;;  %626 = vadd.xlane.f32.xlu1 %v625_v31  ;;  %v485_v19 = vpop.xlane.xlu0 %484  ;;  %v619_v15 = vsel %vm482_vm0, %v581_v30, 0.0 }
 0x166   : > { %529 = vadd.xlane.f32.xlu2 %v528_v29  ;;  %v550_v29 = vmul.f32 %v9257_v18, %v521_v21  ;;  %v538_v26 = vmul.f32 %v9257_v18, %v485_v19  ;;  %v488_v31 = vpop.xlane.xlu1 %487 }
 0x167   : > { %v539_v21 = vmul.f32 %v9257_v18, %v488_v31 }
 0x168   : > { %v9302_v32 = vsub.f32 %v8656_v2, %v550_v29  ;;  %v9306_v13 = vsub.f32 %v8704_v4, %v538_v26 }
 0x169   : > { %v9316_v19 = vsub.f32 %v8700_v12, %v539_v21  ;;  %v504_v21 = vsel %vm482_vm0, %v8676_v56, 0.0 }
 0x16a   : > { %v582_v35 = vmul.f32 %v9302_v32, %v9302_v32 }
 0x16c   : > { %v622_v29 = vsel %vm482_vm0, %v582_v35, 0.0 }
 0x16d   : > { %490 = vadd.xlane.f32.xlu0 %v489_v52  ;;  %502 = vadd.xlane.f32.xlu1 %v501_v16  ;;  %v498_v16 = vsel %vm482_vm0, %v8684_v14, 0.0  ;;  %v570_v52 = vmul.f32 %v9306_v13, %v9306_v13 }
 0x16e   : > { %617 = vadd.xlane.f32.xlu2 %v616_v0  ;;  %v527_v0 = vpop.xlane.xlu1 %526 }
 0x16f   : > { %v586_v30 = vsel %vm482_vm0, %v570_v52, 0.0  ;;  %v552_v26 = vmul.f32 %v9257_v18, %v527_v0 }
 0x175   : > { %620 = vadd.xlane.f32.xlu0 %v619_v15  ;;  %v571_v15 = vmul.f32 %v9316_v19, %v9316_v19 }
 0x176   : > { %499 = vadd.xlane.f32.xlu2 %v498_v16  ;;  %v9325_v16 = vsub.f32 %v8648_v34, %v552_v26  ;;  %v494_v11 = vpop.xlane.xlu1 %493  ;;  %v7400_v26 = vld [vmem:[%s9343_s30 + $0x34] sm:$0xf0] }
 0x177   : > { %v589_v31 = vsel %vm482_vm0, %v571_v15, 0.0  ;;  %v541_v52 = vmul.f32 %v9257_v18, %v494_v11  ;;  %v7017_v11 = vld [vmem:[%s9343_s30 + $0x30] sm:$0xf] }
 0x178   : > { %v584_v35 = vmul.f32 %v9325_v16, %v9325_v16 }
 0x179   : > { %v9334_v0 = vsub.f32 %v8692_v28, %v541_v52 }
 0x17d   : > { %623 = vadd.xlane.f32.xlu0 %v622_v29  ;;  %v628_v29 = vsel %vm482_vm0, %v584_v35, 0.0  ;;  %v7019_v35 = vld [vmem:[%s9343_s30 + $0x38] sm:$0xf0] }
 0x17e   : > { %587 = vadd.xlane.f32.xlu2 %v586_v30  ;;  %v573_v30 = vmul.f32 %v9334_v0, %v9334_v0 }
 0x180   : > { %v595_v15 = vsel %vm482_vm0, %v573_v30, 0.0  ;;  %v7398_v30 = vld [vmem:[%s9343_s30 + $0x24] sm:$0xf0] }
 0x185   : > { %590 = vadd.xlane.f32.xlu0 %v589_v31  ;;  %v7399_v31 = vld [vmem:[%s9343_s30 + $0x34] sm:$0xf] }
 0x186   : > { %505 = vadd.xlane.f32.xlu2 %v504_v21  ;;  %v7018_v21 = vor.u32 %v7400_v26, %v7017_v11  ;;  %v7022_v52 = vor.u32 %v7399_v31, %v7019_v35  ;;  %v7001_v11 = vld [vmem:[%s9343_s30 + $0x10] sm:$0xf]  ;;  %v7396_v26 = vld [vmem:[%s9343_s30 + $0x14] sm:$0xf0]  ;;  %v7395_v31 = vld [vmem:[%s9343_s30 + $0x14] sm:$0xf] }
 0x187   : > { %v7003_v35 = vld [vmem:[%s9343_s30 + $0x18] sm:$0xf0] }
 0x188   : > { %7456 = vmatpush.bf16.msra.mxu3 %v7018_v21  ;;  %923 = vmatpush.bf16.msra.mxu0 %v7018_v21  ;;  %v7002_v21 = vor.u32 %v7396_v26, %v7001_v11  ;;  %v7006_v6 = vor.u32 %v7395_v31, %v7003_v35 }
 0x189   : > { %7460 = vmatpush.bf16.msra.mxu2 %v7022_v52  ;;  %972 = vmatpush.bf16.msra.mxu1 %v7022_v52  ;;  %v497_v52 = vpop.xlane.xlu1 %496 }
 0x18a   : > { %v542_v35 = vmul.f32 %v9257_v18, %v497_v52 }
 0x18d   : > { %629 = vadd.xlane.f32.xlu0 %v628_v29  ;;  %v7009_v29 = vld [vmem:[%s9343_s30 + $0x20] sm:$0xf] }
 0x18e   : > { %v7010_v10 = vor.u32 %v7398_v30, %v7009_v29  ;;  %v6993_v29 = vld [vmem:[%s9343_s30] sm:$0xf]  ;;  %v7394_v30 = vld [vmem:[%s9343_s30 + $0x4] sm:$0xf0] }
 0x190   : > { %7457 = vmatpush.bf16.msra.mxu3 %v7010_v10  ;;  %924 = vmatpush.bf16.msra.mxu0 %v7010_v10 }
 0x194   : > { %7458 = vmatpush.bf16.msra.mxu3 %v7002_v21  ;;  %925 = vmatpush.bf16.msra.mxu0 %v7002_v21 }
 0x195   : > { %596 = vadd.xlane.f32.xlu0 %v595_v15  ;;  %v7397_v15 = vld [vmem:[%s9343_s30 + $0x24] sm:$0xf] }
 0x196   : > { %v7014_v7 = vor.u32 %v7397_v15, %v7011_v8  ;;  %v7393_v8 = vld [vmem:[%s9343_s30 + $0x4] sm:$0xf]  ;;  %v6994_v15 = vor.u32 %v7394_v30, %v6993_v29 }
 0x197   : > { %v6998_v62 = vor.u32 %v7393_v8, %v6995_v1 }
 0x198   : > { %7461 = vmatpush.bf16.msra.mxu2 %v7014_v7  ;;  %973 = vmatpush.bf16.msra.mxu1 %v7014_v7 }
 0x199   : > { %7459 = vmatpush.bf16.msra.mxu3 %v6994_v15  ;;  %926 = vmatpush.bf16.msra.mxu0 %v6994_v15 }
 0x19c   : > { %7462 = vmatpush.bf16.msra.mxu2 %v7006_v6  ;;  %974 = vmatpush.bf16.msra.mxu1 %v7006_v6 }
 0x1a0   : > { %7463 = vmatpush.bf16.msra.mxu2 %v6998_v62  ;;  %975 = vmatpush.bf16.msra.mxu1 %v6998_v62  ;;  %v9369_v62 = vsub.f32 %v8688_v42, %v542_v35 }
 0x1a2   : > { %v574_v35 = vmul.f32 %v9369_v62, %v9369_v62 }
 0x1d0   : > { %v612_v10 = vpop.xlane.xlu2 %611 }
 0x1d1   : > { %v642_v63 = vmul.f32 %v612_v10, %v9257_v18 }
 0x1d3   : > { %v658_v7 = vadd.f32 1e-06, %v642_v63 }
 0x1d5   : > { %7869 = vrsqrt.f32 %v658_v7  ;;  %vm752_vm3 = vweird.f32 %v658_v7 }
 0x1d8   : > { %v615_v11 = vpop.xlane.xlu0 %614  ;;  %v627_v26 = vpop.xlane.xlu1 %626 }
 0x1d9   : > { %v643_v31 = vmul.f32 %v615_v11, %v9257_v18  ;;  %v530_v21 = vpop.xlane.xlu2 %529 }
 0x1da   : > { %v553_v6 = vmul.f32 %v9257_v18, %v530_v21 }
 0x1db   : > { %v7870_v29 = vpop.eup %7869  ;;  %v659_v30 = vadd.f32 1e-06, %v643_v31 }
 0x1dc   : > { %v747_v1 = vmul.f32 %v7870_v29, %v658_v7  ;;  %v9366_v8 = vsub.f32 %v8644_v5, %v553_v6  ;;  %vm753_vm2 = vweird.f32 %v7870_v29 }
 0x1dd   : > { %7871 = vrsqrt.f32 %v659_v30  ;;  %vm754_vm5 = vmor %vm752_vm3, %vm753_vm2  ;;  %vm762_vm6 = vweird.f32 %v659_v30 }
 0x1de   : > { %v748_v15 = vmul.f32 %v7870_v29, %v747_v1  ;;  %v585_v63 = vmul.f32 %v9366_v8, %v9366_v8 }
 0x1e0   : > { %v749_v10 = vmul.f32 0.5, %v748_v15  ;;  %v491_v11 = vpop.xlane.xlu0 %490  ;;  %v503_v59 = vpop.xlane.xlu1 %502  ;;  %v631_v52 = vsel %vm482_vm0, %v585_v63, 0.0 }
 0x1e1   : > { %v540_v21 = vmul.f32 %v9257_v18, %v491_v11  ;;  %v544_v31 = vmul.f32 %v9257_v18, %v503_v59  ;;  %632 = vadd.xlane.f32.xlu1 %v631_v52  ;;  %v618_v6 = vpop.xlane.xlu2 %617 }
 0x1e2   : > { %v644_v60 = vmul.f32 %v618_v6, %v9257_v18  ;;  %v750_v55 = vsub.f32 1.5, %v749_v10  ;;  %v647_v6 = vmul.f32 %v627_v26, %v9257_v18 }
 0x1e3   : > { %v7872_v1 = vpop.eup %7871  ;;  %v9380_v58 = vsub.f32 %v8696_v20, %v540_v21  ;;  %v9383_v15 = vsub.f32 %v8680_v27, %v544_v31  ;;  %v598_v21 = vsel %vm482_vm0, %v574_v35, 0.0 }
 0x1e4   : > { %v757_v63 = vmul.f32 %v7872_v1, %v659_v30  ;;  %v9385_v54 = vadd.f32 1e-06, %v644_v60  ;;  %v751_v34 = vmul.f32 %v7870_v29, %v750_v55  ;;  %vm763_vm4 = vweird.f32 %v7872_v1 }
 0x1e5   : > { %v576_v59 = vmul.f32 %v9383_v15, %v9383_v15  ;;  %v572_v11 = vmul.f32 %v9380_v58, %v9380_v58  ;;  %v9397_v2 = vadd.f32 1e-06, %v647_v6  ;;  %vm764_vm7 = vmor %vm762_vm6, %vm763_vm4 }
 0x1e6   : > { %v758_v52 = vmul.f32 %v7872_v1, %v757_v63  ;;  %7873 = vrsqrt.f32 %v9385_v54  ;;  %v755_v55 = vsel %vm754_vm5, %v7870_v29, %v751_v34  ;;  %vm772_vm8 = vweird.f32 %v9385_v54 }
 0x1e7   : > { %v604_v31 = vsel %vm482_vm0, %v576_v59, 0.0  ;;  %v592_v10 = vsel %vm482_vm0, %v572_v11, 0.0  ;;  %v834_v30 = vmul.f32 %v755_v55, %v9261_v24  ;;  %vm802_vm14 = vweird.f32 %v9397_v2 }
 0x1e8   : > { %v759_v60 = vmul.f32 0.5, %v758_v52  ;;  %v621_v5 = vpop.xlane.xlu0 %620  ;;  %605 = vadd.xlane.f32.xlu0 %v604_v31  ;;  %593 = vadd.xlane.f32.xlu2 %v592_v10 }
 0x1e9   : > { %v645_v23 = vmul.f32 %v621_v5, %v9257_v18  ;;  %599 = vadd.xlane.f32.xlu1 %v598_v21  ;;  %v500_v63 = vpop.xlane.xlu2 %499 }
 0x1ea   : > { %v760_v26 = vsub.f32 1.5, %v759_v60  ;;  %v543_v35 = vmul.f32 %v9257_v18, %v500_v63 }
 0x1eb   : > { %v661_v59 = vadd.f32 1e-06, %v645_v23 }
 0x1ec   : > { %v9400_v11 = vpop.eup %7873  ;;  %v9403_v52 = vsub.f32 %v8684_v14, %v543_v35  ;;  %v761_v7 = vmul.f32 %v7872_v1, %v760_v26 }
 0x1ed   : > { %v767_v5 = vmul.f32 %v9400_v11, %v9385_v54  ;;  %7875 = vrsqrt.f32 %v661_v59  ;;  %vm773_vm9 = vweird.f32 %v9400_v11  ;;  %vm782_vm10 = vweird.f32 %v661_v59 }
 0x1ee   : > { %7877 = vrsqrt.f32 %v9397_v2  ;;  %v575_v6 = vmul.f32 %v9403_v52, %v9403_v52  ;;  %v765_v21 = vsel %vm764_vm7, %v7872_v1, %v761_v7  ;;  %vm9429_vm12 = vmor %vm772_vm8, %vm773_vm9 }
 0x1ef   : > { %v768_v23 = vmul.f32 %v9400_v11, %v767_v5  ;;  %v835_v31 = vmul.f32 %v765_v21, %v9270_v61 }
 0x1f0   : > { %v624_v10 = vpop.xlane.xlu0 %623  ;;  %v601_v34 = vsel %vm482_vm0, %v575_v6, 0.0 }
 0x1f1   : > { %v769_v29 = vmul.f32 0.5, %v768_v23  ;;  %v646_v60 = vmul.f32 %v624_v10, %v9257_v18  ;;  %602 = vadd.xlane.f32.xlu2 %v601_v34  ;;  %v588_v63 = vpop.xlane.xlu2 %587  ;;  %v846_v26 = vpack.c.bf16 %v835_v31, %v834_v30 }
 0x1f2   : > { %v634_v35 = vmul.f32 %v588_v63, %v9257_v18 }
 0x1f3   : > { %v7876_v33 = vpop.eup %7875  ;;  %v9416_v25 = vadd.f32 1e-06, %v646_v60  ;;  %7027 = vmatmul.msk.bf16.vlgmr.msra.gmra.mxu3 %vm482_vm0, %v846_v26  ;;  %7035 = vmatmul.msk.bf16.vlgmr.msra.gmra.mxu2 %vm482_vm0, %v846_v26  ;;  %v770_v61 = vsub.f32 1.5, %v769_v29 }
 0x1f4   : > { %v9420_v24 = vpop.eup %7877  ;;  %v777_v1 = vmul.f32 %v7876_v33, %v661_v59  ;;  %v650_v55 = vadd.f32 1e-06, %v634_v35  ;;  %vm783_vm11 = vweird.f32 %v7876_v33 }
 0x1f5   : > { %7879 = vrsqrt.f32 %v9416_v25  ;;  %v797_v5 = vmul.f32 %v9420_v24, %v9397_v2  ;;  %v771_v23 = vmul.f32 %v9400_v11, %v770_v61  ;;  %vm784_vm13 = vmor %vm782_vm10, %vm783_vm11  ;;  %vm803_vm15 = vweird.f32 %v9420_v24 }
 0x1f6   : > { %v778_v7 = vmul.f32 %v7876_v33, %v777_v1  ;;  %7881 = vrsqrt.f32 %v650_v55  ;;  %vm792_vm2 = vweird.f32 %v9416_v25  ;;  %vm672_vm3 = vweird.f32 %v650_v55  ;;  %vm9453_vm5 = vmor %vm802_vm14, %vm803_vm15 }
 0x1f7   : > { %v798_v54 = vmul.f32 %v9420_v24, %v797_v5  ;;  %v775_v61 = vsel %vm9429_vm12, %v9400_v11, %v771_v23 }
 0x1f8   : > { %v779_v6 = vmul.f32 0.5, %v778_v7  ;;  %v591_v21 = vpop.xlane.xlu0 %590  ;;  %v836_v17 = vmul.f32 %v775_v61, %v9280_v22 }
 0x1f9   : > { %v635_v30 = vmul.f32 %v591_v21, %v9257_v18  ;;  %v506_v31 = vpop.xlane.xlu2 %505 }
 0x1fa   : > { %v780_v34 = vsub.f32 1.5, %v779_v6  ;;  %v545_v29 = vmul.f32 %v9257_v18, %v506_v31  ;;  %v799_v31 = vmul.f32 0.5, %v798_v54 }
 0x1fb   : > { %v7880_v60 = vpop.eup %7879  ;;  %v651_v63 = vadd.f32 1e-06, %v635_v30 }
 0x1fc   : > { %v7882_v59 = vpop.eup %7881  ;;  %v787_v26 = vmul.f32 %v7880_v60, %v9416_v25  ;;  %v9437_v35 = vsub.f32 %v8676_v56, %v545_v29  ;;  %v781_v1 = vmul.f32 %v7876_v33, %v780_v34  ;;  %v800_v34 = vsub.f32 1.5, %v799_v31 }
 0x1fd   : > { %v667_v7 = vmul.f32 %v7882_v59, %v650_v55  ;;  %7883 = vrsqrt.f32 %v651_v63  ;;  %vm793_vm1 = vweird.f32 %v7880_v60  ;;  %vm673_vm4 = vweird.f32 %v7882_v59 }
 0x1fe   : > { %v788_v6 = vmul.f32 %v7880_v60, %v787_v26  ;;  %v577_v21 = vmul.f32 %v9437_v35, %v9437_v35  ;;  %v785_v5 = vsel %vm784_vm13, %v7876_v33, %v781_v1  ;;  %vm682_vm6 = vweird.f32 %v651_v63  ;;  %vm794_vm8 = vmor %vm792_vm2, %vm793_vm1 }
 0x1ff   : > { %v668_v30 = vmul.f32 %v7882_v59, %v667_v7  ;;  %v837_v9 = vmul.f32 %v785_v5, %v9292_v57  ;;  %vm674_vm9 = vmor %vm672_vm3, %vm673_vm4 }
 0x200   : > { %v789_v29 = vmul.f32 0.5, %v788_v6  ;;  %v607_v56 = vsel %vm482_vm0, %v577_v21, 0.0 }
 0x201   : > { %v669_v27 = vmul.f32 0.5, %v668_v30  ;;  %608 = vadd.xlane.f32.xlu1 %v607_v56  ;;  %v847_v11 = vpack.c.bf16 %v837_v9, %v836_v17  ;;  %v801_v9 = vmul.f32 %v9420_v24, %v800_v34 }
 0x202   : > { %v790_v23 = vsub.f32 1.5, %v789_v29 }
 0x203   : > { %v7884_v10 = vpop.eup %7883  ;;  %7028 = vmatmul.msk.bf16.gmra.mxu3 %vm482_vm0, %v847_v11  ;;  %7036 = vmatmul.msk.bf16.gmra.mxu2 %vm482_vm0, %v847_v11  ;;  %v670_v33 = vsub.f32 1.5, %v669_v27  ;;  %v805_v25 = vsel %vm9453_vm5, %v9420_v24, %v801_v9  ;;  %v630_v24 = vpop.xlane.xlu0 %629 }
 0x204   : > { %v677_v54 = vmul.f32 %v7884_v10, %v651_v63  ;;  %v791_v57 = vmul.f32 %v7880_v60, %v790_v23  ;;  %vm683_vm7 = vweird.f32 %v7884_v10  ;;  %v839_v21 = vmul.f32 %v805_v25, %v9273_v3 }
 0x205   : > { %v671_v27 = vmul.f32 %v7882_v59, %v670_v33  ;;  %vm684_vm10 = vmor %vm682_vm6, %vm683_vm7 }
 0x206   : > { %v678_v22 = vmul.f32 %v7884_v10, %v677_v54  ;;  %v795_v26 = vsel %vm794_vm8, %v7880_v60, %v791_v57 }
 0x207   : > { %v675_v61 = vsel %vm674_vm9, %v7882_v59, %v671_v27  ;;  %v838_v55 = vmul.f32 %v795_v26, %v9302_v32  ;;  %v648_v32 = vmul.f32 %v630_v24, %v9257_v18 }
 0x208   : > { %v679_v56 = vmul.f32 0.5, %v678_v22  ;;  %v826_v6 = vmul.f32 %v675_v61, %v9306_v13 }
 0x209   : > { %v848_v31 = vpack.c.bf16 %v839_v21, %v838_v55  ;;  %v664_v60 = vadd.f32 1e-06, %v648_v32 }
 0x20a   : > { %v680_v2 = vsub.f32 1.5, %v679_v56 }
 0x20b   : > { %v597_v59 = vpop.xlane.xlu0 %596  ;;  %7885 = vrsqrt.f32 %v664_v60  ;;  %vm812_vm11 = vweird.f32 %v664_v60 }
 0x20c   : > { %v681_v1 = vmul.f32 %v7884_v10, %v680_v2  ;;  %v637_v13 = vmul.f32 %v597_v59, %v9257_v18 }
 0x20e   : > { %v685_v7 = vsel %vm684_vm10, %v7884_v10, %v681_v1 }
 0x20f   : > { %v827_v63 = vmul.f32 %v685_v7, %v9316_v19  ;;  %v653_v19 = vadd.f32 1e-06, %v637_v13 }
 0x211   : > { %v842_v5 = vpack.c.bf16 %v827_v63, %v826_v6  ;;  %v7886_v3 = vpop.eup %7885  ;;  %7887 = vrsqrt.f32 %v653_v19  ;;  %vm702_vm2 = vweird.f32 %v653_v19 }
 0x212   : > { %v807_v30 = vmul.f32 %v7886_v3, %v664_v60  ;;  %vm813_vm12 = vweird.f32 %v7886_v3 }
 0x213   : > { %7023 = vmatmul.msk.bf16.vlgmr.msra.gmra.mxu0 %vm482_vm0, %v842_v5  ;;  %7029 = vmatmul.msk.bf16.gmra.mxu3 %vm482_vm0, %v848_v31  ;;  %vm9480_vm13 = vmor %vm812_vm11, %vm813_vm12 }
 0x214   : > { %7031 = vmatmul.msk.bf16.vlgmr.msra.gmra.mxu1 %vm482_vm0, %v842_v5  ;;  %7037 = vmatmul.msk.bf16.gmra.mxu2 %vm482_vm0, %v848_v31  ;;  %v808_v10 = vmul.f32 %v7886_v3, %v807_v30 }
 0x216   : > { %v809_v54 = vmul.f32 0.5, %v808_v10 }
 0x217   : > { %v9471_v34 = vpop.eup %7887 }
 0x218   : > { %v697_v9 = vmul.f32 %v9471_v34, %v653_v19  ;;  %v810_v2 = vsub.f32 1.5, %v809_v54  ;;  %vm703_vm3 = vweird.f32 %v9471_v34 }
 0x219   : > { %vm9496_vm4 = vmor %vm702_vm2, %vm703_vm3 }
 0x21a   : > { %v698_v1 = vmul.f32 %v9471_v34, %v697_v9  ;;  %v811_v6 = vmul.f32 %v7886_v3, %v810_v2 }
 0x21c   : > { %v699_v21 = vmul.f32 0.5, %v698_v1  ;;  %v815_v60 = vsel %vm9480_vm13, %v7886_v3, %v811_v6 }
 0x21e   : > { %v700_v13 = vsub.f32 1.5, %v699_v21 }
 0x254   : > { %v633_v29 = vpop.xlane.xlu1 %632 }
 0x255   : > { %v649_v11 = vmul.f32 %v633_v29, %v9257_v18 }
 0x257   : > { %v665_v23 = vadd.f32 1e-06, %v649_v11 }
 0x259   : > { %7889 = vrsqrt.f32 %v665_v23  ;;  %vm822_vm14 = vweird.f32 %v665_v23 }
 0x25b   : > { %v594_v33 = vpop.xlane.xlu2 %593  ;;  %v606_v30 = vpop.xlane.xlu0 %605 }
 0x25c   : > { %v600_v22 = vpop.xlane.xlu1 %599  ;;  %v636_v57 = vmul.f32 %v594_v33, %v9257_v18 }
 0x25d   : > { %v638_v17 = vmul.f32 %v600_v22, %v9257_v18  ;;  %v640_v22 = vmul.f32 %v606_v30, %v9257_v18 }
 0x25e   : > { %v652_v56 = vadd.f32 1e-06, %v636_v57 }
 0x25f   : > { %v7890_v27 = vpop.eup %7889  ;;  %v9476_v61 = vadd.f32 1e-06, %v638_v17  ;;  %v701_v17 = vmul.f32 %v9471_v34, %v700_v13 }
 0x260   : > { %v817_v26 = vmul.f32 %v7890_v27, %v665_v23  ;;  %7891 = vrsqrt.f32 %v652_v56  ;;  %vm823_vm15 = vweird.f32 %v7890_v27  ;;  %v840_v23 = vmul.f32 %v815_v60, %v9325_v16 }
 0x261   : > { %7893 = vrsqrt.f32 %v9476_v61  ;;  %vm824_vm1 = vmor %vm822_vm14, %vm823_vm15  ;;  %v656_v16 = vadd.f32 1e-06, %v640_v22  ;;  %vm692_vm6 = vweird.f32 %v652_v56  ;;  %vm712_vm8 = vweird.f32 %v9476_v61 }
 0x262   : > { %v818_v25 = vmul.f32 %v7890_v27, %v817_v26 }
 0x263   : > { %vm732_vm14 = vweird.f32 %v656_v16 }
 0x264   : > { %v819_v55 = vmul.f32 0.5, %v818_v25  ;;  %v603_v7 = vpop.xlane.xlu2 %602  ;;  %v705_v25 = vsel %vm9496_vm4, %v9471_v34, %v701_v17 }
 0x265   : > { %v639_v5 = vmul.f32 %v603_v7, %v9257_v18 }
 0x266   : > { %v820_v31 = vsub.f32 1.5, %v819_v55  ;;  %v7892_v32 = vpop.eup %7891 }
 0x267   : > { %v655_v24 = vadd.f32 1e-06, %v639_v5  ;;  %v687_v29 = vmul.f32 %v7892_v32, %v652_v56  ;;  %v9487_v11 = vpop.eup %7893  ;;  %vm693_vm5 = vweird.f32 %v7892_v32  ;;  %v829_v5 = vmul.f32 %v705_v25, %v9334_v0 }
 0x268   : > { %v821_v59 = vmul.f32 %v7890_v27, %v820_v31  ;;  %v707_v3 = vmul.f32 %v9487_v11, %v9476_v61  ;;  %vm694_vm7 = vmor %vm692_vm6, %vm693_vm5  ;;  %vm713_vm9 = vweird.f32 %v9487_v11  ;;  %vm1049_vm5 = vcmask 130048  }
 0x269   : > { %7895 = vrsqrt.f32 %v655_v24  ;;  %v688_v33 = vmul.f32 %v7892_v32, %v687_v29  ;;  %vm722_vm10 = vweird.f32 %v655_v24  ;;  %vm714_vm12 = vmor %vm712_vm8, %vm713_vm9  ;;  %vm2634_vm6 = vcmask 261120  }
 0x26a   : > { %v825_v10 = vsel %vm824_vm1, %v7890_v27, %v821_v59  ;;  %v708_v26 = vmul.f32 %v9487_v11, %v707_v3  ;;  %7897 = vrsqrt.f32 %v656_v16 }
 0x26b   : > { %v841_v54 = vmul.f32 %v825_v10, %v9366_v8  ;;  %v689_v57 = vmul.f32 0.5, %v688_v33 }
 0x26c   : > { %v709_v31 = vmul.f32 0.5, %v708_v26 }
 0x26d   : > { %v849_v9 = vpack.c.bf16 %v841_v54, %v840_v23  ;;  %v690_v27 = vsub.f32 1.5, %v689_v57 }
 0x26e   : > { %v710_v34 = vsub.f32 1.5, %v709_v31 }
 0x26f   : > { %v7896_v19 = vpop.eup %7895  ;;  %7030 = vmatmul.msk.bf16.gmra.mxu3 %vm482_vm0, %v849_v9  ;;  %7038 = vmatmul.msk.bf16.gmra.mxu2 %vm482_vm0, %v849_v9  ;;  %v691_v1 = vmul.f32 %v7892_v32, %v690_v27 }
 0x270   : > { %v717_v8 = vmul.f32 %v7896_v19, %v655_v24  ;;  %vm723_vm11 = vweird.f32 %v7896_v19  ;;  %v711_v29 = vmul.f32 %v9487_v11, %v710_v34 }
 0x271   : > { %v695_v7 = vsel %vm694_vm7, %v7892_v32, %v691_v1  ;;  %v7898_v32 = vpop.eup %7897  ;;  %vm724_vm13 = vmor %vm722_vm10, %vm723_vm11  ;;  %vm2651_vm7 = vcmask 392192  }
 0x272   : > { %v718_v55 = vmul.f32 %v7896_v19, %v717_v8  ;;  %v828_v21 = vmul.f32 %v695_v7, %v9380_v58  ;;  %v727_v0 = vmul.f32 %v7898_v32, %v656_v16  ;;  %v715_v3 = vsel %vm714_vm12, %v9487_v11, %v711_v29 }
 0x273   : > { %v830_v24 = vmul.f32 %v715_v3, %v9369_v62  ;;  %vm733_vm15 = vweird.f32 %v7898_v32 }
 0x274   : > { %v719_v6 = vmul.f32 0.5, %v718_v55  ;;  %v609_v63 = vpop.xlane.xlu1 %608  ;;  %v843_v59 = vpack.c.bf16 %v829_v5, %v828_v21  ;;  %v728_v22 = vmul.f32 %v7898_v32, %v727_v0  ;;  %vm734_vm3 = vmor %vm732_vm14, %vm733_vm15 }
 0x275   : > { %v641_v60 = vmul.f32 %v609_v63, %v9257_v18 }
 0x276   : > { %v9509_v56 = vpop.f32.mrf.mxu3  ;;  %v720_v13 = vsub.f32 1.5, %v719_v6  ;;  %7024 = vmatmul.msk.bf16.gmra.mxu0 %vm482_vm0, %v843_v59  ;;  %7032 = vmatmul.msk.bf16.gmra.mxu1 %vm482_vm0, %v843_v59  ;;  %v729_v17 = vmul.f32 0.5, %v728_v22 }
 0x277   : > { %v657_v30 = vadd.f32 1e-06, %v641_v60 }
 0x278   : > { %v721_v58 = vmul.f32 %v7896_v19, %v720_v13  ;;  %v730_v11 = vsub.f32 1.5, %v729_v17 }
 0x279   : > { %7899 = vrsqrt.f32 %v657_v30  ;;  %vm742_vm1 = vweird.f32 %v657_v30 }
 0x27a   : > { %v725_v23 = vsel %vm724_vm13, %v7896_v19, %v721_v58  ;;  %v731_v26 = vmul.f32 %v7898_v32, %v730_v11 }
 0x27b   : > { %v831_v61 = vmul.f32 %v725_v23, %v9403_v52  ;;  %v9528_v52 = vld [vmem:[%s9523_s19] sm:$0x3] }
 0x27c   : > { %v9531_v19 = vperm.slane %v9528_v52, 0  ;;  %v735_v16 = vsel %vm734_vm3, %v7898_v32, %v731_v26 }
 0x27d   : > { %v844_v2 = vpack.c.bf16 %v831_v61, %v830_v24  ;;  %v832_v21 = vmul.f32 %v735_v16, %v9383_v15 }
 0x27e   : > { %v950_v10 = vpop.f32.mrf.mxu3  ;;  %v949_v61 = vadd.f32 %v9509_v56, %v9531_v19 }
 0x27f   : > { %v7900_v33 = vpop.eup %7899 }
 0x280   : > { %v737_v54 = vmul.f32 %v7900_v33, %v657_v30  ;;  %vm743_vm2 = vweird.f32 %v7900_v33 }
 0x281   : > { %vm744_vm4 = vmor %vm742_vm1, %vm743_vm2 }
 0x282   : > { %v738_v57 = vmul.f32 %v7900_v33, %v737_v54 }
 0x284   : > { %v739_v9 = vmul.f32 0.5, %v738_v57  ;;  %v951_v57 = vadd.f32 %v950_v10, %v9531_v19 }
 0x286   : > { %v953_v27 = vpop.f32.mrf.mxu3  ;;  %v740_v8 = vsub.f32 1.5, %v739_v9  ;;  %7025 = vmatmul.msk.bf16.gmra.mxu0 %vm482_vm0, %v844_v2  ;;  %7033 = vmatmul.msk.bf16.gmra.mxu1 %vm482_vm0, %v844_v2  ;;  %v9564_v9 = vpack.c.bf16 %v951_v57, %v949_v61 }
 0x287   : > { %v954_v25 = vadd.f32 %v953_v27, %v9531_v19  ;;  %v997_v27 = vpop.f32.mrf.mxu2 }
 0x288   : > { %v741_v62 = vmul.f32 %v7900_v33, %v740_v8 }
 0x28a   : > { %v745_v7 = vsel %vm744_vm4, %v7900_v33, %v741_v62 }
 0x28b   : > { %v833_v63 = vmul.f32 %v745_v7, %v9437_v35 }
 0x28d   : > { %v845_v5 = vpack.c.bf16 %v833_v63, %v832_v21 }
 0x28e   : > { %v955_v1 = vpop.f32.mrf.mxu3 }
 0x28f   : > { %v956_v55 = vadd.f32 %v955_v1, %v9531_v19  ;;  %v999_v11 = vpop.f32.mrf.mxu2 }
 0x290   : > { %v928_v35 = vpop.f32.mrf.mxu0 }
 0x291   : > { %v9535_v6 = vpack.c.bf16 %v956_v55, %v954_v25  ;;  %v977_v26 = vpop.f32.mrf.mxu1  ;;  %v929_v63 = vadd.f32 %v928_v35, %v9531_v19  ;;  %v9615_v35 = vperm.slane %v9528_v52, 1 }
 0x293   : > { %1043 = vrot.lane.b32.xlu1 %v9535_v6, %s8711_s20 }
 0x296   : > { %v958_v31 = vpop.f32.mrf.mxu3  ;;  %7026 = vmatmul.msk.bf16.gmra.mxu0 %vm482_vm0, %v845_v5  ;;  %7034 = vmatmul.msk.bf16.gmra.mxu1 %vm482_vm0, %v845_v5 }
 0x297   : > { %v959_v59 = vadd.f32 %v958_v31, %v9531_v19  ;;  %v9588_v7 = vpop.f32.mrf.mxu2 }
 0x298   : > { %v930_v34 = vpop.f32.mrf.mxu0 }
 0x299   : > { %v931_v16 = vadd.f32 %v930_v34, %v9531_v19  ;;  %v979_v5 = vpop.f32.mrf.mxu1 }
 0x29a   : > { %v980_v61 = vadd.f32 %v979_v5, %v9615_v35 }
 0x29b   : > { %v9594_v21 = vpack.c.bf16 %v931_v16, %v929_v63 }
 0x29d   : > { %13526 = vst [vmem:[#allocation54_spill] sm:$0xff] %v9594_v21 }
 0x29e   : > { %v960_v60 = vpop.f32.mrf.mxu3 }
 0x29f   : > { %v961_v13 = vadd.f32 %v960_v60, %v9531_v19  ;;  %v1004_v31 = vpop.f32.mrf.mxu2 }
 0x2a1   : > { %v9545_v30 = vpack.c.bf16 %v961_v13, %v959_v59 }
 0x2a3   : > { %1045 = vrot.lane.b32.xlu0 %v9545_v30, %s8711_s20 }
 0x2f2   : > { %v963_v32 = vpop.f32.mrf.mxu3 }
 0x2f3   : > { %v933_v15 = vpop.f32.mrf.mxu0  ;;  %v964_v0 = vadd.f32 %v963_v32, %v9531_v19  ;;  %v982_v60 = vpop.f32.mrf.mxu1 }
 0x2f4   : > { %v934_v54 = vadd.f32 %v933_v15, %v9531_v19 }
 0x2fa   : > { %v965_v58 = vpop.f32.mrf.mxu3 }
 0x2fb   : > { %v966_v29 = vadd.f32 %v965_v58, %v9531_v19  ;;  %v935_v23 = vpop.f32.mrf.mxu0  ;;  %v984_v59 = vpop.f32.mrf.mxu1 }
 0x2fc   : > { %v936_v22 = vadd.f32 %v935_v23, %v9531_v19 }
 0x2fd   : > { %v9551_v33 = vpack.c.bf16 %v966_v29, %v964_v0  ;;  %v1000_v0 = vadd.f32 %v999_v11, %v9615_v35  ;;  %v998_v29 = vadd.f32 %v997_v27, %v9615_v35 }
 0x2fe   : > { %v9557_v3 = vpack.c.bf16 %v936_v22, %v934_v54 }
 0x2ff   : > { %1047 = vrot.lane.b32.xlu2 %v9551_v33, %s8711_s20  ;;  %v9641_v54 = vpack.c.bf16 %v1000_v0, %v998_v29 }
 0x300   : > { %13523 = vst [vmem:[#allocation51_spill] sm:$0xff] %v9557_v3  ;;  %1035 = vrot.lane.b32.xlu1 %v9557_v3, %s8711_s20 }
 0x301   : > { %13528 = vst [vmem:[#allocation56_spill] sm:$0xff] %v9641_v54 }
 0x303   : > { %v938_v24 = vpop.f32.mrf.mxu0  ;;  %v987_v32 = vpop.f32.mrf.mxu1 }
 0x304   : > { %v939_v2 = vadd.f32 %v938_v24, %v9531_v19  ;;  %v978_v24 = vadd.f32 %v977_v26, %v9615_v35  ;;  %v983_v26 = vadd.f32 %v982_v60, %v9615_v35  ;;  %v1005_v60 = vadd.f32 %v1004_v31, %v9615_v35 }
 0x307   : > { %1041 = vrot.lane.b32.xlu2 %v9564_v9, %s8711_s20 }
 0x308   : > { %1400 = vrot.lane.b32.xlu1 %v9545_v30, %s8712_s21 }
 0x30b   : > { %v940_v17 = vpop.f32.mrf.mxu0  ;;  %v989_v52 = vpop.f32.mrf.mxu1 }
 0x30c   : > { %v941_v10 = vadd.f32 %v940_v17, %v9531_v19 }
 0x30e   : > { %v9572_v8 = vpack.c.bf16 %v941_v10, %v939_v2  ;;  %v9652_v2 = vpack.c.bf16 %v980_v61, %v978_v24 }
 0x310   : > { %13524 = vst [vmem:[#allocation52_spill] sm:$0xff] %v9572_v8  ;;  %1309 = vrot.lane.b32.xlu1 %v9535_v6, %s8713_s0  ;;  %1037 = vrot.lane.b32.xlu2 %v9572_v8, %s8711_s20 }
 0x311   : > { %13529 = vst [vmem:[#allocation57_spill] sm:$0xff] %v9652_v2 }
 0x313   : > { %v943_v56 = vpop.f32.mrf.mxu0  ;;  %v992_v23 = vpop.f32.mrf.mxu1 }
 0x314   : > { %v944_v1 = vadd.f32 %v943_v56, %v9531_v19  ;;  %v985_v56 = vadd.f32 %v984_v59, %v9615_v35  ;;  %v990_v59 = vadd.f32 %v989_v52, %v9615_v35 }
 0x315   : > { %v1046_v17 = vpop.permute.xlu0 %1045 }
 0x316   : > { %v1093_v27 = vsel %vm1049_vm5, %v1046_v17, 0  ;;  %v9665_v16 = vpack.c.bf16 %v985_v56, %v983_v26 }
 0x318   : > { %1398 = vrot.lane.b32.xlu2 %v9535_v6, %s8712_s21  ;;  %13530 = vst [vmem:[#allocation58_spill] sm:$0xff] %v9665_v16 }
 0x31b   : > { %v945_v62 = vpop.f32.mrf.mxu0  ;;  %v994_v10 = vpop.f32.mrf.mxu1 }
 0x31c   : > { %v946_v25 = vadd.f32 %v945_v62, %v9531_v19  ;;  %v1007_v19 = vpop.f32.mrf.mxu2  ;;  %v995_v62 = vadd.f32 %v994_v10, %v9615_v35 }
 0x31d   : > { %v1008_v15 = vadd.f32 %v1007_v19, %v9615_v35 }
 0x31e   : > { %v9582_v55 = vpack.c.bf16 %v946_v25, %v944_v1  ;;  %v1044_v1 = vpop.permute.xlu1 %1043  ;;  %v993_v25 = vadd.f32 %v992_v23, %v9615_v35 }
 0x31f   : > { %v1090_v5 = vsel %vm1049_vm5, %v1044_v1, 0 }
 0x320   : > { %13525 = vst [vmem:[#allocation53_spill] sm:$0xff] %v9582_v55  ;;  %1394 = vrot.lane.b32.xlu1 %v9582_v55, %s8712_s21  ;;  %1039 = vrot.lane.b32.xlu0 %v9582_v55, %s8711_s20  ;;  %v9667_v63 = vpack.c.bf16 %v995_v62, %v993_v25 }
 0x321   : > { %1396 = vrot.lane.b32.xlu2 %v9564_v9, %s8712_s21 }
 0x322   : > { %13531 = vst [vmem:[#allocation59_spill] sm:$0xff] %v9667_v63 }
 0x324   : > { %v1009_v13 = vpop.f32.mrf.mxu2 }
 0x325   : > { %v1010_v34 = vadd.f32 %v1009_v13, %v9615_v35  ;;  %v1003_v13 = vadd.f32 %v9588_v7, %v9615_v35 }
 0x327   : > { %v9625_v58 = vpack.c.bf16 %v1010_v34, %v1008_v15  ;;  %v988_v34 = vadd.f32 %v987_v32, %v9615_v35  ;;  %v9681_v15 = vpack.c.bf16 %v1005_v60, %v1003_v13 }
 0x328   : > { %1305 = vrot.lane.b32.xlu1 %v9582_v55, %s8713_s0  ;;  %1033 = vrot.lane.b32.xlu0 %v9594_v21, %s8711_s20 }
 0x329   : > { %1307 = vrot.lane.b32.xlu2 %v9564_v9, %s8713_s0  ;;  %13527 = vst [vmem:[#allocation55_spill] sm:$0xff] %v9625_v58  ;;  %v9683_v0 = vpack.c.bf16 %v990_v59, %v988_v34 }
 0x32a   : > { %13532 = vst [vmem:[#allocation60_spill] sm:$0xff] %v9681_v15 }
 0x32b   : > { %13533 = vst [vmem:[#allocation61_spill] sm:$0xff] %v9683_v0 }
 0x330   : > { %1301 = vrot.lane.b32.xlu1 %v9557_v3, %s8713_s0  ;;  %1311 = vrot.lane.b32.xlu0 %v9545_v30, %s8713_s0 }
 0x331   : > { %1392 = vrot.lane.b32.xlu2 %v9572_v8, %s8712_s21 }
 0x338   : > { %1388 = vrot.lane.b32.xlu1 %v9594_v21, %s8712_s21  ;;  %1303 = vrot.lane.b32.xlu0 %v9572_v8, %s8713_s0 }
 0x339   : > { %1376 = vrot.lane.b32.xlu2 %v9572_v8, %s8714_s4 }
 0x340   : > { %1374 = vrot.lane.b32.xlu1 %v9557_v3, %s8714_s4  ;;  %1299 = vrot.lane.b32.xlu0 %v9594_v21, %s8713_s0 }
 0x341   : > { %1762 = vrot.lane.b32.xlu2 %v9545_v30, %s8715_s1 }
 0x348   : > { %2100 = vrot.lane.b32.xlu1 %v9625_v58, %s8713_s0  ;;  %1390 = vrot.lane.b32.xlu0 %v9557_v3, %s8712_s21 }
 0x349   : > { %1380 = vrot.lane.b32.xlu2 %v9564_v9, %s8714_s4 }
 0x350   : > { %1756 = vrot.lane.b32.xlu1 %v9582_v55, %s8715_s1  ;;  %1372 = vrot.lane.b32.xlu0 %v9594_v21, %s8714_s4 }
 0x351   : > { %1760 = vrot.lane.b32.xlu2 %v9535_v6, %s8715_s1 }
 0x358   : > { %1752 = vrot.lane.b32.xlu1 %v9557_v3, %s8715_s1  ;;  %1378 = vrot.lane.b32.xlu0 %v9582_v55, %s8714_s4 }
 0x359   : > { %v1048_v22 = vpop.permute.xlu2 %1047  ;;  %2096 = vrot.lane.b32.xlu2 %v9641_v54, %s8713_s0 }
 0x35a   : > { %v1096_v57 = vsel %vm1049_vm5, %v1048_v22, 0 }
 0x35b   : > { %1098 = vmatpush.bf16.xpose.msrb.mxu2 %v1096_v57 }
 0x360   : > { %2088 = vrot.lane.b32.xlu1 %v9652_v2, %s8713_s0  ;;  %1758 = vrot.lane.b32.xlu0 %v9564_v9, %s8715_s1 }
 0x361   : > { %1754 = vrot.lane.b32.xlu2 %v9572_v8, %s8715_s1  ;;  %v1042_v11 = vpop.permute.xlu2 %1041 }
 0x362   : > { %v1087_v31 = vsel %vm1049_vm5, %v1042_v11, 0 }
 0x363   : > { %1099 = vmatpush.bf16.xpose.msrb.mxu2 %v1093_v27  ;;  %v1012_v27 = vpop.f32.mrf.mxu2 }
 0x364   : > { %v1013_v13 = vadd.f32 %v1012_v27, %v9615_v35 }
 0x368   : > { %2074 = vrot.lane.b32.xlu1 %v9665_v16, %s8711_s20  ;;  %1382 = vrot.lane.b32.xlu0 %v9535_v6, %s8714_s4 }
 0x369   : > { %2094 = vrot.lane.b32.xlu2 %v9667_v63, %s8713_s0 }
 0x36a   : > { %v1038_v19 = vpop.permute.xlu2 %1037 }
 0x36b   : > { %1100 = vmatpush.bf16.xpose.msrb.mxu2 %v1090_v5  ;;  %v1081_v26 = vsel %vm1049_vm5, %v1038_v19, 0  ;;  %v1014_v1 = vpop.f32.mrf.mxu2 }
 0x36c   : > { %v1015_v25 = vadd.f32 %v1014_v1, %v9615_v35 }
 0x36e   : > { %v9757_v34 = vpack.c.bf16 %v1015_v25, %v1013_v13 }
 0x370   : > { %1740 = vrot.lane.b32.xlu1 %v9582_v55, %s8716_s22  ;;  %2098 = vrot.lane.b32.xlu0 %v9681_v15, %s8713_s0  ;;  %13534 = vst [vmem:[#allocation62_spill] sm:$0xff] %v9757_v34 }
 0x371   : > { %2092 = vrot.lane.b32.xlu2 %v9683_v0, %s8713_s0 }
 0x372   : > { %v9692_v7 = vpop.permute.xlu2 %1398  ;;  %v1036_v32 = vpop.permute.xlu1 %1035 }
 0x373   : > { %1101 = vmatpush.bf16.xpose.msrb.mxu2 %v1087_v31  ;;  %v1078_v19 = vsel %vm1049_vm5, %v1036_v32, 0 }
 0x378   : > { %2078 = vrot.lane.b32.xlu1 %v9667_v63, %s8711_s20  ;;  %1384 = vrot.lane.b32.xlu0 %v9545_v30, %s8714_s4 }
 0x379   : > { %1750 = vrot.lane.b32.xlu2 %v9594_v21, %s8715_s1 }
 0x37a   : > { %v9702_v29 = vpop.permute.xlu1 %1400 }
 0x37b   : > { %v9700_v52 = vpop.permute.xlu2 %1396 }
 0x380   : > { %1742 = vrot.lane.b32.xlu1 %v9564_v9, %s8716_s22  ;;  %1734 = vrot.lane.b32.xlu0 %v9594_v21, %s8716_s22 }
 0x381   : > { %2090 = vrot.lane.b32.xlu2 %v9665_v16, %s8713_s0 }
 0x382   : > { %v9718_v22 = vpop.permute.xlu1 %1309 }
 0x383   : > { %v9710_v23 = vpop.permute.xlu2 %1307 }
 0x388   : > { %1663 = vrot.lane.b32.xlu1 %v9535_v6, %s8717_s23  ;;  %1736 = vrot.lane.b32.xlu0 %v9557_v3, %s8716_s22 }
 0x389   : > { %2072 = vrot.lane.b32.xlu2 %v9652_v2, %s8711_s20 }
 0x38b   : > { %v9720_v57 = vpop.permute.xlu2 %1392 }
 0x390   : > { %1313 = vrot.lane.b32.xlu1 %v9551_v33, %s8713_s0  ;;  %2076 = vrot.lane.b32.xlu0 %v9683_v0, %s8711_s20 }
 0x391   : > { %1738 = vrot.lane.b32.xlu2 %v9572_v8, %s8716_s22 }
 0x392   : > { %v9728_v61 = vpop.permute.xlu1 %1394  ;;  %v1040_v24 = vpop.permute.xlu0 %1039 }
 0x393   : > { %v9730_v17 = vpop.permute.xlu2 %1376  ;;  %v1084_v10 = vsel %vm1049_vm5, %v1040_v24, 0 }
 0x394   : > { %1102 = vmatpush.bf16.xpose.msrb.mxu2 %v1084_v10 }
 0x398   : > { %1764 = vrot.lane.b32.xlu1 %v9551_v33, %s8715_s1  ;;  %2080 = vrot.lane.b32.xlu0 %v9641_v54, %s8711_s20 }
 0x399   : > { %1744 = vrot.lane.b32.xlu2 %v9535_v6, %s8716_s22 }
 0x39a   : > { %v9739_v56 = vpop.permute.xlu1 %1305  ;;  %v1034_v11 = vpop.permute.xlu0 %1033 }
 0x39b   : > { %v9741_v62 = vpop.permute.xlu2 %1762 }
 0x39c   : > { %1103 = vmatpush.bf16.xpose.msrb.mxu2 %v1081_v26  ;;  %v1075_v26 = vsel %vm1049_vm5, %v1034_v11, 0 }
 0x3a0   : > { %1667 = vrot.lane.b32.xlu1 %v9551_v33, %s8717_s23  ;;  %1402 = vrot.lane.b32.xlu0 %v9551_v33, %s8712_s21 }
 0x3a1   : > { %2082 = vrot.lane.b32.xlu2 %v9681_v15, %s8711_s20 }
 0x3a2   : > { %v9751_v5 = vpop.permute.xlu1 %1301  ;;  %v1312_v60 = vpop.permute.xlu0 %1311 }
 0x3a3   : > { %v9753_v59 = vpop.permute.xlu2 %1380 }
 0x3a4   : > { %1104 = vmatpush.bf16.xpose.msrb.mxu2 %v1078_v19 }
 0x3a8   : > { %2102 = vrot.lane.b32.xlu0 %v9757_v34, %s8713_s0 }
 0x3a9   : > { %1665 = vrot.lane.b32.xlu2 %v9545_v30, %s8717_s23 }
 0x3aa   : > { %v9763_v31 = vpop.permute.xlu1 %1388  ;;  %v9765_v24 = vpop.permute.xlu0 %1303 }
 0x3ab   : > { %v9767_v10 = vpop.permute.xlu2 %1760 }
 0x3ac   : > { %1105 = vmatpush.bf16.xpose.msrb.mxu2 %v1075_v26 }
 0x3b0   : > { %1386 = vrot.lane.b32.xlu0 %v9551_v33, %s8714_s4 }
 0x3b1   : > { %1746 = vrot.lane.b32.xlu2 %v9545_v30, %s8716_s22 }
 0x3b2   : > { %v9776_v35 = vpop.permute.xlu1 %1374  ;;  %v9778_v32 = vpop.permute.xlu0 %1299 }
 0x3b3   : > { %v9780_v27 = vpop.permute.xlu2 %2096  ;;  %7039 = vmatmul.msk.bf16.vlgmr.msrb.gmra.mxu2 %vm1049_vm5, %v9594_v21 }
 0x3b4   : > { %2015 = vmatpush.bf16.msra.mxu2 %v9757_v34 }
 0x3b8   : > { %2016 = vmatpush.bf16.msra.mxu2 %v9625_v58 }
 0x3b9   : > { %1661 = vrot.lane.b32.xlu2 %v9564_v9, %s8717_s23 }
 0x3ba   : > { %v9788_v11 = vpop.permute.xlu1 %2100  ;;  %v9790_v1 = vpop.permute.xlu0 %1390 }
 0x3bb   : > { %v9792_v25 = vpop.permute.xlu2 %1754 }
 0x3bc   : > { %2017 = vmatpush.bf16.msra.mxu2 %v9681_v15 }
 0x3c0   : > { %2018 = vmatpush.bf16.msra.mxu2 %v9641_v54 }
 0x3c2   : > { %v9796_v19 = vpop.permute.xlu1 %1756  ;;  %v9798_v13 = vpop.permute.xlu0 %1372 }
 0x3c3   : > { %v9800_v26 = vpop.permute.xlu2 %2094  ;;  %7040 = vmatmul.msk.bf16.gmra.mxu2 %vm1049_vm5, %v9557_v3 }
 0x3c4   : > { %2019 = vmatpush.bf16.msra.mxu2 %v9667_v63 }
 0x3c8   : > { %2020 = vmatpush.bf16.msra.mxu2 %v9683_v0 }
 0x3ca   : > { %v9806_v18 = vpop.permute.xlu1 %1752  ;;  %v9808_v14 = vpop.permute.xlu0 %1378 }
 0x3cb   : > { %v9810_v42 = vpop.permute.xlu2 %2092 }
 0x3cc   : > { %2021 = vmatpush.bf16.msra.mxu2 %v9665_v16 }
 0x3d0   : > { %2022 = vmatpush.bf16.msra.mxu2 %v9652_v2 }
 0x3d2   : > { %v9812_v28 = vpop.permute.xlu1 %2088  ;;  %v1759_v20 = vpop.permute.xlu0 %1758 }
 0x3d3   : > { %v9814_v12 = vpop.permute.xlu2 %1750  ;;  %7041 = vmatmul.msk.bf16.gmra.mxu2 %vm1049_vm5, %v9572_v8 }
 0x3da   : > { %v9818_v4 = vpop.permute.xlu1 %2074  ;;  %v9820_v0 = vpop.permute.xlu0 %1382 }
 0x3db   : > { %v9822_v16 = vpop.permute.xlu2 %2090 }
 0x3e2   : > { %v9824_v2 = vpop.permute.xlu1 %1740  ;;  %v9826_v63 = vpop.permute.xlu0 %2098 }
 0x3e3   : > { %13535 = vst [vmem:[#allocation63_spill] sm:$0xff] %v9824_v2  ;;  %v9828_v15 = vpop.permute.xlu2 %2072  ;;  %7042 = vmatmul.msk.bf16.gmra.mxu2 %vm1049_vm5, %v9582_v55 }
 0x3ea   : > { %v9832_v54 = vpop.permute.xlu1 %2078  ;;  %v9834_v34 = vpop.permute.xlu0 %1384 }
 0x3eb   : > { %v9836_v21 = vpop.permute.xlu2 %1738 }
 0x3ec   : > { %13536 = vst [vmem:[#allocation64_spill] sm:$0xff] %v9836_v21 }
 0x3f2   : > { %v9838_v3 = vpop.permute.xlu1 %1742  ;;  %v9840_v58 = vpop.permute.xlu0 %1734 }
 0x3f3   : > { %13537 = vst [vmem:[#allocation65_spill] sm:$0xff] %v9838_v3  ;;  %7043 = vmatmul.msk.bf16.gmra.mxu2 %vm1049_vm5, %v9564_v9  ;;  %v9844_v2 = vpop.permute.xlu2 %1744 }
 0x3f4   : > { %13538 = vst [vmem:[#allocation66_spill] sm:$0xff] %v9840_v58 }
 0x3f5   : > { %13539 = vst [vmem:[#allocation67_spill] sm:$0xff] %v9844_v2 }
 0x3fa   : > { %v1664_v8 = vpop.permute.xlu1 %1663  ;;  %v9846_v49 = vpop.permute.xlu0 %1736 }
 0x3fb   : > { %13540 = vst [vmem:[#allocation68_spill] sm:$0xff] %v9846_v49  ;;  %v9848_v48 = vpop.permute.xlu2 %2082 }
 0x402   : > { %v1314_v55 = vpop.permute.xlu1 %1313  ;;  %v9850_v53 = vpop.permute.xlu0 %2076 }
 0x403   : > { %7044 = vmatmul.msk.bf16.gmra.mxu2 %vm1049_vm5, %v9535_v6  ;;  %1323 = vmatpush.bf16.msrb.mxu3 %v1314_v55  ;;  %v1666_v58 = vpop.permute.xlu2 %1665  ;;  %v1447_v55 = vsel %vm1049_vm5, %v9702_v29, 0 }
 0x407   : > { %1324 = vmatpush.bf16.msrb.mxu3 %v1312_v60 }
 0x40a   : > { %v1765_v3 = vpop.permute.xlu1 %1764  ;;  %v9854_v21 = vpop.permute.xlu0 %2080 }
 0x40b   : > { %1325 = vmatpush.bf16.msrb.mxu3 %v9718_v22  ;;  %v9862_v6 = vpop.permute.xlu2 %1746  ;;  %v1435_v22 = vsel %vm1049_vm5, %v9720_v57, 0 }
 0x40c   : > { %13541 = vst [vmem:[#allocation69_spill] sm:$0xff] %v9862_v6 }
 0x40f   : > { %1326 = vmatpush.bf16.msrb.mxu3 %v9710_v23 }
 0x412   : > { %v1668_v9 = vpop.permute.xlu1 %1667  ;;  %v1403_v2 = vpop.permute.xlu0 %1402 }
 0x413   : > { %7045 = vmatmul.msk.bf16.gmra.mxu2 %vm1049_vm5, %v9545_v30  ;;  %1327 = vmatpush.bf16.msrb.mxu3 %v9739_v56  ;;  %v1450_v49 = vsel %vm1049_vm5, %v1403_v2, 0  ;;  %v1812_v30 = vsel %vm1049_vm5, %v1765_v3, 0  ;;  %v1662_v23 = vpop.permute.xlu2 %1661  ;;  %v1806_v3 = vsel %vm1049_vm5, %v9767_v10, 0  ;;  %v1438_v2 = vsel %vm1049_vm5, %v9728_v61, 0 }
 0x414   : > { %1677 = vmatpush.bf16.msrb.mxu1 %v1668_v9  ;;  %1452 = vmatpush.bf16.xpose.msrb.mxu0 %v1450_v49  ;;  %v1444_v49 = vsel %vm1049_vm5, %v9692_v7, 0  ;;  %v1803_v7 = vsel %vm1049_vm5, %v1759_v20, 0  ;;  %v1432_v61 = vsel %vm1049_vm5, %v9790_v1, 0  ;;  %v1797_v20 = vsel %vm1049_vm5, %v9792_v25, 0 }
 0x415   : > { %v2147_v10 = vsel %vm1049_vm5, %v9788_v11, 0  ;;  %v2138_v1 = vsel %vm1049_vm5, %v9800_v26, 0 }
 0x417   : > { %1328 = vmatpush.bf16.msrb.mxu3 %v9765_v24  ;;  %v1794_v24 = vsel %vm1049_vm5, %v9806_v18, 0  ;;  %v2141_v18 = vsel %vm1049_vm5, %v9780_v27, 0 }
 0x418   : > { %1678 = vmatpush.bf16.msrb.mxu1 %v1666_v58  ;;  %v1809_v58 = vsel %vm1049_vm5, %v9741_v62, 0 }
 0x41a   : > { %v2103_v57 = vpop.permute.xlu0 %2102 }
 0x41b   : > { %1329 = vmatpush.bf16.msrb.mxu3 %v9751_v5  ;;  %v1429_v5 = vsel %vm1049_vm5, %v9763_v31, 0  ;;  %v2150_v60 = vsel %vm1049_vm5, %v2103_v57, 0  ;;  %v2144_v31 = vsel %vm1049_vm5, %v9826_v63, 0  ;;  %v2132_v63 = vsel %vm1049_vm5, %v9822_v16, 0 }
 0x41c   : > { %1679 = vmatpush.bf16.msrb.mxu1 %v1664_v8  ;;  %1453 = vmatpush.bf16.xpose.msrb.mxu0 %v1447_v55  ;;  %v1441_v8 = vsel %vm1049_vm5, %v9700_v52, 0  ;;  %v1800_v52 = vsel %vm1049_vm5, %v9796_v19, 0 }
 0x41f   : > { %1330 = vmatpush.bf16.msrb.mxu3 %v9778_v32  ;;  %v1791_v32 = vsel %vm1049_vm5, %v9814_v12, 0  ;;  %v2135_v12 = vsel %vm1049_vm5, %v9810_v42, 0 }
 0x420   : > { %1680 = vmatpush.bf16.msrb.mxu1 %v1662_v23 }
 0x422   : > { %v1387_v25 = vpop.permute.xlu0 %1386 }
 0x423   : > { %1814 = vmatpush.bf16.xpose.msra.mxu3 %v1812_v30  ;;  %7046 = vmatmul.msk.bf16.gmra.mxu2 %vm1049_vm5, %v9551_v33 }
 0x424   : > { %1454 = vmatpush.bf16.xpose.msrb.mxu0 %v1444_v49 }
 0x42b   : > { %1815 = vmatpush.bf16.xpose.msra.mxu3 %v1809_v58 }
 0x42c   : > { %1455 = vmatpush.bf16.xpose.msrb.mxu0 %v1441_v8 }
 0x433   : > { %1816 = vmatpush.bf16.xpose.msra.mxu3 %v1806_v3 }
 0x434   : > { %1456 = vmatpush.bf16.xpose.msrb.mxu0 %v1438_v2 }
 0x436   : > { %v1107_v29 = vpop.f32.mrf.mxu2 }
 0x43b   : > { %1817 = vmatpush.bf16.xpose.msra.mxu3 %v1803_v7 }
 0x43c   : > { %1457 = vmatpush.bf16.xpose.msrb.mxu0 %v1435_v22 }
 0x43e   : > { %v1109_v56 = vpop.f32.mrf.mxu2 }
 0x43f   : > { %v9888_v62 = vadd.f32 %v1109_v56, %v13496_v37 }
 0x441   : > { %1149 = vmax.xlane.f32.xlu1 %v9888_v62 }
 0x443   : > { %1818 = vmatpush.bf16.xpose.msra.mxu3 %v1800_v52 }
 0x444   : > { %1458 = vmatpush.bf16.xpose.msrb.mxu0 %v1432_v61 }
 0x446   : > { %v1112_v27 = vpop.f32.mrf.mxu2 }
 0x447   : > { %v9946_v55 = vadd.f32 %v1112_v27, %v13495_v38 }
 0x44b   : > { %1819 = vmatpush.bf16.xpose.msra.mxu3 %v1797_v20 }
 0x44c   : > { %1459 = vmatpush.bf16.xpose.msrb.mxu0 %v1429_v5 }
 0x453   : > { %1820 = vmatpush.bf16.xpose.msra.mxu3 %v1794_v24  ;;  %7047 = vmatmul.msk.bf16.vlgmr.msrb.gmra.mxu0 %vm1049_vm5, %v9798_v13 }
 0x454   : > { %2152 = vmatpush.bf16.xpose.msra.mxu0 %v2150_v60 }
 0x45b   : > { %1821 = vmatpush.bf16.xpose.msra.mxu3 %v1791_v32 }
 0x45c   : > { %2153 = vmatpush.bf16.xpose.msra.mxu0 %v2147_v10 }
 0x463   : > { %7048 = vmatmul.msk.bf16.gmra.mxu0 %vm1049_vm5, %v9776_v35  ;;  %v2129_v35 = vsel %vm1049_vm5, %v9812_v28, 0 }
 0x464   : > { %2154 = vmatpush.bf16.xpose.msra.mxu0 %v2144_v31 }
 0x46c   : > { %2155 = vmatpush.bf16.xpose.msra.mxu0 %v2141_v18 }
 0x473   : > { %7049 = vmatmul.msk.bf16.gmra.mxu0 %vm1049_vm5, %v9730_v17  ;;  %v1114_v17 = vpop.f32.mrf.mxu2 }
 0x474   : > { %2156 = vmatpush.bf16.xpose.msra.mxu0 %v2138_v1 }
 0x47b   : > { %v1117_v42 = vpop.f32.mrf.mxu2 }
 0x47c   : > { %2157 = vmatpush.bf16.xpose.msra.mxu0 %v2135_v12  ;;  %v9956_v49 = vadd.f32 %v1117_v42, %v13493_v40  ;;  %v13542_v12 = vld [vmem:[#allocation17_spill] sm:$0xff] }
 0x483   : > { %7050 = vmatmul.msk.bf16.gmra.mxu0 %vm1049_vm5, %v9808_v14  ;;  %v1119_v11 = vpop.f32.mrf.mxu2 }
 0x484   : > { %2158 = vmatpush.bf16.xpose.msra.mxu0 %v2132_v63  ;;  %v9985_v20 = vadd.f32 %v1119_v11, %v13492_v41  ;;  %v13543_v63 = vmov %v13542_v12 }
 0x48b   : > { %v1122_v16 = vpop.f32.mrf.mxu2 }
 0x48c   : > { %2159 = vmatpush.bf16.xpose.msra.mxu0 %v2129_v35  ;;  %v9974_v22 = vadd.f32 %v1122_v16, %v13491_v43 }
 0x493   : > { %7051 = vmatmul.msk.bf16.gmra.mxu0 %vm1049_vm5, %v9753_v59  ;;  %v1124_v14 = vpop.f32.mrf.mxu2  ;;  %v9938_v59 = vadd.f32 %v1107_v29, %v13497_v36  ;;  %v9967_v29 = vadd.f32 %v1114_v17, %v13494_v39  ;;  %v13544_v17 = vld [vmem:[#allocation13_spill] sm:$0xff] }
 0x494   : > { %v9995_v60 = vadd.f32 %v1124_v14, %v13490_v44  ;;  %v13545_v11 = vmov %v13544_v17 }
 0x49b   : > { %v1127_v28 = vpop.f32.mrf.mxu2 }
 0x49c   : > { %v10004_v32 = vadd.f32 %v1127_v28, %v13489_v45 }
 0x4a3   : > { %7052 = vmatmul.msk.bf16.gmra.mxu0 %vm1049_vm5, %v9820_v0  ;;  %v1129_v26 = vpop.f32.mrf.mxu2 }
 0x4a4   : > { %v9998_v24 = vadd.f32 %v1129_v26, %v13488_v46 }
 0x4b3   : > { %7053 = vmatmul.msk.bf16.gmra.mxu0 %vm1049_vm5, %v9834_v34 }
 0x4b4   : > { %v1150_v27 = vpop.xlane.xlu1 %1149 }
 0x4b5   : > { %v1180_v16 = vsub.f32 %v9888_v62, %v1150_v27 }
 0x4c3   : > { %7054 = vmatmul.msk.bf16.gmra.mxu0 %vm1049_vm5, %v1387_v25  ;;  %v13546_v25 = vld [vmem:[#allocation14_spill] sm:$0xff] }
 0x4d0   : > { %v1461_v19 = vpop.f32.mrf.mxu0 }
 0x4d1   : > { %v9932_v13 = vadd.f32 %v1461_v19, %v13497_v36  ;;  %v13547_v19 = vmov %v13546_v25 }
 0x4d3   : > { %1501 = vmax.xlane.f32.xlu2 %v9932_v13  ;;  %7063 = vmatmul.msk.bf16.vlgmr.msra.gmra.mxu0 %vm1049_vm5, %v9828_v15  ;;  %v1132_v15 = vpop.f32.mrf.mxu2 }
 0x4d4   : > { %v10018_v1 = vadd.f32 %v1132_v15, %v13487_v47 }
 0x4d8   : > { %v1463_v0 = vpop.f32.mrf.mxu0 }
 0x4d9   : > { %v9941_v34 = vadd.f32 %v1463_v0, %v13496_v37 }
 0x4db   : > { %1503 = vmax.xlane.f32.xlu0 %v9941_v34  ;;  %1147 = vmax.xlane.f32.xlu2 %v9938_v59  ;;  %v1134_v8 = vpop.f32.mrf.mxu2 }
 0x4dc   : > { %v10026_v42 = vadd.f32 %v1134_v8, %v13544_v17 }
 0x4e0   : > { %v1466_v9 = vpop.f32.mrf.mxu0 }
 0x4e1   : > { %v9949_v30 = vadd.f32 %v1466_v9, %v13495_v38 }
 0x4e3   : > { %1505 = vmax.xlane.f32.xlu1 %v9949_v30  ;;  %1151 = vmax.xlane.f32.xlu0 %v9946_v55 }
 0x4e4   : > { %7064 = vmatmul.msk.bf16.gmra.mxu0 %vm1049_vm5, %v9818_v4  ;;  %v1137_v4 = vpop.f32.mrf.mxu2 }
 0x4e5   : > { %v10033_v14 = vadd.f32 %v1137_v4, %v13546_v25 }
 0x4e8   : > { %v1468_v23 = vpop.f32.mrf.mxu0 }
 0x4e9   : > { %v9959_v58 = vadd.f32 %v1468_v23, %v13494_v39 }
 0x4eb   : > { %1155 = vmax.xlane.f32.xlu0 %v9956_v49  ;;  %1507 = vmax.xlane.f32.xlu2 %v9959_v58 }
 0x4f0   : > { %v1471_v3 = vpop.f32.mrf.mxu0 }
 0x4f1   : > { %v9964_v2 = vadd.f32 %v1471_v3, %v13493_v40 }
 0x4f3   : > { %1153 = vmax.xlane.f32.xlu2 %v9967_v29  ;;  %1509 = vmax.xlane.f32.xlu1 %v9964_v2 }
 0x4f4   : > { %7065 = vmatmul.msk.bf16.gmra.mxu0 %vm1049_vm5, %v9850_v53  ;;  %v1139_v53 = vpop.f32.mrf.mxu2 }
 0x4f5   : > { %v10010_v31 = vadd.f32 %v1139_v53, %v13486_v50 }
 0x4f8   : > { %v1473_v7 = vpop.f32.mrf.mxu0 }
 0x4f9   : > { %v9977_v56 = vadd.f32 %v1473_v7, %v13492_v41 }
 0x4fb   : > { %1159 = vmax.xlane.f32.xlu2 %v9974_v22  ;;  %1511 = vmax.xlane.f32.xlu0 %v9977_v56 }
 0x4fc   : > { %v1142_v10 = vpop.f32.mrf.mxu2 }
 0x500   : > { %v1476_v52 = vpop.f32.mrf.mxu0 }
 0x501   : > { %v9982_v61 = vadd.f32 %v1476_v52, %v13491_v43 }
 0x503   : > { %1157 = vmax.xlane.f32.xlu0 %v9985_v20  ;;  %1513 = vmax.xlane.f32.xlu1 %v9982_v61 }
 0x504   : > { %7066 = vmatmul.msk.bf16.gmra.mxu0 %vm1049_vm5, %v9832_v54  ;;  %v10007_v54 = vadd.f32 %v1142_v10, %v13485_v51  ;;  %v1144_v18 = vpop.f32.mrf.mxu2 }
 0x505   : > { %v10021_v35 = vadd.f32 %v1144_v18, %v13542_v12 }
 0x508   : > { %v1478_v57 = vpop.f32.mrf.mxu0 }
 0x509   : > { %v9992_v5 = vadd.f32 %v1478_v57, %v13490_v44 }
 0x50b   : > { %1515 = vmax.xlane.f32.xlu2 %v9992_v5  ;;  %1161 = vmax.xlane.f32.xlu0 %v9995_v60 }
 0x50c   : > { %1165 = vmax.xlane.f32.xlu1 %v9998_v24 }
 0x513   : > { %1163 = vmax.xlane.f32.xlu2 %v10004_v32  ;;  %1175 = vmax.xlane.f32.xlu0 %v10007_v54 }
 0x514   : > { %1173 = vmax.xlane.f32.xlu1 %v10010_v31  ;;  %7067 = vmatmul.msk.bf16.gmra.mxu0 %vm1049_vm5, %v9854_v21  ;;  %v1197_v21 = vmul.f32 1.442695, %v1180_v16 }
 0x516   : > { %7901 = vpow2.f32 %v1197_v21 }
 0x51b   : > { %1167 = vmax.xlane.f32.xlu2 %v10018_v1  ;;  %1177 = vmax.xlane.f32.xlu0 %v10021_v35 }
 0x51c   : > { %v10036_v28 = vpop.eup %7901 }
 0x523   : > { %1169 = vmax.xlane.f32.xlu2 %v10026_v42 }
 0x524   : > { %7068 = vmatmul.msk.bf16.gmra.mxu0 %vm1049_vm5, %v9848_v48 }
 0x52b   : > { %1171 = vmax.xlane.f32.xlu2 %v10033_v14 }
 0x533   : > { %1229 = vadd.xlane.f32.xlu2 %v10036_v28 }
 0x546   : > { %v10039_v0 = vpop.xlane.xlu2 %1501 }
 0x54e   : > { %v1504_v26 = vpop.xlane.xlu0 %1503  ;;  %v1148_v9 = vpop.xlane.xlu2 %1147 }
 0x54f   : > { %v1179_v62 = vsub.f32 %v9938_v59, %v1148_v9 }
 0x551   : > { %v1195_v15 = vmul.f32 1.442695, %v1179_v62 }
 0x553   : > { %7903 = vpow2.f32 %v1195_v15 }
 0x556   : > { %v1152_v48 = vpop.xlane.xlu0 %1151  ;;  %v10051_v52 = vpop.xlane.xlu1 %1505 }
 0x557   : > { %v1181_v23 = vsub.f32 %v9946_v55, %v1152_v48 }
 0x559   : > { %v1199_v8 = vmul.f32 1.442695, %v1181_v23  ;;  %v10043_v3 = vpop.eup %7903 }
 0x55a   : > { %1227 = vadd.xlane.f32.xlu1 %v10043_v3 }
 0x55b   : > { %7905 = vpow2.f32 %v1199_v8 }
 0x55e   : > { %v10046_v4 = vpop.xlane.xlu2 %1507  ;;  %v1156_v59 = vpop.xlane.xlu0 %1155 }
 0x55f   : > { %v1183_v55 = vsub.f32 %v9956_v49, %v1156_v59 }
 0x561   : > { %v10048_v7 = vpop.eup %7905  ;;  %v1203_v27 = vmul.f32 1.442695, %v1183_v55 }
 0x562   : > { %1231 = vadd.xlane.f32.xlu0 %v10048_v7 }
 0x566   : > { %v1154_v53 = vpop.xlane.xlu2 %1153  ;;  %v10055_v18 = vpop.xlane.xlu1 %1509 }
 0x567   : > { %v1182_v57 = vsub.f32 %v9967_v29, %v1154_v53  ;;  %v13548_v29 = vld [vmem:[#allocation53_spill] sm:$0xff] }
 0x569   : > { %v1201_v10 = vmul.f32 1.442695, %v1182_v57 }
 0x56b   : > { %7907 = vpow2.f32 %v1201_v10 }
 0x56c   : > { %7909 = vpow2.f32 %v1203_v27 }
 0x56e   : > { %v10057_v12 = vpop.xlane.xlu0 %1511  ;;  %v1160_v17 = vpop.xlane.xlu2 %1159 }
 0x56f   : > { %v1185_v21 = vsub.f32 %v9974_v22, %v1160_v17 }
 0x571   : > { %v10059_v16 = vpop.eup %7907  ;;  %v1207_v49 = vmul.f32 1.442695, %v1185_v21 }
 0x572   : > { %1233 = vadd.xlane.f32.xlu2 %v10059_v16  ;;  %v10067_v62 = vpop.eup %7909 }
 0x573   : > { %7911 = vpow2.f32 %v1207_v49 }
 0x576   : > { %v1158_v25 = vpop.xlane.xlu0 %1157  ;;  %v10063_v9 = vpop.xlane.xlu1 %1513  ;;  %1659 = vrot.lane.b32.xlu0 %v13548_v29, %s8717_s23 }
 0x577   : > { %v1184_v29 = vsub.f32 %v9985_v20, %v1158_v25 }
 0x579   : > { %v10074_v53 = vpop.eup %7911 }
 0x57a   : > { %1235 = vadd.xlane.f32.xlu2 %v10067_v62 }
 0x57e   : > { %v1162_v15 = vpop.xlane.xlu0 %1161  ;;  %v10070_v48 = vpop.xlane.xlu2 %1515 }
 0x57f   : > { %v1186_v23 = vsub.f32 %v9995_v60, %v1162_v15  ;;  %v1166_v8 = vpop.xlane.xlu1 %1165  ;;  %v1534_v60 = vsub.f32 %v9941_v34, %v1504_v26 }
 0x580   : > { %v1188_v22 = vsub.f32 %v9998_v24, %v1166_v8 }
 0x581   : > { %v1209_v59 = vmul.f32 1.442695, %v1186_v23  ;;  %v1551_v24 = vmul.f32 1.442695, %v1534_v60  ;;  %v1205_v23 = vmul.f32 1.442695, %v1184_v29 }
 0x582   : > { %v1213_v57 = vmul.f32 1.442695, %v1188_v22  ;;  %1239 = vadd.xlane.f32.xlu2 %v10074_v53 }
 0x583   : > { %7913 = vpow2.f32 %v1209_v59 }
 0x584   : > { %7915 = vpow2.f32 %v1213_v57 }
 0x586   : > { %v1164_v10 = vpop.xlane.xlu2 %1163 }
 0x587   : > { %v1187_v55 = vsub.f32 %v10004_v32, %v1164_v10  ;;  %v1174_v49 = vpop.xlane.xlu1 %1173  ;;  %v13550_v10 = vld [vmem:[#allocation55_spill] sm:$0xff] }
 0x588   : > { %v1192_v32 = vsub.f32 %v10010_v31, %v1174_v49  ;;  %v13549_v31 = vld [vmem:[#allocation52_spill] sm:$0xff] }
 0x589   : > { %v10078_v27 = vpop.eup %7913  ;;  %v1211_v17 = vmul.f32 1.442695, %v1187_v55 }
 0x58a   : > { %v10080_v21 = vpop.eup %7915  ;;  %1241 = vadd.xlane.f32.xlu2 %v10078_v27  ;;  %v1221_v22 = vmul.f32 1.442695, %v1192_v32  ;;  %v1481_v32 = vpop.f32.mrf.mxu0 }
 0x58b   : > { %1245 = vadd.xlane.f32.xlu1 %v10080_v21  ;;  %7917 = vpow2.f32 %v1211_v17 }
 0x58c   : > { %7919 = vpow2.f32 %v1551_v24 }
 0x58d   : > { %7921 = vpow2.f32 %v1205_v23 }
 0x58e   : > { %v1168_v8 = vpop.xlane.xlu2 %1167  ;;  %7923 = vpow2.f32 %v1221_v22 }
 0x58f   : > { %v1189_v59 = vsub.f32 %v10018_v1, %v1168_v8 }
 0x591   : > { %v10086_v15 = vpop.eup %7917  ;;  %v1215_v34 = vmul.f32 1.442695, %v1189_v59 }
 0x592   : > { %1243 = vadd.xlane.f32.xlu2 %v10086_v15  ;;  %v10091_v57 = vpop.eup %7919 }
 0x593   : > { %v10094_v20 = vpop.eup %7921  ;;  %7925 = vpow2.f32 %v1215_v34  ;;  %v10116_v34 = vpop.f32.mrf.mxu0 }
 0x594   : > { %v10097_v26 = vpop.eup %7923 }
 0x596   : > { %v1170_v1 = vpop.xlane.xlu2 %1169 }
 0x597   : > { %v1190_v55 = vsub.f32 %v10026_v42, %v1170_v1  ;;  %v1533_v1 = vsub.f32 %v9932_v13, %v10039_v0 }
 0x599   : > { %v10102_v25 = vpop.eup %7925  ;;  %v1217_v60 = vmul.f32 1.442695, %v1190_v55 }
 0x59a   : > { %1583 = vadd.xlane.f32.xlu2 %v10091_v57 }
 0x59b   : > { %7927 = vpow2.f32 %v1217_v60  ;;  %v1549_v60 = vmul.f32 1.442695, %v1533_v1 }
 0x59e   : > { %v1172_v17 = vpop.xlane.xlu2 %1171 }
 0x59f   : > { %v1191_v24 = vsub.f32 %v10033_v14, %v1172_v17 }
 0x5a0   : > { %1237 = vadd.xlane.f32.xlu0 %v10094_v20 }
 0x5a1   : > { %v1219_v29 = vmul.f32 1.442695, %v1191_v24  ;;  %v10111_v23 = vpop.eup %7927  ;;  %v1536_v24 = vsub.f32 %v9959_v58, %v10046_v4 }
 0x5a2   : > { %1253 = vadd.xlane.f32.xlu2 %v10097_v26 }
 0x5a3   : > { %v1555_v6 = vmul.f32 1.442695, %v1536_v24 }
 0x5a4   : > { %1657 = vrot.lane.b32.xlu1 %v13549_v31, %s8717_s23 }
 0x5a6   : > { %v1230_v49 = vpop.xlane.xlu2 %1229 }
 0x5a7   : > { %7929 = vrcp.f32 %v1230_v49 }
 0x5a8   : > { %1247 = vadd.xlane.f32.xlu0 %v10102_v25  ;;  %7931 = vpow2.f32 %v1219_v29  ;;  %v10125_v29 = vpop.f32.mrf.mxu0 }
 0x5ad   : > { %v7930_v22 = vpop.eup %7929 }
 0x5ae   : > { %v10114_v59 = vpop.eup %7931  ;;  %v1276_v31 = vmul.f32 %v7930_v22, %v10036_v28 }
 0x5b0   : > { %v1488_v4 = vpop.f32.mrf.mxu0 }
 0x5b8   : > { %v10150_v24 = vpop.f32.mrf.mxu0 }
 0x5ba   : > { %1748 = vrot.lane.b32.xlu2 %v9551_v33, %s8716_s22  ;;  %v1176_v33 = vpop.xlane.xlu0 %1175 }
 0x5bb   : > { %v1193_v49 = vsub.f32 %v10007_v54, %v1176_v33 }
 0x5bc   : > { %2084 = vrot.lane.b32.xlu0 %v13550_v10, %s8711_s20 }
 0x5bd   : > { %v1223_v28 = vmul.f32 1.442695, %v1193_v49 }
 0x5c2   : > { %v1178_v17 = vpop.xlane.xlu0 %1177 }
 0x5cd   : > { %v1228_v8 = vpop.xlane.xlu1 %1227 }
 0x5ce   : > { %1249 = vadd.xlane.f32.xlu1 %v10111_v23  ;;  %7933 = vrcp.f32 %v1228_v8 }
 0x5cf   : > { %7935 = vpow2.f32 %v1549_v60  ;;  %v10148_v60 = vadd.f32 %v1488_v4, %v13545_v11  ;;  %v1194_v4 = vsub.f32 %v10021_v35, %v1178_v17 }
 0x5d4   : > { %v7934_v42 = vpop.eup %7933 }
 0x5d5   : > { %v1275_v14 = vmul.f32 %v7934_v42, %v10043_v3  ;;  %v1232_v8 = vpop.xlane.xlu0 %1231  ;;  %v10129_v3 = vadd.f32 %v1481_v32, %v13489_v45  ;;  %v10132_v13 = vpop.eup %7935  ;;  %v1538_v42 = vsub.f32 %v9977_v56, %v10057_v12 }
 0x5d6   : > { %1251 = vadd.xlane.f32.xlu1 %v10114_v59  ;;  %7937 = vrcp.f32 %v1232_v8 }
 0x5d7   : > { %v1291_v55 = vpack.c.bf16 %v1276_v31, %v1275_v14  ;;  %7939 = vpow2.f32 %v1555_v6  ;;  %v13551_v31 = vld [vmem:[#allocation51_spill] sm:$0xff] }
 0x5d9   : > { %1331 = vmatmul.bf16.vlgmr.msrb.gmra.mxu3 %v1291_v55  ;;  %v1559_v55 = vmul.f32 1.442695, %v1538_v42  ;;  %v1225_v42 = vmul.f32 1.442695, %v1194_v4 }
 0x5dc   : > { %v7938_v54 = vpop.eup %7937 }
 0x5dd   : > { %v10135_v33 = vpop.eup %7939  ;;  %v1277_v6 = vmul.f32 %v7938_v54, %v10048_v7  ;;  %v1493_v7 = vpop.f32.mrf.mxu0 }
 0x5de   : > { %v10157_v12 = vadd.f32 %v1493_v7, %v13486_v50 }
 0x5e3   : > { %1517 = vmax.xlane.f32.xlu2 %v10129_v3 }
 0x5e5   : > { %v1234_v0 = vpop.xlane.xlu2 %1233  ;;  %v1496_v49 = vpop.f32.mrf.mxu0 }
 0x5e6   : > { %7941 = vrcp.f32 %v1234_v0  ;;  %1581 = vadd.xlane.f32.xlu0 %v10132_v13  ;;  %v13553_v0 = vld [vmem:[#allocation62_spill] sm:$0xff] }
 0x5e7   : > { %7943 = vpow2.f32 %v1223_v28  ;;  %v10163_v28 = vadd.f32 %v1496_v49, %v13485_v51 }
 0x5e8   : > { %v1660_v58 = vpop.permute.xlu0 %1659  ;;  %7945 = vpow2.f32 %v1559_v55 }
 0x5e9   : > { %1681 = vmatpush.bf16.msrb.mxu1 %v1660_v58 }
 0x5eb   : > { %1587 = vadd.xlane.f32.xlu2 %v10135_v33 }
 0x5ec   : > { %v7942_v32 = vpop.eup %7941 }
 0x5ed   : > { %v10138_v22 = vpop.eup %7943  ;;  %v1278_v14 = vmul.f32 %v7942_v32, %v10059_v16  ;;  %v13552_v16 = vld [vmem:[#allocation54_spill] sm:$0xff]  ;;  %v1236_v8 = vpop.xlane.xlu2 %1235 }
 0x5ee   : > { %1255 = vadd.xlane.f32.xlu0 %v10138_v22  ;;  %v10153_v56 = vpop.eup %7945  ;;  %7947 = vrcp.f32 %v1236_v8  ;;  %v1498_v49 = vpop.f32.mrf.mxu0  ;;  %v1535_v8 = vsub.f32 %v9949_v30, %v10051_v52  ;;  %v1540_v30 = vsub.f32 %v9992_v5, %v10070_v48 }
 0x5ef   : > { %1655 = vrot.lane.b32.xlu1 %v13551_v31, %s8717_s23  ;;  %v1292_v1 = vpack.c.bf16 %v1278_v14, %v1277_v6  ;;  %v10171_v14 = vadd.f32 %v10116_v34, %v13488_v46  ;;  %v1537_v34 = vsub.f32 %v9964_v2, %v10055_v18 }
 0x5f1   : > { %1336 = vmatmul.bf16.gmra.mxu3 %v1292_v1  ;;  %v1557_v4 = vmul.f32 1.442695, %v1537_v34 }
 0x5f3   : > { %1523 = vmax.xlane.f32.xlu2 %v10148_v60 }
 0x5f4   : > { %v7948_v31 = vpop.eup %7947 }
 0x5f5   : > { %v1240_v54 = vpop.xlane.xlu2 %1239  ;;  %v1279_v55 = vmul.f32 %v7948_v31, %v10067_v62  ;;  %v1553_v31 = vmul.f32 1.442695, %v1535_v8 }
 0x5fb   : > { %1591 = vadd.xlane.f32.xlu2 %v10153_v56 }
 0x5fd   : > { %v1242_v17 = vpop.xlane.xlu2 %1241 }
 0x5fe   : > { %v1246_v58 = vpop.xlane.xlu1 %1245 }
 0x602   : > { %1653 = vrot.lane.b32.xlu0 %v13552_v16, %s8717_s23 }
 0x603   : > { %1527 = vmax.xlane.f32.xlu2 %v10157_v12 }
 0x605   : > { %v1244_v52 = vpop.xlane.xlu2 %1243 }
 0x60a   : > { %2086 = vrot.lane.b32.xlu0 %v13553_v0, %s8711_s20 }
 0x60b   : > { %1529 = vmax.xlane.f32.xlu2 %v10163_v28 }
 0x613   : > { %v1238_v32 = vpop.xlane.xlu0 %1237 }
 0x614   : > { %7949 = vrcp.f32 %v1238_v32 }
 0x615   : > { %7951 = vpow2.f32 %v1225_v42 }
 0x616   : > { %v1658_v6 = vpop.permute.xlu1 %1657  ;;  %7953 = vrcp.f32 %v1242_v17  ;;  %v10205_v17 = vadd.f32 %v10150_v24, %v13547_v19 }
 0x617   : > { %1682 = vmatpush.bf16.msrb.mxu1 %v1658_v6  ;;  %7955 = vrcp.f32 %v1240_v54  ;;  %v10188_v6 = vpop.f32.mrf.mxu0 }
 0x618   : > { %7957 = vpow2.f32 %v1557_v4 }
 0x619   : > { %1519 = vmax.xlane.f32.xlu1 %v10171_v14  ;;  %7959 = vpow2.f32 %v1553_v31 }
 0x61a   : > { %v7950_v1 = vpop.eup %7949  ;;  %7961 = vrcp.f32 %v1244_v52 }
 0x61b   : > { %v1280_v35 = vmul.f32 %v7950_v1, %v10094_v20  ;;  %v10176_v16 = vpop.eup %7951  ;;  %v10185_v20 = vadd.f32 %v10125_v29, %v13487_v47  ;;  %v1248_v32 = vpop.xlane.xlu0 %1247  ;;  %7963 = vrcp.f32 %v1246_v58 }
 0x61c   : > { %v7954_v62 = vpop.eup %7953  ;;  %v1584_v58 = vpop.xlane.xlu2 %1583 }
 0x61d   : > { %v1293_v7 = vpack.c.bf16 %v1280_v35, %v1279_v55  ;;  %v7956_v42 = vpop.eup %7955  ;;  %v1282_v2 = vmul.f32 %v7954_v62, %v10078_v27  ;;  %v1539_v27 = vsub.f32 %v9982_v61, %v10063_v9  ;;  %v1563_v55 = vmul.f32 1.442695, %v1540_v30 }
 0x61e   : > { %v1281_v18 = vmul.f32 %v7956_v42, %v10074_v53  ;;  %v10194_v1 = vpop.eup %7957 }
 0x61f   : > { %1341 = vmatmul.bf16.gmra.mxu3 %v1293_v7  ;;  %v10200_v53 = vpop.eup %7959  ;;  %v2163_v35 = vpop.f32.mrf.mxu0  ;;  %v1561_v5 = vmul.f32 1.442695, %v1539_v27  ;;  %7965 = vpow2.f32 %v1563_v55 }
 0x620   : > { %v1294_v54 = vpack.c.bf16 %v1282_v2, %v1281_v18  ;;  %v7962_v48 = vpop.eup %7961 }
 0x621   : > { %1257 = vadd.xlane.f32.xlu1 %v10176_v16  ;;  %v7964_v7 = vpop.eup %7963  ;;  %7967 = vpow2.f32 %v1561_v5  ;;  %v1283_v61 = vmul.f32 %v7962_v48, %v10086_v15  ;;  %v10219_v15 = vadd.f32 %v1498_v49, %v13543_v63 }
 0x622   : > { %v1284_v34 = vmul.f32 %v7964_v7, %v10080_v21 }
 0x624   : > { %v1295_v4 = vpack.c.bf16 %v1284_v34, %v1283_v61  ;;  %v1254_v42 = vpop.xlane.xlu2 %1253 }
 0x625   : > { %v10209_v9 = vpop.eup %7965 }
 0x627   : > { %v10213_v8 = vpop.f32.mrf.mxu0  ;;  %v10215_v62 = vpop.eup %7967 }
 0x629   : > { %1521 = vmax.xlane.f32.xlu1 %v10185_v20 }
 0x62c   : > { %v10227_v27 = vpop.permute.xlu2 %1748 }
 0x62e   : > { %v2085_v29 = vpop.permute.xlu0 %2084 }
 0x62f   : > { %1346 = vmatmul.bf16.gmra.mxu3 %v1294_v54  ;;  %7069 = vmatmul.msk.bf16.gmra.mxu0 %vm1049_vm5, %v2085_v29  ;;  %v2168_v2 = vpop.f32.mrf.mxu0  ;;  %v10225_v29 = vadd.f32 %v2163_v35, %v13496_v37 }
 0x630   : > { %v10233_v55 = vadd.f32 %v2168_v2, %v13494_v39 }
 0x631   : > { %1589 = vadd.xlane.f32.xlu1 %v10194_v1 }
 0x634   : > { %1585 = vadd.xlane.f32.xlu0 %v10200_v53 }
 0x637   : > { %v10230_v49 = vpop.f32.mrf.mxu0 }
 0x639   : > { %1525 = vmax.xlane.f32.xlu1 %v10205_v17 }
 0x63c   : > { %1595 = vadd.xlane.f32.xlu0 %v10209_v9 }
 0x63f   : > { %1351 = vmatmul.bf16.gmra.mxu3 %v1295_v4  ;;  %v2173_v7 = vpop.f32.mrf.mxu0 }
 0x640   : > { %v10240_v4 = vadd.f32 %v2173_v7, %v13492_v41 }
 0x641   : > { %v1250_v24 = vpop.xlane.xlu1 %1249  ;;  %1593 = vadd.xlane.f32.xlu1 %v10215_v62 }
 0x642   : > { %7969 = vrcp.f32 %v1250_v24 }
 0x643   : > { %7971 = vrcp.f32 %v1248_v32 }
 0x648   : > { %v7970_v31 = vpop.eup %7969 }
 0x649   : > { %v7972_v21 = vpop.eup %7971  ;;  %1531 = vmax.xlane.f32.xlu1 %v10219_v15  ;;  %v1286_v18 = vmul.f32 %v7970_v31, %v10111_v23  ;;  %v1252_v52 = vpop.xlane.xlu1 %1251 }
 0x64a   : > { %v1285_v30 = vmul.f32 %v7972_v21, %v10102_v25  ;;  %7973 = vrcp.f32 %v1252_v52 }
 0x64b   : > { %7975 = vrcp.f32 %v1254_v42 }
 0x64c   : > { %v1296_v54 = vpack.c.bf16 %v1286_v18, %v1285_v30 }
 0x64f   : > { %1356 = vmatmul.bf16.gmra.mxu3 %v1296_v54 }
 0x650   : > { %v7974_v32 = vpop.eup %7973 }
 0x651   : > { %2203 = vmax.xlane.f32.xlu1 %v10225_v29  ;;  %v7976_v25 = vpop.eup %7975  ;;  %v1287_v35 = vmul.f32 %v7974_v32, %v10114_v59 }
 0x652   : > { %v1288_v61 = vmul.f32 %v7976_v25, %v10097_v26 }
 0x654   : > { %v1297_v34 = vpack.c.bf16 %v1288_v61, %v1287_v35 }
 0x656   : > { %v1518_v23 = vpop.xlane.xlu2 %1517 }
 0x657   : > { %v1541_v5 = vsub.f32 %v10129_v3, %v1518_v23 }
 0x659   : > { %2207 = vmax.xlane.f32.xlu1 %v10233_v55  ;;  %v1565_v48 = vmul.f32 1.442695, %v1541_v5  ;;  %v1582_v3 = vpop.xlane.xlu0 %1581 }
 0x65b   : > { %7977 = vpow2.f32 %v1565_v48 }
 0x65c   : > { %7979 = vrcp.f32 %v1582_v3  ;;  %v10254_v61 = vpop.f32.mrf.mxu3 }
 0x65d   : > { %7981 = vrcp.f32 %v1584_v58 }
 0x65e   : > { %v1588_v54 = vpop.xlane.xlu2 %1587 }
 0x65f   : > { %1361 = vmatmul.bf16.gmra.mxu3 %v1297_v34 }
 0x661   : > { %2211 = vmax.xlane.f32.xlu1 %v10240_v4  ;;  %v1656_v24 = vpop.permute.xlu1 %1655  ;;  %v10243_v42 = vpop.eup %7977 }
 0x662   : > { %1683 = vmatpush.bf16.msrb.mxu1 %v1656_v24  ;;  %1597 = vadd.xlane.f32.xlu0 %v10243_v42  ;;  %v1256_v59 = vpop.xlane.xlu0 %1255  ;;  %v7980_v31 = vpop.eup %7979 }
 0x663   : > { %v7982_v26 = vpop.eup %7981  ;;  %v1629_v2 = vmul.f32 %v7980_v31, %v10132_v13  ;;  %v10261_v31 = vadd.f32 %v10188_v6, %v13497_v36 }
 0x664   : > { %v1630_v18 = vmul.f32 %v7982_v26, %v10091_v57 }
 0x666   : > { %v1645_v30 = vpack.c.bf16 %v1630_v18, %v1629_v2  ;;  %v1524_v58 = vpop.xlane.xlu2 %1523 }
 0x667   : > { %v1544_v57 = vsub.f32 %v10148_v60, %v1524_v58 }
 0x669   : > { %v1571_v34 = vmul.f32 1.442695, %v1544_v57 }
 0x66e   : > { %v1592_v7 = vpop.xlane.xlu2 %1591 }
 0x674   : > { %v1654_v21 = vpop.permute.xlu0 %1653 }
 0x675   : > { %1684 = vmatpush.bf16.msrb.mxu1 %v1654_v21 }
 0x676   : > { %v1528_v21 = vpop.xlane.xlu2 %1527 }
 0x678   : > { %1685 = vmatmul.bf16.vlgmr.msrb.gmra.mxu1 %v1645_v30 }
 0x67c   : > { %v2087_v52 = vpop.permute.xlu0 %2086 }
 0x67d   : > { %7070 = vmatmul.msk.bf16.gmra.mxu0 %vm1049_vm5, %v2087_v52 }
 0x68c   : > { %v1520_v32 = vpop.xlane.xlu1 %1519 }
 0x68d   : > { %v1542_v23 = vsub.f32 %v10171_v14, %v1520_v32 }
 0x68f   : > { %v1567_v25 = vmul.f32 1.442695, %v1542_v23 }
 0x691   : > { %7983 = vpow2.f32 %v1567_v25  ;;  %v10276_v25 = vadd.f32 %v10213_v8, %v13495_v38  ;;  %v1530_v8 = vpop.xlane.xlu2 %1529 }
 0x692   : > { %7985 = vrcp.f32 %v1256_v59 }
 0x694   : > { %v1258_v5 = vpop.xlane.xlu1 %1257 }
 0x695   : > { %7987 = vrcp.f32 %v1258_v5 }
 0x696   : > { %7989 = vpow2.f32 %v1571_v34 }
 0x697   : > { %v10250_v13 = vpop.eup %7983 }
 0x698   : > { %1599 = vadd.xlane.f32.xlu2 %v10250_v13  ;;  %v7986_v35 = vpop.eup %7985 }
 0x699   : > { %v1289_v14 = vmul.f32 %v7986_v35, %v10138_v22  ;;  %v10266_v22 = vpop.f32.mrf.mxu3 }
 0x69b   : > { %v7988_v48 = vpop.eup %7987 }
 0x69c   : > { %v1522_v24 = vpop.xlane.xlu1 %1521  ;;  %v1290_v3 = vmul.f32 %v7988_v48, %v10176_v16  ;;  %v10264_v18 = vpop.eup %7989 }
 0x69d   : > { %v1543_v59 = vsub.f32 %v10185_v20, %v1522_v24  ;;  %v1546_v20 = vsub.f32 %v10157_v12, %v1528_v21  ;;  %v13554_v12 = vld [vmem:[#allocation66_spill] sm:$0xff] }
 0x69e   : > { %v1298_v60 = vpack.c.bf16 %v1290_v3, %v1289_v14  ;;  %v1547_v3 = vsub.f32 %v10163_v28, %v1530_v8  ;;  %v13555_v28 = vld [vmem:[#allocation68_spill] sm:$0xff] }
 0x69f   : > { %v1569_v26 = vmul.f32 1.442695, %v1543_v59  ;;  %v1575_v30 = vmul.f32 1.442695, %v1546_v20 }
 0x6a0   : > { %2201 = vmax.xlane.f32.xlu2 %v10261_v31  ;;  %1366 = vmatmul.bf16.gmra.mxu3 %v1298_v60 }
 0x6a1   : > { %7991 = vpow2.f32 %v1569_v26  ;;  %v10278_v58 = vpop.f32.mrf.mxu3 }
 0x6a2   : > { %7993 = vrcp.f32 %v1588_v54 }
 0x6a4   : > { %v1590_v2 = vpop.xlane.xlu1 %1589 }
 0x6a7   : > { %v10268_v16 = vpop.eup %7991  ;;  %v1586_v6 = vpop.xlane.xlu0 %1585 }
 0x6a8   : > { %1601 = vadd.xlane.f32.xlu0 %v10268_v16  ;;  %1603 = vadd.xlane.f32.xlu2 %v10264_v18  ;;  %7995 = vrcp.f32 %v1586_v6  ;;  %v7994_v32 = vpop.eup %7993 }
 0x6a9   : > { %7997 = vpow2.f32 %v1575_v30  ;;  %v1632_v35 = vmul.f32 %v7994_v32, %v10135_v33  ;;  %v10289_v14 = vpop.f32.mrf.mxu3 }
 0x6ac   : > { %v1526_v52 = vpop.xlane.xlu1 %1525 }
 0x6ad   : > { %v1545_v23 = vsub.f32 %v10205_v17, %v1526_v52 }
 0x6ae   : > { %v7996_v54 = vpop.eup %7995 }
 0x6af   : > { %v1573_v5 = vmul.f32 1.442695, %v1545_v23  ;;  %v1631_v57 = vmul.f32 %v7996_v54, %v10200_v53  ;;  %v10285_v34 = vpop.eup %7997  ;;  %v1577_v53 = vmul.f32 1.442695, %v1547_v3  ;;  %v13556_v54 = vld [vmem:[#allocation64_spill] sm:$0xff]  ;;  %v2176_v3 = vpop.f32.mrf.mxu0 }
 0x6b0   : > { %7055 = vmatmul.msk.bf16.vlgmr.msra.gmra.mxu3 %vm1049_vm5, %v13554_v12  ;;  %2205 = vmax.xlane.f32.xlu2 %v10276_v25 }
 0x6b1   : > { %7999 = vpow2.f32 %v1573_v5  ;;  %v1646_v17 = vpack.c.bf16 %v1632_v35, %v1631_v57  ;;  %v10300_v20 = vpop.f32.mrf.mxu3  ;;  %v13558_v35 = vld [vmem:[#allocation56_spill] sm:$0xff] }
 0x6b2   : > { %8001 = vrcp.f32 %v1590_v2  ;;  %v10297_v2 = vadd.f32 %v10230_v49, %v13493_v40 }
 0x6b3   : > { %1690 = vmatmul.bf16.gmra.mxu1 %v1646_v17  ;;  %8003 = vrcp.f32 %v1592_v7 }
 0x6b4   : > { %v1594_v48 = vpop.xlane.xlu1 %1593  ;;  %8005 = vpow2.f32 %v1577_v53 }
 0x6b7   : > { %v10287_v24 = vpop.eup %7999 }
 0x6b8   : > { %1605 = vadd.xlane.f32.xlu0 %v10287_v24  ;;  %1607 = vadd.xlane.f32.xlu2 %v10285_v34  ;;  %v8002_v33 = vpop.eup %8001 }
 0x6b9   : > { %v8004_v60 = vpop.eup %8003  ;;  %v1633_v7 = vmul.f32 %v8002_v33, %v10194_v1  ;;  %v10312_v1 = vpop.f32.mrf.mxu3 }
 0x6ba   : > { %v1634_v6 = vmul.f32 %v8004_v60, %v10153_v56  ;;  %v10306_v49 = vpop.eup %8005 }
 0x6bc   : > { %v1532_v59 = vpop.xlane.xlu1 %1531  ;;  %v1647_v30 = vpack.c.bf16 %v1634_v6, %v1633_v7  ;;  %v10346_v7 = vadd.f32 %v2176_v3, %v13491_v43 }
 0x6bd   : > { %v1548_v26 = vsub.f32 %v10219_v15, %v1532_v59  ;;  %v1596_v15 = vpop.xlane.xlu0 %1595  ;;  %v13566_v59 = vld [vmem:[#allocation67_spill] sm:$0xff] }
 0x6bf   : > { %v1579_v21 = vmul.f32 1.442695, %v1548_v26 }
 0x6c0   : > { %7056 = vmatmul.msk.bf16.gmra.mxu3 %vm1049_vm5, %v13555_v28  ;;  %2209 = vmax.xlane.f32.xlu2 %v10297_v2 }
 0x6c1   : > { %8007 = vpow2.f32 %v1579_v21  ;;  %v10320_v57 = vpop.f32.mrf.mxu3 }
 0x6c2   : > { %8009 = vrcp.f32 %v1594_v48  ;;  %13557 = vst [vmem:[#allocation53_spill] sm:$0xff] %v10320_v57  ;;  %v13560_v48 = vld [vmem:[#allocation63_spill] sm:$0xff] }
 0x6c3   : > { %1695 = vmatmul.bf16.gmra.mxu1 %v1647_v30  ;;  %8011 = vrcp.f32 %v1596_v15 }
 0x6c4   : > { %v2204_v53 = vpop.xlane.xlu1 %2203 }
 0x6c5   : > { %v2234_v60 = vsub.f32 %v10225_v29, %v2204_v53 }
 0x6c7   : > { %v10308_v52 = vpop.eup %8007  ;;  %v2251_v21 = vmul.f32 1.442695, %v2234_v60 }
 0x6c8   : > { %1611 = vadd.xlane.f32.xlu1 %v10308_v52  ;;  %1609 = vadd.xlane.f32.xlu2 %v10306_v49  ;;  %v8010_v32 = vpop.eup %8009 }
 0x6c9   : > { %v8012_v56 = vpop.eup %8011  ;;  %v1635_v23 = vmul.f32 %v8010_v32, %v10215_v62  ;;  %v10324_v17 = vpop.f32.mrf.mxu3  ;;  %v13569_v32 = vld [vmem:[#allocation69_spill] sm:$0xff] }
 0x6ca   : > { %v1636_v5 = vmul.f32 %v8012_v56, %v10209_v9  ;;  %13559 = vst [vmem:[#allocation52_spill] sm:$0xff] %v10324_v17  ;;  %v13563_v9 = vld [vmem:[#allocation65_spill] sm:$0xff] }
 0x6cc   : > { %2367 = vrot.lane.b32.xlu0 %v13553_v0, %s8714_s4  ;;  %v1648_v12 = vpack.c.bf16 %v1636_v5, %v1635_v23  ;;  %v13561_v0 = vld [vmem:[#allocation60_spill] sm:$0xff] }
 0x6d0   : > { %7057 = vmatmul.msk.bf16.gmra.mxu3 %vm1049_vm5, %v13556_v54 }
 0x6d1   : > { %v10332_v62 = vpop.f32.mrf.mxu3 }
 0x6d2   : > { %13562 = vst [vmem:[#allocation55_spill] sm:$0xff] %v10332_v62 }
 0x6d3   : > { %1700 = vmatmul.bf16.gmra.mxu1 %v1648_v12 }
 0x6d4   : > { %2361 = vrot.lane.b32.xlu0 %v13558_v35, %s8714_s4 }
 0x6d5   : > { %v1598_v28 = vpop.xlane.xlu0 %1597 }
 0x6d6   : > { %8013 = vrcp.f32 %v1598_v28 }
 0x6d7   : > { %8015 = vpow2.f32 %v2251_v21 }
 0x6d9   : > { %v10336_v8 = vpop.f32.mrf.mxu3 }
 0x6da   : > { %13564 = vst [vmem:[#allocation51_spill] sm:$0xff] %v10336_v8 }
 0x6dc   : > { %v8014_v29 = vpop.eup %8013 }
 0x6dd   : > { %v10357_v56 = vpop.eup %8015  ;;  %v1637_v5 = vmul.f32 %v8014_v29, %v10243_v42  ;;  %v13571_v42 = vld [vmem:[#allocation59_spill] sm:$0xff]  ;;  %v10376_v29 = vpop.xlane.xlu1 %2207 }
 0x6e0   : > { %7058 = vmatmul.msk.bf16.gmra.mxu3 %vm1049_vm5, %v13560_v48  ;;  %2365 = vrot.lane.b32.xlu2 %v13550_v10, %s8714_s4  ;;  %v2178_v10 = vpop.f32.mrf.mxu0 }
 0x6e1   : > { %2363 = vrot.lane.b32.xlu1 %v13561_v0, %s8714_s4  ;;  %v10338_v33 = vpop.f32.mrf.mxu3  ;;  %v10349_v6 = vadd.f32 %v2178_v10, %v13490_v44 }
 0x6e2   : > { %13565 = vst [vmem:[#allocation54_spill] sm:$0xff] %v10338_v33 }
 0x6e9   : > { %v10343_v26 = vpop.f32.mrf.mxu3 }
 0x6ea   : > { %13567 = vst [vmem:[#allocation62_spill] sm:$0xff] %v10343_v26 }
 0x6f0   : > { %7059 = vmatmul.msk.bf16.gmra.mxu3 %vm1049_vm5, %v13563_v9 }
 0x6f1   : > { %v10353_v15 = vpop.f32.mrf.mxu3 }
 0x6f2   : > { %13568 = vst [vmem:[#allocation66_spill] sm:$0xff] %v10353_v15 }
 0x6f9   : > { %v10363_v9 = vpop.f32.mrf.mxu3 }
 0x6fa   : > { %13570 = vst [vmem:[#allocation68_spill] sm:$0xff] %v10363_v9 }
 0x700   : > { %7060 = vmatmul.msk.bf16.gmra.mxu3 %vm1049_vm5, %v13566_v59 }
 0x709   : > { %2213 = vmax.xlane.f32.xlu2 %v10346_v7 }
 0x70b   : > { %2215 = vmax.xlane.f32.xlu1 %v10349_v6  ;;  %v1600_v30 = vpop.xlane.xlu2 %1599 }
 0x70c   : > { %8017 = vrcp.f32 %v1600_v30 }
 0x710   : > { %7061 = vmatmul.msk.bf16.gmra.mxu3 %vm1049_vm5, %v13569_v32  ;;  %v13573_v32 = vld [vmem:[#allocation58_spill] sm:$0xff] }
 0x712   : > { %v8018_v23 = vpop.eup %8017 }
 0x713   : > { %2283 = vadd.xlane.f32.xlu1 %v10357_v56  ;;  %v2202_v54 = vpop.xlane.xlu2 %2201  ;;  %v1638_v12 = vmul.f32 %v8018_v23, %v10250_v13 }
 0x714   : > { %v2233_v35 = vsub.f32 %v10261_v31, %v2202_v54 }
 0x715   : > { %v1649_v48 = vpack.c.bf16 %v1638_v12, %v1637_v5 }
 0x716   : > { %v2249_v0 = vmul.f32 1.442695, %v2233_v35  ;;  %v10382_v35 = vpop.xlane.xlu1 %2211 }
 0x717   : > { %1705 = vmatmul.bf16.gmra.mxu1 %v1649_v48 }
 0x718   : > { %8019 = vpow2.f32 %v2249_v0 }
 0x71b   : > { %v1602_v3 = vpop.xlane.xlu0 %1601  ;;  %v1604_v53 = vpop.xlane.xlu2 %1603 }
 0x71c   : > { %8021 = vrcp.f32 %v1602_v3 }
 0x71d   : > { %8023 = vrcp.f32 %v1604_v53 }
 0x71e   : > { %v10365_v59 = vpop.eup %8019 }
 0x71f   : > { %2281 = vadd.xlane.f32.xlu0 %v10365_v59 }
 0x720   : > { %7062 = vmatmul.msk.bf16.gmra.mxu3 %vm1049_vm5, %v10227_v27 }
 0x721   : > { %2359 = vrot.lane.b32.xlu2 %v13571_v42, %s8714_s4 }
 0x722   : > { %v8022_v13 = vpop.eup %8021 }
 0x723   : > { %v8024_v31 = vpop.eup %8023  ;;  %v10372_v60 = vpop.f32.mrf.mxu3  ;;  %v1639_v21 = vmul.f32 %v8022_v13, %v10268_v16 }
 0x724   : > { %13572 = vst [vmem:[#allocation64_spill] sm:$0xff] %v10372_v60  ;;  %v2206_v10 = vpop.xlane.xlu2 %2205  ;;  %v1640_v28 = vmul.f32 %v8024_v31, %v10264_v18 }
 0x726   : > { %v1650_v30 = vpack.c.bf16 %v1640_v28, %v1639_v21 }
 0x728   : > { %1710 = vmatmul.bf16.gmra.mxu1 %v1650_v30 }
 0x729   : > { %2355 = vrot.lane.b32.xlu2 %v13573_v32, %s8714_s4 }
 0x72b   : > { %v10380_v27 = vpop.f32.mrf.mxu3  ;;  %v1606_v23 = vpop.xlane.xlu0 %1605 }
 0x72c   : > { %13574 = vst [vmem:[#allocation56_spill] sm:$0xff] %v10380_v27  ;;  %8025 = vrcp.f32 %v1606_v23  ;;  %v1608_v54 = vpop.xlane.xlu2 %1607 }
 0x72d   : > { %8027 = vrcp.f32 %v1608_v54 }
 0x732   : > { %v8026_v5 = vpop.eup %8025 }
 0x733   : > { %v8028_v12 = vpop.eup %8027  ;;  %v1823_v16 = vpop.f32.mrf.mxu3  ;;  %v1641_v18 = vmul.f32 %v8026_v5, %v10287_v24 }
 0x734   : > { %v10386_v48 = vadd.f32 %v1823_v16, %v13497_v36  ;;  %v10388_v0 = vpop.xlane.xlu2 %2209  ;;  %v1642_v3 = vmul.f32 %v8028_v12, %v10285_v34  ;;  %v2235_v12 = vsub.f32 %v10276_v25, %v2206_v10 }
 0x736   : > { %1863 = vmax.xlane.f32.xlu1 %v10386_v48  ;;  %v1651_v53 = vpack.c.bf16 %v1642_v3, %v1641_v18  ;;  %v2181_v3 = vpop.f32.mrf.mxu0 }
 0x738   : > { %1715 = vmatmul.bf16.gmra.mxu1 %v1651_v53  ;;  %v2253_v53 = vmul.f32 1.442695, %v2235_v12 }
 0x73b   : > { %v1612_v42 = vpop.xlane.xlu1 %1611  ;;  %v1825_v13 = vpop.f32.mrf.mxu3 }
 0x73c   : > { %8029 = vrcp.f32 %v1612_v42  ;;  %v10393_v31 = vadd.f32 %v1825_v13, %v13496_v37  ;;  %v1610_v21 = vpop.xlane.xlu2 %1609  ;;  %v13575_v42 = vld [vmem:[#allocation61_spill] sm:$0xff] }
 0x73d   : > { %8031 = vrcp.f32 %v1610_v21 }
 0x73e   : > { %v2368_v24 = vpop.permute.xlu0 %2367  ;;  %1865 = vmax.xlane.f32.xlu0 %v10393_v31  ;;  %8033 = vpow2.f32 %v2253_v53  ;;  %v2183_v53 = vpop.f32.mrf.mxu0 }
 0x73f   : > { %2377 = vmatpush.bf16.msra.mxu1 %v2368_v24 }
 0x742   : > { %v8030_v28 = vpop.eup %8029 }
 0x743   : > { %v8032_v30 = vpop.eup %8031  ;;  %v1828_v32 = vpop.f32.mrf.mxu3  ;;  %v1644_v34 = vmul.f32 %v8030_v28, %v10308_v52  ;;  %v10406_v52 = vadd.f32 %v2181_v3, %v13489_v45 }
 0x744   : > { %v2366_v23 = vpop.permute.xlu2 %2365  ;;  %v1643_v54 = vmul.f32 %v8032_v30, %v10306_v49  ;;  %v10409_v10 = vpop.eup %8033  ;;  %v10427_v12 = vadd.f32 %v1828_v32, %v13495_v38 }
 0x745   : > { %2378 = vmatpush.bf16.msra.mxu1 %v2366_v23  ;;  %v13576_v23 = vld [vmem:[#allocation57_spill] sm:$0xff] }
 0x746   : > { %v1652_v5 = vpack.c.bf16 %v1644_v34, %v1643_v54  ;;  %v2362_v25 = vpop.permute.xlu0 %2361 }
 0x748   : > { %1720 = vmatmul.bf16.gmra.mxu1 %v1652_v5 }
 0x74b   : > { %v1830_v16 = vpop.f32.mrf.mxu3 }
 0x74c   : > { %v10400_v18 = vadd.f32 %v1830_v16, %v13494_v39 }
 0x74e   : > { %1869 = vmax.xlane.f32.xlu0 %v10400_v18 }
 0x74f   : > { %2357 = vrot.lane.b32.xlu1 %v13575_v42, %s8714_s4 }
 0x752   : > { %2217 = vmax.xlane.f32.xlu2 %v10406_v52 }
 0x753   : > { %v2364_v49 = vpop.permute.xlu1 %2363  ;;  %v1833_v13 = vpop.f32.mrf.mxu3 }
 0x754   : > { %2379 = vmatpush.bf16.msra.mxu1 %v2364_v49  ;;  %v10433_v42 = vadd.f32 %v1833_v13, %v13493_v40  ;;  %v2238_v13 = vsub.f32 %v10240_v4, %v10382_v35 }
 0x758   : > { %2380 = vmatpush.bf16.msra.mxu1 %v2362_v25 }
 0x75a   : > { %2285 = vadd.xlane.f32.xlu2 %v10409_v10 }
 0x75b   : > { %v1835_v21 = vpop.f32.mrf.mxu3 }
 0x75c   : > { %v10413_v24 = vadd.f32 %v1835_v21, %v13492_v41  ;;  %v10437_v21 = vadd.f32 %v2183_v53, %v13488_v46  ;;  %v2259_v53 = vmul.f32 1.442695, %v2238_v13 }
 0x75e   : > { %1873 = vmax.xlane.f32.xlu0 %v10413_v24  ;;  %8035 = vpow2.f32 %v2259_v53 }
 0x763   : > { %v1838_v28 = vpop.f32.mrf.mxu3 }
 0x764   : > { %v10455_v37 = vadd.f32 %v1838_v28, %v13491_v43  ;;  %v10458_v4 = vpop.eup %8035 }
 0x76b   : > { %v1840_v30 = vpop.f32.mrf.mxu3 }
 0x76c   : > { %v10417_v34 = vadd.f32 %v1840_v30, %v13490_v44  ;;  %v2186_v30 = vpop.f32.mrf.mxu0 }
 0x76e   : > { %1877 = vmax.xlane.f32.xlu2 %v10417_v34 }
 0x772   : > { %2353 = vrot.lane.b32.xlu0 %v13576_v23, %s8714_s4 }
 0x773   : > { %v1843_v54 = vpop.f32.mrf.mxu3 }
 0x774   : > { %v10423_v5 = vadd.f32 %v1843_v54, %v13489_v45  ;;  %v2188_v36 = vpop.f32.mrf.mxu0 }
 0x776   : > { %1879 = vmax.xlane.f32.xlu2 %v10423_v5 }
 0x779   : > { %1867 = vmax.xlane.f32.xlu1 %v10427_v12 }
 0x77b   : > { %v1845_v16 = vpop.f32.mrf.mxu3 }
 0x77c   : > { %v10430_v3 = vpop.xlane.xlu2 %2213  ;;  %v10447_v54 = vadd.f32 %v1845_v16, %v13488_v46 }
 0x781   : > { %1871 = vmax.xlane.f32.xlu1 %v10433_v42 }
 0x783   : > { %v1848_v49 = vpop.f32.mrf.mxu3 }
 0x784   : > { %v2360_v25 = vpop.permute.xlu2 %2359  ;;  %v10467_v40 = vadd.f32 %v1848_v49, %v13487_v47 }
 0x785   : > { %2381 = vmatpush.bf16.msra.mxu1 %v2360_v25  ;;  %v10451_v25 = vadd.f32 %v2188_v36, %v13545_v11 }
 0x789   : > { %2219 = vmax.xlane.f32.xlu1 %v10437_v21 }
 0x78b   : > { %v1850_v32 = vpop.f32.mrf.mxu3 }
 0x78c   : > { %v10441_v23 = vadd.f32 %v1850_v32, %v13545_v11  ;;  %v2216_v32 = vpop.xlane.xlu1 %2215 }
 0x78e   : > { %1885 = vmax.xlane.f32.xlu2 %v10441_v23 }
 0x791   : > { %1881 = vmax.xlane.f32.xlu1 %v10447_v54 }
 0x792   : > { %v2282_v16 = vpop.xlane.xlu0 %2281 }
 0x794   : > { %v2284_v35 = vpop.xlane.xlu1 %2283 }
 0x796   : > { %2223 = vmax.xlane.f32.xlu2 %v10451_v25 }
 0x79c   : > { %1875 = vmax.xlane.f32.xlu0 %v10455_v37 }
 0x79e   : > { %2291 = vadd.xlane.f32.xlu2 %v10458_v4 }
 0x7a9   : > { %v1864_v38 = vpop.xlane.xlu1 %1863 }
 0x7aa   : > { %v1895_v13 = vsub.f32 %v10386_v48, %v1864_v38  ;;  %v2237_v38 = vsub.f32 %v10297_v2, %v10388_v0 }
 0x7ac   : > { %v1911_v36 = vmul.f32 1.442695, %v1895_v13  ;;  %v2356_v13 = vpop.permute.xlu2 %2355 }
 0x7ae   : > { %8037 = vpow2.f32 %v1911_v36 }
 0x7b1   : > { %v1866_v11 = vpop.xlane.xlu0 %1865 }
 0x7b2   : > { %v1896_v53 = vsub.f32 %v10393_v31, %v1866_v11  ;;  %v2257_v11 = vmul.f32 1.442695, %v2237_v38  ;;  %v10476_v31 = vadd.f32 %v2186_v30, %v13487_v47 }
 0x7b4   : > { %v10463_v39 = vpop.eup %8037  ;;  %v1913_v28 = vmul.f32 1.442695, %v1896_v53 }
 0x7b5   : > { %1943 = vadd.xlane.f32.xlu1 %v10463_v39 }
 0x7b6   : > { %8039 = vpow2.f32 %v1913_v28  ;;  %v1853_v28 = vpop.f32.mrf.mxu3 }
 0x7b7   : > { %8041 = vpow2.f32 %v2257_v11  ;;  %v10486_v38 = vadd.f32 %v1853_v28, %v13547_v19 }
 0x7bc   : > { %v10469_v41 = vpop.eup %8039 }
 0x7bd   : > { %1883 = vmax.xlane.f32.xlu1 %v10467_v40  ;;  %1945 = vadd.xlane.f32.xlu0 %v10469_v41  ;;  %v10479_v36 = vpop.eup %8041 }
 0x7be   : > { %v1855_v43 = vpop.f32.mrf.mxu3 }
 0x7bf   : > { %v10496_v28 = vadd.f32 %v1855_v43, %v13486_v50 }
 0x7c1   : > { %v2358_v48 = vpop.permute.xlu1 %2357  ;;  %v1870_v49 = vpop.xlane.xlu0 %1869 }
 0x7c2   : > { %2382 = vmatpush.bf16.msra.mxu1 %v2358_v48 }
 0x7c5   : > { %2221 = vmax.xlane.f32.xlu1 %v10476_v31  ;;  %v10482_v53 = vpop.xlane.xlu2 %2217 }
 0x7c6   : > { %2383 = vmatpush.bf16.msra.mxu1 %v2356_v13 }
 0x7cd   : > { %2289 = vadd.xlane.f32.xlu1 %v10479_v36  ;;  %v10489_v48 = vpop.xlane.xlu2 %2285 }
 0x7d1   : > { %v1874_v2 = vpop.xlane.xlu0 %1873 }
 0x7d2   : > { %v1900_v0 = vsub.f32 %v10413_v24, %v1874_v2  ;;  %v2191_v2 = vpop.f32.mrf.mxu0 }
 0x7d3   : > { %v10502_v47 = vadd.f32 %v2191_v2, %v13547_v19 }
 0x7d4   : > { %v1921_v30 = vmul.f32 1.442695, %v1900_v0 }
 0x7d5   : > { %1887 = vmax.xlane.f32.xlu1 %v10486_v38 }
 0x7d6   : > { %8043 = vpow2.f32 %v1921_v30 }
 0x7d7   : > { %8045 = vrcp.f32 %v2282_v16 }
 0x7d8   : > { %8047 = vrcp.f32 %v2284_v35  ;;  %v2240_v35 = vsub.f32 %v10349_v6, %v2216_v32 }
 0x7da   : > { %v2263_v46 = vmul.f32 1.442695, %v2240_v35 }
 0x7dc   : > { %v10491_v11 = vpop.eup %8043  ;;  %8049 = vpow2.f32 %v2263_v46 }
 0x7dd   : > { %1953 = vadd.xlane.f32.xlu2 %v10491_v11  ;;  %v8046_v13 = vpop.eup %8045 }
 0x7de   : > { %v8048_v44 = vpop.eup %8047  ;;  %v2329_v24 = vmul.f32 %v8046_v13, %v10365_v59  ;;  %v2193_v13 = vpop.f32.mrf.mxu0 }
 0x7df   : > { %v2330_v0 = vmul.f32 %v8048_v44, %v10357_v56 }
 0x7e1   : > { %v1878_v45 = vpop.xlane.xlu2 %1877  ;;  %v2345_v30 = vpack.c.bf16 %v2330_v0, %v2329_v24 }
 0x7e2   : > { %v10508_v32 = vpop.eup %8049 }
 0x7e4   : > { %v2354_v16 = vpop.permute.xlu0 %2353 }
 0x7e5   : > { %1889 = vmax.xlane.f32.xlu2 %v10496_v28  ;;  %2384 = vmatpush.bf16.msra.mxu1 %v2354_v16  ;;  %v1898_v16 = vsub.f32 %v10400_v18, %v1870_v49  ;;  %v2239_v18 = vsub.f32 %v10346_v7, %v10430_v3 }
 0x7e7   : > { %v1917_v24 = vmul.f32 1.442695, %v1898_v16  ;;  %v2261_v49 = vmul.f32 1.442695, %v2239_v18  ;;  %v10540_v16 = vadd.f32 %v2193_v13, %v13486_v50 }
 0x7e8   : > { %2385 = vmatmul.bf16.vlgmr.msra.gmra.mxu1 %v2345_v30 }
 0x7e9   : > { %v1880_v60 = vpop.xlane.xlu2 %1879 }
 0x7ea   : > { %v1903_v44 = vsub.f32 %v10423_v5, %v1880_v60  ;;  %v2236_v60 = vsub.f32 %v10233_v55, %v10376_v29  ;;  %v1902_v55 = vsub.f32 %v10417_v34, %v1878_v45 }
 0x7ec   : > { %v1868_v59 = vpop.xlane.xlu1 %1867  ;;  %v1927_v6 = vmul.f32 1.442695, %v1903_v44  ;;  %v1925_v29 = vmul.f32 1.442695, %v1902_v55 }
 0x7ed   : > { %v1897_v43 = vsub.f32 %v10427_v12, %v1868_v59  ;;  %2225 = vmax.xlane.f32.xlu2 %v10502_v47  ;;  %v2196_v12 = vpop.f32.mrf.mxu0 }
 0x7ef   : > { %v1915_v56 = vmul.f32 1.442695, %v1897_v43 }
 0x7f1   : > { %8051 = vpow2.f32 %v1915_v56  ;;  %v1858_v56 = vpop.f32.mrf.mxu3 }
 0x7f2   : > { %8053 = vpow2.f32 %v1927_v6 }
 0x7f3   : > { %8055 = vpow2.f32 %v1917_v24 }
 0x7f4   : > { %v1872_v2 = vpop.xlane.xlu1 %1871 }
 0x7f5   : > { %v1899_v0 = vsub.f32 %v10433_v42, %v1872_v2  ;;  %2295 = vadd.xlane.f32.xlu2 %v10508_v32  ;;  %v2255_v42 = vmul.f32 1.442695, %v2236_v60  ;;  %v2198_v43 = vpop.f32.mrf.mxu0  ;;  %v10550_v60 = vpop.f32.mrf.mxu1 }
 0x7f6   : > { %v10530_v7 = vadd.f32 %v2198_v43, %v13543_v63  ;;  %v10559_v43 = vadd.f32 %v2196_v12, %v13485_v51 }
 0x7f7   : > { %v10512_v35 = vpop.eup %8051  ;;  %v1919_v46 = vmul.f32 1.442695, %v1899_v0 }
 0x7f8   : > { %1947 = vadd.xlane.f32.xlu0 %v10512_v35  ;;  %v10519_v5 = vpop.eup %8053 }
 0x7f9   : > { %8057 = vpow2.f32 %v1919_v46  ;;  %v10522_v30 = vpop.eup %8055  ;;  %v1860_v0 = vpop.f32.mrf.mxu3 }
 0x7fa   : > { %8059 = vpow2.f32 %v2255_v42  ;;  %v10548_v46 = vadd.f32 %v1860_v0, %v13543_v63 }
 0x7fb   : > { %8061 = vpow2.f32 %v2261_v49 }
 0x7fc   : > { %8063 = vpow2.f32 %v1925_v29  ;;  %v2220_v34 = vpop.xlane.xlu1 %2219 }
 0x7fd   : > { %1959 = vadd.xlane.f32.xlu2 %v10519_v5  ;;  %v2242_v13 = vsub.f32 %v10437_v21, %v2220_v34  ;;  %v10562_v29 = vpop.f32.mrf.mxu1  ;;  %v2241_v21 = vsub.f32 %v10406_v52, %v10482_v53 }
 0x7ff   : > { %v10524_v59 = vpop.eup %8057  ;;  %v2267_v49 = vmul.f32 1.442695, %v2242_v13  ;;  %v2265_v12 = vmul.f32 1.442695, %v2241_v21 }
 0x800   : > { %1949 = vadd.xlane.f32.xlu0 %v10522_v30  ;;  %1951 = vadd.xlane.f32.xlu1 %v10524_v59  ;;  %v10533_v3 = vpop.eup %8059 }
 0x801   : > { %v10535_v44 = vpop.eup %8061  ;;  %v1886_v34 = vpop.xlane.xlu2 %1885 }
 0x802   : > { %v10542_v45 = vpop.eup %8063 }
 0x804   : > { %v1882_v18 = vpop.xlane.xlu1 %1881 }
 0x805   : > { %2231 = vmax.xlane.f32.xlu2 %v10530_v7 }
 0x808   : > { %2287 = vadd.xlane.f32.xlu0 %v10533_v3  ;;  %2293 = vadd.xlane.f32.xlu1 %v10535_v44 }
 0x80f   : > { %v1876_v6 = vpop.xlane.xlu0 %1875 }
 0x810   : > { %v1901_v24 = vsub.f32 %v10455_v37, %v1876_v6  ;;  %2227 = vmax.xlane.f32.xlu0 %v10540_v16  ;;  %1957 = vadd.xlane.f32.xlu1 %v10542_v45  ;;  %v1904_v37 = vsub.f32 %v10447_v54, %v1882_v18  ;;  %v10565_v6 = vadd.f32 %v1858_v56, %v13485_v51  ;;  %v2224_v18 = vpop.xlane.xlu2 %2223 }
 0x811   : > { %v1906_v56 = vsub.f32 %v10441_v23, %v1886_v34 }
 0x812   : > { %v1923_v2 = vmul.f32 1.442695, %v1901_v24  ;;  %v1929_v55 = vmul.f32 1.442695, %v1904_v37 }
 0x813   : > { %v1933_v13 = vmul.f32 1.442695, %v1906_v56 }
 0x814   : > { %8065 = vpow2.f32 %v1923_v2  ;;  %v10573_v2 = vpop.f32.mrf.mxu1 }
 0x815   : > { %8067 = vpow2.f32 %v2267_v49 }
 0x816   : > { %8069 = vpow2.f32 %v1929_v55 }
 0x817   : > { %8071 = vpow2.f32 %v2265_v12  ;;  %v2244_v12 = vsub.f32 %v10451_v25, %v2224_v18 }
 0x818   : > { %1893 = vmax.xlane.f32.xlu1 %v10548_v46 }
 0x819   : > { %v2271_v34 = vmul.f32 1.442695, %v2244_v12 }
 0x81a   : > { %v10554_v42 = vpop.eup %8065 }
 0x81b   : > { %1955 = vadd.xlane.f32.xlu0 %v10554_v42  ;;  %v10570_v54 = vpop.eup %8067 }
 0x81c   : > { %v10575_v0 = vpop.eup %8069  ;;  %v10582_v55 = vpop.f32.mrf.mxu1 }
 0x81d   : > { %v10580_v49 = vpop.eup %8071 }
 0x820   : > { %2229 = vmax.xlane.f32.xlu1 %v10559_v43 }
 0x823   : > { %1891 = vmax.xlane.f32.xlu0 %v10565_v6 }
 0x824   : > { %v10595_v25 = vpop.f32.mrf.mxu1 }
 0x828   : > { %v1944_v24 = vpop.xlane.xlu1 %1943  ;;  %2299 = vadd.xlane.f32.xlu1 %v10570_v54 }
 0x829   : > { %8073 = vrcp.f32 %v1944_v24 }
 0x82b   : > { %1961 = vadd.xlane.f32.xlu0 %v10575_v0 }
 0x82f   : > { %v8074_v19 = vpop.eup %8073 }
 0x830   : > { %v1884_v52 = vpop.xlane.xlu1 %1883  ;;  %v1946_v53 = vpop.xlane.xlu0 %1945  ;;  %v1991_v24 = vmul.f32 %v8074_v19, %v10463_v39 }
 0x831   : > { %v1905_v37 = vsub.f32 %v10467_v40, %v1884_v52  ;;  %8075 = vrcp.f32 %v1946_v53 }
 0x832   : > { %8077 = vpow2.f32 %v1933_v13  ;;  %v2292_v13 = vpop.xlane.xlu2 %2291 }
 0x833   : > { %v1931_v21 = vmul.f32 1.442695, %v1905_v37  ;;  %2297 = vadd.xlane.f32.xlu0 %v10580_v49 }
 0x835   : > { %8079 = vpow2.f32 %v1931_v21 }
 0x836   : > { %8081 = vpow2.f32 %v2271_v34 }
 0x837   : > { %v8076_v23 = vpop.eup %8075 }
 0x838   : > { %v1992_v56 = vmul.f32 %v8076_v23, %v10469_v41  ;;  %v2222_v40 = vpop.xlane.xlu1 %2221  ;;  %v10589_v53 = vpop.eup %8077 }
 0x839   : > { %v2243_v52 = vsub.f32 %v10476_v31, %v2222_v40  ;;  %v10603_v31 = vpop.f32.mrf.mxu1 }
 0x83a   : > { %v2007_v50 = vpack.c.bf16 %v1992_v56, %v1991_v24 }
 0x83b   : > { %v10591_v37 = vpop.eup %8079  ;;  %v2269_v51 = vmul.f32 1.442695, %v2243_v52  ;;  %1965 = vadd.xlane.f32.xlu0 %v10589_v53 }
 0x83c   : > { %2023 = vmatmul.bf16.vlgmr.msra.gmra.mxu2 %v2007_v50  ;;  %1963 = vadd.xlane.f32.xlu2 %v10591_v37  ;;  %v10597_v41 = vpop.eup %8081 }
 0x83d   : > { %8083 = vpow2.f32 %v2269_v51 }
 0x840   : > { %v2290_v39 = vpop.xlane.xlu1 %2289 }
 0x841   : > { %v10606_v23 = vpop.f32.mrf.mxu1 }
 0x843   : > { %v10599_v19 = vpop.eup %8083 }
 0x844   : > { %2301 = vadd.xlane.f32.xlu1 %v10599_v19  ;;  %2303 = vadd.xlane.f32.xlu2 %v10597_v41 }
 0x848   : > { %v1888_v18 = vpop.xlane.xlu1 %1887 }
 0x849   : > { %v1907_v50 = vsub.f32 %v10486_v38, %v1888_v18  ;;  %v10612_v40 = vpop.f32.mrf.mxu1 }
 0x84b   : > { %v1935_v21 = vmul.f32 1.442695, %v1907_v50 }
 0x84d   : > { %8085 = vpow2.f32 %v1935_v21 }
 0x850   : > { %v1954_v12 = vpop.xlane.xlu2 %1953 }
 0x851   : > { %v10617_v50 = vpop.f32.mrf.mxu1 }
 0x853   : > { %v10608_v51 = vpop.eup %8085 }
 0x854   : > { %1967 = vadd.xlane.f32.xlu0 %v10608_v51 }
 0x858   : > { %v1890_v34 = vpop.xlane.xlu2 %1889 }
 0x859   : > { %v1908_v24 = vsub.f32 %v10496_v28, %v1890_v34  ;;  %v10623_v28 = vpop.f32.mrf.mxu1 }
 0x85b   : > { %v1937_v56 = vmul.f32 1.442695, %v1908_v24 }
 0x85d   : > { %8087 = vpow2.f32 %v1937_v56 }
 0x860   : > { %v2226_v52 = vpop.xlane.xlu2 %2225 }
 0x861   : > { %v2245_v63 = vsub.f32 %v10502_v47, %v2226_v52  ;;  %v10625_v56 = vpop.f32.mrf.mxu1 }
 0x863   : > { %v10615_v38 = vpop.eup %8087  ;;  %v2273_v18 = vmul.f32 1.442695, %v2245_v63 }
 0x864   : > { %1969 = vadd.xlane.f32.xlu1 %v10615_v38 }
 0x865   : > { %8089 = vpow2.f32 %v2273_v18 }
 0x868   : > { %v2296_v17 = vpop.xlane.xlu2 %2295 }
 0x869   : > { %v10630_v62 = vpop.f32.mrf.mxu1 }
 0x86b   : > { %v10620_v21 = vpop.eup %8089  ;;  %v1948_v27 = vpop.xlane.xlu0 %1947 }
 0x86c   : > { %2305 = vadd.xlane.f32.xlu2 %v10620_v21  ;;  %8091 = vrcp.f32 %v1948_v27 }
 0x872   : > { %v8092_v47 = vpop.eup %8091 }
 0x873   : > { %v1950_v34 = vpop.xlane.xlu0 %1949  ;;  %v1952_v24 = vpop.xlane.xlu1 %1951  ;;  %v1993_v18 = vmul.f32 %v8092_v47, %v10512_v35 }
 0x874   : > { %8093 = vrcp.f32 %v1950_v34 }
 0x875   : > { %8095 = vrcp.f32 %v10489_v48 }
 0x87a   : > { %v8094_v63 = vpop.eup %8093 }
 0x87b   : > { %v2288_v52 = vpop.xlane.xlu0 %2287  ;;  %v2294_v15 = vpop.xlane.xlu1 %2293  ;;  %v1994_v9 = vmul.f32 %v8094_v63, %v10522_v30 }
 0x87c   : > { %8097 = vrcp.f32 %v2288_v52  ;;  %v8096_v26 = vpop.eup %8095 }
 0x87d   : > { %v2008_v33 = vpack.c.bf16 %v1994_v9, %v1993_v18  ;;  %8099 = vrcp.f32 %v1952_v24  ;;  %v2331_v57 = vmul.f32 %v8096_v26, %v10409_v10 }
 0x87e   : > { %8101 = vrcp.f32 %v1954_v12 }
 0x87f   : > { %2028 = vmatmul.bf16.gmra.mxu2 %v2008_v33  ;;  %8103 = vrcp.f32 %v2290_v39 }
 0x882   : > { %v8098_v27 = vpop.eup %8097 }
 0x883   : > { %v2228_v34 = vpop.xlane.xlu0 %2227  ;;  %v1958_v8 = vpop.xlane.xlu1 %1957  ;;  %v2332_v48 = vmul.f32 %v8098_v27, %v10533_v3 }
 0x884   : > { %v2246_v35 = vsub.f32 %v10540_v16, %v2228_v34  ;;  %v8100_v30 = vpop.eup %8099  ;;  %v10638_v3 = vpop.f32.mrf.mxu1 }
 0x885   : > { %v2346_v47 = vpack.c.bf16 %v2332_v48, %v2331_v57  ;;  %v8102_v33 = vpop.eup %8101  ;;  %v1995_v9 = vmul.f32 %v8100_v30, %v10524_v59  ;;  %v1960_v57 = vpop.xlane.xlu2 %1959 }
 0x886   : > { %v2275_v63 = vmul.f32 1.442695, %v2246_v35  ;;  %v1996_v24 = vmul.f32 %v8102_v33, %v10491_v11  ;;  %v8104_v10 = vpop.eup %8103 }
 0x887   : > { %2390 = vmatmul.bf16.gmra.mxu1 %v2346_v47 }
 0x888   : > { %8105 = vpow2.f32 %v2275_v63  ;;  %v2009_v52 = vpack.c.bf16 %v1996_v24, %v1995_v9 }
 0x889   : > { %8107 = vrcp.f32 %v2292_v13  ;;  %v2333_v13 = vmul.f32 %v8104_v10, %v10479_v36 }
 0x88b   : > { %v1894_v12 = vpop.xlane.xlu1 %1893 }
 0x88c   : > { %v1910_v26 = vsub.f32 %v10548_v46, %v1894_v12  ;;  %v10650_v36 = vpop.f32.mrf.mxu1 }
 0x88e   : > { %v10640_v16 = vpop.eup %8105  ;;  %v1941_v18 = vmul.f32 1.442695, %v1910_v26  ;;  %v1956_v39 = vpop.xlane.xlu0 %1955 }
 0x88f   : > { %8109 = vrcp.f32 %v1956_v39  ;;  %2307 = vadd.xlane.f32.xlu0 %v10640_v16  ;;  %2033 = vmatmul.bf16.gmra.mxu2 %v2009_v52  ;;  %v8108_v59 = vpop.eup %8107 }
 0x890   : > { %8111 = vpow2.f32 %v1941_v18  ;;  %v2334_v46 = vmul.f32 %v8108_v59, %v10458_v4 }
 0x891   : > { %8113 = vrcp.f32 %v1958_v8  ;;  %v2232_v8 = vpop.xlane.xlu2 %2231 }
 0x892   : > { %v2347_v48 = vpack.c.bf16 %v2334_v46, %v2333_v13  ;;  %8115 = vrcp.f32 %v2294_v15  ;;  %v2248_v9 = vsub.f32 %v10530_v7, %v2232_v8 }
 0x893   : > { %v2230_v11 = vpop.xlane.xlu1 %2229 }
 0x894   : > { %v2247_v27 = vsub.f32 %v10559_v43, %v2230_v11  ;;  %v2279_v10 = vmul.f32 1.442695, %v2248_v9 }
 0x895   : > { %v8110_v34 = vpop.eup %8109 }
 0x896   : > { %v10646_v35 = vpop.eup %8111  ;;  %v2277_v47 = vmul.f32 1.442695, %v2247_v27  ;;  %v1892_v30 = vpop.xlane.xlu0 %1891  ;;  %v1997_v43 = vmul.f32 %v8110_v34, %v10554_v42 }
 0x897   : > { %v1909_v63 = vsub.f32 %v10565_v6, %v1892_v30  ;;  %2395 = vmatmul.bf16.gmra.mxu1 %v2347_v48  ;;  %1973 = vadd.xlane.f32.xlu2 %v10646_v35  ;;  %v8114_v33 = vpop.eup %8113  ;;  %v10661_v42 = vpop.f32.mrf.mxu1 }
 0x898   : > { %8117 = vpow2.f32 %v2277_v47  ;;  %v1998_v12 = vmul.f32 %v8114_v33, %v10542_v45  ;;  %v8116_v15 = vpop.eup %8115 }
 0x899   : > { %v1939_v4 = vmul.f32 1.442695, %v1909_v63  ;;  %8119 = vrcp.f32 %v2296_v17  ;;  %v2335_v17 = vmul.f32 %v8116_v15, %v10535_v44 }
 0x89a   : > { %v2010_v24 = vpack.c.bf16 %v1998_v12, %v1997_v43 }
 0x89b   : > { %8121 = vpow2.f32 %v1939_v4  ;;  %v2300_v13 = vpop.xlane.xlu1 %2299 }
 0x89e   : > { %v10655_v6 = vpop.eup %8117  ;;  %v1962_v26 = vpop.xlane.xlu0 %1961 }
 0x89f   : > { %2309 = vadd.xlane.f32.xlu0 %v10655_v6  ;;  %2038 = vmatmul.bf16.gmra.mxu2 %v2010_v24  ;;  %v8120_v52 = vpop.eup %8119  ;;  %8123 = vrcp.f32 %v1962_v26 }
 0x8a0   : > { %8125 = vrcp.f32 %v1960_v57  ;;  %v2336_v7 = vmul.f32 %v8120_v52, %v10508_v32  ;;  %v1723_v57 = vpop.f32.mrf.mxu1  ;;  %v7621_v32 = vpack.i.bf16 %v10562_v29, %v10550_v60 }
 0x8a1   : > { %v10658_v18 = vpop.eup %8121  ;;  %8127 = vpow2.f32 %v2279_v10 }
 0x8a2   : > { %1971 = vadd.xlane.f32.xlu1 %v10658_v18  ;;  %v2348_v45 = vpack.c.bf16 %v2336_v7, %v2335_v17 }
 0x8a5   : > { %v8124_v39 = vpop.eup %8123 }
 0x8a6   : > { %v2298_v59 = vpop.xlane.xlu0 %2297  ;;  %v8126_v11 = vpop.eup %8125  ;;  %v2000_v27 = vmul.f32 %v8124_v39, %v10575_v0 }
 0x8a7   : > { %2400 = vmatmul.bf16.gmra.mxu1 %v2348_v45  ;;  %8129 = vrcp.f32 %v2298_v59  ;;  %v10665_v46 = vpop.eup %8127  ;;  %v1999_v44 = vmul.f32 %v8126_v11, %v10519_v5  ;;  %v7711_v11 = vpack.i.bf16 %v10650_v36, %v10638_v3 }
 0x8a8   : > { %8131 = vrcp.f32 %v2300_v13  ;;  %v2386_v8 = vpop.f32.mrf.mxu1 }
 0x8a9   : > { %v2011_v34 = vpack.c.bf16 %v2000_v27, %v1999_v44 }
 0x8aa   : > { %2311 = vadd.xlane.f32.xlu1 %v10665_v46 }
 0x8ad   : > { %v8130_v48 = vpop.eup %8129 }
 0x8ae   : > { %v1966_v47 = vpop.xlane.xlu0 %1965  ;;  %v8132_v63 = vpop.eup %8131  ;;  %v2337_v0 = vmul.f32 %v8130_v48, %v10580_v49 }
 0x8af   : > { %8133 = vrcp.f32 %v1966_v47  ;;  %7622 = vrot.lane.b32.xlu2 %v7621_v32, %s8715_s1  ;;  %2043 = vmatmul.bf16.gmra.mxu2 %v2011_v34  ;;  %v1964_v30 = vpop.xlane.xlu2 %1963  ;;  %v2338_v33 = vmul.f32 %v8132_v63, %v10570_v54  ;;  %v7405_v47 = vld [vmem:[%s10714_s27 + $0x18] sm:$0xff]  ;;  %v7404_v63 = vld [vmem:[%s10714_s27 + $0x10] sm:$0xff] }
 0x8b0   : > { %8135 = vrcp.f32 %v1964_v30  ;;  %v2388_v26 = vpop.f32.mrf.mxu1  ;;  %2728 = vmatpush.bf16.msrb.mxu3 %v7405_v47 }
 0x8b1   : > { %v2349_v4 = vpack.c.bf16 %v2338_v33, %v2337_v0  ;;  %v7631_v54 = vpack.i.bf16 %v2388_v26, %v2386_v8  ;;  %v7402_v26 = vld [vmem:[%s10714_s27] sm:$0xff] }
 0x8b4   : > { %2729 = vmatpush.bf16.msrb.mxu3 %v7404_v63 }
 0x8b5   : > { %v8134_v5 = vpop.eup %8133 }
 0x8b6   : > { %v8136_v43 = vpop.eup %8135  ;;  %v2002_v12 = vmul.f32 %v8134_v5, %v10589_v53  ;;  %v7651_v53 = vpack.i.bf16 %v10603_v31, %v10595_v25  ;;  %v7681_v25 = vpack.i.bf16 %v10623_v28, %v10617_v50  ;;  %v7726_v50 = vpack.i.bf16 %v1723_v57, %v10661_v42 }
 0x8b7   : > { %v2302_v9 = vpop.xlane.xlu1 %2301  ;;  %2405 = vmatmul.bf16.gmra.mxu1 %v2349_v4  ;;  %v2304_v60 = vpop.xlane.xlu2 %2303  ;;  %v2001_v29 = vmul.f32 %v8136_v43, %v10591_v37  ;;  %v7636_v37 = vpack.i.bf16 %v10582_v55, %v10573_v2  ;;  %v7403_v4 = vld [vmem:[%s10714_s27 + $0x8] sm:$0xff] }
 0x8b8   : > { %8137 = vrcp.f32 %v2302_v9  ;;  %2730 = vmatpush.bf16.msrb.mxu3 %v7403_v4 }
 0x8b9   : > { %8139 = vrcp.f32 %v2304_v60  ;;  %v2012_v15 = vpack.c.bf16 %v2002_v12, %v2001_v29 }
 0x8bc   : > { %2731 = vmatpush.bf16.msrb.mxu3 %v7402_v26 }
 0x8be   : > { %v8138_v24 = vpop.eup %8137 }
 0x8bf   : > { %v8140_v10 = vpop.eup %8139  ;;  %v2024_v49 = vpop.f32.mrf.mxu2  ;;  %2048 = vmatmul.bf16.gmra.mxu2 %v2012_v15  ;;  %v2339_v52 = vmul.f32 %v8138_v24, %v10599_v19  ;;  %v7666_v19 = vpack.i.bf16 %v10612_v40, %v10606_v23  ;;  %v7696_v23 = vpack.i.bf16 %v10630_v62, %v10625_v56 }
 0x8c0   : > { %v2340_v17 = vmul.f32 %v8140_v10, %v10597_v41 }
 0x8c2   : > { %v2350_v7 = vpack.c.bf16 %v2340_v17, %v2339_v52 }
 0x8c3   : > { %7632 = vrot.lane.b32.xlu1 %v7631_v54, %s8717_s23 }
 0x8c7   : > { %v2026_v45 = vpop.f32.mrf.mxu2  ;;  %2410 = vmatmul.bf16.gmra.mxu1 %v2350_v7  ;;  %v1968_v41 = vpop.xlane.xlu0 %1967 }
 0x8c8   : > { %v7626_v39 = vpack.i.bf16 %v2026_v45, %v2024_v49  ;;  %8141 = vrcp.f32 %v1968_v41 }
 0x8ca   : > { %7627 = vrot.lane.b32.xlu0 %v7626_v39, %s8716_s22 }
 0x8cb   : > { %7652 = vrot.lane.b32.xlu1 %v7651_v53, %s8715_s1 }
 0x8ce   : > { %v8142_v31 = vpop.eup %8141 }
 0x8cf   : > { %v2003_v2 = vmul.f32 %v8142_v31, %v10608_v51 }
 0x8d2   : > { %7637 = vrot.lane.b32.xlu0 %v7636_v37, %s8715_s1 }
 0x8d3   : > { %7667 = vrot.lane.b32.xlu1 %v7666_v19, %s8715_s1 }
 0x8d7   : > { %v1970_v59 = vpop.xlane.xlu1 %1969 }
 0x8d8   : > { %8143 = vrcp.f32 %v1970_v59 }
 0x8db   : > { %7682 = vrot.lane.b32.xlu1 %v7681_v25, %s8715_s1 }
 0x8de   : > { %v8144_v13 = vpop.eup %8143 }
 0x8df   : > { %v2004_v55 = vmul.f32 %v8144_v13, %v10615_v38  ;;  %v2306_v28 = vpop.xlane.xlu2 %2305 }
 0x8e0   : > { %8145 = vrcp.f32 %v2306_v28 }
 0x8e1   : > { %v2013_v40 = vpack.c.bf16 %v2004_v55, %v2003_v2 }
 0x8e3   : > { %7697 = vrot.lane.b32.xlu1 %v7696_v23, %s8715_s1  ;;  %2053 = vmatmul.bf16.gmra.mxu2 %v2013_v40 }
 0x8e6   : > { %v8146_v56 = vpop.eup %8145 }
 0x8e7   : > { %v2341_v32 = vmul.f32 %v8146_v56, %v10620_v21 }
 0x8eb   : > { %7712 = vrot.lane.b32.xlu1 %v7711_v11, %s8715_s1 }
 0x8f3   : > { %7727 = vrot.lane.b32.xlu1 %v7726_v50, %s8715_s1 }
 0x902   : > { %v2029_v51 = vpop.f32.mrf.mxu2  ;;  %v2308_v38 = vpop.xlane.xlu0 %2307 }
 0x903   : > { %8147 = vrcp.f32 %v2308_v38 }
 0x904   : > { %v2391_v62 = vpop.f32.mrf.mxu1 }
 0x909   : > { %v8148_v27 = vpop.eup %8147 }
 0x90a   : > { %v2031_v44 = vpop.f32.mrf.mxu2  ;;  %v2342_v3 = vmul.f32 %v8148_v27, %v10640_v16  ;;  %v1974_v57 = vpop.xlane.xlu2 %1973 }
 0x90b   : > { %v7641_v36 = vpack.i.bf16 %v2031_v44, %v2029_v51  ;;  %8149 = vrcp.f32 %v1974_v57 }
 0x90c   : > { %v2393_v34 = vpop.f32.mrf.mxu1  ;;  %v2351_v48 = vpack.c.bf16 %v2342_v3, %v2341_v32 }
 0x90d   : > { %v7646_v42 = vpack.i.bf16 %v2393_v34, %v2391_v62  ;;  %7642 = vrot.lane.b32.xlu2 %v7641_v36, %s8716_s22 }
 0x90e   : > { %2415 = vmatmul.bf16.gmra.mxu1 %v2351_v48 }
 0x90f   : > { %7647 = vrot.lane.b32.xlu0 %v7646_v42, %s8717_s23 }
 0x911   : > { %v8150_v33 = vpop.eup %8149 }
 0x912   : > { %v2034_v21 = vpop.f32.mrf.mxu2  ;;  %v2310_v0 = vpop.xlane.xlu0 %2309  ;;  %v2006_v15 = vmul.f32 %v8150_v33, %v10646_v35 }
 0x913   : > { %v7623_v41 = vpop.permute.xlu2 %7622 }
 0x914   : > { %v2396_v16 = vpop.f32.mrf.mxu1  ;;  %v7625_v59 = vunpack.i.h.bf16 %v7623_v41  ;;  %v7624_v25 = vunpack.i.l.bf16 %v7623_v41 }
 0x915   : > { %v1972_v30 = vpop.xlane.xlu1 %1971 }
 0x916   : > { %8151 = vrcp.f32 %v1972_v30  ;;  %v2619_v11 = vsel %vm1049_vm5, %v10266_v22, %v7625_v59  ;;  %v2618_v50 = vsel %vm1049_vm5, %v10254_v61, %v7624_v25 }
 0x917   : > { %8153 = vrcp.f32 %v2310_v0 }
 0x91a   : > { %v2036_v8 = vpop.f32.mrf.mxu2 }
 0x91b   : > { %v7656_v5 = vpack.i.bf16 %v2036_v8, %v2034_v21 }
 0x91c   : > { %v8152_v43 = vpop.eup %8151  ;;  %v2398_v9 = vpop.f32.mrf.mxu1 }
 0x91d   : > { %v7661_v60 = vpack.i.bf16 %v2398_v9, %v2396_v16  ;;  %7657 = vrot.lane.b32.xlu2 %v7656_v5, %s8716_s22  ;;  %v2312_v29 = vpop.xlane.xlu1 %2311  ;;  %v2005_v12 = vmul.f32 %v8152_v43, %v10658_v18  ;;  %v8154_v10 = vpop.eup %8153 }
 0x91e   : > { %8155 = vrcp.f32 %v2312_v29  ;;  %v2343_v17 = vmul.f32 %v8154_v10, %v10655_v6 }
 0x91f   : > { %7662 = vrot.lane.b32.xlu0 %v7661_v60, %s8717_s23  ;;  %v2014_v24 = vpack.c.bf16 %v2006_v15, %v2005_v12 }
 0x921   : > { %2058 = vmatmul.bf16.gmra.mxu2 %v2014_v24 }
 0x922   : > { %v2039_v49 = vpop.f32.mrf.mxu2 }
 0x924   : > { %v8156_v54 = vpop.eup %8155  ;;  %v2401_v52 = vpop.f32.mrf.mxu1 }
 0x925   : > { %v2344_v7 = vmul.f32 %v8156_v54, %v10665_v46 }
 0x927   : > { %v2352_v45 = vpack.c.bf16 %v2344_v7, %v2343_v17 }
 0x929   : > { %2420 = vmatmul.bf16.gmra.mxu1 %v2352_v45 }
 0x92a   : > { %v2041_v18 = vpop.f32.mrf.mxu2 }
 0x92b   : > { %v7671_v35 = vpack.i.bf16 %v2041_v18, %v2039_v49 }
 0x92c   : > { %v2403_v39 = vpop.f32.mrf.mxu1 }
 0x92d   : > { %v7676_v53 = vpack.i.bf16 %v2403_v39, %v2401_v52  ;;  %7672 = vrot.lane.b32.xlu2 %v7671_v35, %s8716_s22 }
 0x92f   : > { %7677 = vrot.lane.b32.xlu0 %v7676_v53, %s8717_s23 }
 0x932   : > { %v2044_v37 = vpop.f32.mrf.mxu2 }
 0x934   : > { %v2406_v19 = vpop.f32.mrf.mxu1 }
 0x935   : > { %v7633_v13 = vpop.permute.xlu1 %7632 }
 0x936   : > { %v7635_v28 = vunpack.i.h.bf16 %v7633_v13  ;;  %v7634_v51 = vunpack.i.l.bf16 %v7633_v13 }
 0x93a   : > { %v2046_v31 = vpop.f32.mrf.mxu2 }
 0x93b   : > { %v7686_v6 = vpack.i.bf16 %v2046_v31, %v2044_v37 }
 0x93c   : > { %v7628_v46 = vpop.permute.xlu0 %7627  ;;  %v2408_v2 = vpop.f32.mrf.mxu1 }
 0x93d   : > { %v7630_v55 = vunpack.i.h.bf16 %v7628_v46  ;;  %v7629_v23 = vunpack.i.l.bf16 %v7628_v46  ;;  %v7691_v40 = vpack.i.bf16 %v2408_v2, %v2406_v19  ;;  %7687 = vrot.lane.b32.xlu2 %v7686_v6, %s8716_s22  ;;  %v7653_v24 = vpop.permute.xlu1 %7652  ;;  %v13577_v2 = vld [vmem:[#allocation52_spill] sm:$0xff] }
 0x93e   : > { %v7654_v49 = vunpack.i.l.bf16 %v7653_v24 }
 0x93f   : > { %v2635_v38 = vsel %vm2634_vm6, %v2618_v50, %v7629_v23  ;;  %v2636_v62 = vsel %vm2634_vm6, %v2619_v11, %v7630_v55  ;;  %7692 = vrot.lane.b32.xlu0 %v7691_v40, %s8717_s23  ;;  %v13578_v23 = vld [vmem:[#allocation53_spill] sm:$0xff] }
 0x940   : > { %v2652_v56 = vsel %vm2651_vm7, %v2635_v38, %v7634_v51  ;;  %v2653_v27 = vsel %vm2651_vm7, %v2636_v62, %v7635_v28  ;;  %v2622_v7 = vsel %vm1049_vm5, %v10300_v20, %v7654_v49  ;;  %v13581_v49 = vld [vmem:[#allocation62_spill] sm:$0xff] }
 0x941   : > { %v2668_v44 = vpack.c.bf16 %v2653_v27, %v2652_v56 }
 0x942   : > { %v2049_v32 = vpop.f32.mrf.mxu2 }
 0x943   : > { %7087 = vmatmul.msk.bf16.vlgmr.msrb.gmra.mxu3 %vm482_vm0, %v2668_v44 }
 0x944   : > { %v2411_v22 = vpop.f32.mrf.mxu1  ;;  %v7638_v21 = vpop.permute.xlu0 %7637 }
 0x945   : > { %v7640_v47 = vunpack.i.h.bf16 %v7638_v21  ;;  %v7639_v30 = vunpack.i.l.bf16 %v7638_v21 }
 0x947   : > { %v2621_v8 = vsel %vm1049_vm5, %v10289_v14, %v7640_v47  ;;  %v2620_v5 = vsel %vm1049_vm5, %v10278_v58, %v7639_v30  ;;  %v7655_v14 = vunpack.i.h.bf16 %v7653_v24  ;;  %v13579_v47 = vld [vmem:[#allocation51_spill] sm:$0xff] }
 0x949   : > { %v2623_v17 = vsel %vm1049_vm5, %v10312_v1, %v7655_v14  ;;  %v7668_v1 = vpop.permute.xlu1 %7667 }
 0x94a   : > { %v2051_v61 = vpop.f32.mrf.mxu2  ;;  %v7670_v20 = vunpack.i.h.bf16 %v7668_v1  ;;  %v7669_v31 = vunpack.i.l.bf16 %v7668_v1 }
 0x94b   : > { %v7701_v3 = vpack.i.bf16 %v2051_v61, %v2049_v32 }
 0x94c   : > { %v2413_v36 = vpop.f32.mrf.mxu1  ;;  %v2625_v55 = vsel %vm1049_vm5, %v13577_v2, %v7670_v20  ;;  %v2624_v40 = vsel %vm1049_vm5, %v13578_v23, %v7669_v31  ;;  %v13584_v31 = vld [vmem:[#allocation48_spill] sm:$0xff] }
 0x94d   : > { %v7706_v34 = vpack.i.bf16 %v2413_v36, %v2411_v22  ;;  %7702 = vrot.lane.b32.xlu2 %v7701_v3, %s8716_s22 }
 0x94f   : > { %7707 = vrot.lane.b32.xlu0 %v7706_v34, %s8717_s23 }
 0x951   : > { %v7683_v32 = vpop.permute.xlu1 %7682 }
 0x952   : > { %v7685_v36 = vunpack.i.h.bf16 %v7683_v32  ;;  %v7684_v34 = vunpack.i.l.bf16 %v7683_v32 }
 0x954   : > { %v2627_v30 = vsel %vm1049_vm5, %v13579_v47, %v7685_v36  ;;  %v13588_v47 = vld [vmem:[#allocation46_spill] sm:$0xff] }
 0x966   : > { %v2054_v48 = vpop.f32.mrf.mxu2 }
 0x967   : > { %v7643_v16 = vpop.permute.xlu2 %7642 }
 0x968   : > { %v7645_v63 = vunpack.i.h.bf16 %v7643_v16  ;;  %v7644_v0 = vunpack.i.l.bf16 %v7643_v16 }
 0x96a   : > { %v2638_v9 = vsel %vm2634_vm6, %v2621_v8, %v7645_v63  ;;  %v2637_v60 = vsel %vm2634_vm6, %v2620_v5, %v7644_v0  ;;  %v13580_v63 = vld [vmem:[#allocation55_spill] sm:$0xff] }
 0x96b   : > { %v2626_v0 = vsel %vm1049_vm5, %v13580_v63, %v7684_v34  ;;  %v13587_v34 = vld [vmem:[#allocation47_spill] sm:$0xff] }
 0x96e   : > { %v2056_v42 = vpop.f32.mrf.mxu2 }
 0x96f   : > { %v7716_v57 = vpack.i.bf16 %v2056_v42, %v2054_v48 }
 0x971   : > { %7717 = vrot.lane.b32.xlu2 %v7716_v57, %s8716_s22 }
 0x977   : > { %v7658_v10 = vpop.permute.xlu2 %7657 }
 0x978   : > { %v7660_v54 = vunpack.i.h.bf16 %v7658_v10  ;;  %v7659_v58 = vunpack.i.l.bf16 %v7658_v10 }
 0x97a   : > { %v2640_v35 = vsel %vm2634_vm6, %v2623_v17, %v7660_v54  ;;  %v2639_v39 = vsel %vm2634_vm6, %v2622_v7, %v7659_v58  ;;  %v13582_v58 = vld [vmem:[#allocation54_spill] sm:$0xff] }
 0x981   : > { %v7648_v33 = vpop.permute.xlu0 %7647 }
 0x982   : > { %v7650_v4 = vunpack.i.h.bf16 %v7648_v33  ;;  %v7649_v43 = vunpack.i.l.bf16 %v7648_v33 }
 0x984   : > { %v2654_v29 = vsel %vm2651_vm7, %v2637_v60, %v7649_v43  ;;  %v2655_v12 = vsel %vm2651_vm7, %v2638_v9, %v7650_v4 }
 0x985   : > { %v2669_v15 = vpack.c.bf16 %v2655_v12, %v2654_v29  ;;  %v7698_v29 = vpop.permute.xlu1 %7697 }
 0x986   : > { %v7699_v24 = vunpack.i.l.bf16 %v7698_v29 }
 0x987   : > { %7088 = vmatmul.msk.bf16.gmra.mxu3 %vm482_vm0, %v2669_v15  ;;  %v7673_v25 = vpop.permute.xlu2 %7672  ;;  %v7700_v15 = vunpack.i.h.bf16 %v7698_v29 }
 0x988   : > { %v7675_v13 = vunpack.i.h.bf16 %v7673_v25  ;;  %v7674_v6 = vunpack.i.l.bf16 %v7673_v25 }
 0x989   : > { %v2629_v54 = vsel %vm1049_vm5, %v13581_v49, %v7700_v15 }
 0x98a   : > { %v2642_v28 = vsel %vm2634_vm6, %v2625_v55, %v7675_v13  ;;  %v2641_v51 = vsel %vm2634_vm6, %v2624_v40, %v7674_v6 }
 0x98b   : > { %v2416_v26 = vpop.f32.mrf.mxu1 }
 0x98d   : > { %v7713_v2 = vpop.permute.xlu1 %7712 }
 0x98e   : > { %v7715_v23 = vunpack.i.h.bf16 %v7713_v2  ;;  %v7714_v40 = vunpack.i.l.bf16 %v7713_v2 }
 0x991   : > { %v7663_v52 = vpop.permute.xlu0 %7662 }
 0x992   : > { %v7665_v45 = vunpack.i.h.bf16 %v7663_v52  ;;  %v7664_v18 = vunpack.i.l.bf16 %v7663_v52  ;;  %v2628_v52 = vsel %vm1049_vm5, %v13582_v58, %v7699_v24 }
 0x993   : > { %v2418_v53 = vpop.f32.mrf.mxu1 }
 0x994   : > { %v2656_v37 = vsel %vm2651_vm7, %v2639_v39, %v7664_v18  ;;  %v2657_v19 = vsel %vm2651_vm7, %v2640_v35, %v7665_v45  ;;  %v7721_v41 = vpack.i.bf16 %v2418_v53, %v2416_v26  ;;  %v10796_v53 = vld [vmem:[%s10743_s29] ss:$0 sm:$0xff] }
 0x995   : > { %v2670_v59 = vpack.c.bf16 %v2657_v19, %v2656_v37 }
 0x996   : > { %7722 = vrot.lane.b32.xlu0 %v7721_v41, %s8717_s23  ;;  %v13583_v41 = vld [vmem:[#allocation49_spill] sm:$0xff] }
 0x997   : > { %7089 = vmatmul.msk.bf16.gmra.mxu3 %vm482_vm0, %v2670_v59  ;;  %v7688_v22 = vpop.permute.xlu2 %7687 }
 0x998   : > { %v7690_v42 = vunpack.i.h.bf16 %v7688_v22  ;;  %v7689_v57 = vunpack.i.l.bf16 %v7688_v22 }
 0x99a   : > { %v2644_v5 = vsel %vm2634_vm6, %v2627_v30, %v7690_v42  ;;  %v2643_v4 = vsel %vm2634_vm6, %v2626_v0, %v7689_v57 }
 0x9a1   : > { %v7678_v46 = vpop.permute.xlu0 %7677 }
 0x9a2   : > { %v7680_v11 = vunpack.i.h.bf16 %v7678_v46  ;;  %v7679_v50 = vunpack.i.l.bf16 %v7678_v46 }
 0x9a4   : > { %v2658_v38 = vsel %vm2651_vm7, %v2641_v51, %v7679_v50  ;;  %v2659_v62 = vsel %vm2651_vm7, %v2642_v28, %v7680_v11  ;;  %v2059_v56 = vpop.f32.mrf.mxu2  ;;  %v13585_v51 = vld [vmem:[#allocation68_spill] sm:$0xff] }
 0x9a5   : > { %v2671_v27 = vpack.c.bf16 %v2659_v62, %v2658_v38  ;;  %v2631_v38 = vsel %vm1049_vm5, %v13585_v51, %v7715_v23  ;;  %v13586_v62 = vld [vmem:[#allocation66_spill] sm:$0xff] }
 0x9a6   : > { %v2421_v44 = vpop.f32.mrf.mxu1 }
 0x9a7   : > { %7090 = vmatmul.msk.bf16.gmra.mxu3 %vm482_vm0, %v2671_v27  ;;  %v7703_v12 = vpop.permute.xlu2 %7702 }
 0x9a8   : > { %v7705_v26 = vunpack.i.h.bf16 %v7703_v12  ;;  %v7704_v10 = vunpack.i.l.bf16 %v7703_v12 }
 0x9aa   : > { %v2646_v45 = vsel %vm2634_vm6, %v2629_v54, %v7705_v26  ;;  %v2645_v18 = vsel %vm2634_vm6, %v2628_v52, %v7704_v10  ;;  %v13590_v10 = vld [vmem:[#allocation44_spill] sm:$0xff] }
 0x9ab   : > { %v13591_v54 = vld [vmem:[#allocation56_spill] sm:$0xff] }
 0x9ac   : > { %v2061_v61 = vpop.f32.mrf.mxu2  ;;  %v13592_v52 = vld [vmem:[#allocation64_spill] sm:$0xff] }
 0x9ad   : > { %v7731_v3 = vpack.i.bf16 %v2061_v61, %v2059_v56  ;;  %v2630_v56 = vsel %vm1049_vm5, %v13586_v62, %v7714_v40 }
 0x9ae   : > { %v2423_v48 = vpop.f32.mrf.mxu1 }
 0x9af   : > { %v7736_v21 = vpack.i.bf16 %v2423_v48, %v2421_v44  ;;  %7732 = vrot.lane.b32.xlu2 %v7731_v3, %s8716_s22 }
 0x9b1   : > { %v7693_v16 = vpop.permute.xlu0 %7692  ;;  %7737 = vrot.lane.b32.xlu0 %v7736_v21, %s8717_s23 }
 0x9b2   : > { %v7695_v33 = vunpack.i.h.bf16 %v7693_v16  ;;  %v7694_v8 = vunpack.i.l.bf16 %v7693_v16 }
 0x9b4   : > { %v2660_v43 = vsel %vm2651_vm7, %v2643_v4, %v7694_v8  ;;  %v2661_v9 = vsel %vm2651_vm7, %v2644_v5, %v7695_v33  ;;  %v13589_v8 = vld [vmem:[#allocation45_spill] sm:$0xff]  ;;  %v7728_v4 = vpop.permute.xlu1 %7727 }
 0x9b5   : > { %v2672_v60 = vpack.c.bf16 %v2661_v9, %v2660_v43  ;;  %v7730_v29 = vunpack.i.h.bf16 %v7728_v4  ;;  %v7729_v12 = vunpack.i.l.bf16 %v7728_v4 }
 0x9b7   : > { %7091 = vmatmul.msk.bf16.gmra.mxu3 %vm482_vm0, %v2672_v60  ;;  %v2633_v58 = vsel %vm1049_vm5, %v13591_v54, %v7730_v29 }
 0x9c1   : > { %v7708_v14 = vpop.permute.xlu0 %7707 }
 0x9c2   : > { %v7710_v17 = vunpack.i.h.bf16 %v7708_v14  ;;  %v7709_v7 = vunpack.i.l.bf16 %v7708_v14 }
 0x9c4   : > { %v2662_v35 = vsel %vm2651_vm7, %v2645_v18, %v7709_v7  ;;  %v2663_v39 = vsel %vm2651_vm7, %v2646_v45, %v7710_v17  ;;  %v2632_v17 = vsel %vm1049_vm5, %v13592_v52, %v7729_v12 }
 0x9c5   : > { %v2673_v37 = vpack.c.bf16 %v2663_v39, %v2662_v35 }
 0x9c6   : > { %v2733_v19 = vpop.f32.mrf.mxu3 }
 0x9c7   : > { %v2773_v59 = vadd.f32 %v13583_v41, %v2733_v19  ;;  %7092 = vmatmul.msk.bf16.gmra.mxu3 %vm482_vm0, %v2673_v37 }
 0x9c9   : > { %v10801_v1 = vadd.f32 %v10796_v53, %v2773_v59 }
 0x9cb   : > { %v2808_v25 = vsel %vm482_vm0, %v10801_v1, 0.0  ;;  %v7718_v55 = vpop.permute.xlu2 %7717 }
 0x9cc   : > { %2809 = vadd.xlane.f32.xlu1 %v2808_v25  ;;  %v7720_v11 = vunpack.i.h.bf16 %v7718_v55  ;;  %v7719_v50 = vunpack.i.l.bf16 %v7718_v55  ;;  %v13594_v55 = vld [vmem:[#allocation50_spill] sm:$0xff] }
 0x9ce   : > { %v2735_v20 = vpop.f32.mrf.mxu3  ;;  %v2648_v32 = vsel %vm2634_vm6, %v2631_v38, %v7720_v11  ;;  %v2647_v22 = vsel %vm2634_vm6, %v2630_v56, %v7719_v50 }
 0x9cf   : > { %v2774_v13 = vadd.f32 %v13584_v31, %v2735_v20  ;;  %v13593_v20 = vld [vmem:[#allocation43_spill] sm:$0xff] }
 0x9d1   : > { %v10807_v6 = vadd.f32 %v10796_v53, %v2774_v13 }
 0x9d3   : > { %v2811_v46 = vsel %vm482_vm0, %v10807_v6, 0.0 }
 0x9d8   : > { %2812 = vadd.xlane.f32.xlu2 %v2811_v46 }
 0xa08   : > { %v7723_v28 = vpop.permute.xlu0 %7722 }
 0xa09   : > { %v7725_v27 = vunpack.i.h.bf16 %v7723_v28  ;;  %v7724_v44 = vunpack.i.l.bf16 %v7723_v28  ;;  %v7733_v9 = vpop.permute.xlu2 %7732  ;;  %v13595_v28 = vld [vmem:[#allocation42_spill] sm:$0xff] }
 0xa0a   : > { %v2738_v61 = vpop.f32.mrf.mxu3  ;;  %v7735_v15 = vunpack.i.h.bf16 %v7733_v9  ;;  %v7734_v24 = vunpack.i.l.bf16 %v7733_v9 }
 0xa0b   : > { %v2664_v3 = vsel %vm2651_vm7, %v2647_v22, %v7724_v44  ;;  %v2665_v36 = vsel %vm2651_vm7, %v2648_v32, %v7725_v27  ;;  %v2775_v48 = vadd.f32 %v13587_v34, %v2738_v61  ;;  %v13596_v32 = vld [vmem:[#allocation41_spill] sm:$0xff] }
 0xa0c   : > { %v2674_v42 = vpack.c.bf16 %v2665_v36, %v2664_v3  ;;  %v2650_v18 = vsel %vm2634_vm6, %v2633_v58, %v7735_v15  ;;  %v2649_v35 = vsel %vm2634_vm6, %v2632_v17, %v7734_v24  ;;  %v13598_v24 = vld [vmem:[#allocation39_spill] sm:$0xff] }
 0xa0d   : > { %v10821_v57 = vadd.f32 %v10796_v53, %v2775_v48 }
 0xa0e   : > { %7093 = vmatmul.msk.bf16.gmra.mxu3 %vm482_vm0, %v2674_v42 }
 0xa0f   : > { %v2814_v21 = vsel %vm482_vm0, %v10821_v57, 0.0 }
 0xa10   : > { %2815 = vadd.xlane.f32.xlu0 %v2814_v21 }
 0xa12   : > { %v2740_v16 = vpop.f32.mrf.mxu3 }
 0xa13   : > { %v2776_v30 = vadd.f32 %v13588_v47, %v2740_v16 }
 0xa15   : > { %v10828_v63 = vadd.f32 %v10796_v53, %v2776_v30 }
 0xa17   : > { %v2817_v0 = vsel %vm482_vm0, %v10828_v63, 0.0 }
 0xa18   : > { %2818 = vadd.xlane.f32.xlu2 %v2817_v0 }
 0xa1a   : > { %v2743_v33 = vpop.f32.mrf.mxu3 }
 0xa1b   : > { %v2777_v5 = vadd.f32 %v13589_v8, %v2743_v33  ;;  %v13597_v33 = vld [vmem:[#allocation40_spill] sm:$0xff] }
 0xa1d   : > { %v10834_v43 = vadd.f32 %v10796_v53, %v2777_v5 }
 0xa1f   : > { %v2820_v60 = vsel %vm482_vm0, %v10834_v43, 0.0 }
 0xa20   : > { %2821 = vadd.xlane.f32.xlu1 %v2820_v60 }
 0xa22   : > { %v2745_v26 = vpop.f32.mrf.mxu3 }
 0xa23   : > { %v2778_v14 = vadd.f32 %v13590_v10, %v2745_v26  ;;  %v7738_v49 = vpop.permute.xlu0 %7737 }
 0xa24   : > { %v7740_v7 = vunpack.i.h.bf16 %v7738_v49  ;;  %v7739_v45 = vunpack.i.l.bf16 %v7738_v49 }
 0xa25   : > { %v10846_v39 = vadd.f32 %v10796_v53, %v2778_v14 }
 0xa26   : > { %v2666_v37 = vsel %vm2651_vm7, %v2649_v35, %v7739_v45  ;;  %v2667_v19 = vsel %vm2651_vm7, %v2650_v18, %v7740_v7  ;;  %v13599_v45 = vld [vmem:[#allocation38_spill] sm:$0xff] }
 0xa27   : > { %v2823_v41 = vsel %vm482_vm0, %v10846_v39, 0.0  ;;  %v2675_v59 = vpack.c.bf16 %v2667_v19, %v2666_v37 }
 0xa28   : > { %2824 = vadd.xlane.f32.xlu2 %v2823_v41 }
 0xa29   : > { %7094 = vmatmul.msk.bf16.gmra.mxu3 %vm482_vm0, %v2675_v59 }
 0xa2a   : > { %v2748_v25 = vpop.f32.mrf.mxu3 }
 0xa2b   : > { %v2779_v31 = vadd.f32 %v13593_v20, %v2748_v25 }
 0xa2d   : > { %v10855_v13 = vadd.f32 %v10796_v53, %v2779_v31 }
 0xa2f   : > { %v2826_v46 = vsel %vm482_vm0, %v10855_v13, 0.0 }
 0xa30   : > { %2827 = vadd.xlane.f32.xlu2 %v2826_v46  ;;  %v13600_v46 = vld [vmem:[#allocation37_spill] sm:$0xff] }
 0xa32   : > { %v2750_v40 = vpop.f32.mrf.mxu3 }
 0xa33   : > { %v2780_v51 = vadd.f32 %v13595_v28, %v2750_v40 }
 0xa35   : > { %v10868_v62 = vadd.f32 %v10796_v53, %v2780_v51 }
 0xa37   : > { %v2829_v3 = vsel %vm482_vm0, %v10868_v62, 0.0 }
 0xa3a   : > { %v2753_v56 = vpop.f32.mrf.mxu3 }
 0xa3b   : > { %v2781_v22 = vadd.f32 %v13596_v32, %v2753_v56 }
 0xa3d   : > { %v10880_v34 = vadd.f32 %v10796_v53, %v2781_v22 }
 0xa3f   : > { %v2810_v2 = vpop.xlane.xlu1 %2809  ;;  %v2832_v42 = vsel %vm482_vm0, %v10880_v34, 0.0 }
 0xa40   : > { %v2856_v23 = vmul.f32 %v2810_v2, %v13594_v55 }
 0xa42   : > { %v10861_v11 = vsub.f32 %v10801_v1, %v2856_v23  ;;  %v2755_v21 = vpop.f32.mrf.mxu3 }
 0xa43   : > { %v2782_v8 = vadd.f32 %v13597_v33, %v2755_v21  ;;  %v7409_v33 = vld [vmem:[%s10952_s18 + $0x10] sm:$0xff] }
 0xa44   : > { %v2888_v50 = vmul.f32 %v10861_v11, %v10861_v11 }
 0xa45   : > { %v10895_v29 = vadd.f32 %v10796_v53, %v2782_v8 }
 0xa46   : > { %v2904_v38 = vsel %vm482_vm0, %v2888_v50, 0.0 }
 0xa47   : > { %2905 = vadd.xlane.f32.xlu0 %v2904_v38  ;;  %v2835_v14 = vsel %vm482_vm0, %v10895_v29, 0.0 }
 0xa4a   : > { %v2758_v4 = vpop.f32.mrf.mxu3 }
 0xa4b   : > { %v2813_v27 = vpop.xlane.xlu2 %2812  ;;  %v2783_v26 = vadd.f32 %v13598_v24, %v2758_v4  ;;  %v7408_v4 = vld [vmem:[%s10952_s18 + $0x8] sm:$0xff] }
 0xa4c   : > { %v2857_v44 = vmul.f32 %v2813_v27, %v13594_v55 }
 0xa4d   : > { %v10908_v52 = vadd.f32 %v10796_v53, %v2783_v26 }
 0xa4e   : > { %v10873_v61 = vsub.f32 %v10807_v6, %v2857_v44  ;;  %v13601_v44 = vld [vmem:[#allocation36_spill] sm:$0xff] }
 0xa4f   : > { %2830 = vadd.xlane.f32.xlu0 %v2829_v3  ;;  %v2838_v37 = vsel %vm482_vm0, %v10908_v52, 0.0 }
 0xa50   : > { %v2889_v36 = vmul.f32 %v10873_v61, %v10873_v61 }
 0xa52   : > { %v2907_v48 = vsel %vm482_vm0, %v2889_v36, 0.0  ;;  %v2760_v58 = vpop.f32.mrf.mxu3 }
 0xa53   : > { %2908 = vadd.xlane.f32.xlu1 %v2907_v48  ;;  %v2784_v18 = vadd.f32 %v13599_v45, %v2760_v58 }
 0xa55   : > { %v10921_v25 = vadd.f32 %v10796_v53, %v2784_v18 }
 0xa57   : > { %2833 = vadd.xlane.f32.xlu0 %v2832_v42  ;;  %v2841_v40 = vsel %vm482_vm0, %v10921_v25, 0.0  ;;  %v13602_v42 = vld [vmem:[#allocation35_spill] sm:$0xff] }
 0xa83   : > { %v2816_v16 = vpop.xlane.xlu0 %2815 }
 0xa84   : > { %v2858_v47 = vmul.f32 %v2816_v16, %v13594_v55 }
 0xa86   : > { %v10887_v30 = vsub.f32 %v10821_v57, %v2858_v47  ;;  %v7410_v47 = vld [vmem:[%s10952_s18 + $0x18] sm:$0xff] }
 0xa87   : > { %3223 = vmatpush.bf16.msrb.mxu2 %v7410_v47 }
 0xa88   : > { %v2890_v0 = vmul.f32 %v10887_v30, %v10887_v30 }
 0xa8a   : > { %v2910_v5 = vsel %vm482_vm0, %v2890_v0, 0.0 }
 0xa8b   : > { %v2819_v9 = vpop.xlane.xlu2 %2818  ;;  %2911 = vadd.xlane.f32.xlu1 %v2910_v5  ;;  %3224 = vmatpush.bf16.msrb.mxu2 %v7409_v33 }
 0xa8c   : > { %v2859_v60 = vmul.f32 %v2819_v9, %v13594_v55 }
 0xa8e   : > { %v10898_v12 = vsub.f32 %v10828_v63, %v2859_v60 }
 0xa8f   : > { %3225 = vmatpush.bf16.msrb.mxu2 %v7408_v4 }
 0xa90   : > { %v2891_v15 = vmul.f32 %v10898_v12, %v10898_v12 }
 0xa91   : > { %v2763_v59 = vpop.f32.mrf.mxu3 }
 0xa92   : > { %v2913_v10 = vsel %vm482_vm0, %v2891_v15, 0.0  ;;  %v2785_v2 = vadd.f32 %v13600_v46, %v2763_v59  ;;  %v7407_v15 = vld [vmem:[%s10952_s18] sm:$0xff] }
 0xa93   : > { %v2822_v49 = vpop.xlane.xlu1 %2821  ;;  %2914 = vadd.xlane.f32.xlu2 %v2913_v10  ;;  %2836 = vadd.xlane.f32.xlu1 %v2835_v14 }
 0xa94   : > { %v2860_v54 = vmul.f32 %v2822_v49, %v13594_v55  ;;  %v10934_v51 = vadd.f32 %v10796_v53, %v2785_v2  ;;  %3226 = vmatpush.bf16.msrb.mxu2 %v7407_v15 }
 0xa96   : > { %v10911_v17 = vsub.f32 %v10834_v43, %v2860_v54  ;;  %v2844_v3 = vsel %vm482_vm0, %v10934_v51, 0.0 }
 0xa98   : > { %v2892_v7 = vmul.f32 %v10911_v17, %v10911_v17 }
 0xa99   : > { %v2765_v56 = vpop.f32.mrf.mxu3 }
 0xa9a   : > { %v2916_v35 = vsel %vm482_vm0, %v2892_v7, 0.0  ;;  %v2786_v32 = vadd.f32 %v13601_v44, %v2765_v56 }
 0xa9b   : > { %v2825_v19 = vpop.xlane.xlu2 %2824  ;;  %2917 = vadd.xlane.f32.xlu2 %v2916_v35  ;;  %2839 = vadd.xlane.f32.xlu1 %v2838_v37 }
 0xa9c   : > { %v2861_v41 = vmul.f32 %v2825_v19, %v13594_v55  ;;  %v10946_v36 = vadd.f32 %v10796_v53, %v2786_v32 }
 0xa9e   : > { %v10924_v20 = vsub.f32 %v10846_v39, %v2861_v41  ;;  %v2847_v16 = vsel %vm482_vm0, %v10946_v36, 0.0 }
 0xaa0   : > { %v2893_v31 = vmul.f32 %v10924_v20, %v10924_v20 }
 0xaa2   : > { %v2919_v23 = vsel %vm482_vm0, %v2893_v31, 0.0 }
 0xaa3   : > { %v2828_v50 = vpop.xlane.xlu2 %2827  ;;  %2920 = vadd.xlane.f32.xlu0 %v2919_v23  ;;  %2842 = vadd.xlane.f32.xlu2 %v2841_v40  ;;  %v13603_v23 = vld [vmem:[#allocation34_spill] sm:$0xff] }
 0xaa4   : > { %v2862_v28 = vmul.f32 %v2828_v50, %v13594_v55 }
 0xaa6   : > { %v10937_v38 = vsub.f32 %v10855_v13, %v2862_v28 }
 0xaa8   : > { %v2894_v27 = vmul.f32 %v10937_v38, %v10937_v38 }
 0xaaa   : > { %v2922_v22 = vsel %vm482_vm0, %v2894_v27, 0.0 }
 0xaab   : > { %2923 = vadd.xlane.f32.xlu0 %v2922_v22  ;;  %2845 = vadd.xlane.f32.xlu2 %v2844_v3 }
 0xaac   : > { %v2768_v48 = vpop.f32.mrf.mxu3 }
 0xaad   : > { %v2787_v21 = vadd.f32 %v13602_v42, %v2768_v48 }
 0xaaf   : > { %v10959_v0 = vadd.f32 %v10796_v53, %v2787_v21 }
 0xab1   : > { %v2850_v5 = vsel %vm482_vm0, %v10959_v0, 0.0 }
 0xab3   : > { %2848 = vadd.xlane.f32.xlu0 %v2847_v16 }
 0xab4   : > { %v2770_v59 = vpop.f32.mrf.mxu3 }
 0xab5   : > { %v2788_v40 = vadd.f32 %v13603_v23, %v2770_v59 }
 0xab7   : > { %v10984_v44 = vadd.f32 %v10796_v53, %v2788_v40 }
 0xab9   : > { %v2853_v48 = vsel %vm482_vm0, %v10984_v44, 0.0 }
 0xaba   : > { %v2906_v8 = vpop.xlane.xlu0 %2905 }
 0xabb   : > { %v2952_v9 = vmul.f32 %v2906_v8, %v13594_v55  ;;  %2851 = vadd.xlane.f32.xlu0 %v2850_v5 }
 0xabd   : > { %v2968_v60 = vadd.f32 1e-06, %v2952_v9 }
 0xabf   : > { %8157 = vrsqrt.f32 %v2968_v60  ;;  %vm2990_vm9 = vweird.f32 %v2968_v60 }
 0xac2   : > { %v2831_v24 = vpop.xlane.xlu0 %2830 }
 0xac3   : > { %v2863_v26 = vmul.f32 %v2831_v24, %v13594_v55 }
 0xac5   : > { %v8158_v10 = vpop.eup %8157  ;;  %v10969_v14 = vsub.f32 %v10868_v62, %v2863_v26 }
 0xac6   : > { %v2985_v49 = vmul.f32 %v8158_v10, %v2968_v60  ;;  %v2909_v54 = vpop.xlane.xlu1 %2908  ;;  %vm2991_vm8 = vweird.f32 %v8158_v10 }
 0xac7   : > { %v2953_v58 = vmul.f32 %v2909_v54, %v13594_v55  ;;  %v2895_v7 = vmul.f32 %v10969_v14, %v10969_v14  ;;  %vm2992_vm11 = vmor %vm2990_vm9, %vm2991_vm8 }
 0xac8   : > { %v2986_v35 = vmul.f32 %v8158_v10, %v2985_v49 }
 0xac9   : > { %v2969_v45 = vadd.f32 1e-06, %v2953_v58  ;;  %v2925_v18 = vsel %vm482_vm0, %v2895_v7, 0.0 }
 0xaca   : > { %v2834_v37 = vpop.xlane.xlu0 %2833  ;;  %2926 = vadd.xlane.f32.xlu1 %v2925_v18  ;;  %v2987_v31 = vmul.f32 0.5, %v2986_v35 }
 0xacb   : > { %8159 = vrsqrt.f32 %v2969_v45  ;;  %v2864_v19 = vmul.f32 %v2834_v37, %v13594_v55  ;;  %vm3000_vm12 = vweird.f32 %v2969_v45 }
 0xacc   : > { %v2988_v28 = vsub.f32 1.5, %v2987_v31 }
 0xacd   : > { %v10977_v41 = vsub.f32 %v10880_v34, %v2864_v19 }
 0xace   : > { %v2989_v32 = vmul.f32 %v8158_v10, %v2988_v28 }
 0xacf   : > { %v2896_v46 = vmul.f32 %v10977_v41, %v10977_v41 }
 0xad0   : > { %v2993_v42 = vsel %vm2992_vm11, %v8158_v10, %v2989_v32 }
 0xad1   : > { %v8160_v2 = vpop.eup %8159  ;;  %v2928_v50 = vsel %vm482_vm0, %v2896_v46, 0.0  ;;  %v3144_v16 = vmul.f32 %v2993_v42, %v10861_v11 }
 0xad2   : > { %v2995_v56 = vmul.f32 %v8160_v2, %v2969_v45  ;;  %2929 = vadd.xlane.f32.xlu1 %v2928_v50  ;;  %vm3001_vm10 = vweird.f32 %v8160_v2 }
 0xad3   : > { %vm3002_vm13 = vmor %vm3000_vm12, %vm3001_vm10 }
 0xad4   : > { %v2996_v27 = vmul.f32 %v8160_v2, %v2995_v56 }
 0xad6   : > { %v2997_v22 = vmul.f32 0.5, %v2996_v27 }
 0xad8   : > { %v2998_v3 = vsub.f32 1.5, %v2997_v22 }
 0xada   : > { %v2999_v21 = vmul.f32 %v8160_v2, %v2998_v3  ;;  %2854 = vadd.xlane.f32.xlu1 %v2853_v48 }
 0xadc   : > { %v3003_v53 = vsel %vm3002_vm13, %v8160_v2, %v2999_v21 }
 0xadd   : > { %v3145_v47 = vmul.f32 %v3003_v53, %v10873_v61 }
 0xadf   : > { %v3160_v33 = vpack.c.bf16 %v3145_v47, %v3144_v16 }
 0xae1   : > { %7111 = vmatmul.msk.bf16.vlgmr.msrb.gmra.mxu2 %vm482_vm0, %v3160_v33 }
 0xafe   : > { %v2912_v8 = vpop.xlane.xlu1 %2911 }
 0xaff   : > { %v2954_v5 = vmul.f32 %v2912_v8, %v13594_v55 }
 0xb01   : > { %v2970_v4 = vadd.f32 1e-06, %v2954_v5 }
 0xb03   : > { %8161 = vrsqrt.f32 %v2970_v4  ;;  %vm3010_vm15 = vweird.f32 %v2970_v4 }
 0xb06   : > { %v2915_v9 = vpop.xlane.xlu2 %2914  ;;  %v2837_v60 = vpop.xlane.xlu1 %2836 }
 0xb07   : > { %v2955_v15 = vmul.f32 %v2915_v9, %v13594_v55  ;;  %v2865_v24 = vmul.f32 %v2837_v60, %v13594_v55 }
 0xb09   : > { %v8162_v26 = vpop.eup %8161  ;;  %v2971_v10 = vadd.f32 1e-06, %v2955_v15  ;;  %v11001_v11 = vsub.f32 %v10895_v29, %v2865_v24 }
 0xb0a   : > { %v3005_v61 = vmul.f32 %v8162_v26, %v2970_v4  ;;  %vm3011_vm14 = vweird.f32 %v8162_v26 }
 0xb0b   : > { %8163 = vrsqrt.f32 %v2971_v10  ;;  %v2897_v49 = vmul.f32 %v11001_v11, %v11001_v11  ;;  %vm3012_vm2 = vmor %vm3010_vm15, %vm3011_vm14  ;;  %vm3020_vm3 = vweird.f32 %v2971_v10 }
 0xb0c   : > { %v3006_v54 = vmul.f32 %v8162_v26, %v3005_v61 }
 0xb0d   : > { %v2931_v58 = vsel %vm482_vm0, %v2897_v49, 0.0 }
 0xb0e   : > { %v3007_v7 = vmul.f32 0.5, %v3006_v54  ;;  %v2918_v45 = vpop.xlane.xlu2 %2917  ;;  %v2840_v18 = vpop.xlane.xlu1 %2839  ;;  %2932 = vadd.xlane.f32.xlu2 %v2931_v58 }
 0xb0f   : > { %v2956_v35 = vmul.f32 %v2918_v45, %v13594_v55  ;;  %v2866_v37 = vmul.f32 %v2840_v18, %v13594_v55 }
 0xb10   : > { %v3008_v46 = vsub.f32 1.5, %v3007_v7 }
 0xb11   : > { %v8164_v19 = vpop.eup %8163  ;;  %v2972_v59 = vadd.f32 1e-06, %v2956_v35  ;;  %v11009_v31 = vsub.f32 %v10908_v52, %v2866_v37 }
 0xb12   : > { %v3015_v2 = vmul.f32 %v8164_v19, %v2971_v10  ;;  %v3009_v28 = vmul.f32 %v8162_v26, %v3008_v46  ;;  %vm3021_vm1 = vweird.f32 %v8164_v19 }
 0xb13   : > { %8165 = vrsqrt.f32 %v2972_v59  ;;  %v2898_v23 = vmul.f32 %v11009_v31, %v11009_v31  ;;  %vm3022_vm4 = vmor %vm3020_vm3, %vm3021_vm1  ;;  %vm3030_vm9 = vweird.f32 %v2972_v59 }
 0xb14   : > { %v3016_v40 = vmul.f32 %v8164_v19, %v3015_v2  ;;  %v3013_v16 = vsel %vm3012_vm2, %v8162_v26, %v3009_v28 }
 0xb15   : > { %v2934_v50 = vsel %vm482_vm0, %v2898_v23, 0.0  ;;  %v3146_v60 = vmul.f32 %v3013_v16, %v10887_v30 }
 0xb16   : > { %v3017_v56 = vmul.f32 0.5, %v3016_v40  ;;  %v2921_v27 = vpop.xlane.xlu0 %2920  ;;  %v2843_v32 = vpop.xlane.xlu2 %2842  ;;  %2935 = vadd.xlane.f32.xlu2 %v2934_v50 }
 0xb17   : > { %v2957_v22 = vmul.f32 %v2921_v27, %v13594_v55  ;;  %v2867_v3 = vmul.f32 %v2843_v32, %v13594_v55 }
 0xb18   : > { %v3018_v48 = vsub.f32 1.5, %v3017_v56 }
 0xb19   : > { %v8166_v42 = vpop.eup %8165  ;;  %v2973_v21 = vadd.f32 1e-06, %v2957_v22  ;;  %v11017_v53 = vsub.f32 %v10921_v25, %v2867_v3 }
 0xb1a   : > { %v3019_v47 = vmul.f32 %v8164_v19, %v3018_v48  ;;  %v3025_v33 = vmul.f32 %v8166_v42, %v2972_v59  ;;  %vm3031_vm8 = vweird.f32 %v8166_v42 }
 0xb1b   : > { %8167 = vrsqrt.f32 %v2973_v21  ;;  %v2899_v8 = vmul.f32 %v11017_v53, %v11017_v53  ;;  %vm3032_vm11 = vmor %vm3030_vm9, %vm3031_vm8  ;;  %vm3040_vm12 = vweird.f32 %v2973_v21 }
 0xb1c   : > { %v3023_v5 = vsel %vm3022_vm4, %v8164_v19, %v3019_v47  ;;  %v3026_v9 = vmul.f32 %v8166_v42, %v3025_v33 }
 0xb1d   : > { %v2937_v4 = vsel %vm482_vm0, %v2899_v8, 0.0  ;;  %v3147_v15 = vmul.f32 %v3023_v5, %v10898_v12 }
 0xb1e   : > { %v3027_v24 = vmul.f32 0.5, %v3026_v9  ;;  %v2924_v61 = vpop.xlane.xlu0 %2923  ;;  %v2846_v49 = vpop.xlane.xlu2 %2845  ;;  %2938 = vadd.xlane.f32.xlu0 %v2937_v4 }
 0xb1f   : > { %v2868_v26 = vmul.f32 %v2846_v49, %v13594_v55  ;;  %v3161_v10 = vpack.c.bf16 %v3147_v15, %v3146_v60  ;;  %v2958_v27 = vmul.f32 %v2924_v61, %v13594_v55 }
 0xb20   : > { %v3028_v7 = vsub.f32 1.5, %v3027_v24 }
 0xb21   : > { %v8168_v54 = vpop.eup %8167  ;;  %v11026_v58 = vsub.f32 %v10934_v51, %v2868_v26  ;;  %7112 = vmatmul.msk.bf16.gmra.mxu2 %vm482_vm0, %v3161_v10  ;;  %v2974_v16 = vadd.f32 1e-06, %v2958_v27 }
 0xb22   : > { %v3035_v45 = vmul.f32 %v8168_v54, %v2973_v21  ;;  %v3029_v35 = vmul.f32 %v8166_v42, %v3028_v7  ;;  %vm3041_vm10 = vweird.f32 %v8168_v54 }
 0xb23   : > { %v2900_v30 = vmul.f32 %v11026_v58, %v11026_v58  ;;  %vm3042_vm13 = vmor %vm3040_vm12, %vm3041_vm10  ;;  %8169 = vrsqrt.f32 %v2974_v16  ;;  %vm3050_vm15 = vweird.f32 %v2974_v16 }
 0xb24   : > { %v3036_v18 = vmul.f32 %v8168_v54, %v3035_v45  ;;  %v3033_v40 = vsel %vm3032_vm11, %v8166_v42, %v3029_v35 }
 0xb25   : > { %v2940_v12 = vsel %vm482_vm0, %v2900_v30, 0.0  ;;  %v3148_v59 = vmul.f32 %v3033_v40, %v10911_v17 }
 0xb26   : > { %v3037_v37 = vmul.f32 0.5, %v3036_v18  ;;  %v2849_v19 = vpop.xlane.xlu0 %2848  ;;  %2941 = vadd.xlane.f32.xlu1 %v2940_v12 }
 0xb27   : > { %v2869_v46 = vmul.f32 %v2849_v19, %v13594_v55 }
 0xb28   : > { %v3038_v2 = vsub.f32 1.5, %v3037_v37 }
 0xb29   : > { %v11034_v23 = vsub.f32 %v10946_v36, %v2869_v46  ;;  %v8170_v17 = vpop.eup %8169 }
 0xb2a   : > { %v3039_v50 = vmul.f32 %v8168_v54, %v3038_v2  ;;  %vm3051_vm14 = vweird.f32 %v8170_v17 }
 0xb2b   : > { %v2901_v28 = vmul.f32 %v11034_v23, %v11034_v23  ;;  %vm3052_vm2 = vmor %vm3050_vm15, %vm3051_vm14 }
 0xb2c   : > { %v3043_v56 = vsel %vm3042_vm13, %v8168_v54, %v3039_v50 }
 0xb2d   : > { %v2943_v32 = vsel %vm482_vm0, %v2901_v28, 0.0  ;;  %v3149_v22 = vmul.f32 %v3043_v56, %v10924_v20  ;;  %v3045_v20 = vmul.f32 %v8170_v17, %v2974_v16  ;;  %v7415_v28 = vld [vmem:[%s11064_s17 + $0x18] sm:$0xff]  ;;  %v7414_v56 = vld [vmem:[%s11064_s17 + $0x10] sm:$0xff] }
 0xb2e   : > { %2944 = vadd.xlane.f32.xlu2 %v2943_v32  ;;  %v2852_v3 = vpop.xlane.xlu0 %2851  ;;  %3475 = vmatpush.bf16.msrb.mxu0 %v7415_v28 }
 0xb2f   : > { %v2870_v48 = vmul.f32 %v2852_v3, %v13594_v55  ;;  %v3162_v42 = vpack.c.bf16 %v3149_v22, %v3148_v59  ;;  %v3046_v4 = vmul.f32 %v8170_v17, %v3045_v20  ;;  %v7412_v59 = vld [vmem:[%s11064_s17] sm:$0xff] }
 0xb31   : > { %v11044_v21 = vsub.f32 %v10959_v0, %v2870_v48  ;;  %7113 = vmatmul.msk.bf16.gmra.mxu2 %vm482_vm0, %v3162_v42  ;;  %v3047_v60 = vmul.f32 0.5, %v3046_v4 }
 0xb32   : > { %3476 = vmatpush.bf16.msrb.mxu0 %v7414_v56 }
 0xb33   : > { %v2902_v47 = vmul.f32 %v11044_v21, %v11044_v21  ;;  %v3048_v61 = vsub.f32 1.5, %v3047_v60 }
 0xb35   : > { %v2946_v33 = vsel %vm482_vm0, %v2902_v47, 0.0  ;;  %v3049_v10 = vmul.f32 %v8170_v17, %v3048_v61 }
 0xb36   : > { %2947 = vadd.xlane.f32.xlu0 %v2946_v33 }
 0xb37   : > { %v3053_v12 = vsel %vm3052_vm2, %v8170_v17, %v3049_v10 }
 0xb38   : > { %v3150_v2 = vmul.f32 %v3053_v12, %v10937_v38  ;;  %v11070_v38 = vld [vmem:[%s10992_s28] ss:$0 sm:$0xff] }
 0xb3d   : > { %v2927_v8 = vpop.xlane.xlu1 %2926 }
 0xb3e   : > { %v2959_v5 = vmul.f32 %v2927_v8, %v13594_v55 }
 0xb40   : > { %v2975_v9 = vadd.f32 1e-06, %v2959_v5 }
 0xb42   : > { %8171 = vrsqrt.f32 %v2975_v9  ;;  %vm3060_vm3 = vweird.f32 %v2975_v9 }
 0xb45   : > { %v2930_v15 = vpop.xlane.xlu1 %2929 }
 0xb46   : > { %v2960_v20 = vmul.f32 %v2930_v15, %v13594_v55 }
 0xb48   : > { %v8172_v24 = vpop.eup %8171 }
 0xb49   : > { %v3055_v49 = vmul.f32 %v8172_v24, %v2975_v9  ;;  %vm3061_vm1 = vweird.f32 %v8172_v24  ;;  %v2976_v9 = vadd.f32 1e-06, %v2960_v20 }
 0xb4a   : > { %vm3062_vm4 = vmor %vm3060_vm3, %vm3061_vm1 }
 0xb4b   : > { %v3056_v26 = vmul.f32 %v8172_v24, %v3055_v49  ;;  %vm3070_vm9 = vweird.f32 %v2976_v9 }
 0xb4d   : > { %v3057_v54 = vmul.f32 0.5, %v3056_v26  ;;  %v2855_v7 = vpop.xlane.xlu1 %2854 }
 0xb4e   : > { %v2871_v45 = vmul.f32 %v2855_v7, %v13594_v55 }
 0xb4f   : > { %v3058_v30 = vsub.f32 1.5, %v3057_v54 }
 0xb50   : > { %v11053_v18 = vsub.f32 %v10984_v44, %v2871_v45 }
 0xb51   : > { %v3059_v35 = vmul.f32 %v8172_v24, %v3058_v30 }
 0xb52   : > { %v2903_v37 = vmul.f32 %v11053_v18, %v11053_v18 }
 0xb53   : > { %v3063_v19 = vsel %vm3062_vm4, %v8172_v24, %v3059_v35 }
 0xb54   : > { %v2949_v46 = vsel %vm482_vm0, %v2903_v37, 0.0  ;;  %v3151_v40 = vmul.f32 %v3063_v19, %v10969_v14  ;;  %v7413_v14 = vld [vmem:[%s11064_s17 + $0x8] sm:$0xff] }
 0xb55   : > { %2950 = vadd.xlane.f32.xlu1 %v2949_v46  ;;  %3477 = vmatpush.bf16.msrb.mxu0 %v7413_v14 }
 0xb56   : > { %v3163_v50 = vpack.c.bf16 %v3151_v40, %v3150_v2 }
 0xb58   : > { %7114 = vmatmul.msk.bf16.gmra.mxu2 %vm482_vm0, %v3163_v50 }
 0xb59   : > { %3478 = vmatpush.bf16.msrb.mxu0 %v7412_v59 }
 0xb64   : > { %v3228_v27 = vpop.f32.mrf.mxu2 }
 0xb65   : > { %v3229_v32 = vadd.f32 %v11070_v38, %v3228_v27 }
 0xb67   : > { %v3268_v22 = vmul.f32 %v3229_v32, %v3229_v32 }
 0xb69   : > { %v3284_v3 = vmul.f32 %v3268_v22, %v3229_v32 }
 0xb6b   : > { %v3300_v48 = vmul.f32 0.044715, %v3284_v3 }
 0xb6c   : > { %v3230_v42 = vpop.f32.mrf.mxu2 }
 0xb6d   : > { %v3316_v16 = vadd.f32 %v3300_v48, %v3229_v32  ;;  %v3231_v47 = vadd.f32 %v11070_v38, %v3230_v42 }
 0xb6f   : > { %v3332_v33 = vmul.f32 0.7978846, %v3316_v16  ;;  %v3269_v17 = vmul.f32 %v3231_v47, %v3231_v47 }
 0xb71   : > { %v3285_v8 = vmul.f32 %v3269_v17, %v3231_v47  ;;  %8173 = vtanh.f32 %v3332_v33 }
 0xb72   : > { %8175 = vrsqrt.f32 %v2976_v9 }
 0xb73   : > { %v3301_v5 = vmul.f32 0.044715, %v3285_v8 }
 0xb75   : > { %v3317_v4 = vadd.f32 %v3301_v5, %v3231_v47 }
 0xb77   : > { %v3333_v60 = vmul.f32 0.7978846, %v3317_v4  ;;  %v8174_v24 = vpop.eup %8173 }
 0xb78   : > { %v3364_v61 = vadd.f32 1.0, %v8174_v24  ;;  %v8176_v49 = vpop.eup %8175 }
 0xb79   : > { %8177 = vtanh.f32 %v3333_v60  ;;  %v3065_v15 = vmul.f32 %v8176_v49, %v2976_v9  ;;  %vm3071_vm8 = vweird.f32 %v8176_v49 }
 0xb7a   : > { %v3380_v10 = vmul.f32 0.5, %v3364_v61  ;;  %vm3072_vm11 = vmor %vm3070_vm9, %vm3071_vm8 }
 0xb7b   : > { %v3066_v19 = vmul.f32 %v8176_v49, %v3065_v15 }
 0xb7c   : > { %v3396_v12 = vmul.f32 %v3380_v10, %v3229_v32 }
 0xb7d   : > { %v3067_v2 = vmul.f32 0.5, %v3066_v19 }
 0xb7f   : > { %v8178_v26 = vpop.eup %8177  ;;  %v3068_v14 = vsub.f32 1.5, %v3067_v2 }
 0xb80   : > { %v3365_v54 = vadd.f32 1.0, %v8178_v26 }
 0xb81   : > { %v2933_v7 = vpop.xlane.xlu2 %2932  ;;  %v3069_v22 = vmul.f32 %v8176_v49, %v3068_v14 }
 0xb82   : > { %v3381_v45 = vmul.f32 0.5, %v3365_v54  ;;  %v2961_v30 = vmul.f32 %v2933_v7, %v13594_v55 }
 0xb83   : > { %v3073_v33 = vsel %vm3072_vm11, %v8176_v49, %v3069_v22 }
 0xb84   : > { %v3397_v35 = vmul.f32 %v3381_v45, %v3231_v47  ;;  %v2977_v37 = vadd.f32 1e-06, %v2961_v30  ;;  %v3152_v4 = vmul.f32 %v3073_v33, %v10977_v41 }
 0xb86   : > { %v3412_v46 = vpack.c.bf16 %v3397_v35, %v3396_v12  ;;  %8179 = vrsqrt.f32 %v2977_v37  ;;  %vm3080_vm12 = vweird.f32 %v2977_v37 }
 0xb88   : > { %7135 = vmatmul.msk.bf16.vlgmr.msrb.gmra.mxu0 %vm482_vm0, %v3412_v46 }
 0xb89   : > { %v2936_v40 = vpop.xlane.xlu2 %2935 }
 0xb8a   : > { %v2962_v50 = vmul.f32 %v2936_v40, %v13594_v55 }
 0xb8c   : > { %v8180_v28 = vpop.eup %8179  ;;  %v2978_v56 = vadd.f32 1e-06, %v2962_v50 }
 0xb8d   : > { %v3075_v27 = vmul.f32 %v8180_v28, %v2977_v37  ;;  %vm3081_vm10 = vweird.f32 %v8180_v28 }
 0xb8e   : > { %8181 = vrsqrt.f32 %v2978_v56  ;;  %vm3082_vm13 = vmor %vm3080_vm12, %vm3081_vm10  ;;  %vm3090_vm15 = vweird.f32 %v2978_v56 }
 0xb8f   : > { %v3076_v59 = vmul.f32 %v8180_v28, %v3075_v27 }
 0xb91   : > { %v3077_v32 = vmul.f32 0.5, %v3076_v59  ;;  %v2939_v3 = vpop.xlane.xlu0 %2938 }
 0xb92   : > { %v2963_v48 = vmul.f32 %v2939_v3, %v13594_v55 }
 0xb93   : > { %v3078_v42 = vsub.f32 1.5, %v3077_v32 }
 0xb94   : > { %v8182_v16 = vpop.eup %8181  ;;  %v2979_v47 = vadd.f32 1e-06, %v2963_v48 }
 0xb95   : > { %v3079_v17 = vmul.f32 %v8180_v28, %v3078_v42  ;;  %v3085_v20 = vmul.f32 %v8182_v16, %v2978_v56  ;;  %vm3091_vm14 = vweird.f32 %v8182_v16 }
 0xb96   : > { %8183 = vrsqrt.f32 %v2979_v47  ;;  %vm3092_vm2 = vmor %vm3090_vm15, %vm3091_vm14  ;;  %vm3100_vm3 = vweird.f32 %v2979_v47 }
 0xb97   : > { %v3083_v8 = vsel %vm3082_vm13, %v8180_v28, %v3079_v17  ;;  %v3086_v5 = vmul.f32 %v8182_v16, %v3085_v20 }
 0xb98   : > { %v3153_v60 = vmul.f32 %v3083_v8, %v11001_v11 }
 0xb99   : > { %v3087_v24 = vmul.f32 0.5, %v3086_v5  ;;  %v2942_v61 = vpop.xlane.xlu1 %2941 }
 0xb9a   : > { %v2964_v9 = vmul.f32 %v2942_v61, %v13594_v55  ;;  %v3164_v26 = vpack.c.bf16 %v3153_v60, %v3152_v4 }
 0xb9b   : > { %v3088_v49 = vsub.f32 1.5, %v3087_v24 }
 0xb9c   : > { %v8184_v10 = vpop.eup %8183  ;;  %v2980_v54 = vadd.f32 1e-06, %v2964_v9  ;;  %7115 = vmatmul.msk.bf16.gmra.mxu2 %vm482_vm0, %v3164_v26 }
 0xb9d   : > { %v3095_v15 = vmul.f32 %v8184_v10, %v2979_v47  ;;  %v3089_v45 = vmul.f32 %v8182_v16, %v3088_v49  ;;  %vm3101_vm1 = vweird.f32 %v8184_v10 }
 0xb9e   : > { %8185 = vrsqrt.f32 %v2980_v54  ;;  %vm3102_vm4 = vmor %vm3100_vm3, %vm3101_vm1  ;;  %vm3110_vm9 = vweird.f32 %v2980_v54 }
 0xb9f   : > { %v3096_v7 = vmul.f32 %v8184_v10, %v3095_v15  ;;  %v3093_v46 = vsel %vm3092_vm2, %v8182_v16, %v3089_v45 }
 0xba0   : > { %v3154_v27 = vmul.f32 %v3093_v46, %v11009_v31 }
 0xba1   : > { %v3097_v30 = vmul.f32 0.5, %v3096_v7  ;;  %v2945_v12 = vpop.xlane.xlu2 %2944 }
 0xba2   : > { %v2965_v41 = vmul.f32 %v2945_v12, %v13594_v55 }
 0xba3   : > { %v3098_v11 = vsub.f32 1.5, %v3097_v30 }
 0xba4   : > { %v8186_v35 = vpop.eup %8185  ;;  %v2981_v37 = vadd.f32 1e-06, %v2965_v41  ;;  %v3233_v19 = vpop.f32.mrf.mxu2 }
 0xba5   : > { %v3099_v2 = vmul.f32 %v8184_v10, %v3098_v11  ;;  %v3105_v40 = vmul.f32 %v8186_v35, %v2980_v54  ;;  %v11093_v50 = vadd.f32 %v11070_v38, %v3233_v19  ;;  %vm3111_vm8 = vweird.f32 %v8186_v35 }
 0xba6   : > { %8187 = vrsqrt.f32 %v2981_v37  ;;  %vm3112_vm11 = vmor %vm3110_vm9, %vm3111_vm8  ;;  %vm3120_vm12 = vweird.f32 %v2981_v37 }
 0xba7   : > { %v3103_v28 = vsel %vm3102_vm4, %v8184_v10, %v3099_v2  ;;  %v3106_v14 = vmul.f32 %v8186_v35, %v3105_v40  ;;  %v3270_v56 = vmul.f32 %v11093_v50, %v11093_v50 }
 0xba8   : > { %v3155_v59 = vmul.f32 %v3103_v28, %v11017_v53 }
 0xba9   : > { %v3107_v22 = vmul.f32 0.5, %v3106_v14  ;;  %v3286_v32 = vmul.f32 %v3270_v56, %v11093_v50  ;;  %v2948_v61 = vpop.xlane.xlu0 %2947 }
 0xbaa   : > { %v3165_v3 = vpack.c.bf16 %v3155_v59, %v3154_v27  ;;  %v2966_v30 = vmul.f32 %v2948_v61, %v13594_v55 }
 0xbab   : > { %v3302_v48 = vmul.f32 0.044715, %v3286_v32  ;;  %v3108_v47 = vsub.f32 1.5, %v3107_v22 }
 0xbac   : > { %v8188_v42 = vpop.eup %8187  ;;  %v3235_v16 = vpop.f32.mrf.mxu2  ;;  %7116 = vmatmul.msk.bf16.gmra.mxu2 %vm482_vm0, %v3165_v3 }
 0xbad   : > { %v3115_v33 = vmul.f32 %v8188_v42, %v2981_v37  ;;  %v3318_v17 = vadd.f32 %v3302_v48, %v11093_v50  ;;  %v3236_v20 = vadd.f32 %v11070_v38, %v3235_v16  ;;  %v3109_v4 = vmul.f32 %v8186_v35, %v3108_v47 }
 0xbae   : > { %vm3121_vm10 = vweird.f32 %v8188_v42 }
 0xbaf   : > { %v3116_v8 = vmul.f32 %v8188_v42, %v3115_v33  ;;  %v3334_v5 = vmul.f32 0.7978846, %v3318_v17  ;;  %v3271_v31 = vmul.f32 %v3236_v20, %v3236_v20  ;;  %v3113_v10 = vsel %vm3112_vm11, %v8186_v35, %v3109_v4  ;;  %vm3122_vm13 = vmor %vm3120_vm12, %vm3121_vm10 }
 0xbb0   : > { %v3156_v54 = vmul.f32 %v3113_v10, %v11026_v58  ;;  %v2982_v35 = vadd.f32 1e-06, %v2966_v30 }
 0xbb1   : > { %v3117_v53 = vmul.f32 0.5, %v3116_v8  ;;  %v3287_v60 = vmul.f32 %v3271_v31, %v3236_v20  ;;  %8189 = vtanh.f32 %v3334_v5 }
 0xbb2   : > { %vm3130_vm15 = vweird.f32 %v2982_v35 }
 0xbb3   : > { %v3118_v24 = vsub.f32 1.5, %v3117_v53  ;;  %v3303_v9 = vmul.f32 0.044715, %v3287_v60 }
 0xbb4   : > { %v3238_v26 = vpop.f32.mrf.mxu2 }
 0xbb5   : > { %v3119_v49 = vmul.f32 %v8188_v42, %v3118_v24  ;;  %v3239_v15 = vadd.f32 %v11070_v38, %v3238_v26  ;;  %v3319_v7 = vadd.f32 %v3303_v9, %v3236_v20 }
 0xbb7   : > { %v3123_v45 = vsel %vm3122_vm13, %v8188_v42, %v3119_v49  ;;  %v3272_v12 = vmul.f32 %v3239_v15, %v3239_v15  ;;  %v3335_v41 = vmul.f32 0.7978846, %v3319_v7  ;;  %v8190_v46 = vpop.eup %8189 }
 0xbb8   : > { %v3157_v11 = vmul.f32 %v3123_v45, %v11034_v23  ;;  %v3366_v28 = vadd.f32 1.0, %v8190_v46 }
 0xbb9   : > { %v3288_v19 = vmul.f32 %v3272_v12, %v3239_v15  ;;  %8191 = vtanh.f32 %v3335_v41 }
 0xbba   : > { %v3166_v2 = vpack.c.bf16 %v3157_v11, %v3156_v54  ;;  %8193 = vrsqrt.f32 %v2982_v35  ;;  %v3382_v58 = vmul.f32 0.5, %v3366_v28 }
 0xbbb   : > { %v3304_v40 = vmul.f32 0.044715, %v3288_v19 }
 0xbbc   : > { %v3240_v37 = vpop.f32.mrf.mxu2  ;;  %7117 = vmatmul.msk.bf16.gmra.mxu2 %vm482_vm0, %v3166_v2  ;;  %v3398_v16 = vmul.f32 %v3382_v58, %v11093_v50 }
 0xbbd   : > { %v3320_v14 = vadd.f32 %v3304_v40, %v3239_v15  ;;  %v3241_v56 = vadd.f32 %v11070_v38, %v3240_v37 }
 0xbbf   : > { %v3336_v27 = vmul.f32 0.7978846, %v3320_v14  ;;  %v3273_v59 = vmul.f32 %v3241_v56, %v3241_v56  ;;  %v8192_v22 = vpop.eup %8191 }
 0xbc0   : > { %v3367_v23 = vadd.f32 1.0, %v8192_v22  ;;  %v8194_v42 = vpop.eup %8193 }
 0xbc1   : > { %v3289_v32 = vmul.f32 %v3273_v59, %v3241_v56  ;;  %8195 = vtanh.f32 %v3336_v27  ;;  %v3125_v5 = vmul.f32 %v8194_v42, %v2982_v35  ;;  %vm3131_vm14 = vweird.f32 %v8194_v42 }
 0xbc2   : > { %v3383_v48 = vmul.f32 0.5, %v3367_v23  ;;  %vm3132_vm2 = vmor %vm3130_vm15, %vm3131_vm14 }
 0xbc3   : > { %v3305_v3 = vmul.f32 0.044715, %v3289_v32  ;;  %v3126_v24 = vmul.f32 %v8194_v42, %v3125_v5 }
 0xbc4   : > { %v3399_v33 = vmul.f32 %v3383_v48, %v3236_v20 }
 0xbc5   : > { %v3321_v47 = vadd.f32 %v3305_v3, %v3241_v56  ;;  %v3127_v26 = vmul.f32 0.5, %v3126_v24  ;;  %v11120_v24 = vld [vmem:[%s11081_s26] ss:$0 sm:$0xff] }
 0xbc6   : > { %v3413_v8 = vpack.c.bf16 %v3399_v33, %v3398_v16 }
 0xbc7   : > { %v3337_v17 = vmul.f32 0.7978846, %v3321_v47  ;;  %v8196_v4 = vpop.eup %8195  ;;  %v3128_v7 = vsub.f32 1.5, %v3127_v26 }
 0xbc8   : > { %v2951_v31 = vpop.xlane.xlu1 %2950  ;;  %7136 = vmatmul.msk.bf16.gmra.mxu0 %vm482_vm0, %v3413_v8  ;;  %v3368_v61 = vadd.f32 1.0, %v8196_v4 }
 0xbc9   : > { %8197 = vtanh.f32 %v3337_v17  ;;  %v2967_v53 = vmul.f32 %v2951_v31, %v13594_v55  ;;  %v3129_v11 = vmul.f32 %v8194_v42, %v3128_v7 }
 0xbca   : > { %v3384_v10 = vmul.f32 0.5, %v3368_v61 }
 0xbcb   : > { %v2983_v60 = vadd.f32 1e-06, %v2967_v53  ;;  %v3133_v40 = vsel %vm3132_vm2, %v8194_v42, %v3129_v11 }
 0xbcc   : > { %v3400_v45 = vmul.f32 %v3384_v10, %v3239_v15 }
 0xbcd   : > { %8199 = vrsqrt.f32 %v2983_v60  ;;  %vm3140_vm3 = vweird.f32 %v2983_v60 }
 0xbcf   : > { %v8198_v9 = vpop.eup %8197 }
 0xbd0   : > { %v3369_v50 = vadd.f32 1.0, %v8198_v9 }
 0xbd2   : > { %v3385_v49 = vmul.f32 0.5, %v3369_v50 }
 0xbd3   : > { %v8200_v20 = vpop.eup %8199 }
 0xbd4   : > { %v3135_v30 = vmul.f32 %v8200_v20, %v2983_v60  ;;  %v3401_v12 = vmul.f32 %v3385_v49, %v3241_v56  ;;  %vm3141_vm1 = vweird.f32 %v8200_v20  ;;  %v3158_v56 = vmul.f32 %v3133_v40, %v11044_v21 }
 0xbd5   : > { %vm3142_vm4 = vmor %vm3140_vm3, %vm3141_vm1 }
 0xbd6   : > { %v3136_v41 = vmul.f32 %v8200_v20, %v3135_v30  ;;  %v3414_v54 = vpack.c.bf16 %v3401_v12, %v3400_v45 }
 0xbd8   : > { %v3137_v19 = vmul.f32 0.5, %v3136_v41  ;;  %7137 = vmatmul.msk.bf16.gmra.mxu0 %vm482_vm0, %v3414_v54 }
 0xbda   : > { %v3138_v46 = vsub.f32 1.5, %v3137_v19 }
 0xbdb   : > { %v3243_v2 = vpop.f32.mrf.mxu2 }
 0xbdc   : > { %v3139_v37 = vmul.f32 %v8200_v20, %v3138_v46  ;;  %v3244_v28 = vadd.f32 %v11070_v38, %v3243_v2 }
 0xbde   : > { %v3143_v15 = vsel %vm3142_vm4, %v8200_v20, %v3139_v37  ;;  %v3274_v14 = vmul.f32 %v3244_v28, %v3244_v28 }
 0xbdf   : > { %v3159_v27 = vmul.f32 %v3143_v15, %v11053_v18 }
 0xbe0   : > { %v3290_v59 = vmul.f32 %v3274_v14, %v3244_v28 }
 0xbe1   : > { %v3167_v22 = vpack.c.bf16 %v3159_v27, %v3158_v56 }
 0xbe2   : > { %v3306_v58 = vmul.f32 0.044715, %v3290_v59 }
 0xbe3   : > { %v3245_v35 = vpop.f32.mrf.mxu2  ;;  %7118 = vmatmul.msk.bf16.gmra.mxu2 %vm482_vm0, %v3167_v22 }
 0xbe4   : > { %v3322_v32 = vadd.f32 %v3306_v58, %v3244_v28  ;;  %v3246_v23 = vadd.f32 %v11070_v38, %v3245_v35 }
 0xbe6   : > { %v3338_v3 = vmul.f32 0.7978846, %v3322_v32  ;;  %v3275_v48 = vmul.f32 %v3246_v23, %v3246_v23 }
 0xbe8   : > { %v3291_v42 = vmul.f32 %v3275_v48, %v3246_v23  ;;  %8201 = vtanh.f32 %v3338_v3 }
 0xbea   : > { %v3307_v16 = vmul.f32 0.044715, %v3291_v42 }
 0xbec   : > { %v3323_v47 = vadd.f32 %v3307_v16, %v3246_v23 }
 0xbee   : > { %v3339_v33 = vmul.f32 0.7978846, %v3323_v47  ;;  %v8202_v21 = vpop.eup %8201 }
 0xbef   : > { %v3370_v18 = vadd.f32 1.0, %v8202_v21 }
 0xbf0   : > { %8203 = vtanh.f32 %v3339_v33 }
 0xbf1   : > { %v3386_v8 = vmul.f32 0.5, %v3370_v18 }
 0xbf3   : > { %v3402_v4 = vmul.f32 %v3386_v8, %v3244_v28 }
 0xbf6   : > { %v8204_v17 = vpop.eup %8203 }
 0xbf7   : > { %v3371_v5 = vadd.f32 1.0, %v8204_v17 }
 0xbf9   : > { %v3387_v31 = vmul.f32 0.5, %v3371_v5 }
 0xbfb   : > { %v3403_v53 = vmul.f32 %v3387_v31, %v3246_v23 }
 0xbfd   : > { %v3415_v60 = vpack.c.bf16 %v3403_v53, %v3402_v4 }
 0xbff   : > { %7138 = vmatmul.msk.bf16.gmra.mxu0 %vm482_vm0, %v3415_v60 }
 0xc05   : > { %v3480_v61 = vpop.f32.mrf.mxu0 }
 0xc06   : > { %v3481_v9 = vadd.f32 %v11120_v24, %v3480_v61 }
 0xc08   : > { %v11124_v26 = vadd.f32 %v3481_v9, %v10801_v1 }
 0xc0a   : > { %13604 = vst [vmem:[#allocation63_spill] sm:$0xff] %v11124_v26  ;;  %v3588_v10 = vsel %vm482_vm0, %v11124_v26, 0.0 }
 0xc0b   : > { %3589 = vadd.xlane.f32.xlu2 %v3588_v10 }
 0xc0d   : > { %v3482_v50 = vpop.f32.mrf.mxu0 }
 0xc0e   : > { %v3483_v49 = vadd.f32 %v11120_v24, %v3482_v50 }
 0xc10   : > { %v11130_v20 = vadd.f32 %v3483_v49, %v10807_v6 }
 0xc12   : > { %13605 = vst [vmem:[#allocation60_spill] sm:$0xff] %v11130_v20  ;;  %v3591_v7 = vsel %vm482_vm0, %v11130_v20, 0.0 }
 0xc13   : > { %3592 = vadd.xlane.f32.xlu0 %v3591_v7 }
 0xc1f   : > { %v3248_v45 = vpop.f32.mrf.mxu2 }
 0xc20   : > { %v3249_v30 = vadd.f32 %v11070_v38, %v3248_v45 }
 0xc22   : > { %v3276_v12 = vmul.f32 %v3249_v30, %v3249_v30 }
 0xc24   : > { %v3292_v1 = vmul.f32 %v3276_v12, %v3249_v30 }
 0xc26   : > { %v3308_v41 = vmul.f32 0.044715, %v3292_v1 }
 0xc27   : > { %v3250_v54 = vpop.f32.mrf.mxu2 }
 0xc28   : > { %v3324_v11 = vadd.f32 %v3308_v41, %v3249_v30  ;;  %v3251_v19 = vadd.f32 %v11070_v38, %v3250_v54 }
 0xc2a   : > { %v3340_v46 = vmul.f32 0.7978846, %v3324_v11  ;;  %v3277_v2 = vmul.f32 %v3251_v19, %v3251_v19 }
 0xc2c   : > { %v3293_v40 = vmul.f32 %v3277_v2, %v3251_v19  ;;  %8205 = vtanh.f32 %v3340_v46 }
 0xc2e   : > { %v3309_v6 = vmul.f32 0.044715, %v3293_v40 }
 0xc2f   : > { %v3253_v37 = vpop.f32.mrf.mxu2 }
 0xc30   : > { %v3325_v28 = vadd.f32 %v3309_v6, %v3251_v19  ;;  %v3254_v15 = vadd.f32 %v11070_v38, %v3253_v37 }
 0xc32   : > { %v3341_v14 = vmul.f32 0.7978846, %v3325_v28  ;;  %v3278_v56 = vmul.f32 %v3254_v15, %v3254_v15  ;;  %v8206_v27 = vpop.eup %8205 }
 0xc33   : > { %v3372_v58 = vadd.f32 1.0, %v8206_v27 }
 0xc34   : > { %8207 = vtanh.f32 %v3341_v14  ;;  %v3294_v59 = vmul.f32 %v3278_v56, %v3254_v15 }
 0xc35   : > { %v3388_v16 = vmul.f32 0.5, %v3372_v58 }
 0xc36   : > { %v3310_v22 = vmul.f32 0.044715, %v3294_v59 }
 0xc37   : > { %v3255_v35 = vpop.f32.mrf.mxu2  ;;  %v3404_v17 = vmul.f32 %v3388_v16, %v3249_v30 }
 0xc38   : > { %v3326_v32 = vadd.f32 %v3310_v22, %v3254_v15  ;;  %v3256_v23 = vadd.f32 %v11070_v38, %v3255_v35 }
 0xc3a   : > { %v8208_v3 = vpop.eup %8207  ;;  %v3342_v48 = vmul.f32 0.7978846, %v3326_v32  ;;  %v3279_v42 = vmul.f32 %v3256_v23, %v3256_v23 }
 0xc3b   : > { %v3373_v47 = vadd.f32 1.0, %v8208_v3 }
 0xc3c   : > { %v3295_v33 = vmul.f32 %v3279_v42, %v3256_v23  ;;  %8209 = vtanh.f32 %v3342_v48 }
 0xc3d   : > { %v3389_v21 = vmul.f32 0.5, %v3373_v47 }
 0xc3e   : > { %v3311_v18 = vmul.f32 0.044715, %v3295_v33 }
 0xc3f   : > { %v3258_v8 = vpop.f32.mrf.mxu2  ;;  %v3405_v5 = vmul.f32 %v3389_v21, %v3251_v19 }
 0xc40   : > { %v3327_v31 = vadd.f32 %v3311_v18, %v3256_v23  ;;  %v3259_v4 = vadd.f32 %v11070_v38, %v3258_v8 }
 0xc41   : > { %v3416_v53 = vpack.c.bf16 %v3405_v5, %v3404_v17 }
 0xc42   : > { %v3343_v60 = vmul.f32 0.7978846, %v3327_v31  ;;  %v3280_v61 = vmul.f32 %v3259_v4, %v3259_v4  ;;  %v8210_v9 = vpop.eup %8209 }
 0xc43   : > { %7139 = vmatmul.msk.bf16.gmra.mxu0 %vm482_vm0, %v3416_v53  ;;  %v3374_v7 = vadd.f32 1.0, %v8210_v9 }
 0xc44   : > { %8211 = vtanh.f32 %v3343_v60  ;;  %v3296_v10 = vmul.f32 %v3280_v61, %v3259_v4 }
 0xc45   : > { %v3485_v49 = vpop.f32.mrf.mxu0  ;;  %v3390_v46 = vmul.f32 0.5, %v3374_v7 }
 0xc46   : > { %v3312_v50 = vmul.f32 0.044715, %v3296_v10  ;;  %v3486_v45 = vadd.f32 %v11120_v24, %v3485_v49 }
 0xc47   : > { %v3260_v12 = vpop.f32.mrf.mxu2  ;;  %v3406_v56 = vmul.f32 %v3390_v46, %v3254_v15 }
 0xc48   : > { %v3328_v30 = vadd.f32 %v3312_v50, %v3259_v4  ;;  %v3261_v1 = vadd.f32 %v11070_v38, %v3260_v12  ;;  %v11143_v41 = vadd.f32 %v3486_v45, %v10821_v57 }
 0xc4a   : > { %13606 = vst [vmem:[#allocation65_spill] sm:$0xff] %v11143_v41  ;;  %v8212_v54 = vpop.eup %8211  ;;  %v3344_v11 = vmul.f32 0.7978846, %v3328_v30  ;;  %v3281_v19 = vmul.f32 %v3261_v1, %v3261_v1  ;;  %v3594_v2 = vsel %vm482_vm0, %v11143_v41, 0.0 }
 0xc4b   : > { %v3375_v40 = vadd.f32 1.0, %v8212_v54  ;;  %3595 = vadd.xlane.f32.xlu1 %v3594_v2 }
 0xc4c   : > { %v3297_v6 = vmul.f32 %v3281_v19, %v3261_v1  ;;  %8213 = vtanh.f32 %v3344_v11 }
 0xc4d   : > { %v3391_v37 = vmul.f32 0.5, %v3375_v40  ;;  %v3487_v14 = vpop.f32.mrf.mxu0 }
 0xc4e   : > { %v3313_v28 = vmul.f32 0.044715, %v3297_v6  ;;  %v3488_v27 = vadd.f32 %v11120_v24, %v3487_v14 }
 0xc4f   : > { %v3407_v59 = vmul.f32 %v3391_v37, %v3256_v23 }
 0xc50   : > { %v3329_v57 = vadd.f32 %v3313_v28, %v3261_v1  ;;  %v11149_v22 = vadd.f32 %v3488_v27, %v10828_v63 }
 0xc51   : > { %v3417_v58 = vpack.c.bf16 %v3407_v59, %v3406_v56 }
 0xc52   : > { %13607 = vst [vmem:[#allocation67_spill] sm:$0xff] %v11149_v22  ;;  %v3345_v35 = vmul.f32 0.7978846, %v3329_v57  ;;  %v3597_v32 = vsel %vm482_vm0, %v11149_v22, 0.0  ;;  %v8214_v3 = vpop.eup %8213 }
 0xc53   : > { %7140 = vmatmul.msk.bf16.gmra.mxu0 %vm482_vm0, %v3417_v58  ;;  %3598 = vadd.xlane.f32.xlu2 %v3597_v32  ;;  %v3376_v42 = vadd.f32 1.0, %v8214_v3 }
 0xc54   : > { %8215 = vtanh.f32 %v3345_v35 }
 0xc55   : > { %v3490_v48 = vpop.f32.mrf.mxu0  ;;  %v3392_v63 = vmul.f32 0.5, %v3376_v42 }
 0xc56   : > { %v3491_v15 = vadd.f32 %v11120_v24, %v3490_v48 }
 0xc57   : > { %v3408_v17 = vmul.f32 %v3392_v63, %v3259_v4 }
 0xc58   : > { %v11156_v23 = vadd.f32 %v3491_v15, %v10834_v43 }
 0xc5a   : > { %13608 = vst [vmem:[#allocation69_spill] sm:$0xff] %v11156_v23  ;;  %v8216_v16 = vpop.eup %8215  ;;  %v3600_v47 = vsel %vm482_vm0, %v11156_v23, 0.0 }
 0xc5b   : > { %v3377_v33 = vadd.f32 1.0, %v8216_v16  ;;  %3601 = vadd.xlane.f32.xlu0 %v3600_v47 }
 0xc5d   : > { %v3393_v21 = vmul.f32 0.5, %v3377_v33  ;;  %v3492_v18 = vpop.f32.mrf.mxu0 }
 0xc5e   : > { %v3493_v8 = vadd.f32 %v11120_v24, %v3492_v18 }
 0xc5f   : > { %v3409_v5 = vmul.f32 %v3393_v21, %v3261_v1 }
 0xc60   : > { %v11162_v31 = vadd.f32 %v3493_v8, %v10846_v39 }
 0xc61   : > { %v3418_v53 = vpack.c.bf16 %v3409_v5, %v3408_v17 }
 0xc62   : > { %13609 = vst [vmem:[#allocation59_spill] sm:$0xff] %v11162_v31  ;;  %v3603_v43 = vsel %vm482_vm0, %v11162_v31, 0.0 }
 0xc63   : > { %7141 = vmatmul.msk.bf16.gmra.mxu0 %vm482_vm0, %v3418_v53  ;;  %3604 = vadd.xlane.f32.xlu1 %v3603_v43 }
 0xc66   : > { %v3263_v60 = vpop.f32.mrf.mxu2 }
 0xc67   : > { %v3264_v61 = vadd.f32 %v11070_v38, %v3263_v60 }
 0xc69   : > { %v3282_v9 = vmul.f32 %v3264_v61, %v3264_v61 }
 0xc6b   : > { %v3298_v10 = vmul.f32 %v3282_v9, %v3264_v61 }
 0xc6d   : > { %v3314_v50 = vmul.f32 0.044715, %v3298_v10 }
 0xc6e   : > { %v3265_v4 = vpop.f32.mrf.mxu2 }
 0xc6f   : > { %v3330_v49 = vadd.f32 %v3314_v50, %v3264_v61  ;;  %v3266_v7 = vadd.f32 %v11070_v38, %v3265_v4 }
 0xc71   : > { %v3346_v45 = vmul.f32 0.7978846, %v3330_v49  ;;  %v3283_v39 = vmul.f32 %v3266_v7, %v3266_v7 }
 0xc73   : > { %v3299_v12 = vmul.f32 %v3283_v39, %v3266_v7  ;;  %8217 = vtanh.f32 %v3346_v45 }
 0xc75   : > { %v3315_v30 = vmul.f32 0.044715, %v3299_v12 }
 0xc77   : > { %v3331_v1 = vadd.f32 %v3315_v30, %v3266_v7 }
 0xc79   : > { %v3347_v54 = vmul.f32 0.7978846, %v3331_v1  ;;  %v8218_v11 = vpop.eup %8217 }
 0xc7a   : > { %v3378_v2 = vadd.f32 1.0, %v8218_v11 }
 0xc7b   : > { %8219 = vtanh.f32 %v3347_v54 }
 0xc7c   : > { %v3495_v19 = vpop.f32.mrf.mxu0  ;;  %v3394_v56 = vmul.f32 0.5, %v3378_v2 }
 0xc7d   : > { %v3496_v46 = vadd.f32 %v11120_v24, %v3495_v19 }
 0xc7e   : > { %v3590_v40 = vpop.xlane.xlu2 %3589  ;;  %v3410_v32 = vmul.f32 %v3394_v56, %v3264_v61 }
 0xc7f   : > { %v11171_v6 = vadd.f32 %v3496_v46, %v10855_v13  ;;  %v3636_v37 = vmul.f32 %v3590_v40, %v13594_v55 }
 0xc81   : > { %13610 = vst [vmem:[#allocation58_spill] sm:$0xff] %v11171_v6  ;;  %v8220_v38 = vpop.eup %8219  ;;  %v11175_v28 = vsub.f32 %v11124_v26, %v3636_v37  ;;  %v3606_v14 = vsel %vm482_vm0, %v11171_v6, 0.0 }
 0xc82   : > { %3607 = vadd.xlane.f32.xlu1 %v3606_v14  ;;  %v3379_v27 = vadd.f32 1.0, %v8220_v38 }
 0xc83   : > { %v3668_v59 = vmul.f32 %v11175_v28, %v11175_v28 }
 0xc84   : > { %v3497_v57 = vpop.f32.mrf.mxu0  ;;  %v3395_v58 = vmul.f32 0.5, %v3379_v27 }
 0xc85   : > { %v3498_v13 = vadd.f32 %v11120_v24, %v3497_v57  ;;  %v3684_v35 = vsel %vm482_vm0, %v3668_v59, 0.0 }
 0xc86   : > { %3685 = vadd.xlane.f32.xlu2 %v3684_v35  ;;  %v3593_v3 = vpop.xlane.xlu0 %3592  ;;  %v3411_v48 = vmul.f32 %v3395_v58, %v3266_v7 }
 0xc87   : > { %v3637_v42 = vmul.f32 %v3593_v3, %v13594_v55  ;;  %v11185_v16 = vadd.f32 %v3498_v13, %v10868_v62  ;;  %v7423_v3 = vld [vmem:[%s9343_s30 + $0x134] sm:$0xf0] }
 0xc88   : > { %v3419_v15 = vpack.c.bf16 %v3411_v48, %v3410_v32  ;;  %v7210_v32 = vld [vmem:[%s9343_s30 + $0x130] sm:$0xf]  ;;  %v7422_v48 = vld [vmem:[%s9343_s30 + $0x134] sm:$0xf] }
 0xc89   : > { %13611 = vst [vmem:[#allocation61_spill] sm:$0xff] %v11185_v16  ;;  %v11188_v63 = vsub.f32 %v11130_v20, %v3637_v42  ;;  %v3609_v33 = vsel %vm482_vm0, %v11185_v16, 0.0  ;;  %v7211_v42 = vor.u32 %v7423_v3, %v7210_v32 }
 0xc8a   : > { %7142 = vmatmul.msk.bf16.gmra.mxu0 %vm482_vm0, %v3419_v15  ;;  %v7212_v15 = vld [vmem:[%s9343_s30 + $0x138] sm:$0xf0] }
 0xc8b   : > { %v3669_v47 = vmul.f32 %v11188_v63, %v11188_v63  ;;  %4021 = vmatpush.bf16.msrb.mxu1 %v7211_v42 }
 0xc8d   : > { %v3687_v21 = vsel %vm482_vm0, %v3669_v47, 0.0  ;;  %v7215_v47 = vor.u32 %v7422_v48, %v7212_v15 }
 0xc8e   : > { %3610 = vadd.xlane.f32.xlu2 %v3609_v33  ;;  %3688 = vadd.xlane.f32.xlu0 %v3687_v21  ;;  %v7202_v33 = vld [vmem:[%s9343_s30 + $0x120] sm:$0xf]  ;;  %v7421_v21 = vld [vmem:[%s9343_s30 + $0x124] sm:$0xf0] }
 0xc8f   : > { %4070 = vmatpush.bf16.msra.mxu3 %v7215_v47 }
 0xcbe   : > { %v3596_v18 = vpop.xlane.xlu1 %3595 }
 0xcbf   : > { %v3638_v17 = vmul.f32 %v3596_v18, %v13594_v55  ;;  %v7203_v18 = vor.u32 %v7421_v21, %v7202_v33 }
 0xcc0   : > { %v3500_v62 = vpop.f32.mrf.mxu0 }
 0xcc1   : > { %v3501_v8 = vadd.f32 %v11120_v24, %v3500_v62  ;;  %v11199_v5 = vsub.f32 %v11143_v41, %v3638_v17  ;;  %v7204_v17 = vld [vmem:[%s9343_s30 + $0x128] sm:$0xf0]  ;;  %4022 = vmatpush.bf16.msrb.mxu1 %v7203_v18 }
 0xcc3   : > { %v11202_v53 = vadd.f32 %v3501_v8, %v10880_v34  ;;  %v3670_v43 = vmul.f32 %v11199_v5, %v11199_v5  ;;  %v7194_v8 = vld [vmem:[%s9343_s30 + $0x110] sm:$0xf] }
 0xcc5   : > { %13612 = vst [vmem:[#allocation57_spill] sm:$0xff] %v11202_v53  ;;  %v3612_v60 = vsel %vm482_vm0, %v11202_v53, 0.0  ;;  %v3690_v61 = vsel %vm482_vm0, %v3670_v43, 0.0  ;;  %v7419_v43 = vld [vmem:[%s9343_s30 + $0x114] sm:$0xf0] }
 0xcc6   : > { %3613 = vadd.xlane.f32.xlu2 %v3612_v60  ;;  %v3599_v9 = vpop.xlane.xlu2 %3598  ;;  %3691 = vadd.xlane.f32.xlu0 %v3690_v61  ;;  %v7418_v60 = vld [vmem:[%s9343_s30 + $0x114] sm:$0xf] }
 0xcc7   : > { %v3639_v10 = vmul.f32 %v3599_v9, %v13594_v55  ;;  %v7195_v9 = vor.u32 %v7419_v43, %v7194_v8 }
 0xcc8   : > { %v3502_v50 = vpop.f32.mrf.mxu0 }
 0xcc9   : > { %v3503_v4 = vadd.f32 %v11120_v24, %v3502_v50  ;;  %v11212_v49 = vsub.f32 %v11149_v22, %v3639_v10  ;;  %v7196_v10 = vld [vmem:[%s9343_s30 + $0x118] sm:$0xf0]  ;;  %4023 = vmatpush.bf16.msrb.mxu1 %v7195_v9 }
 0xccb   : > { %v11215_v34 = vadd.f32 %v3503_v4, %v10895_v29  ;;  %v3671_v7 = vmul.f32 %v11212_v49, %v11212_v49  ;;  %v7199_v4 = vor.u32 %v7418_v60, %v7196_v10 }
 0xccd   : > { %13613 = vst [vmem:[#allocation52_spill] sm:$0xff] %v11215_v34  ;;  %v3615_v45 = vsel %vm482_vm0, %v11215_v34, 0.0  ;;  %v3693_v39 = vsel %vm482_vm0, %v3671_v7, 0.0 }
 0xcce   : > { %v3602_v12 = vpop.xlane.xlu0 %3601  ;;  %3694 = vadd.xlane.f32.xlu1 %v3693_v39  ;;  %3616 = vadd.xlane.f32.xlu0 %v3615_v45  ;;  %v7186_v45 = vld [vmem:[%s9343_s30 + $0x100] sm:$0xf]  ;;  %v7417_v39 = vld [vmem:[%s9343_s30 + $0x104] sm:$0xf0] }
 0xccf   : > { %v3640_v30 = vmul.f32 %v3602_v12, %v13594_v55  ;;  %v7416_v12 = vld [vmem:[%s9343_s30 + $0x104] sm:$0xf] }
 0xcd0   : > { %v3505_v1 = vpop.f32.mrf.mxu0 }
 0xcd1   : > { %v3506_v54 = vadd.f32 %v11120_v24, %v3505_v1  ;;  %v11225_v11 = vsub.f32 %v11156_v23, %v3640_v30 }
 0xcd3   : > { %v11228_v29 = vadd.f32 %v3506_v54, %v10908_v52  ;;  %v3672_v19 = vmul.f32 %v11225_v11, %v11225_v11  ;;  %v7187_v54 = vor.u32 %v7417_v39, %v7186_v45 }
 0xcd5   : > { %13614 = vst [vmem:[#allocation53_spill] sm:$0xff] %v11228_v29  ;;  %v3618_v46 = vsel %vm482_vm0, %v11228_v29, 0.0  ;;  %v3696_v2 = vsel %vm482_vm0, %v3672_v19, 0.0  ;;  %v7188_v19 = vld [vmem:[%s9343_s30 + $0x108] sm:$0xf0]  ;;  %4024 = vmatpush.bf16.msrb.mxu1 %v7187_v54 }
 0xcd6   : > { %3697 = vadd.xlane.f32.xlu1 %v3696_v2  ;;  %3619 = vadd.xlane.f32.xlu0 %v3618_v46  ;;  %v3605_v40 = vpop.xlane.xlu1 %3604 }
 0xcd7   : > { %v3641_v37 = vmul.f32 %v3605_v40, %v13594_v55  ;;  %v7191_v40 = vor.u32 %v7416_v12, %v7188_v19 }
 0xcd8   : > { %v3507_v38 = vpop.f32.mrf.mxu0 }
 0xcd9   : > { %v3508_v52 = vadd.f32 %v11120_v24, %v3507_v38  ;;  %v11238_v14 = vsub.f32 %v11162_v31, %v3641_v37 }
 0xcdb   : > { %v11241_v56 = vadd.f32 %v3508_v52, %v10921_v25  ;;  %v3673_v27 = vmul.f32 %v11238_v14, %v11238_v14 }
 0xcdd   : > { %13615 = vst [vmem:[#allocation51_spill] sm:$0xff] %v11241_v56  ;;  %v3621_v59 = vsel %vm482_vm0, %v11241_v56, 0.0  ;;  %v3699_v57 = vsel %vm482_vm0, %v3673_v27, 0.0 }
 0xcde   : > { %3622 = vadd.xlane.f32.xlu1 %v3621_v59  ;;  %3700 = vadd.xlane.f32.xlu2 %v3699_v57 }
 0xce0   : > { %v3510_v58 = vpop.f32.mrf.mxu0 }
 0xce1   : > { %v3511_v13 = vadd.f32 %v11120_v24, %v3510_v58 }
 0xce3   : > { %v11250_v25 = vadd.f32 %v3511_v13, %v10934_v51  ;;  %v7420_v51 = vld [vmem:[%s9343_s30 + $0x124] sm:$0xf] }
 0xce4   : > { %v7207_v62 = vor.u32 %v7420_v51, %v7204_v17 }
 0xce5   : > { %13616 = vst [vmem:[#allocation55_spill] sm:$0xff] %v11250_v25  ;;  %v3624_v35 = vsel %vm482_vm0, %v11250_v25, 0.0 }
 0xce6   : > { %3625 = vadd.xlane.f32.xlu1 %v3624_v35  ;;  %4071 = vmatpush.bf16.msra.mxu3 %v7207_v62 }
 0xce8   : > { %v3512_v30 = vpop.f32.mrf.mxu0 }
 0xce9   : > { %v3513_v37 = vadd.f32 %v11120_v24, %v3512_v30 }
 0xcea   : > { %4072 = vmatpush.bf16.msra.mxu3 %v7199_v4 }
 0xceb   : > { %v11280_v27 = vadd.f32 %v3513_v37, %v10946_v36 }
 0xced   : > { %13617 = vst [vmem:[#allocation62_spill] sm:$0xff] %v11280_v27  ;;  %v3627_v48 = vsel %vm482_vm0, %v11280_v27, 0.0 }
 0xcee   : > { %4073 = vmatpush.bf16.msra.mxu3 %v7191_v40 }
 0xcf5   : > { %v3608_v61 = vpop.xlane.xlu1 %3607 }
 0xcf6   : > { %v3642_v50 = vmul.f32 %v3608_v61, %v13594_v55 }
 0xcf8   : > { %v11268_v7 = vsub.f32 %v11171_v6, %v3642_v50 }
 0xcf9   : > { %v3686_v1 = vpop.xlane.xlu2 %3685 }
 0xcfa   : > { %v3732_v46 = vmul.f32 %v3686_v1, %v13594_v55  ;;  %v3674_v2 = vmul.f32 %v11268_v7, %v11268_v7 }
 0xcfc   : > { %v3748_v38 = vadd.f32 1e-06, %v3732_v46  ;;  %v3702_v52 = vsel %vm482_vm0, %v3674_v2, 0.0 }
 0xcfd   : > { %3703 = vadd.xlane.f32.xlu2 %v3702_v52 }
 0xcfe   : > { %8221 = vrsqrt.f32 %v3748_v38  ;;  %vm3770_vm9 = vweird.f32 %v3748_v38 }
 0xd01   : > { %v3611_v59 = vpop.xlane.xlu2 %3610  ;;  %v3689_v57 = vpop.xlane.xlu0 %3688 }
 0xd02   : > { %v3643_v58 = vmul.f32 %v3611_v59, %v13594_v55  ;;  %v3733_v13 = vmul.f32 %v3689_v57, %v13594_v55 }
 0xd04   : > { %v8222_v35 = vpop.eup %8221  ;;  %v11285_v32 = vsub.f32 %v11185_v16, %v3643_v58  ;;  %v3749_v3 = vadd.f32 1e-06, %v3733_v13 }
 0xd05   : > { %v3765_v42 = vmul.f32 %v8222_v35, %v3748_v38  ;;  %3628 = vadd.xlane.f32.xlu2 %v3627_v48  ;;  %vm3771_vm8 = vweird.f32 %v8222_v35 }
 0xd06   : > { %8223 = vrsqrt.f32 %v3749_v3  ;;  %v3675_v36 = vmul.f32 %v11285_v32, %v11285_v32  ;;  %vm3772_vm11 = vmor %vm3770_vm9, %vm3771_vm8  ;;  %vm3780_vm12 = vweird.f32 %v3749_v3 }
 0xd07   : > { %v3766_v15 = vmul.f32 %v8222_v35, %v3765_v42  ;;  %v3515_v47 = vpop.f32.mrf.mxu0 }
 0xd08   : > { %v3516_v33 = vadd.f32 %v11120_v24, %v3515_v47  ;;  %v3705_v21 = vsel %vm482_vm0, %v3675_v36, 0.0 }
 0xd09   : > { %v3767_v51 = vmul.f32 0.5, %v3766_v15  ;;  %3706 = vadd.xlane.f32.xlu0 %v3705_v21 }
 0xd0a   : > { %v11294_v18 = vadd.f32 %v3516_v33, %v10959_v0 }
 0xd0b   : > { %v3768_v8 = vsub.f32 1.5, %v3767_v51 }
 0xd0c   : > { %13618 = vst [vmem:[#allocation54_spill] sm:$0xff] %v11294_v18  ;;  %v8224_v17 = vpop.eup %8223  ;;  %v3630_v62 = vsel %vm482_vm0, %v11294_v18, 0.0 }
 0xd0d   : > { %v3775_v43 = vmul.f32 %v8224_v17, %v3749_v3  ;;  %3631 = vadd.xlane.f32.xlu2 %v3630_v62  ;;  %v3769_v61 = vmul.f32 %v8222_v35, %v3768_v8  ;;  %vm3781_vm10 = vweird.f32 %v8224_v17 }
 0xd0e   : > { %vm3782_vm13 = vmor %vm3780_vm12, %vm3781_vm10 }
 0xd0f   : > { %v3776_v60 = vmul.f32 %v8224_v17, %v3775_v43  ;;  %v3773_v50 = vsel %vm3772_vm11, %v8222_v35, %v3769_v61  ;;  %v3517_v2 = vpop.f32.mrf.mxu0 }
 0xd10   : > { %v3924_v45 = vmul.f32 %v3773_v50, %v11175_v28 }
 0xd11   : > { %v3777_v9 = vmul.f32 0.5, %v3776_v60 }
 0xd13   : > { %v3778_v10 = vsub.f32 1.5, %v3777_v9 }
 0xd15   : > { %v3779_v4 = vmul.f32 %v8224_v17, %v3778_v10 }
 0xd17   : > { %v3783_v0 = vsel %vm3782_vm13, %v8224_v17, %v3779_v4 }
 0xd18   : > { %v3925_v39 = vmul.f32 %v3783_v0, %v11188_v63  ;;  %v3518_v63 = vadd.f32 %v11120_v24, %v3517_v2 }
 0xd1a   : > { %v3940_v12 = vpack.c.bf16 %v3925_v39, %v3924_v45  ;;  %v11314_v58 = vadd.f32 %v3518_v63, %v10984_v44 }
 0xd1c   : > { %7216 = vmatmul.msk.bf16.vlgmr.msrb.gmra.mxu1 %vm482_vm0, %v3940_v12  ;;  %7224 = vmatmul.msk.bf16.vlgmr.msra.gmra.mxu3 %vm482_vm0, %v3940_v12  ;;  %13619 = vst [vmem:[#allocation49_spill] sm:$0xff] %v11314_v58  ;;  %v3633_v36 = vsel %vm482_vm0, %v11314_v58, 0.0 }
 0xd39   : > { %v3614_v30 = vpop.xlane.xlu2 %3613  ;;  %v3692_v54 = vpop.xlane.xlu0 %3691 }
 0xd3a   : > { %v3644_v1 = vmul.f32 %v3614_v30, %v13594_v55  ;;  %v3734_v19 = vmul.f32 %v3692_v54, %v13594_v55 }
 0xd3c   : > { %v11305_v46 = vsub.f32 %v11202_v53, %v3644_v1  ;;  %v3750_v40 = vadd.f32 1e-06, %v3734_v19 }
 0xd3e   : > { %v3676_v28 = vmul.f32 %v11305_v46, %v11305_v46  ;;  %8225 = vrsqrt.f32 %v3750_v40  ;;  %vm3790_vm15 = vweird.f32 %v3750_v40 }
 0xd40   : > { %v3708_v37 = vsel %vm482_vm0, %v3676_v28, 0.0 }
 0xd41   : > { %3709 = vadd.xlane.f32.xlu0 %v3708_v37  ;;  %v3617_v38 = vpop.xlane.xlu0 %3616  ;;  %v3695_v52 = vpop.xlane.xlu1 %3694 }
 0xd42   : > { %v3645_v59 = vmul.f32 %v3617_v38, %v13594_v55  ;;  %v3735_v57 = vmul.f32 %v3695_v52, %v13594_v55 }
 0xd44   : > { %v8226_v13 = vpop.eup %8225  ;;  %v11317_v35 = vsub.f32 %v11215_v34, %v3645_v59  ;;  %v3751_v3 = vadd.f32 1e-06, %v3735_v57 }
 0xd45   : > { %v3785_v48 = vmul.f32 %v8226_v13, %v3750_v40  ;;  %vm3791_vm14 = vweird.f32 %v8226_v13 }
 0xd46   : > { %8227 = vrsqrt.f32 %v3751_v3  ;;  %v3677_v24 = vmul.f32 %v11317_v35, %v11317_v35  ;;  %vm3792_vm2 = vmor %vm3790_vm15, %vm3791_vm14  ;;  %vm3800_vm3 = vweird.f32 %v3751_v3 }
 0xd47   : > { %v3786_v42 = vmul.f32 %v8226_v13, %v3785_v48 }
 0xd48   : > { %v3711_v15 = vsel %vm482_vm0, %v3677_v24, 0.0 }
 0xd49   : > { %3634 = vadd.xlane.f32.xlu0 %v3633_v36  ;;  %v3787_v47 = vmul.f32 0.5, %v3786_v42  ;;  %3712 = vadd.xlane.f32.xlu1 %v3711_v15  ;;  %v3620_v44 = vpop.xlane.xlu0 %3619  ;;  %v3698_v33 = vpop.xlane.xlu1 %3697 }
 0xd4a   : > { %v3646_v21 = vmul.f32 %v3620_v44, %v13594_v55  ;;  %v3736_v51 = vmul.f32 %v3698_v33, %v13594_v55 }
 0xd4b   : > { %v3788_v43 = vsub.f32 1.5, %v3787_v47 }
 0xd4c   : > { %v8228_v17 = vpop.eup %8227  ;;  %v11327_v62 = vsub.f32 %v11228_v29, %v3646_v21  ;;  %v3752_v8 = vadd.f32 1e-06, %v3736_v51 }
 0xd4d   : > { %v3795_v60 = vmul.f32 %v8228_v17, %v3751_v3  ;;  %v3789_v50 = vmul.f32 %v8226_v13, %v3788_v43  ;;  %vm3801_vm1 = vweird.f32 %v8228_v17 }
 0xd4e   : > { %8229 = vrsqrt.f32 %v3752_v8  ;;  %v3678_v61 = vmul.f32 %v11327_v62, %v11327_v62  ;;  %vm3802_vm4 = vmor %vm3800_vm3, %vm3801_vm1  ;;  %vm3810_vm9 = vweird.f32 %v3752_v8 }
 0xd4f   : > { %v3796_v9 = vmul.f32 %v8228_v17, %v3795_v60  ;;  %v3793_v2 = vsel %vm3792_vm2, %v8226_v13, %v3789_v50 }
 0xd50   : > { %v3714_v10 = vsel %vm482_vm0, %v3678_v61, 0.0  ;;  %v3926_v59 = vmul.f32 %v3793_v2, %v11199_v5 }
 0xd51   : > { %v3797_v4 = vmul.f32 0.5, %v3796_v9  ;;  %3715 = vadd.xlane.f32.xlu1 %v3714_v10  ;;  %v3701_v0 = vpop.xlane.xlu2 %3700  ;;  %v3623_v45 = vpop.xlane.xlu1 %3622 }
 0xd52   : > { %v3737_v39 = vmul.f32 %v3701_v0, %v13594_v55  ;;  %v3647_v12 = vmul.f32 %v3623_v45, %v13594_v55 }
 0xd53   : > { %v3798_v30 = vsub.f32 1.5, %v3797_v4 }
 0xd54   : > { %v8230_v1 = vpop.eup %8229  ;;  %v3753_v54 = vadd.f32 1e-06, %v3737_v39  ;;  %v11335_v19 = vsub.f32 %v11241_v56, %v3647_v12 }
 0xd55   : > { %v3799_v28 = vmul.f32 %v8228_v17, %v3798_v30  ;;  %v3805_v63 = vmul.f32 %v8230_v1, %v3752_v8  ;;  %vm3811_vm8 = vweird.f32 %v8230_v1 }
 0xd56   : > { %8231 = vrsqrt.f32 %v3753_v54  ;;  %v3679_v37 = vmul.f32 %v11335_v19, %v11335_v19  ;;  %vm3812_vm11 = vmor %vm3810_vm9, %vm3811_vm8  ;;  %vm3820_vm12 = vweird.f32 %v3753_v54 }
 0xd57   : > { %v3803_v38 = vsel %vm3802_vm4, %v8228_v17, %v3799_v28  ;;  %v3806_v52 = vmul.f32 %v8230_v1, %v3805_v63 }
 0xd58   : > { %v3717_v40 = vsel %vm482_vm0, %v3679_v37, 0.0  ;;  %v3927_v57 = vmul.f32 %v3803_v38, %v11212_v49 }
 0xd59   : > { %v3807_v48 = vmul.f32 0.5, %v3806_v52  ;;  %3718 = vadd.xlane.f32.xlu2 %v3717_v40  ;;  %v3626_v24 = vpop.xlane.xlu1 %3625 }
 0xd5a   : > { %v3648_v13 = vmul.f32 %v3626_v24, %v13594_v55  ;;  %v3941_v3 = vpack.c.bf16 %v3927_v57, %v3926_v59 }
 0xd5b   : > { %v3808_v15 = vsub.f32 1.5, %v3807_v48 }
 0xd5c   : > { %v8232_v42 = vpop.eup %8231  ;;  %v11344_v36 = vsub.f32 %v11250_v25, %v3648_v13  ;;  %7217 = vmatmul.msk.bf16.gmra.mxu1 %vm482_vm0, %v3941_v3  ;;  %7225 = vmatmul.msk.bf16.gmra.mxu3 %vm482_vm0, %v3941_v3 }
 0xd5d   : > { %v3815_v47 = vmul.f32 %v8232_v42, %v3753_v54  ;;  %v3809_v33 = vmul.f32 %v8230_v1, %v3808_v15  ;;  %vm3821_vm10 = vweird.f32 %v8232_v42 }
 0xd5e   : > { %v3680_v5 = vmul.f32 %v11344_v36, %v11344_v36  ;;  %vm3822_vm13 = vmor %vm3820_vm12, %vm3821_vm10 }
 0xd5f   : > { %v3816_v49 = vmul.f32 %v8232_v42, %v3815_v47  ;;  %v3813_v17 = vsel %vm3812_vm11, %v8230_v1, %v3809_v33 }
 0xd60   : > { %v3720_v44 = vsel %vm482_vm0, %v3680_v5, 0.0  ;;  %v3928_v61 = vmul.f32 %v3813_v17, %v11225_v11  ;;  %v11376_v17 = vld [vmem:[%s9523_s19 + $0x8] sm:$0x3] }
 0xd61   : > { %v3817_v21 = vmul.f32 0.5, %v3816_v49  ;;  %3721 = vadd.xlane.f32.xlu0 %v3720_v44 }
 0xd63   : > { %v3818_v51 = vsub.f32 1.5, %v3817_v21 }
 0xd65   : > { %v3819_v43 = vmul.f32 %v8232_v42, %v3818_v51 }
 0xd67   : > { %v3823_v60 = vsel %vm3822_vm13, %v8232_v42, %v3819_v43  ;;  %v11379_v43 = vperm.slane %v11376_v17, 0 }
 0xd68   : > { %v3929_v9 = vmul.f32 %v3823_v60, %v11238_v14 }
 0xd6a   : > { %v3942_v10 = vpack.c.bf16 %v3929_v9, %v3928_v61 }
 0xd6c   : > { %7218 = vmatmul.msk.bf16.gmra.mxu1 %vm482_vm0, %v3942_v10  ;;  %7226 = vmatmul.msk.bf16.gmra.mxu3 %vm482_vm0, %v3942_v10 }
 0xd70   : > { %v3704_v50 = vpop.xlane.xlu2 %3703 }
 0xd71   : > { %v3738_v8 = vmul.f32 %v3704_v50, %v13594_v55 }
 0xd73   : > { %v3754_v4 = vadd.f32 1e-06, %v3738_v8 }
 0xd75   : > { %8233 = vrsqrt.f32 %v3754_v4  ;;  %vm3830_vm15 = vweird.f32 %v3754_v4 }
 0xd78   : > { %v3629_v0 = vpop.xlane.xlu2 %3628 }
 0xd79   : > { %v3649_v45 = vmul.f32 %v3629_v0, %v13594_v55 }
 0xd7b   : > { %v8234_v39 = vpop.eup %8233  ;;  %v11358_v12 = vsub.f32 %v11280_v27, %v3649_v45 }
 0xd7c   : > { %v3825_v11 = vmul.f32 %v8234_v39, %v3754_v4  ;;  %v3707_v30 = vpop.xlane.xlu0 %3706  ;;  %vm3831_vm14 = vweird.f32 %v8234_v39 }
 0xd7d   : > { %v3739_v14 = vmul.f32 %v3707_v30, %v13594_v55  ;;  %v3681_v1 = vmul.f32 %v11358_v12, %v11358_v12  ;;  %vm3832_vm2 = vmor %vm3830_vm15, %vm3831_vm14 }
 0xd7e   : > { %v3826_v28 = vmul.f32 %v8234_v39, %v3825_v11 }
 0xd7f   : > { %v3755_v54 = vadd.f32 1e-06, %v3739_v14  ;;  %v3723_v2 = vsel %vm482_vm0, %v3681_v1, 0.0 }
 0xd80   : > { %3724 = vadd.xlane.f32.xlu1 %v3723_v2  ;;  %v3632_v63 = vpop.xlane.xlu2 %3631  ;;  %v3827_v52 = vmul.f32 0.5, %v3826_v28 }
 0xd81   : > { %8235 = vrsqrt.f32 %v3755_v54  ;;  %v3650_v37 = vmul.f32 %v3632_v63, %v13594_v55  ;;  %vm3840_vm3 = vweird.f32 %v3755_v54 }
 0xd82   : > { %v3828_v48 = vsub.f32 1.5, %v3827_v52 }
 0xd83   : > { %v11366_v38 = vsub.f32 %v11294_v18, %v3650_v37 }
 0xd84   : > { %v3829_v3 = vmul.f32 %v8234_v39, %v3828_v48 }
 0xd85   : > { %v3682_v40 = vmul.f32 %v11366_v38, %v11366_v38 }
 0xd86   : > { %v3833_v47 = vsel %vm3832_vm2, %v8234_v39, %v3829_v3 }
 0xd87   : > { %v8236_v59 = vpop.eup %8235  ;;  %v3726_v57 = vsel %vm482_vm0, %v3682_v40, 0.0  ;;  %v3930_v44 = vmul.f32 %v3833_v47, %v11268_v7 }
 0xd88   : > { %v3835_v24 = vmul.f32 %v8236_v59, %v3755_v54  ;;  %3727 = vadd.xlane.f32.xlu2 %v3726_v57  ;;  %vm3841_vm1 = vweird.f32 %v8236_v59 }
 0xd89   : > { %vm3842_vm4 = vmor %vm3840_vm3, %vm3841_vm1 }
 0xd8a   : > { %v3836_v13 = vmul.f32 %v8236_v59, %v3835_v24 }
 0xd8c   : > { %v3837_v42 = vmul.f32 0.5, %v3836_v13 }
 0xd8e   : > { %v3838_v15 = vsub.f32 1.5, %v3837_v42 }
 0xd90   : > { %v3839_v5 = vmul.f32 %v8236_v59, %v3838_v15 }
 0xd92   : > { %v3843_v49 = vsel %vm3842_vm4, %v8236_v59, %v3839_v5 }
 0xd93   : > { %v3931_v33 = vmul.f32 %v3843_v49, %v11285_v32 }
 0xd95   : > { %v3943_v21 = vpack.c.bf16 %v3931_v33, %v3930_v44 }
 0xd97   : > { %7219 = vmatmul.msk.bf16.gmra.mxu1 %vm482_vm0, %v3943_v21  ;;  %7227 = vmatmul.msk.bf16.gmra.mxu3 %vm482_vm0, %v3943_v21 }
 0xd99   : > { %v4026_v51 = vpop.f32.mrf.mxu1 }
 0xd9a   : > { %v4027_v61 = vadd.f32 %v4026_v51, %v11379_v43 }
 0xda1   : > { %v4028_v60 = vpop.f32.mrf.mxu1 }
 0xda2   : > { %v4029_v9 = vadd.f32 %v4028_v60, %v11379_v43 }
 0xda4   : > { %v11383_v10 = vpack.c.bf16 %v4029_v9, %v4027_v61 }
 0xda6   : > { %4485 = vrot.lane.b32.xlu1 %v11383_v10, %s8712_s21  ;;  %4131 = vrot.lane.b32.xlu2 %v11383_v10, %s8711_s20 }
 0xdb4   : > { %v3710_v7 = vpop.xlane.xlu0 %3709 }
 0xdb5   : > { %v3740_v32 = vmul.f32 %v3710_v7, %v13594_v55 }
 0xdb7   : > { %v3756_v50 = vadd.f32 1e-06, %v3740_v32 }
 0xdb9   : > { %8237 = vrsqrt.f32 %v3756_v50  ;;  %vm3850_vm9 = vweird.f32 %v3756_v50 }
 0xdbc   : > { %v3635_v8 = vpop.xlane.xlu0 %3634  ;;  %v3713_v0 = vpop.xlane.xlu1 %3712 }
 0xdbd   : > { %v3651_v4 = vmul.f32 %v3635_v8, %v13594_v55  ;;  %v3741_v45 = vmul.f32 %v3713_v0, %v13594_v55 }
 0xdbf   : > { %v8238_v39 = vpop.eup %8237  ;;  %v11393_v11 = vsub.f32 %v11314_v58, %v3651_v4  ;;  %v3757_v14 = vadd.f32 1e-06, %v3741_v45 }
 0xdc0   : > { %v3845_v30 = vmul.f32 %v8238_v39, %v3756_v50  ;;  %vm3851_vm8 = vweird.f32 %v8238_v39 }
 0xdc1   : > { %v3683_v1 = vmul.f32 %v11393_v11, %v11393_v11  ;;  %8239 = vrsqrt.f32 %v3757_v14  ;;  %vm3852_vm11 = vmor %vm3850_vm9, %vm3851_vm8  ;;  %vm3860_vm12 = vweird.f32 %v3757_v14 }
 0xdc2   : > { %v3846_v54 = vmul.f32 %v8238_v39, %v3845_v30 }
 0xdc3   : > { %v3729_v2 = vsel %vm482_vm0, %v3683_v1, 0.0 }
 0xdc4   : > { %3730 = vadd.xlane.f32.xlu0 %v3729_v2  ;;  %v3847_v28 = vmul.f32 0.5, %v3846_v54  ;;  %v3716_v63 = vpop.xlane.xlu1 %3715 }
 0xdc5   : > { %v3742_v37 = vmul.f32 %v3716_v63, %v13594_v55 }
 0xdc6   : > { %v3848_v59 = vsub.f32 1.5, %v3847_v28 }
 0xdc7   : > { %v8240_v52 = vpop.eup %8239  ;;  %v3758_v40 = vadd.f32 1e-06, %v3742_v37 }
 0xdc8   : > { %v3855_v57 = vmul.f32 %v8240_v52, %v3757_v14  ;;  %v3849_v24 = vmul.f32 %v8238_v39, %v3848_v59  ;;  %vm3861_vm10 = vweird.f32 %v8240_v52 }
 0xdc9   : > { %8241 = vrsqrt.f32 %v3758_v40  ;;  %vm3862_vm13 = vmor %vm3860_vm12, %vm3861_vm10  ;;  %vm3870_vm15 = vweird.f32 %v3758_v40 }
 0xdca   : > { %v3856_v48 = vmul.f32 %v8240_v52, %v3855_v57  ;;  %v3853_v49 = vsel %vm3852_vm11, %v8238_v39, %v3849_v24 }
 0xdcb   : > { %v3932_v60 = vmul.f32 %v3853_v49, %v11305_v46 }
 0xdcc   : > { %v3857_v13 = vmul.f32 0.5, %v3856_v48  ;;  %v3719_v3 = vpop.xlane.xlu2 %3718 }
 0xdcd   : > { %v3743_v42 = vmul.f32 %v3719_v3, %v13594_v55 }
 0xdce   : > { %v3858_v15 = vsub.f32 1.5, %v3857_v13 }
 0xdcf   : > { %v8242_v47 = vpop.eup %8241  ;;  %v3759_v5 = vadd.f32 1e-06, %v3743_v42 }
 0xdd0   : > { %v3859_v44 = vmul.f32 %v8240_v52, %v3858_v15  ;;  %v3865_v33 = vmul.f32 %v8242_v47, %v3758_v40  ;;  %vm3871_vm14 = vweird.f32 %v8242_v47 }
 0xdd1   : > { %8243 = vrsqrt.f32 %v3759_v5  ;;  %vm3872_vm2 = vmor %vm3870_vm15, %vm3871_vm14  ;;  %vm3880_vm3 = vweird.f32 %v3759_v5 }
 0xdd2   : > { %v3863_v21 = vsel %vm3862_vm13, %v8240_v52, %v3859_v44  ;;  %v3866_v51 = vmul.f32 %v8242_v47, %v3865_v33 }
 0xdd3   : > { %v3933_v61 = vmul.f32 %v3863_v21, %v11317_v35 }
 0xdd4   : > { %v3867_v9 = vmul.f32 0.5, %v3866_v51  ;;  %v3722_v35 = vpop.xlane.xlu0 %3721 }
 0xdd5   : > { %v3944_v7 = vpack.c.bf16 %v3933_v61, %v3932_v60  ;;  %v3744_v1 = vmul.f32 %v3722_v35, %v13594_v55 }
 0xdd6   : > { %v3868_v50 = vsub.f32 1.5, %v3867_v9 }
 0xdd7   : > { %v8244_v32 = vpop.eup %8243  ;;  %7220 = vmatmul.msk.bf16.gmra.mxu1 %vm482_vm0, %v3944_v7  ;;  %7228 = vmatmul.msk.bf16.gmra.mxu3 %vm482_vm0, %v3944_v7  ;;  %v3760_v59 = vadd.f32 1e-06, %v3744_v1  ;;  %v11440_v1 = vpop.f32.mrf.mxu3 }
 0xdd8   : > { %v3875_v8 = vmul.f32 %v8244_v32, %v3759_v5  ;;  %4469 = vrot.lane.b32.xlu0 %v11383_v10, %s8714_s4  ;;  %v3869_v45 = vmul.f32 %v8242_v47, %v3868_v50  ;;  %vm3881_vm1 = vweird.f32 %v8244_v32 }
 0xdd9   : > { %v4031_v4 = vpop.f32.mrf.mxu1  ;;  %vm3882_vm4 = vmor %vm3880_vm3, %vm3881_vm1  ;;  %8245 = vrsqrt.f32 %v3760_v59  ;;  %vm3890_vm9 = vweird.f32 %v3760_v59 }
 0xdda   : > { %v3876_v0 = vmul.f32 %v8244_v32, %v3875_v8  ;;  %v3873_v30 = vsel %vm3872_vm2, %v8242_v47, %v3869_v45  ;;  %v4032_v28 = vadd.f32 %v4031_v4, %v11379_v43 }
 0xddb   : > { %v3934_v37 = vmul.f32 %v3873_v30, %v11327_v62 }
 0xddc   : > { %v3877_v39 = vmul.f32 0.5, %v3876_v0 }
 0xdde   : > { %v3878_v46 = vsub.f32 1.5, %v3877_v39 }
 0xde0   : > { %v3879_v14 = vmul.f32 %v8244_v32, %v3878_v46 }
 0xde1   : > { %v4033_v54 = vpop.f32.mrf.mxu1 }
 0xde2   : > { %v3883_v2 = vsel %vm3882_vm4, %v8244_v32, %v3879_v14  ;;  %v4034_v63 = vadd.f32 %v4033_v54, %v11379_v43 }
 0xde3   : > { %v3935_v52 = vmul.f32 %v3883_v2, %v11335_v19  ;;  %v8246_v19 = vpop.eup %8245  ;;  %v11449_v2 = vpop.f32.mrf.mxu3 }
 0xde4   : > { %v11411_v40 = vpack.c.bf16 %v4034_v63, %v4032_v28  ;;  %v3885_v24 = vmul.f32 %v8246_v19, %v3760_v59  ;;  %vm3891_vm8 = vweird.f32 %v8246_v19 }
 0xde5   : > { %v3945_v57 = vpack.c.bf16 %v3935_v52, %v3934_v37  ;;  %vm3892_vm11 = vmor %vm3890_vm9, %vm3891_vm8 }
 0xde6   : > { %4133 = vrot.lane.b32.xlu1 %v11411_v40, %s8711_s20  ;;  %4471 = vrot.lane.b32.xlu2 %v11411_v40, %s8714_s4  ;;  %v3886_v49 = vmul.f32 %v8246_v19, %v3885_v24 }
 0xde7   : > { %4487 = vrot.lane.b32.xlu0 %v11411_v40, %s8712_s21  ;;  %7221 = vmatmul.msk.bf16.gmra.mxu1 %vm482_vm0, %v3945_v57 }
 0xde8   : > { %7229 = vmatmul.msk.bf16.gmra.mxu3 %vm482_vm0, %v3945_v57  ;;  %v3887_v44 = vmul.f32 0.5, %v3886_v49 }
 0xde9   : > { %v4036_v62 = vpop.f32.mrf.mxu1 }
 0xdea   : > { %v4037_v13 = vadd.f32 %v4036_v62, %v11379_v43  ;;  %v3888_v21 = vsub.f32 1.5, %v3887_v44 }
 0xdeb   : > { %v11451_v28 = vpop.f32.mrf.mxu3 }
 0xdec   : > { %v3889_v61 = vmul.f32 %v8246_v19, %v3888_v21 }
 0xdee   : > { %v3893_v32 = vsel %vm3892_vm11, %v8246_v19, %v3889_v61 }
 0xdef   : > { %v3936_v4 = vmul.f32 %v3893_v32, %v11344_v36 }
 0xdf1   : > { %v4038_v48 = vpop.f32.mrf.mxu1 }
 0xdf2   : > { %v4039_v3 = vadd.f32 %v4038_v48, %v11379_v43 }
 0xdf3   : > { %v3725_v42 = vpop.xlane.xlu1 %3724  ;;  %v11454_v19 = vpop.f32.mrf.mxu3 }
 0xdf4   : > { %v3745_v15 = vmul.f32 %v3725_v42, %v13594_v55  ;;  %v11424_v47 = vpack.c.bf16 %v4039_v3, %v4037_v13 }
 0xdf6   : > { %v3761_v5 = vadd.f32 1e-06, %v3745_v15  ;;  %4473 = vrot.lane.b32.xlu1 %v11424_v47, %s8714_s4  ;;  %4489 = vrot.lane.b32.xlu2 %v11424_v47, %s8712_s21 }
 0xdf7   : > { %4135 = vrot.lane.b32.xlu0 %v11424_v47, %s8711_s20 }
 0xdf8   : > { %8247 = vrsqrt.f32 %v3761_v5  ;;  %vm3900_vm12 = vweird.f32 %v3761_v5 }
 0xdfb   : > { %v3728_v36 = vpop.xlane.xlu2 %3727  ;;  %v11456_v15 = vpop.f32.mrf.mxu3 }
 0xdfe   : > { %v8248_v33 = vpop.eup %8247 }
 0xdff   : > { %v3895_v51 = vmul.f32 %v8248_v33, %v3761_v5  ;;  %vm3901_vm10 = vweird.f32 %v8248_v33 }
 0xe00   : > { %vm3902_vm13 = vmor %vm3900_vm12, %vm3901_vm10 }
 0xe01   : > { %v3896_v60 = vmul.f32 %v8248_v33, %v3895_v51 }
 0xe03   : > { %v3897_v9 = vmul.f32 0.5, %v3896_v60 }
 0xe05   : > { %v3898_v7 = vsub.f32 1.5, %v3897_v9 }
 0xe07   : > { %v3899_v50 = vmul.f32 %v8248_v33, %v3898_v7  ;;  %v4087_v7 = vpop.f32.mrf.mxu3 }
 0xe09   : > { %v3903_v8 = vsel %vm3902_vm13, %v8248_v33, %v3899_v50 }
 0xe0a   : > { %v3937_v0 = vmul.f32 %v3903_v8, %v11358_v12  ;;  %v3746_v12 = vmul.f32 %v3728_v36, %v13594_v55 }
 0xe0c   : > { %v3946_v45 = vpack.c.bf16 %v3937_v0, %v3936_v4  ;;  %v3762_v54 = vadd.f32 1e-06, %v3746_v12 }
 0xe0e   : > { %7222 = vmatmul.msk.bf16.gmra.mxu1 %vm482_vm0, %v3946_v45  ;;  %7230 = vmatmul.msk.bf16.gmra.mxu3 %vm482_vm0, %v3946_v45  ;;  %8249 = vrsqrt.f32 %v3762_v54  ;;  %vm3910_vm15 = vweird.f32 %v3762_v54 }
 0xe14   : > { %v4041_v39 = vpop.f32.mrf.mxu1  ;;  %v8250_v63 = vpop.eup %8249 }
 0xe15   : > { %v4042_v35 = vadd.f32 %v4041_v39, %v11379_v43  ;;  %v3905_v37 = vmul.f32 %v8250_v63, %v3762_v54  ;;  %vm3911_vm14 = vweird.f32 %v8250_v63 }
 0xe16   : > { %vm3912_vm2 = vmor %vm3910_vm15, %vm3911_vm14 }
 0xe17   : > { %v3906_v62 = vmul.f32 %v8250_v63, %v3905_v37 }
 0xe19   : > { %v3907_v48 = vmul.f32 0.5, %v3906_v62 }
 0xe1a   : > { %v4090_v50 = vpop.f32.mrf.mxu3 }
 0xe1b   : > { %v3908_v13 = vsub.f32 1.5, %v3907_v48 }
 0xe1c   : > { %v4043_v46 = vpop.f32.mrf.mxu1 }
 0xe1d   : > { %v4044_v30 = vadd.f32 %v4043_v46, %v11379_v43  ;;  %v3909_v5 = vmul.f32 %v8250_v63, %v3908_v13 }
 0xe1f   : > { %v11438_v14 = vpack.c.bf16 %v4044_v30, %v4042_v35  ;;  %v3913_v33 = vsel %vm3912_vm2, %v8250_v63, %v3909_v5 }
 0xe20   : > { %v3938_v60 = vmul.f32 %v3913_v33, %v11366_v38 }
 0xe21   : > { %4491 = vrot.lane.b32.xlu1 %v11438_v14, %s8712_s21  ;;  %4137 = vrot.lane.b32.xlu2 %v11438_v14, %s8711_s20 }
 0xe22   : > { %4475 = vrot.lane.b32.xlu0 %v11438_v14, %s8714_s4  ;;  %v4092_v38 = vpop.f32.mrf.mxu3 }
 0xe37   : > { %v3731_v52 = vpop.xlane.xlu0 %3730 }
 0xe38   : > { %v3747_v59 = vmul.f32 %v3731_v52, %v13594_v55 }
 0xe3a   : > { %v3763_v57 = vadd.f32 1e-06, %v3747_v59 }
 0xe3c   : > { %8251 = vrsqrt.f32 %v3763_v57  ;;  %vm3920_vm3 = vweird.f32 %v3763_v57 }
 0xe42   : > { %v8252_v24 = vpop.eup %8251 }
 0xe43   : > { %v3915_v3 = vmul.f32 %v8252_v24, %v3763_v57  ;;  %vm3921_vm1 = vweird.f32 %v8252_v24 }
 0xe44   : > { %vm3922_vm4 = vmor %vm3920_vm3, %vm3921_vm1 }
 0xe45   : > { %v3916_v42 = vmul.f32 %v8252_v24, %v3915_v3 }
 0xe47   : > { %v3917_v49 = vmul.f32 0.5, %v3916_v42 }
 0xe49   : > { %v3918_v44 = vsub.f32 1.5, %v3917_v49 }
 0xe4b   : > { %v3919_v21 = vmul.f32 %v8252_v24, %v3918_v44 }
 0xe4d   : > { %v3923_v51 = vsel %vm3922_vm4, %v8252_v24, %v3919_v21  ;;  %v11489_v24 = vperm.slane %v11376_v17, 1 }
 0xe4e   : > { %v3939_v61 = vmul.f32 %v3923_v51, %v11393_v11 }
 0xe4f   : > { %v4093_v33 = vadd.f32 %v4092_v38, %v11489_v24  ;;  %v4091_v21 = vadd.f32 %v4090_v50, %v11489_v24  ;;  %v4081_v50 = vadd.f32 %v11451_v28, %v11489_v24 }
 0xe50   : > { %v3947_v9 = vpack.c.bf16 %v3939_v61, %v3938_v60  ;;  %v4088_v60 = vadd.f32 %v4087_v7, %v11489_v24  ;;  %v4086_v61 = vadd.f32 %v11456_v15, %v11489_v24  ;;  %v11538_v7 = vpop.permute.xlu0 %4469 }
 0xe51   : > { %v11513_v51 = vpack.c.bf16 %v4093_v33, %v4091_v21 }
 0xe52   : > { %7223 = vmatmul.msk.bf16.gmra.mxu1 %vm482_vm0, %v3947_v9  ;;  %7231 = vmatmul.msk.bf16.gmra.mxu3 %vm482_vm0, %v3947_v9  ;;  %v11522_v9 = vpack.c.bf16 %v4088_v60, %v4086_v61 }
 0xe54   : > { %v4046_v32 = vpop.f32.mrf.mxu1 }
 0xe55   : > { %v4047_v4 = vadd.f32 %v4046_v32, %v11379_v43  ;;  %v4083_v32 = vadd.f32 %v11454_v19, %v11489_v24 }
 0xe5a   : > { %v4095_v39 = vpop.f32.mrf.mxu3 }
 0xe5b   : > { %v4096_v5 = vadd.f32 %v4095_v39, %v11489_v24 }
 0xe5c   : > { %v4048_v8 = vpop.f32.mrf.mxu1 }
 0xe5d   : > { %v4049_v0 = vadd.f32 %v4048_v8, %v11379_v43  ;;  %v11530_v8 = vpack.c.bf16 %v4083_v32, %v4081_v50 }
 0xe5f   : > { %v11464_v45 = vpack.c.bf16 %v4049_v0, %v4047_v4  ;;  %v11544_v0 = vpop.permute.xlu0 %4487 }
 0xe60   : > { %v4529_v23 = vsel %vm1049_vm5, %v11544_v0, 0 }
 0xe61   : > { %4493 = vrot.lane.b32.xlu0 %v11464_v45, %s8712_s21  ;;  %4139 = vrot.lane.b32.xlu1 %v11464_v45, %s8711_s20 }
 0xe62   : > { %v4097_v12 = vpop.f32.mrf.mxu3 }
 0xe63   : > { %v4098_v3 = vadd.f32 %v4097_v12, %v11489_v24  ;;  %v4078_v12 = vadd.f32 %v11449_v2, %v11489_v24 }
 0xe64   : > { %v4051_v11 = vpop.f32.mrf.mxu1 }
 0xe65   : > { %v4052_v35 = vadd.f32 %v4051_v11, %v11379_v43  ;;  %v11501_v17 = vpack.c.bf16 %v4098_v3, %v4096_v5  ;;  %v11614_v3 = vpop.permute.xlu1 %4485 }
 0xe69   : > { %4477 = vrot.lane.b32.xlu1 %v11464_v45, %s8714_s4 }
 0xe6b   : > { %v4100_v54 = vpop.f32.mrf.mxu3 }
 0xe6c   : > { %v4053_v46 = vpop.f32.mrf.mxu1  ;;  %v4101_v39 = vadd.f32 %v4100_v54, %v11489_v24  ;;  %v4076_v54 = vadd.f32 %v11440_v1, %v11489_v24 }
 0xe6d   : > { %v4054_v30 = vadd.f32 %v4053_v46, %v11379_v43  ;;  %v11556_v46 = vpop.permute.xlu0 %4135 }
 0xe6f   : > { %v11474_v36 = vpack.c.bf16 %v4054_v30, %v4052_v35  ;;  %v11566_v35 = vpop.permute.xlu2 %4131 }
 0xe71   : > { %4495 = vrot.lane.b32.xlu2 %v11474_v36, %s8712_s21  ;;  %4141 = vrot.lane.b32.xlu0 %v11474_v36, %s8711_s20 }
 0xe73   : > { %v4102_v63 = vpop.f32.mrf.mxu3 }
 0xe74   : > { %v4103_v11 = vadd.f32 %v4102_v63, %v11489_v24 }
 0xe77   : > { %v11580_v63 = vpop.permute.xlu2 %4471 }
 0xe79   : > { %4479 = vrot.lane.b32.xlu2 %v11474_v36, %s8714_s4  ;;  %4857 = vrot.lane.b32.xlu0 %v11474_v36, %s8715_s1 }
 0xe8b   : > { %v4056_v37 = vpop.f32.mrf.mxu1 }
 0xe8c   : > { %v4057_v57 = vadd.f32 %v4056_v37, %v11379_v43 }
 0xe91   : > { %v4105_v52 = vpop.f32.mrf.mxu3 }
 0xe92   : > { %v4106_v49 = vadd.f32 %v4105_v52, %v11489_v24  ;;  %v11586_v52 = vpack.c.bf16 %v4078_v12, %v4076_v54 }
 0xe93   : > { %v4058_v59 = vpop.f32.mrf.mxu1 }
 0xe94   : > { %v4059_v62 = vadd.f32 %v4058_v59, %v11379_v43  ;;  %v11568_v30 = vpop.permute.xlu0 %4475  ;;  %v11592_v59 = vpop.permute.xlu2 %4489 }
 0xe95   : > { %v4532_v31 = vsel %vm1049_vm5, %v11592_v59, 0 }
 0xe96   : > { %v11486_v48 = vpack.c.bf16 %v4059_v62, %v4057_v57 }
 0xe98   : > { %4859 = vrot.lane.b32.xlu2 %v11486_v48, %s8715_s1  ;;  %4497 = vrot.lane.b32.xlu1 %v11486_v48, %s8712_s21 }
 0xe99   : > { %4143 = vrot.lane.b32.xlu0 %v11486_v48, %s8711_s20  ;;  %v4107_v13 = vpop.f32.mrf.mxu3 }
 0xe9a   : > { %v4108_v42 = vadd.f32 %v4107_v13, %v11489_v24 }
 0xe9c   : > { %v11503_v44 = vpack.c.bf16 %v4108_v42, %v4106_v49  ;;  %v11602_v1 = vpop.permute.xlu2 %4137  ;;  %v11624_v49 = vpop.permute.xlu1 %4133 }
 0xe9d   : > { %v4181_v59 = vsel %vm1049_vm5, %v11602_v1, 0  ;;  %v4178_v1 = vsel %vm1049_vm5, %v11556_v46, 0 }
 0xea0   : > { %5193 = vrot.lane.b32.xlu2 %v11501_v17, %s8713_s0  ;;  %5197 = vrot.lane.b32.xlu1 %v11503_v44, %s8713_s0 }
 0xea1   : > { %4855 = vrot.lane.b32.xlu0 %v11464_v45, %s8715_s1 }
 0xea4   : > { %v11640_v50 = vpop.permute.xlu1 %4473 }
 0xea8   : > { %5191 = vrot.lane.b32.xlu2 %v11513_v51, %s8713_s0 }
 0xea9   : > { %4481 = vrot.lane.b32.xlu0 %v11486_v48, %s8714_s4 }
 0xeb1   : > { %5189 = vrot.lane.b32.xlu0 %v11522_v9, %s8713_s0 }
 0xeb9   : > { %5187 = vrot.lane.b32.xlu0 %v11530_v8, %s8713_s0 }
 0xec1   : > { %4831 = vrot.lane.b32.xlu0 %v11383_v10, %s8716_s22 }
 0xec9   : > { %5171 = vrot.lane.b32.xlu0 %v11530_v8, %s8711_s20 }
 0xecb   : > { %v4496_v13 = vpop.permute.xlu2 %4495 }
 0xecc   : > { %v4541_v56 = vsel %vm1049_vm5, %v4496_v13, 0 }
 0xecf   : > { %v4061_v15 = vpop.f32.mrf.mxu1 }
 0xed0   : > { %v4062_v28 = vadd.f32 %v4061_v15, %v11379_v43 }
 0xed1   : > { %5177 = vrot.lane.b32.xlu0 %v11501_v17, %s8711_s20 }
 0xed3   : > { %v11582_v37 = vpop.permute.xlu0 %4493  ;;  %v11626_v33 = vpop.permute.xlu2 %4479 }
 0xed4   : > { %v4538_v53 = vsel %vm1049_vm5, %v11582_v37, 0 }
 0xed5   : > { %v4110_v62 = vpop.f32.mrf.mxu3 }
 0xed6   : > { %v4111_v61 = vadd.f32 %v4110_v62, %v11489_v24 }
 0xed7   : > { %v4063_v19 = vpop.f32.mrf.mxu1 }
 0xed8   : > { %v4064_v4 = vadd.f32 %v4063_v19, %v11379_v43  ;;  %v11560_v43 = vpack.c.bf16 %v4103_v11, %v4101_v39 }
 0xed9   : > { %4408 = vrot.lane.b32.xlu0 %v11486_v48, %s8713_s0 }
 0xeda   : > { %v11548_v38 = vpack.c.bf16 %v4064_v4, %v4062_v28 }
 0xedc   : > { %4499 = vrot.lane.b32.xlu2 %v11548_v38, %s8712_s21  ;;  %4145 = vrot.lane.b32.xlu1 %v11548_v38, %s8711_s20 }
 0xedd   : > { %v4112_v5 = vpop.f32.mrf.mxu3 }
 0xede   : > { %v4113_v21 = vadd.f32 %v4112_v5, %v11489_v24  ;;  %v4492_v24 = vpop.permute.xlu1 %4491 }
 0xee0   : > { %v11636_v32 = vpack.c.bf16 %v4113_v21, %v4111_v61 }
 0xee1   : > { %4406 = vrot.lane.b32.xlu0 %v11474_v36, %s8713_s0 }
 0xee3   : > { %v11594_v2 = vpop.permute.xlu0 %4141 }
 0xee4   : > { %4849 = vrot.lane.b32.xlu2 %v11411_v40, %s8715_s1  ;;  %5195 = vrot.lane.b32.xlu1 %v11560_v43, %s8713_s0  ;;  %v4187_v6 = vsel %vm1049_vm5, %v11594_v2, 0 }
 0xee6   : > { %v4140_v11 = vpop.permute.xlu1 %4139 }
 0xee9   : > { %4756 = vrot.lane.b32.xlu0 %v11438_v14, %s8717_s23 }
 0xeeb   : > { %v11606_v57 = vpop.permute.xlu0 %4857 }
 0xeec   : > { %4847 = vrot.lane.b32.xlu2 %v11383_v10, %s8715_s1  ;;  %4853 = vrot.lane.b32.xlu1 %v11438_v14, %s8715_s1 }
 0xeee   : > { %v11670_v62 = vpop.permute.xlu1 %4477 }
 0xef1   : > { %4404 = vrot.lane.b32.xlu0 %v11464_v45, %s8713_s0 }
 0xef2   : > { %v11642_v15 = vpop.permute.xlu2 %4859 }
 0xef4   : > { %5169 = vrot.lane.b32.xlu2 %v11586_v52, %s8711_s20  ;;  %4851 = vrot.lane.b32.xlu1 %v11424_v47, %s8715_s1 }
 0xef9   : > { %5181 = vrot.lane.b32.xlu0 %v11503_v44, %s8711_s20 }
 0xefa   : > { %v11654_v4 = vpop.permute.xlu2 %5193 }
 0xefc   : > { %4835 = vrot.lane.b32.xlu2 %v11424_v47, %s8716_s22  ;;  %5185 = vrot.lane.b32.xlu1 %v11586_v52, %s8713_s0 }
 0xf01   : > { %4752 = vrot.lane.b32.xlu0 %v11411_v40, %s8717_s23 }
 0xf02   : > { %v11666_v12 = vpop.permute.xlu2 %5191 }
 0xf04   : > { %4839 = vrot.lane.b32.xlu2 %v11464_v45, %s8716_s22  ;;  %4833 = vrot.lane.b32.xlu1 %v11411_v40, %s8716_s22 }
 0xf09   : > { %5456 = vrot.lane.b32.xlu0 %v11513_v51, %s8714_s4 }
 0xf0a   : > { %v4498_v58 = vpop.permute.xlu1 %4497 }
 0xf0b   : > { %v11616_v42 = vpop.permute.xlu0 %4143  ;;  %v4544_v27 = vsel %vm1049_vm5, %v4498_v58, 0 }
 0xf0c   : > { %4762 = vrot.lane.b32.xlu2 %v11486_v48, %s8717_s23  ;;  %5173 = vrot.lane.b32.xlu1 %v11522_v9, %s8711_s20  ;;  %v4190_v55 = vsel %vm1049_vm5, %v11616_v42, 0 }
 0xf11   : > { %4410 = vrot.lane.b32.xlu0 %v11548_v38, %s8713_s0 }
 0xf13   : > { %v11629_v60 = vpop.permute.xlu0 %4855 }
 0xf14   : > { %4760 = vrot.lane.b32.xlu2 %v11474_v36, %s8717_s23  ;;  %4837 = vrot.lane.b32.xlu1 %v11438_v14, %s8716_s22 }
 0xf19   : > { %5199 = vrot.lane.b32.xlu0 %v11636_v32, %s8713_s0 }
 0xf1b   : > { %v11644_v19 = vpop.permute.xlu0 %4481 }
 0xf1c   : > { %4758 = vrot.lane.b32.xlu2 %v11464_v45, %s8717_s23  ;;  %5175 = vrot.lane.b32.xlu1 %v11513_v51, %s8711_s20 }
 0xf21   : > { %5464 = vrot.lane.b32.xlu0 %v11636_v32, %s8714_s4 }
 0xf23   : > { %v11652_v28 = vpop.permute.xlu0 %5189 }
 0xf24   : > { %4754 = vrot.lane.b32.xlu2 %v11424_v47, %s8717_s23  ;;  %4841 = vrot.lane.b32.xlu1 %v11474_v36, %s8716_s22 }
 0xf2b   : > { %v11660_v39 = vpop.permute.xlu0 %5187 }
 0xf2c   : > { %4750 = vrot.lane.b32.xlu2 %v11383_v10, %s8717_s23  ;;  %5179 = vrot.lane.b32.xlu1 %v11560_v43, %s8711_s20 }
 0xf33   : > { %v11668_v54 = vpop.permute.xlu0 %4831 }
 0xf34   : > { %4396 = vrot.lane.b32.xlu2 %v11383_v10, %s8713_s0  ;;  %4843 = vrot.lane.b32.xlu1 %v11486_v48, %s8716_s22 }
 0xf36   : > { %v4500_v5 = vpop.permute.xlu2 %4499 }
 0xf37   : > { %v4547_v21 = vsel %vm1049_vm5, %v4500_v5, 0  ;;  %v11692_v5 = vpop.permute.xlu1 %5197 }
 0xf38   : > { %4549 = vmatpush.bf16.xpose.msra.mxu1 %v4547_v21 }
 0xf3b   : > { %v11677_v61 = vpop.permute.xlu0 %5171 }
 0xf3c   : > { %5460 = vrot.lane.b32.xlu2 %v11560_v43, %s8714_s4  ;;  %4402 = vrot.lane.b32.xlu1 %v11438_v14, %s8713_s0 }
 0xf3e   : > { %v11683_v18 = vpop.permute.xlu2 %4849 }
 0xf40   : > { %4550 = vmatpush.bf16.xpose.msra.mxu1 %v4544_v27 }
 0xf43   : > { %v11686_v25 = vpop.permute.xlu0 %5177 }
 0xf44   : > { %4861 = vrot.lane.b32.xlu2 %v11548_v38, %s8715_s1  ;;  %4400 = vrot.lane.b32.xlu1 %v11424_v47, %s8713_s0 }
 0xf46   : > { %v11694_v21 = vpop.permute.xlu2 %4847 }
 0xf48   : > { %4551 = vmatpush.bf16.xpose.msra.mxu1 %v4541_v56 }
 0xf4b   : > { %v4409_v29 = vpop.permute.xlu0 %4408 }
 0xf4c   : > { %4845 = vrot.lane.b32.xlu2 %v11548_v38, %s8716_s22  ;;  %4398 = vrot.lane.b32.xlu1 %v11411_v40, %s8713_s0 }
 0xf4e   : > { %v11701_v27 = vpop.permute.xlu2 %5169  ;;  %v4146_v58 = vpop.permute.xlu1 %4145 }
 0xf4f   : > { %v4193_v34 = vsel %vm1049_vm5, %v4146_v58, 0  ;;  %v4535_v58 = vsel %vm1049_vm5, %v4492_v24, 0 }
 0xf50   : > { %4195 = vmatpush.bf16.xpose.msra.mxu2 %v4193_v34  ;;  %4552 = vmatpush.bf16.xpose.msra.mxu1 %v4538_v53 }
 0xf53   : > { %v4407_v16 = vpop.permute.xlu0 %4406 }
 0xf54   : > { %5183 = vrot.lane.b32.xlu2 %v11636_v32, %s8711_s20  ;;  %5462 = vrot.lane.b32.xlu1 %v11503_v44, %s8714_s4 }
 0xf56   : > { %v11710_v56 = vpop.permute.xlu2 %4835  ;;  %v5196_v13 = vpop.permute.xlu1 %5195 }
 0xf58   : > { %4196 = vmatpush.bf16.xpose.msra.mxu2 %v4190_v55  ;;  %4553 = vmatpush.bf16.xpose.msra.mxu1 %v4535_v58  ;;  %v4184_v58 = vsel %vm1049_vm5, %v4140_v11, 0  ;;  %v4526_v11 = vsel %vm1049_vm5, %v11614_v3, 0 }
 0xf5b   : > { %v11715_v37 = vpop.permute.xlu0 %4756 }
 0xf5c   : > { %5458 = vrot.lane.b32.xlu1 %v11501_v17, %s8714_s4 }
 0xf5e   : > { %v11719_v53 = vpop.permute.xlu2 %4839  ;;  %v11721_v34 = vpop.permute.xlu1 %4853 }
 0xf60   : > { %4197 = vmatpush.bf16.xpose.msra.mxu2 %v4187_v6  ;;  %4554 = vmatpush.bf16.xpose.msra.mxu1 %v4532_v31 }
 0xf63   : > { %v4405_v42 = vpop.permute.xlu0 %4404 }
 0xf64   : > { %5454 = vrot.lane.b32.xlu1 %v11522_v9, %s8714_s4 }
 0xf66   : > { %v11729_v55 = vpop.permute.xlu2 %4762  ;;  %v11731_v24 = vpop.permute.xlu1 %4851 }
 0xf68   : > { %4198 = vmatpush.bf16.xpose.msra.mxu2 %v4184_v58  ;;  %4555 = vmatpush.bf16.xpose.msra.mxu1 %v4529_v23 }
 0xf6b   : > { %v11736_v2 = vpop.permute.xlu0 %5181 }
 0xf6c   : > { %4483 = vrot.lane.b32.xlu1 %v11548_v38, %s8714_s4 }
 0xf6e   : > { %v11740_v31 = vpop.permute.xlu2 %4760  ;;  %v11742_v6 = vpop.permute.xlu1 %5185 }
 0xf70   : > { %4199 = vmatpush.bf16.xpose.msra.mxu2 %v4181_v59  ;;  %4556 = vmatpush.bf16.xpose.msra.mxu1 %v4526_v11  ;;  %v4175_v11 = vsel %vm1049_vm5, %v11624_v49, 0 }
 0xf73   : > { %v11748_v0 = vpop.permute.xlu0 %4752 }
 0xf74   : > { %4764 = vrot.lane.b32.xlu1 %v11548_v38, %s8717_s23 }
 0xf76   : > { %v11752_v23 = vpop.permute.xlu2 %4758  ;;  %v11754_v58 = vpop.permute.xlu1 %4833 }
 0xf77   : > { %7240 = vmatmul.msk.bf16.vlgmr.msra.gmra.mxu1 %vm1049_vm5, %v11538_v7  ;;  %v4172_v7 = vsel %vm1049_vm5, %v11566_v35, 0 }
 0xf78   : > { %4200 = vmatpush.bf16.xpose.msra.mxu2 %v4178_v1 }
 0xf7b   : > { %v11760_v22 = vpop.permute.xlu0 %5456 }
 0xf7e   : > { %v11762_v3 = vpop.permute.xlu2 %4754  ;;  %v11764_v59 = vpop.permute.xlu1 %5173 }
 0xf80   : > { %4201 = vmatpush.bf16.xpose.msra.mxu2 %v4175_v11 }
 0xf83   : > { %v4411_v41 = vpop.permute.xlu0 %4410 }
 0xf84   : > { %4420 = vmatpush.bf16.msra.mxu0 %v4411_v41  ;;  %v5244_v41 = vsel %vm1049_vm5, %v11692_v5, 0  ;;  %v5238_v5 = vsel %vm1049_vm5, %v11654_v4, 0 }
 0xf86   : > { %v11768_v20 = vpop.permute.xlu2 %4750  ;;  %v11770_v26 = vpop.permute.xlu1 %4837 }
 0xf87   : > { %7241 = vmatmul.msk.bf16.gmra.mxu1 %vm1049_vm5, %v11580_v63 }
 0xf88   : > { %4421 = vmatpush.bf16.msra.mxu0 %v4409_v29  ;;  %4202 = vmatpush.bf16.xpose.msra.mxu2 %v4172_v7 }
 0xf8b   : > { %v5200_v46 = vpop.permute.xlu0 %5199 }
 0xf8c   : > { %v5247_v1 = vsel %vm1049_vm5, %v5200_v46, 0  ;;  %4422 = vmatpush.bf16.msra.mxu0 %v4407_v16  ;;  %v5241_v16 = vsel %vm1049_vm5, %v5196_v13, 0  ;;  %v5235_v13 = vsel %vm1049_vm5, %v11666_v12, 0 }
 0xf8d   : > { %5249 = vmatpush.bf16.xpose.msrb.mxu1 %v5247_v1 }
 0xf8e   : > { %v4397_v49 = vpop.permute.xlu2 %4396  ;;  %v11777_v11 = vpop.permute.xlu1 %5175 }
 0xf8f   : > { %7232 = vmatmul.msk.bf16.vlgmr.msra.gmra.mxu2 %vm1049_vm5, %v11383_v10 }
 0xf90   : > { %4423 = vmatpush.bf16.msra.mxu0 %v4405_v42 }
 0xf95   : > { %5250 = vmatpush.bf16.xpose.msrb.mxu1 %v5244_v41 }
 0xf96   : > { %v11783_v63 = vpop.permute.xlu2 %5460  ;;  %v11785_v29 = vpop.permute.xlu1 %4841 }
 0xf97   : > { %7242 = vmatmul.msk.bf16.gmra.mxu1 %vm1049_vm5, %v11640_v50  ;;  %v4906_v50 = vsel %vm1049_vm5, %v11642_v15, 0  ;;  %v4900_v15 = vsel %vm1049_vm5, %v11629_v60, 0  ;;  %v5226_v60 = vsel %vm1049_vm5, %v11742_v6, 0 }
 0xf9d   : > { %5251 = vmatpush.bf16.xpose.msrb.mxu1 %v5241_v16 }
 0xf9e   : > { %v4862_v35 = vpop.permute.xlu2 %4861  ;;  %v11790_v7 = vpop.permute.xlu1 %5179 }
 0xf9f   : > { %v4909_v10 = vsel %vm1049_vm5, %v4862_v35, 0  ;;  %7233 = vmatmul.msk.bf16.gmra.mxu2 %vm1049_vm5, %v11411_v40  ;;  %v4903_v40 = vsel %vm1049_vm5, %v11606_v57, 0  ;;  %v4897_v57 = vsel %vm1049_vm5, %v11721_v34, 0 }
 0xfa0   : > { %4911 = vmatpush.bf16.xpose.msrb.mxu2 %v4909_v10  ;;  %v13626_v10 = vld [vmem:[#allocation23_spill] sm:$0xff] }
 0xfa5   : > { %5252 = vmatpush.bf16.xpose.msrb.mxu1 %v5238_v5 }
 0xfa6   : > { %v11797_v42 = vpop.permute.xlu1 %4843 }
 0xfa7   : > { %7243 = vmatmul.msk.bf16.gmra.mxu1 %vm1049_vm5, %v11568_v30  ;;  %v5232_v30 = vsel %vm1049_vm5, %v11652_v28, 0 }
 0xfa8   : > { %4912 = vmatpush.bf16.xpose.msrb.mxu2 %v4906_v50 }
 0xfad   : > { %5253 = vmatpush.bf16.xpose.msrb.mxu1 %v5235_v13 }
 0xfae   : > { %v4403_v46 = vpop.permute.xlu1 %4402 }
 0xfaf   : > { %7234 = vmatmul.msk.bf16.gmra.mxu2 %vm1049_vm5, %v11424_v47  ;;  %4424 = vmatpush.bf16.msra.mxu0 %v4403_v46  ;;  %v5229_v47 = vsel %vm1049_vm5, %v11660_v39, 0  ;;  %v4894_v39 = vsel %vm1049_vm5, %v11731_v24, 0  ;;  %v13627_v46 = vld [vmem:[#allocation25_spill] sm:$0xff] }
 0xfb0   : > { %4913 = vmatpush.bf16.xpose.msrb.mxu2 %v4903_v40 }
 0xfb5   : > { %5254 = vmatpush.bf16.xpose.msrb.mxu1 %v5232_v30 }
 0xfb6   : > { %v4401_v4 = vpop.permute.xlu1 %4400 }
 0xfb7   : > { %4425 = vmatpush.bf16.msra.mxu0 %v4401_v4  ;;  %7244 = vmatmul.msk.bf16.gmra.mxu1 %vm1049_vm5, %v11670_v62 }
 0xfb8   : > { %4914 = vmatpush.bf16.xpose.msrb.mxu2 %v4900_v15 }
 0xfbd   : > { %5255 = vmatpush.bf16.xpose.msrb.mxu1 %v5229_v47  ;;  %v13628_v47 = vld [vmem:[#allocation26_spill] sm:$0xff] }
 0xfbe   : > { %v4399_v12 = vpop.permute.xlu1 %4398 }
 0xfbf   : > { %7235 = vmatmul.msk.bf16.gmra.mxu2 %vm1049_vm5, %v11438_v14  ;;  %4426 = vmatpush.bf16.msra.mxu0 %v4399_v12 }
 0xfc0   : > { %4915 = vmatpush.bf16.xpose.msrb.mxu2 %v4897_v57 }
 0xfc3   : > { %4427 = vmatpush.bf16.msra.mxu0 %v4397_v49 }
 0xfc5   : > { %5256 = vmatpush.bf16.xpose.msrb.mxu1 %v5226_v60 }
 0xfc6   : > { %v5463_v28 = vpop.permute.xlu1 %5462 }
 0xfc7   : > { %5112 = vmatpush.bf16.msrb.mxu0 %v11636_v32  ;;  %7245 = vmatmul.msk.bf16.gmra.mxu1 %vm1049_vm5, %v11626_v33  ;;  %v4891_v32 = vsel %vm1049_vm5, %v11683_v18, 0 }
 0xfc8   : > { %4916 = vmatpush.bf16.xpose.msrb.mxu2 %v4894_v39 }
 0xfcb   : > { %5113 = vmatpush.bf16.msrb.mxu0 %v11503_v44  ;;  %v4888_v44 = vsel %vm1049_vm5, %v11694_v21, 0  ;;  %v13622_v21 = vld [vmem:[#allocation20_spill] sm:$0xff] }
 0xfce   : > { %v5459_v14 = vpop.permute.xlu1 %5458 }
 0xfcf   : > { %5114 = vmatpush.bf16.msrb.mxu0 %v11560_v43  ;;  %7236 = vmatmul.msk.bf16.gmra.mxu2 %vm1049_vm5, %v11464_v45  ;;  %v13621_v43 = vld [vmem:[#allocation19_spill] sm:$0xff] }
 0xfd0   : > { %4917 = vmatpush.bf16.xpose.msrb.mxu2 %v4891_v32  ;;  %v4846_v32 = vpop.permute.xlu2 %4845 }
 0xfd3   : > { %5115 = vmatpush.bf16.msrb.mxu0 %v11501_v17 }
 0xfd6   : > { %v5455_v33 = vpop.permute.xlu1 %5454 }
 0xfd7   : > { %5116 = vmatpush.bf16.msrb.mxu0 %v11513_v51  ;;  %7246 = vmatmul.msk.bf16.gmra.mxu1 %vm1049_vm5, %v11644_v19  ;;  %v13620_v51 = vld [vmem:[#allocation18_spill] sm:$0xff]  ;;  %v5465_v19 = vpop.permute.xlu0 %5464 }
 0xfd8   : > { %4918 = vmatpush.bf16.xpose.msrb.mxu2 %v4888_v44 }
 0xfdb   : > { %5117 = vmatpush.bf16.msrb.mxu0 %v11522_v9 }
 0xfde   : > { %v4484_v45 = vpop.permute.xlu1 %4483 }
 0xfdf   : > { %5118 = vmatpush.bf16.msrb.mxu0 %v11530_v8  ;;  %7237 = vmatmul.msk.bf16.gmra.mxu2 %vm1049_vm5, %v11474_v36 }
 0xfe3   : > { %5119 = vmatpush.bf16.msrb.mxu0 %v11586_v52 }
 0xfe6   : > { %v4765_v18 = vpop.permute.xlu1 %4764 }
 0xfe7   : > { %7247 = vmatmul.msk.bf16.gmra.mxu1 %vm1049_vm5, %v4484_v45  ;;  %4774 = vmatpush.bf16.msrb.mxu3 %v4765_v18  ;;  %v13631_v45 = vld [vmem:[#allocation28_spill] sm:$0xff] }
 0xfeb   : > { %4775 = vmatpush.bf16.msrb.mxu3 %v11729_v55  ;;  %v13623_v55 = vld [vmem:[#allocation22_spill] sm:$0xff] }
 0xfef   : > { %7238 = vmatmul.msk.bf16.gmra.mxu2 %vm1049_vm5, %v11486_v48  ;;  %4776 = vmatpush.bf16.msrb.mxu3 %v11740_v31 }
 0xff3   : > { %4777 = vmatpush.bf16.msrb.mxu3 %v11752_v23 }
 0xff4   : > { %v4558_v17 = vpop.f32.mrf.mxu1 }
 0xff5   : > { %v11852_v9 = vadd.f32 %v4558_v17, %v13620_v51 }
 0xff7   : > { %4598 = vmax.xlane.f32.xlu0 %v11852_v9  ;;  %4778 = vmatpush.bf16.msrb.mxu3 %v11715_v37 }
 0xff8   : > { %7256 = vmatmul.msk.bf16.vlgmr.msrb.gmra.mxu1 %vm1049_vm5, %v11701_v27 }
 0xffb   : > { %4779 = vmatpush.bf16.msrb.mxu3 %v11762_v3 }
 0xffc   : > { %v4560_v36 = vpop.f32.mrf.mxu1 }
 0xffd   : > { %v11860_v48 = vadd.f32 %v4560_v36, %v13621_v43 }
 0xfff   : > { %4600 = vmax.xlane.f32.xlu2 %v11860_v48  ;;  %7239 = vmatmul.msk.bf16.gmra.mxu2 %vm1049_vm5, %v11548_v38 }
0x1000   : > { %4780 = vmatpush.bf16.msrb.mxu3 %v11748_v0 }
0x1004   : > { %4781 = vmatpush.bf16.msrb.mxu3 %v11768_v20  ;;  %v4563_v62 = vpop.f32.mrf.mxu1 }
0x1005   : > { %v11868_v37 = vadd.f32 %v4563_v62, %v13622_v21 }
0x1007   : > { %4602 = vmax.xlane.f32.xlu2 %v11868_v37 }
0x1008   : > { %5474 = vmatpush.bf16.msra.mxu3 %v5465_v19  ;;  %7257 = vmatmul.msk.bf16.gmra.mxu1 %vm1049_vm5, %v11677_v61  ;;  %v5184_v19 = vpop.permute.xlu2 %5183 }
0x100c   : > { %5475 = vmatpush.bf16.msra.mxu3 %v5463_v28  ;;  %v4565_v27 = vpop.f32.mrf.mxu1  ;;  %v13629_v28 = vld [vmem:[#allocation27_spill] sm:$0xff] }
0x100d   : > { %v13630_v39 = vmov %v13629_v28 }
0x100f   : > { %7248 = vmatmul.msk.bf16.vlgmr.msrb.gmra.mxu2 %vm1049_vm5, %v11668_v54 }
0x1010   : > { %5476 = vmatpush.bf16.msra.mxu3 %v11783_v63 }
0x1012   : > { %v4204_v38 = vpop.f32.mrf.mxu2 }
0x1013   : > { %v11877_v20 = vadd.f32 %v4204_v38, %v13620_v51 }
0x1014   : > { %5477 = vmatpush.bf16.msra.mxu3 %v5459_v14  ;;  %v4568_v34 = vpop.f32.mrf.mxu1 }
0x1015   : > { %v11880_v24 = vadd.f32 %v4568_v34, %v13623_v55  ;;  %4244 = vmax.xlane.f32.xlu1 %v11877_v20 }
0x1017   : > { %4606 = vmax.xlane.f32.xlu2 %v11880_v24 }
0x1018   : > { %5478 = vmatpush.bf16.msra.mxu3 %v11760_v22  ;;  %7258 = vmatmul.msk.bf16.gmra.mxu1 %vm1049_vm5, %v11764_v59  ;;  %v13624_v22 = vld [vmem:[#allocation21_spill] sm:$0xff]  ;;  %v13625_v59 = vld [vmem:[#allocation24_spill] sm:$0xff] }
0x1019   : > { %v11894_v0 = vadd.f32 %v4565_v27, %v13624_v22 }
0x101a   : > { %v4206_v54 = vpop.f32.mrf.mxu2 }
0x101b   : > { %v11888_v61 = vadd.f32 %v4206_v54, %v13621_v43 }
0x101c   : > { %5479 = vmatpush.bf16.msra.mxu3 %v5455_v33  ;;  %v4570_v31 = vpop.f32.mrf.mxu1 }
0x101d   : > { %4246 = vmax.xlane.f32.xlu0 %v11888_v61  ;;  %v11920_v5 = vadd.f32 %v4570_v31, %v13626_v10  ;;  %v13634_v31 = vld [vmem:[#allocation30_spill] sm:$0xff] }
0x101f   : > { %7249 = vmatmul.msk.bf16.gmra.mxu2 %vm1049_vm5, %v11754_v58 }
0x1022   : > { %v4209_v6 = vpop.f32.mrf.mxu2 }
0x1023   : > { %v11897_v23 = vadd.f32 %v4209_v6, %v13622_v21 }
0x1024   : > { %v4573_v3 = vpop.f32.mrf.mxu1 }
0x1025   : > { %v11900_v1 = vadd.f32 %v4573_v3, %v13625_v59  ;;  %4604 = vmax.xlane.f32.xlu0 %v11894_v0  ;;  %4248 = vmax.xlane.f32.xlu1 %v11897_v23 }
0x1027   : > { %4610 = vmax.xlane.f32.xlu2 %v11900_v1 }
0x1028   : > { %7259 = vmatmul.msk.bf16.gmra.mxu1 %vm1049_vm5, %v11777_v11 }
0x102a   : > { %v4211_v58 = vpop.f32.mrf.mxu2 }
0x102b   : > { %v11908_v49 = vadd.f32 %v4211_v58, %v13624_v22 }
0x102c   : > { %v4575_v41 = vpop.f32.mrf.mxu1 }
0x102d   : > { %4250 = vmax.xlane.f32.xlu1 %v11908_v49  ;;  %v11930_v40 = vadd.f32 %v4575_v41, %v13627_v46  ;;  %v13635_v41 = vld [vmem:[#allocation31_spill] sm:$0xff] }
0x102f   : > { %7250 = vmatmul.msk.bf16.gmra.mxu2 %vm1049_vm5, %v11710_v56 }
0x1032   : > { %v4214_v63 = vpop.f32.mrf.mxu2 }
0x1033   : > { %v11914_v16 = vadd.f32 %v4214_v63, %v13623_v55 }
0x1034   : > { %v4578_v35 = vpop.f32.mrf.mxu1 }
0x1035   : > { %4252 = vmax.xlane.f32.xlu0 %v11914_v16  ;;  %v11946_v12 = vadd.f32 %v4578_v35, %v13628_v47 }
0x1038   : > { %7260 = vmatmul.msk.bf16.gmra.mxu1 %vm1049_vm5, %v11686_v25 }
0x103a   : > { %v4216_v11 = vpop.f32.mrf.mxu2 }
0x103b   : > { %v11923_v50 = vadd.f32 %v4216_v11, %v13626_v10 }
0x103c   : > { %v4580_v56 = vpop.f32.mrf.mxu1 }
0x103d   : > { %4608 = vmax.xlane.f32.xlu0 %v11920_v5  ;;  %4254 = vmax.xlane.f32.xlu1 %v11923_v50  ;;  %v11956_v14 = vadd.f32 %v4580_v56, %v13629_v28  ;;  %v13636_v56 = vld [vmem:[#allocation32_spill] sm:$0xff] }
0x103f   : > { %7251 = vmatmul.msk.bf16.gmra.mxu2 %vm1049_vm5, %v11770_v26 }
0x1042   : > { %v4219_v13 = vpop.f32.mrf.mxu2 }
0x1043   : > { %v11933_v25 = vadd.f32 %v4219_v13, %v13625_v59  ;;  %v13637_v13 = vmov %v13636_v56 }
0x1044   : > { %v4583_v30 = vpop.f32.mrf.mxu1 }
0x1045   : > { %4256 = vmax.xlane.f32.xlu2 %v11933_v25  ;;  %4612 = vmax.xlane.f32.xlu1 %v11930_v40  ;;  %v11966_v18 = vadd.f32 %v4583_v30, %v13631_v45 }
0x1048   : > { %7261 = vmatmul.msk.bf16.gmra.mxu1 %vm1049_vm5, %v11790_v7 }
0x104a   : > { %v4221_v4 = vpop.f32.mrf.mxu2 }
0x104b   : > { %v11940_v15 = vadd.f32 %v4221_v4, %v13627_v46 }
0x104c   : > { %v4585_v60 = vpop.f32.mrf.mxu1 }
0x104d   : > { %4258 = vmax.xlane.f32.xlu0 %v11940_v15 }
0x104f   : > { %7252 = vmatmul.msk.bf16.gmra.mxu2 %vm1049_vm5, %v11719_v53 }
0x1052   : > { %v4224_v26 = vpop.f32.mrf.mxu2 }
0x1053   : > { %v11949_v57 = vadd.f32 %v4224_v26, %v13628_v47 }
0x1054   : > { %v4588_v33 = vpop.f32.mrf.mxu1 }
0x1055   : > { %4614 = vmax.xlane.f32.xlu0 %v11946_v12  ;;  %4260 = vmax.xlane.f32.xlu1 %v11949_v57  ;;  %v11985_v6 = vadd.f32 %v4588_v33, %v13634_v31 }
0x1058   : > { %7262 = vmatmul.msk.bf16.gmra.mxu1 %vm1049_vm5, %v11736_v2  ;;  %v13632_v2 = vld [vmem:[#allocation29_spill] sm:$0xff] }
0x1059   : > { %v13633_v36 = vmov %v13632_v2  ;;  %v11969_v17 = vadd.f32 %v4585_v60, %v13632_v2  ;;  %v13638_v2 = vld [vmem:[#allocation33_spill] sm:$0xff] }
0x105a   : > { %v4226_v7 = vpop.f32.mrf.mxu2 }
0x105b   : > { %v11959_v53 = vadd.f32 %v4226_v7, %v13630_v39 }
0x105c   : > { %v4590_v62 = vpop.f32.mrf.mxu1 }
0x105d   : > { %4262 = vmax.xlane.f32.xlu0 %v11959_v53  ;;  %4616 = vmax.xlane.f32.xlu1 %v11956_v14  ;;  %v11993_v63 = vadd.f32 %v4590_v62, %v13635_v41 }
0x105f   : > { %7253 = vmatmul.msk.bf16.gmra.mxu2 %vm1049_vm5, %v11785_v29 }
0x1062   : > { %v4229_v44 = vpop.f32.mrf.mxu2 }
0x1063   : > { %v11975_v38 = vadd.f32 %v4229_v44, %v13631_v45 }
0x1064   : > { %v4593_v34 = vpop.f32.mrf.mxu1 }
0x1065   : > { %4620 = vmax.xlane.f32.xlu0 %v11969_v17  ;;  %4618 = vmax.xlane.f32.xlu1 %v11966_v18  ;;  %v12002_v30 = vadd.f32 %v4593_v34, %v13636_v56 }
0x1068   : > { %7263 = vmatmul.msk.bf16.gmra.mxu1 %vm1049_vm5, %v5184_v19  ;;  %v13639_v19 = vmov %v13638_v2 }
0x106a   : > { %v4231_v27 = vpop.f32.mrf.mxu2  ;;  %v4599_v4 = vpop.xlane.xlu0 %4598 }
0x106b   : > { %v11978_v29 = vadd.f32 %v4231_v27, %v13633_v36  ;;  %v4630_v60 = vsub.f32 %v11852_v9, %v4599_v4 }
0x106d   : > { %4266 = vmax.xlane.f32.xlu2 %v11978_v29  ;;  %4264 = vmax.xlane.f32.xlu1 %v11975_v38  ;;  %v4646_v33 = vmul.f32 1.442695, %v4630_v60 }
0x106f   : > { %7254 = vmatmul.msk.bf16.gmra.mxu2 %vm1049_vm5, %v11797_v42  ;;  %v4595_v42 = vpop.f32.mrf.mxu1  ;;  %8253 = vpow2.f32 %v4646_v33 }
0x1072   : > { %v4234_v54 = vpop.f32.mrf.mxu2  ;;  %v4601_v28 = vpop.xlane.xlu2 %4600 }
0x1073   : > { %v11988_v3 = vadd.f32 %v4234_v54, %v13634_v31  ;;  %v4631_v27 = vsub.f32 %v11860_v48, %v4601_v28 }
0x1075   : > { %4622 = vmax.xlane.f32.xlu2 %v11985_v6  ;;  %4268 = vmax.xlane.f32.xlu0 %v11988_v3 }
0x1077   : > { %v5258_v7 = vpop.f32.mrf.mxu1 }
0x107a   : > { %v4236_v58 = vpop.f32.mrf.mxu2  ;;  %v4603_v54 = vpop.xlane.xlu2 %4602 }
0x107b   : > { %v11996_v35 = vadd.f32 %v4236_v58, %v13635_v41  ;;  %v4648_v58 = vmul.f32 1.442695, %v4631_v27  ;;  %v4632_v4 = vsub.f32 %v11868_v37, %v4603_v54 }
0x107d   : > { %4624 = vmax.xlane.f32.xlu0 %v11993_v63  ;;  %4270 = vmax.xlane.f32.xlu1 %v11996_v35  ;;  %8255 = vpow2.f32 %v4648_v58  ;;  %v4650_v48 = vmul.f32 1.442695, %v4632_v4 }
0x107f   : > { %7255 = vmatmul.msk.bf16.gmra.mxu2 %vm1049_vm5, %v4846_v32  ;;  %v12011_v32 = vadd.f32 %v4595_v42, %v13638_v2  ;;  %v5260_v34 = vpop.f32.mrf.mxu1  ;;  %v12022_v42 = vpop.eup %8253  ;;  %v12029_v2 = vadd.f32 %v5258_v7, %v13620_v51  ;;  %8257 = vpow2.f32 %v4650_v48 }
0x1080   : > { %v12046_v48 = vadd.f32 %v5260_v34, %v13621_v43 }
0x1082   : > { %v4239_v11 = vpop.f32.mrf.mxu2 }
0x1083   : > { %v12005_v26 = vadd.f32 %v4239_v11, %v13637_v13  ;;  %v12034_v37 = vpop.eup %8255 }
0x1085   : > { %4272 = vmax.xlane.f32.xlu2 %v12005_v26  ;;  %4626 = vmax.xlane.f32.xlu1 %v12002_v30 }
0x1087   : > { %v5263_v28 = vpop.f32.mrf.mxu1 }
0x1088   : > { %v4245_v11 = vpop.xlane.xlu1 %4244 }
0x1089   : > { %v4276_v60 = vsub.f32 %v11877_v20, %v4245_v11  ;;  %v12041_v11 = vpop.eup %8257 }
0x108a   : > { %v4241_v44 = vpop.f32.mrf.mxu2 }
0x108b   : > { %v12014_v62 = vadd.f32 %v4241_v44, %v13639_v19  ;;  %v4292_v33 = vmul.f32 1.442695, %v4276_v60 }
0x108d   : > { %13640 = vst [vmem:[#allocation48_spill] sm:$0xff] %v12014_v62  ;;  %4274 = vmax.xlane.f32.xlu0 %v12014_v62  ;;  %4628 = vmax.xlane.f32.xlu2 %v12011_v32  ;;  %8259 = vpow2.f32 %v4292_v33  ;;  %v12052_v33 = vadd.f32 %v5263_v28, %v13622_v21 }
0x1090   : > { %v4247_v27 = vpop.xlane.xlu0 %4246 }
0x1091   : > { %v4277_v20 = vsub.f32 %v11888_v61, %v4247_v27  ;;  %v4607_v61 = vpop.xlane.xlu2 %4606 }
0x1092   : > { %v4920_v9 = vpop.f32.mrf.mxu2 }
0x1093   : > { %v12020_v56 = vadd.f32 %v4920_v9, %v13620_v51  ;;  %v4294_v54 = vmul.f32 1.442695, %v4277_v20  ;;  %v12043_v60 = vpop.eup %8259 }
0x1095   : > { %13641 = vst [vmem:[#allocation68_spill] sm:$0xff] %v12020_v56  ;;  %4678 = vadd.xlane.f32.xlu0 %v12022_v42  ;;  %4960 = vmax.xlane.f32.xlu1 %v12020_v56  ;;  %8261 = vpow2.f32 %v4294_v54  ;;  %v4634_v54 = vsub.f32 %v11880_v24, %v4607_v61 }
0x1097   : > { %v4654_v13 = vmul.f32 1.442695, %v4634_v54 }
0x1098   : > { %v4249_v19 = vpop.xlane.xlu1 %4248 }
0x1099   : > { %v4278_v7 = vsub.f32 %v11897_v23, %v4249_v19  ;;  %v4605_v23 = vpop.xlane.xlu0 %4604 }
0x109a   : > { %v4922_v44 = vpop.f32.mrf.mxu2 }
0x109b   : > { %v12032_v9 = vadd.f32 %v4922_v44, %v13621_v43  ;;  %v4296_v4 = vmul.f32 1.442695, %v4278_v7  ;;  %v5265_v44 = vpop.f32.mrf.mxu1  ;;  %v12054_v27 = vpop.eup %8261  ;;  %v4633_v7 = vsub.f32 %v11894_v0, %v4605_v23 }
0x109d   : > { %5298 = vmax.xlane.f32.xlu0 %v12029_v2  ;;  %4962 = vmax.xlane.f32.xlu2 %v12032_v9  ;;  %8263 = vpow2.f32 %v4296_v4  ;;  %v4611_v4 = vpop.xlane.xlu2 %4610  ;;  %v4652_v28 = vmul.f32 1.442695, %v4633_v7 }
0x109e   : > { %4680 = vadd.xlane.f32.xlu1 %v12034_v37 }
0x109f   : > { %8265 = vpow2.f32 %v4652_v28 }
0x10a0   : > { %v4251_v43 = vpop.xlane.xlu1 %4250  ;;  %8267 = vpow2.f32 %v4654_v13 }
0x10a1   : > { %v4279_v13 = vsub.f32 %v11908_v49, %v4251_v43 }
0x10a2   : > { %v4925_v58 = vpop.f32.mrf.mxu2 }
0x10a3   : > { %v12056_v20 = vpop.eup %8263  ;;  %v5268_v34 = vpop.f32.mrf.mxu1  ;;  %v12064_v56 = vadd.f32 %v4925_v58, %v13622_v21 }
0x10a5   : > { %4682 = vadd.xlane.f32.xlu2 %v12041_v11  ;;  %4324 = vadd.xlane.f32.xlu0 %v12043_v60 }
0x10a6   : > { %5300 = vmax.xlane.f32.xlu1 %v12046_v48 }
0x10a8   : > { %v4253_v51 = vpop.xlane.xlu0 %4252 }
0x10a9   : > { %v4280_v43 = vsub.f32 %v11914_v16, %v4253_v51 }
0x10aa   : > { %v4927_v19 = vpop.f32.mrf.mxu2 }
0x10ab   : > { %v12070_v62 = vadd.f32 %v4927_v19, %v13624_v22  ;;  %v5270_v24 = vpop.f32.mrf.mxu1  ;;  %v12079_v19 = vpop.eup %8265 }
0x10ac   : > { %v12077_v23 = vadd.f32 %v5270_v24, %v13626_v10  ;;  %v12081_v54 = vpop.eup %8267  ;;  %v4298_v24 = vmul.f32 1.442695, %v4279_v13 }
0x10ad   : > { %5302 = vmax.xlane.f32.xlu2 %v12052_v33  ;;  %4326 = vadd.xlane.f32.xlu0 %v12054_v27  ;;  %13642 = vst [vmem:[#allocation66_spill] sm:$0xff] %v12070_v62 }
0x10ae   : > { %4328 = vadd.xlane.f32.xlu1 %v12056_v20  ;;  %13643 = vst [vmem:[#allocation47_spill] sm:$0xff] %v12077_v23 }
0x10b0   : > { %v4255_v61 = vpop.xlane.xlu1 %4254 }
0x10b2   : > { %v4930_v31 = vpop.f32.mrf.mxu2 }
0x10b3   : > { %v12067_v41 = vadd.f32 %v4930_v31, %v13623_v55  ;;  %v4609_v31 = vpop.xlane.xlu0 %4608 }
0x10b5   : > { %4968 = vmax.xlane.f32.xlu2 %v12067_v41  ;;  %4964 = vmax.xlane.f32.xlu0 %v12064_v56 }
0x10b6   : > { %4966 = vmax.xlane.f32.xlu1 %v12070_v62 }
0x10b8   : > { %v4257_v0 = vpop.xlane.xlu2 %4256 }
0x10b9   : > { %v4282_v58 = vsub.f32 %v11933_v25, %v4257_v0  ;;  %v4281_v25 = vsub.f32 %v11923_v50, %v4255_v61  ;;  %v4636_v50 = vsub.f32 %v11900_v1, %v4611_v4  ;;  %v4300_v61 = vmul.f32 1.442695, %v4280_v43  ;;  %v5273_v1 = vpop.f32.mrf.mxu1 }
0x10ba   : > { %v12086_v28 = vpop.f32.mrf.mxu2 }
0x10bb   : > { %v4304_v7 = vmul.f32 1.442695, %v4282_v58  ;;  %v12093_v58 = vadd.f32 %v5265_v44, %v13624_v22  ;;  %v4302_v21 = vmul.f32 1.442695, %v4281_v25  ;;  %v4658_v25 = vmul.f32 1.442695, %v4636_v50 }
0x10bd   : > { %8269 = vpow2.f32 %v4304_v7  ;;  %5308 = vmax.xlane.f32.xlu2 %v12077_v23  ;;  %4684 = vadd.xlane.f32.xlu0 %v12079_v19  ;;  %v4613_v7 = vpop.xlane.xlu1 %4612  ;;  %v12096_v23 = vadd.f32 %v5268_v34, %v13623_v55 }
0x10be   : > { %4686 = vadd.xlane.f32.xlu1 %v12081_v54  ;;  %8271 = vpow2.f32 %v4298_v24  ;;  %v4637_v49 = vsub.f32 %v11930_v40, %v4613_v7 }
0x10bf   : > { %8273 = vpow2.f32 %v4302_v21  ;;  %v4635_v21 = vsub.f32 %v11920_v5, %v4609_v31 }
0x10c0   : > { %v4259_v62 = vpop.xlane.xlu0 %4258  ;;  %v4660_v13 = vmul.f32 1.442695, %v4637_v49  ;;  %8275 = vpow2.f32 %v4300_v61 }
0x10c1   : > { %v4656_v40 = vmul.f32 1.442695, %v4635_v21  ;;  %v5275_v50 = vpop.f32.mrf.mxu1  ;;  %v4283_v21 = vsub.f32 %v11940_v15, %v4259_v62  ;;  %v12141_v15 = vadd.f32 %v12086_v28, %v13626_v10 }
0x10c2   : > { %v4935_v44 = vpop.f32.mrf.mxu2  ;;  %8277 = vpow2.f32 %v4660_v13 }
0x10c3   : > { %v12090_v0 = vpop.eup %8269  ;;  %v12105_v34 = vadd.f32 %v4935_v44, %v13625_v59  ;;  %8279 = vpow2.f32 %v4658_v25  ;;  %v12126_v44 = vadd.f32 %v5275_v50, %v13627_v46  ;;  %v12131_v25 = vadd.f32 %v5273_v1, %v13625_v59 }
0x10c4   : > { %v12107_v51 = vpop.eup %8271  ;;  %8281 = vpow2.f32 %v4656_v40  ;;  %v4306_v50 = vmul.f32 1.442695, %v4283_v21 }
0x10c5   : > { %4336 = vadd.xlane.f32.xlu2 %v12090_v0  ;;  %5304 = vmax.xlane.f32.xlu0 %v12093_v58  ;;  %13644 = vst [vmem:[#allocation46_spill] sm:$0xff] %v12105_v34  ;;  %v12109_v22 = vpop.eup %8273 }
0x10c6   : > { %5306 = vmax.xlane.f32.xlu1 %v12096_v23  ;;  %v12115_v4 = vpop.eup %8275 }
0x10c8   : > { %v4261_v16 = vpop.xlane.xlu1 %4260  ;;  %v4615_v24 = vpop.xlane.xlu0 %4614 }
0x10c9   : > { %v12117_v7 = vpop.eup %8277  ;;  %v4284_v5 = vsub.f32 %v11949_v57, %v4261_v16 }
0x10ca   : > { %v12119_v43 = vpop.eup %8279  ;;  %v4937_v16 = vpop.f32.mrf.mxu2 }
0x10cb   : > { %v4308_v61 = vmul.f32 1.442695, %v4284_v5  ;;  %v12128_v13 = vpop.eup %8281  ;;  %v12144_v62 = vadd.f32 %v4937_v16, %v13627_v46 }
0x10cd   : > { %4972 = vmax.xlane.f32.xlu2 %v12105_v34  ;;  %4330 = vadd.xlane.f32.xlu0 %v12107_v51  ;;  %8283 = vpow2.f32 %v4308_v61 }
0x10ce   : > { %4334 = vadd.xlane.f32.xlu1 %v12109_v22  ;;  %8285 = vpow2.f32 %v4306_v50 }
0x10d0   : > { %v4617_v49 = vpop.xlane.xlu1 %4616  ;;  %v4263_v31 = vpop.xlane.xlu0 %4262 }
0x10d1   : > { %v4285_v40 = vsub.f32 %v11959_v53, %v4263_v31  ;;  %v4639_v57 = vsub.f32 %v11956_v14, %v4617_v49  ;;  %v4638_v31 = vsub.f32 %v11946_v12, %v4615_v24 }
0x10d3   : > { %v4310_v34 = vmul.f32 1.442695, %v4285_v40  ;;  %v4664_v59 = vmul.f32 1.442695, %v4639_v57  ;;  %v12146_v53 = vpop.eup %8283  ;;  %v4662_v49 = vmul.f32 1.442695, %v4638_v31 }
0x10d4   : > { %v12154_v57 = vpop.eup %8285 }
0x10d5   : > { %4332 = vadd.xlane.f32.xlu0 %v12115_v4  ;;  %4692 = vadd.xlane.f32.xlu2 %v12117_v7  ;;  %8287 = vpow2.f32 %v4310_v34 }
0x10d6   : > { %4690 = vadd.xlane.f32.xlu1 %v12119_v43  ;;  %8289 = vpow2.f32 %v4664_v59 }
0x10d7   : > { %8291 = vpow2.f32 %v4662_v49 }
0x10d8   : > { %v4619_v5 = vpop.xlane.xlu1 %4618  ;;  %v4621_v55 = vpop.xlane.xlu0 %4620 }
0x10d9   : > { %v4640_v14 = vsub.f32 %v11966_v18, %v4619_v5 }
0x10db   : > { %v4666_v21 = vmul.f32 1.442695, %v4640_v14  ;;  %v12156_v12 = vpop.eup %8287  ;;  %v12168_v14 = vpop.f32.mrf.mxu1 }
0x10dc   : > { %v12158_v50 = vpop.eup %8289 }
0x10dd   : > { %4688 = vadd.xlane.f32.xlu0 %v12128_v13  ;;  %5312 = vmax.xlane.f32.xlu2 %v12126_v44  ;;  %8293 = vpow2.f32 %v4666_v21  ;;  %v12166_v31 = vpop.eup %8291 }
0x10de   : > { %5310 = vmax.xlane.f32.xlu1 %v12131_v25 }
0x10e0   : > { %v4267_v1 = vpop.xlane.xlu2 %4266  ;;  %v4265_v40 = vpop.xlane.xlu1 %4264 }
0x10e1   : > { %v4287_v28 = vsub.f32 %v11978_v29, %v4267_v1  ;;  %v4286_v18 = vsub.f32 %v11975_v38, %v4265_v40 }
0x10e3   : > { %v4314_v16 = vmul.f32 1.442695, %v4287_v28  ;;  %v4312_v34 = vmul.f32 1.442695, %v4286_v18  ;;  %v12170_v49 = vpop.eup %8293 }
0x10e4   : > { %13645 = vst [vmem:[#allocation45_spill] sm:$0xff] %v12170_v49 }
0x10e5   : > { %4970 = vmax.xlane.f32.xlu0 %v12141_v15  ;;  %4974 = vmax.xlane.f32.xlu2 %v12144_v62  ;;  %8295 = vpow2.f32 %v4314_v16 }
0x10e6   : > { %4340 = vadd.xlane.f32.xlu1 %v12146_v53  ;;  %8297 = vpow2.f32 %v4312_v34 }
0x10e8   : > { %v4269_v61 = vpop.xlane.xlu0 %4268  ;;  %v4623_v24 = vpop.xlane.xlu2 %4622 }
0x10e9   : > { %v4288_v59 = vsub.f32 %v11988_v3, %v4269_v61  ;;  %v4642_v29 = vsub.f32 %v11985_v6, %v4623_v24  ;;  %v4641_v3 = vsub.f32 %v11969_v17, %v4621_v55  ;;  %v12185_v55 = vpop.f32.mrf.mxu1 }
0x10eb   : > { %v4316_v5 = vmul.f32 1.442695, %v4288_v59  ;;  %v4670_v38 = vmul.f32 1.442695, %v4642_v29  ;;  %v12172_v40 = vpop.eup %8295  ;;  %v4668_v61 = vmul.f32 1.442695, %v4641_v3 }
0x10ec   : > { %13646 = vst [vmem:[#allocation44_spill] sm:$0xff] %v12172_v40  ;;  %v12179_v16 = vpop.eup %8297 }
0x10ed   : > { %4338 = vadd.xlane.f32.xlu0 %v12154_v57  ;;  %4342 = vadd.xlane.f32.xlu2 %v12156_v12  ;;  %8299 = vpow2.f32 %v4316_v5  ;;  %v4940_v5 = vpop.f32.mrf.mxu2 }
0x10ee   : > { %4696 = vadd.xlane.f32.xlu1 %v12158_v50  ;;  %8301 = vpow2.f32 %v4670_v38 }
0x10ef   : > { %8303 = vpow2.f32 %v4668_v61  ;;  %v12201_v61 = vadd.f32 %v4940_v5, %v13628_v47 }
0x10f0   : > { %v4271_v1 = vpop.xlane.xlu1 %4270  ;;  %v4625_v28 = vpop.xlane.xlu0 %4624 }
0x10f1   : > { %v4643_v6 = vsub.f32 %v11993_v63, %v4625_v28  ;;  %v4289_v63 = vsub.f32 %v11996_v35, %v4271_v1  ;;  %13651 = vst [vmem:[#allocation41_spill] sm:$0xff] %v12201_v61  ;;  %v12206_v35 = vpop.f32.mrf.mxu1 }
0x10f3   : > { %v4672_v21 = vmul.f32 1.442695, %v4643_v6  ;;  %v12181_v24 = vpop.eup %8299  ;;  %v4318_v38 = vmul.f32 1.442695, %v4289_v63 }
0x10f4   : > { %13647 = vst [vmem:[#allocation56_spill] sm:$0xff] %v12181_v24  ;;  %v12183_v59 = vpop.eup %8301 }
0x10f5   : > { %4694 = vadd.xlane.f32.xlu0 %v12166_v31  ;;  %4698 = vadd.xlane.f32.xlu2 %v12170_v49  ;;  %13648 = vst [vmem:[#allocation64_spill] sm:$0xff] %v12183_v59  ;;  %8305 = vpow2.f32 %v4672_v21  ;;  %v12196_v28 = vpop.eup %8303 }
0x10f6   : > { %4346 = vadd.xlane.f32.xlu1 %v12172_v40  ;;  %13649 = vst [vmem:[#allocation43_spill] sm:$0xff] %v12196_v28  ;;  %8307 = vpow2.f32 %v4318_v38 }
0x10f8   : > { %v4627_v18 = vpop.xlane.xlu1 %4626  ;;  %v12187_v17 = vpop.xlane.xlu2 %4272 }
0x10f9   : > { %v4644_v29 = vsub.f32 %v12002_v30, %v4627_v18  ;;  %v5285_v38 = vpop.f32.mrf.mxu1 }
0x10fb   : > { %v4674_v3 = vmul.f32 1.442695, %v4644_v29  ;;  %v12198_v6 = vpop.eup %8305 }
0x10fc   : > { %13650 = vst [vmem:[#allocation42_spill] sm:$0xff] %v12198_v6  ;;  %v12212_v18 = vpop.eup %8307 }
0x10fd   : > { %4348 = vadd.xlane.f32.xlu2 %v12181_v24  ;;  %4344 = vadd.xlane.f32.xlu0 %v12179_v16  ;;  %8309 = vpow2.f32 %v4674_v3  ;;  %13652 = vst [vmem:[#allocation40_spill] sm:$0xff] %v12212_v18  ;;  %v12221_v3 = vadd.f32 %v5285_v38, %v13633_v36 }
0x10fe   : > { %4702 = vadd.xlane.f32.xlu1 %v12183_v59 }
0x10ff   : > { %13654 = vst [vmem:[#allocation38_spill] sm:$0xff] %v12221_v3 }
0x1100   : > { %v12194_v34 = vpop.xlane.xlu0 %4274  ;;  %v12208_v30 = vpop.xlane.xlu2 %4628 }
0x1103   : > { %v12214_v63 = vpop.eup %8309 }
0x1104   : > { %13653 = vst [vmem:[#allocation39_spill] sm:$0xff] %v12214_v63 }
0x1105   : > { %4704 = vadd.xlane.f32.xlu2 %v12198_v6  ;;  %4700 = vadd.xlane.f32.xlu0 %v12196_v28 }
0x1106   : > { %4976 = vmax.xlane.f32.xlu1 %v12201_v61 }
0x1108   : > { %v4679_v1 = vpop.xlane.xlu0 %4678  ;;  %v12210_v21 = vpop.xlane.xlu1 %4960 }
0x1109   : > { %8311 = vrcp.f32 %v4679_v1 }
0x110d   : > { %4350 = vadd.xlane.f32.xlu0 %v12212_v18 }
0x110e   : > { %4706 = vadd.xlane.f32.xlu1 %v12214_v63 }
0x110f   : > { %v8312_v46 = vpop.eup %8311 }
0x1110   : > { %v12218_v29 = vpop.xlane.xlu0 %5298  ;;  %v4963_v5 = vpop.xlane.xlu2 %4962  ;;  %v4726_v6 = vmul.f32 %v8312_v46, %v12022_v42 }
0x1111   : > { %v4681_v10 = vpop.xlane.xlu1 %4680 }
0x1112   : > { %8313 = vrcp.f32 %v4681_v10  ;;  %v4993_v10 = vsub.f32 %v12032_v9, %v4963_v5  ;;  %v12236_v9 = vpop.f32.mrf.mxu2 }
0x1114   : > { %v5010_v46 = vmul.f32 1.442695, %v4993_v10 }
0x1116   : > { %5320 = vmax.xlane.f32.xlu1 %v12221_v3 }
0x1118   : > { %v8314_v61 = vpop.eup %8313  ;;  %v4683_v59 = vpop.xlane.xlu2 %4682 }
0x1119   : > { %v4325_v24 = vpop.xlane.xlu0 %4324  ;;  %v4727_v63 = vmul.f32 %v8314_v61, %v12034_v37  ;;  %v5301_v1 = vpop.xlane.xlu1 %5300 }
0x111a   : > { %v5331_v18 = vsub.f32 %v12046_v48, %v5301_v1 }
0x111b   : > { %v4742_v49 = vpack.c.bf16 %v4727_v63, %v4726_v6 }
0x111c   : > { %v5348_v40 = vmul.f32 1.442695, %v5331_v18 }
0x111d   : > { %4782 = vmatmul.bf16.vlgmr.msrb.gmra.mxu3 %v4742_v49  ;;  %5450 = vrot.lane.b32.xlu2 %v11586_v52, %s8714_s4 }
0x111e   : > { %8315 = vpow2.f32 %v5348_v40 }
0x111f   : > { %8317 = vrcp.f32 %v4325_v24 }
0x1120   : > { %v5303_v38 = vpop.xlane.xlu2 %5302 }
0x1121   : > { %v4327_v3 = vpop.xlane.xlu0 %4326  ;;  %v4329_v28 = vpop.xlane.xlu1 %4328  ;;  %5452 = vrot.lane.b32.xlu0 %v11530_v8, %s8714_s4  ;;  %v5332_v52 = vsub.f32 %v12052_v33, %v5303_v38 }
0x1122   : > { %8319 = vrcp.f32 %v4327_v3  ;;  %v4945_v3 = vpop.f32.mrf.mxu2 }
0x1123   : > { %8321 = vpow2.f32 %v5010_v46  ;;  %v5350_v61 = vmul.f32 1.442695, %v5332_v52 }
0x1124   : > { %v12232_v42 = vpop.eup %8315 }
0x1125   : > { %v8318_v37 = vpop.eup %8317  ;;  %5380 = vadd.xlane.f32.xlu1 %v12232_v42  ;;  %8323 = vpow2.f32 %v5350_v61 }
0x1126   : > { %v4372_v49 = vmul.f32 %v8318_v37, %v12043_v60  ;;  %8325 = vrcp.f32 %v4683_v59 }
0x1128   : > { %v8320_v48 = vpop.eup %8319  ;;  %v12240_v24 = vpop.xlane.xlu2 %4968 }
0x1129   : > { %v4373_v40 = vmul.f32 %v8320_v48, %v12054_v27  ;;  %v4965_v6 = vpop.xlane.xlu0 %4964  ;;  %v12242_v8 = vpop.xlane.xlu1 %4966 }
0x112a   : > { %v12244_v63 = vpop.eup %8321  ;;  %v4994_v33 = vsub.f32 %v12064_v56, %v4965_v6 }
0x112b   : > { %v4388_v18 = vpack.c.bf16 %v4373_v40, %v4372_v49  ;;  %v12250_v10 = vpop.eup %8323 }
0x112c   : > { %v5012_v1 = vmul.f32 1.442695, %v4994_v33  ;;  %13655 = vst [vmem:[#allocation37_spill] sm:$0xff] %v12250_v10  ;;  %v8326_v38 = vpop.eup %8325  ;;  %v4290_v33 = vsub.f32 %v12005_v26, %v12187_v17 }
0x112d   : > { %4428 = vmatmul.bf16.vlgmr.msra.gmra.mxu0 %v4388_v18  ;;  %5042 = vadd.xlane.f32.xlu1 %v12244_v63  ;;  %v4728_v56 = vmul.f32 %v8326_v38, %v12041_v11  ;;  %v12262_v18 = vpop.f32.mrf.mxu2  ;;  %v4645_v38 = vsub.f32 %v12011_v32, %v12208_v30  ;;  %v12287_v30 = vadd.f32 %v12168_v14, %v13628_v47 }
0x1130   : > { %v12248_v5 = vpop.xlane.xlu2 %5308 }
0x1131   : > { %v4685_v60 = vpop.xlane.xlu0 %4684  ;;  %v4687_v27 = vpop.xlane.xlu1 %4686 }
0x1132   : > { %8327 = vrcp.f32 %v4685_v60 }
0x1133   : > { %8329 = vpow2.f32 %v5012_v1  ;;  %v4320_v1 = vmul.f32 1.442695, %v4290_v33 }
0x1135   : > { %5382 = vadd.xlane.f32.xlu1 %v12250_v10  ;;  %v12280_v17 = vpop.f32.mrf.mxu2 }
0x1138   : > { %v8328_v46 = vpop.eup %8327  ;;  %v12253_v37 = vpop.xlane.xlu2 %4336 }
0x1139   : > { %v5305_v52 = vpop.xlane.xlu0 %5304  ;;  %v4729_v59 = vmul.f32 %v8328_v46, %v12079_v19  ;;  %v12258_v49 = vpop.xlane.xlu1 %5306  ;;  %v12275_v46 = vadd.f32 %v12185_v55, %v13630_v39 }
0x113a   : > { %v5333_v48 = vsub.f32 %v12093_v58, %v5305_v52  ;;  %v12260_v61 = vpop.eup %8329  ;;  %v5330_v52 = vsub.f32 %v12029_v2, %v12218_v29 }
0x113b   : > { %v4743_v40 = vpack.c.bf16 %v4729_v59, %v4728_v56  ;;  %13656 = vst [vmem:[#allocation36_spill] sm:$0xff] %v12260_v61  ;;  %v4676_v56 = vmul.f32 1.442695, %v4645_v38 }
0x113c   : > { %v5352_v6 = vmul.f32 1.442695, %v5333_v48  ;;  %v5346_v59 = vmul.f32 1.442695, %v5330_v52 }
0x113d   : > { %4787 = vmatmul.bf16.gmra.mxu3 %v4743_v40  ;;  %5044 = vadd.xlane.f32.xlu1 %v12260_v61  ;;  %v12290_v40 = vadd.f32 %v4945_v3, %v13631_v45  ;;  %v4952_v14 = vpop.f32.mrf.mxu2 }
0x113e   : > { %8331 = vpow2.f32 %v5352_v6 }
0x113f   : > { %8333 = vrcp.f32 %v4329_v28 }
0x1140   : > { %v12267_v19 = vpop.xlane.xlu2 %4972 }
0x1141   : > { %v4331_v11 = vpop.xlane.xlu0 %4330  ;;  %v4335_v58 = vpop.xlane.xlu1 %4334 }
0x1142   : > { %8335 = vrcp.f32 %v4331_v11 }
0x1143   : > { %8337 = vpow2.f32 %v4320_v1 }
0x1144   : > { %v12269_v60 = vpop.eup %8331  ;;  %8339 = vpow2.f32 %v4676_v56 }
0x1145   : > { %v8334_v26 = vpop.eup %8333  ;;  %5384 = vadd.xlane.f32.xlu1 %v12269_v60  ;;  %8341 = vpow2.f32 %v5346_v59 }
0x1146   : > { %5316 = vmax.xlane.f32.xlu2 %v12275_v46  ;;  %v4374_v32 = vmul.f32 %v8334_v26, %v12056_v20  ;;  %v13657_v20 = vld [vmem:[#allocation48_spill] sm:$0xff]  ;;  %v13658_v26 = vld [vmem:[#allocation31_spill] sm:$0xff] }
0x1148   : > { %v8336_v28 = vpop.eup %8335  ;;  %v4693_v6 = vpop.xlane.xlu2 %4692 }
0x1149   : > { %v4333_v48 = vpop.xlane.xlu0 %4332  ;;  %v4375_v55 = vmul.f32 %v8336_v28, %v12107_v51  ;;  %v4691_v2 = vpop.xlane.xlu1 %4690  ;;  %v4291_v51 = vsub.f32 %v13657_v20, %v12194_v34  ;;  %v12304_v28 = vadd.f32 %v4952_v14, %v13658_v26  ;;  %v13659_v34 = vld [vmem:[#allocation68_spill] sm:$0xff] }
0x114a   : > { %v12293_v33 = vpop.eup %8337  ;;  %8343 = vrcp.f32 %v4333_v48 }
0x114b   : > { %v4389_v29 = vpack.c.bf16 %v4375_v55, %v4374_v32  ;;  %5314 = vmax.xlane.f32.xlu0 %v12287_v30  ;;  %8345 = vrcp.f32 %v4687_v27  ;;  %v12299_v11 = vpop.eup %8339  ;;  %v4322_v56 = vmul.f32 1.442695, %v4291_v51 }
0x114c   : > { %8347 = vrcp.f32 %v4335_v58  ;;  %v12301_v38 = vpop.eup %8341  ;;  %v4992_v58 = vsub.f32 %v13659_v34, %v12210_v21 }
0x114d   : > { %4433 = vmatmul.bf16.gmra.mxu0 %v4389_v29  ;;  %4980 = vmax.xlane.f32.xlu1 %v12290_v40 }
0x114e   : > { %4352 = vadd.xlane.f32.xlu2 %v12293_v33  ;;  %v5008_v34 = vmul.f32 1.442695, %v4992_v58 }
0x1150   : > { %v8344_v52 = vpop.eup %8343  ;;  %v12307_v48 = vpop.xlane.xlu2 %5312 }
0x1151   : > { %v4689_v3 = vpop.xlane.xlu0 %4688  ;;  %v5311_v1 = vpop.xlane.xlu1 %5310  ;;  %v4376_v32 = vmul.f32 %v8344_v52, %v12115_v4 }
0x1152   : > { %8349 = vrcp.f32 %v4689_v3  ;;  %v8346_v27 = vpop.eup %8345  ;;  %v12319_v3 = vadd.f32 %v12236_v9, %v13630_v39  ;;  %v12323_v52 = vpop.f32.mrf.mxu1  ;;  %v7436_v39 = vld [vmem:[%s13332_s13] sm:$0xff] (%p13188_p0) }
0x1153   : > { %5378 = vadd.xlane.f32.xlu0 %v12301_v38  ;;  %v8348_v59 = vpop.eup %8347  ;;  %8351 = vpow2.f32 %v4322_v56  ;;  %v4730_v51 = vmul.f32 %v8346_v27, %v12081_v54 }
0x1154   : > { %v4377_v20 = vmul.f32 %v8348_v59, %v12109_v22  ;;  %8353 = vrcp.f32 %v4693_v6  ;;  %v4996_v22 = vsub.f32 %v12067_v41, %v12240_v24  ;;  %v12336_v41 = vadd.f32 %v12206_v35, %v13631_v45 }
0x1155   : > { %4986 = vmax.xlane.f32.xlu1 %v12304_v28  ;;  %8355 = vrcp.f32 %v4691_v2 }
0x1156   : > { %4708 = vadd.xlane.f32.xlu2 %v12299_v11  ;;  %v4390_v61 = vpack.c.bf16 %v4377_v20, %v4376_v32 }
0x1158   : > { %v8350_v55 = vpop.eup %8349 }
0x1159   : > { %v4971_v29 = vpop.xlane.xlu0 %4970  ;;  %v4731_v14 = vmul.f32 %v8350_v55, %v12128_v13  ;;  %v4341_v21 = vpop.xlane.xlu1 %4340  ;;  %v5336_v13 = vsub.f32 %v12131_v25, %v5311_v1  ;;  %v13660_v25 = vld [vmem:[#allocation47_spill] sm:$0xff] }
0x115a   : > { %v4997_v47 = vsub.f32 %v12141_v15, %v4971_v29  ;;  %v12327_v54 = vpop.eup %8351  ;;  %v5016_v15 = vmul.f32 1.442695, %v4996_v22  ;;  %v5335_v1 = vsub.f32 %v13660_v25, %v12248_v5  ;;  %v5290_v27 = vpop.f32.mrf.mxu1 }
0x115b   : > { %v4744_v10 = vpack.c.bf16 %v4731_v14, %v4730_v51  ;;  %4978 = vmax.xlane.f32.xlu0 %v12319_v3  ;;  %v8354_v6 = vpop.eup %8353 }
0x115c   : > { %v5018_v4 = vmul.f32 1.442695, %v4997_v47  ;;  %v12332_v47 = vpop.xlane.xlu2 %4974  ;;  %v4733_v59 = vmul.f32 %v8354_v6, %v12117_v7  ;;  %v5356_v32 = vmul.f32 1.442695, %v5335_v1  ;;  %v12358_v7 = vadd.f32 %v12262_v18, %v13633_v36 }
0x115d   : > { %4438 = vmatmul.bf16.gmra.mxu0 %v4390_v61  ;;  %4792 = vmatmul.bf16.gmra.mxu3 %v4744_v10  ;;  %v8356_v10 = vpop.eup %8355  ;;  %v5358_v61 = vmul.f32 1.442695, %v5336_v13 }
0x115e   : > { %8357 = vpow2.f32 %v5018_v4  ;;  %4354 = vadd.xlane.f32.xlu2 %v12327_v54  ;;  %v4732_v35 = vmul.f32 %v8356_v10, %v12119_v43  ;;  %v13662_v10 = vld [vmem:[#allocation32_spill] sm:$0xff] }
0x115f   : > { %8359 = vpow2.f32 %v5008_v34 }
0x1160   : > { %8361 = vrcp.f32 %v12253_v37  ;;  %v4745_v4 = vpack.c.bf16 %v4733_v59, %v4732_v35 }
0x1161   : > { %v4339_v9 = vpop.xlane.xlu0 %4338  ;;  %v4697_v24 = vpop.xlane.xlu1 %4696 }
0x1162   : > { %8363 = vrcp.f32 %v4339_v9 }
0x1163   : > { %5318 = vmax.xlane.f32.xlu0 %v12336_v41  ;;  %8365 = vpow2.f32 %v5016_v15 }
0x1164   : > { %v12338_v2 = vpop.eup %8357  ;;  %8367 = vpow2.f32 %v5358_v61  ;;  %v4343_v20 = vpop.xlane.xlu2 %4342 }
0x1165   : > { %v12343_v37 = vpop.eup %8359  ;;  %5050 = vadd.xlane.f32.xlu1 %v12338_v2  ;;  %8369 = vpow2.f32 %v5356_v32 }
0x1166   : > { %v8362_v56 = vpop.eup %8361  ;;  %5040 = vadd.xlane.f32.xlu2 %v12343_v37  ;;  %8371 = vrcp.f32 %v4343_v20 }
0x1167   : > { %v4378_v5 = vmul.f32 %v8362_v56, %v12090_v0  ;;  %v13661_v0 = vld [vmem:[#allocation66_spill] sm:$0xff] }
0x1168   : > { %v8364_v58 = vpop.eup %8363  ;;  %v4995_v43 = vsub.f32 %v13661_v0, %v12242_v8  ;;  %v13663_v8 = vld [vmem:[#allocation30_spill] sm:$0xff] }
0x1169   : > { %v4695_v55 = vpop.xlane.xlu0 %4694  ;;  %v4379_v29 = vmul.f32 %v8364_v58, %v12154_v57  ;;  %v4347_v51 = vpop.xlane.xlu1 %4346 }
0x116a   : > { %v12351_v14 = vpop.eup %8365  ;;  %8373 = vrcp.f32 %v4695_v55  ;;  %v5293_v57 = vpop.f32.mrf.mxu1  ;;  %v5014_v25 = vmul.f32 1.442695, %v4995_v43  ;;  %v12385_v55 = vadd.f32 %v5290_v27, %v13658_v26 }
0x116b   : > { %v4391_v34 = vpack.c.bf16 %v4379_v29, %v4378_v5  ;;  %5048 = vadd.xlane.f32.xlu0 %v12351_v14  ;;  %v12354_v22 = vpop.eup %8367  ;;  %8375 = vrcp.f32 %v4341_v21  ;;  %v12369_v61 = vadd.f32 %v5293_v57, %v13662_v10  ;;  %v5334_v21 = vsub.f32 %v12096_v23, %v12258_v49 }
0x116c   : > { %8377 = vrcp.f32 %v4697_v24  ;;  %v12364_v15 = vpop.eup %8369  ;;  %v12376_v24 = vadd.f32 %v12323_v52, %v13663_v8  ;;  %v4699_v35 = vpop.xlane.xlu2 %4698  ;;  %v5337_v57 = vsub.f32 %v12126_v44, %v12307_v48 }
0x116d   : > { %4443 = vmatmul.bf16.gmra.mxu0 %v4391_v34  ;;  %4797 = vmatmul.bf16.gmra.mxu3 %v4745_v4  ;;  %v8372_v9 = vpop.eup %8371  ;;  %8379 = vpow2.f32 %v5014_v25  ;;  %v5354_v32 = vmul.f32 1.442695, %v5334_v21  ;;  %v13666_v21 = vld [vmem:[#allocation44_spill] sm:$0xff] }
0x116e   : > { %5390 = vadd.xlane.f32.xlu1 %v12354_v22  ;;  %4982 = vmax.xlane.f32.xlu2 %v12358_v7  ;;  %v4381_v59 = vmul.f32 %v8372_v9, %v12156_v12  ;;  %v4999_v12 = vsub.f32 %v12144_v62, %v12332_v47  ;;  %v12401_v62 = vadd.f32 %v12280_v17, %v13663_v8  ;;  %v5360_v25 = vmul.f32 1.442695, %v5337_v57 }
0x116f   : > { %8381 = vpow2.f32 %v5354_v32 }
0x1170   : > { %v8374_v6 = vpop.eup %8373  ;;  %v5022_v34 = vmul.f32 1.442695, %v4999_v12 }
0x1171   : > { %v4345_v13 = vpop.xlane.xlu0 %4344  ;;  %v12366_v18 = vpop.xlane.xlu1 %4702  ;;  %v4734_v58 = vmul.f32 %v8374_v6, %v12166_v31  ;;  %v13665_v6 = vld [vmem:[#allocation43_spill] sm:$0xff] }
0x1172   : > { %v8376_v1 = vpop.eup %8375  ;;  %8383 = vrcp.f32 %v4345_v13 }
0x1173   : > { %5388 = vadd.xlane.f32.xlu0 %v12364_v15  ;;  %v8378_v56 = vpop.eup %8377  ;;  %v4380_v23 = vmul.f32 %v8376_v1, %v12146_v53 }
0x1174   : > { %v4735_v49 = vmul.f32 %v8378_v56, %v12158_v50  ;;  %v12392_v53 = vpop.eup %8379  ;;  %v13664_v50 = vld [vmem:[#allocation46_spill] sm:$0xff]  ;;  %v4349_v20 = vpop.xlane.xlu2 %4348  ;;  %v13667_v56 = vld [vmem:[#allocation45_spill] sm:$0xff] }
0x1175   : > { %v4392_v5 = vpack.c.bf16 %v4381_v59, %v4380_v23  ;;  %v4998_v27 = vsub.f32 %v13664_v50, %v12267_v19  ;;  %v12397_v4 = vpop.eup %8381 }
0x1176   : > { %5326 = vmax.xlane.f32.xlu1 %v12369_v61  ;;  %5322 = vmax.xlane.f32.xlu2 %v12376_v24  ;;  %v4746_v29 = vpack.c.bf16 %v4735_v49, %v4734_v58 }
0x1177   : > { %v5020_v43 = vmul.f32 1.442695, %v4998_v27  ;;  %v13668_v27 = vld [vmem:[#allocation40_spill] sm:$0xff] }
0x1178   : > { %v8384_v47 = vpop.eup %8383 }
0x1179   : > { %v4701_v52 = vpop.xlane.xlu0 %4700  ;;  %v12390_v31 = vpop.xlane.xlu1 %4976  ;;  %v4382_v9 = vmul.f32 %v8384_v47, %v12179_v16  ;;  %v13669_v47 = vld [vmem:[#allocation42_spill] sm:$0xff] }
0x117a   : > { %8385 = vrcp.f32 %v4701_v52 }
0x117b   : > { %5324 = vmax.xlane.f32.xlu0 %v12385_v55  ;;  %8387 = vrcp.f32 %v4699_v35 }
0x117c   : > { %8389 = vrcp.f32 %v4347_v51  ;;  %v4705_v44 = vpop.xlane.xlu2 %4704 }
0x117d   : > { %4448 = vmatmul.bf16.gmra.mxu0 %v4392_v5  ;;  %4802 = vmatmul.bf16.gmra.mxu3 %v4746_v29  ;;  %8391 = vpow2.f32 %v5022_v34 }
0x117e   : > { %5046 = vadd.xlane.f32.xlu2 %v12392_v53  ;;  %8393 = vpow2.f32 %v5020_v43 }
0x117f   : > { %8395 = vpow2.f32 %v5360_v25  ;;  %v13672_v25 = vld [vmem:[#allocation33_spill] sm:$0xff] }
0x1180   : > { %v8386_v0 = vpop.eup %8385  ;;  %8397 = vrcp.f32 %v4705_v44 }
0x1181   : > { %v8388_v13 = vpop.eup %8387  ;;  %v12406_v51 = vpop.xlane.xlu1 %4706  ;;  %v4737_v17 = vmul.f32 %v8386_v0, %v13665_v6 }
0x1182   : > { %v8390_v19 = vpop.eup %8389  ;;  %v4736_v35 = vmul.f32 %v8388_v13, %v13667_v56  ;;  %v4351_v59 = vpop.xlane.xlu0 %4350  ;;  %v13671_v13 = vld [vmem:[#allocation64_spill] sm:$0xff] }
0x1183   : > { %4984 = vmax.xlane.f32.xlu0 %v12401_v62  ;;  %v4383_v1 = vmul.f32 %v8390_v19, %v13666_v21  ;;  %v12413_v48 = vpop.eup %8391  ;;  %8399 = vrcp.f32 %v4351_v59  ;;  %v13673_v21 = vmov %v13672_v25 }
0x1184   : > { %v4747_v32 = vpack.c.bf16 %v4737_v17, %v4736_v35  ;;  %v12416_v16 = vpop.eup %8393  ;;  %8401 = vrcp.f32 %v4349_v20  ;;  %v5451_v20 = vpop.permute.xlu2 %5450 }
0x1185   : > { %v4393_v58 = vpack.c.bf16 %v4383_v1, %v4382_v9  ;;  %8403 = vrcp.f32 %v12366_v18  ;;  %v12420_v49 = vpop.eup %8395  ;;  %v13670_v18 = vld [vmem:[#allocation56_spill] sm:$0xff]  ;;  %v5295_v9 = vpop.f32.mrf.mxu1 }
0x1186   : > { %5386 = vadd.xlane.f32.xlu2 %v12397_v4  ;;  %v8398_v52 = vpop.eup %8397  ;;  %v12430_v1 = vadd.f32 %v5295_v9, %v13672_v25  ;;  %v4955_v35 = vpop.f32.mrf.mxu2 }
0x1187   : > { %v4739_v0 = vmul.f32 %v8398_v52, %v13669_v47  ;;  %v12436_v44 = vadd.f32 %v4955_v35, %v13662_v10 }
0x1189   : > { %v5321_v23 = vpop.xlane.xlu1 %5320  ;;  %v8400_v5 = vpop.eup %8399 }
0x118a   : > { %v8402_v12 = vpop.eup %8401  ;;  %v4385_v34 = vmul.f32 %v8400_v5, %v13668_v27 }
0x118b   : > { %5054 = vadd.xlane.f32.xlu0 %v12413_v48  ;;  %v8404_v50 = vpop.eup %8403  ;;  %v4384_v57 = vmul.f32 %v8402_v12, %v13670_v18  ;;  %v13674_v12 = vld [vmem:[#allocation41_spill] sm:$0xff] }
0x118c   : > { %v4738_v19 = vmul.f32 %v8404_v50, %v13671_v13  ;;  %v5000_v50 = vsub.f32 %v13674_v12, %v12390_v31 }
0x118d   : > { %4453 = vmatmul.bf16.gmra.mxu0 %v4393_v58  ;;  %4807 = vmatmul.bf16.gmra.mxu3 %v4747_v32  ;;  %v4394_v6 = vpack.c.bf16 %v4385_v34, %v4384_v57 }
0x118e   : > { %5052 = vadd.xlane.f32.xlu2 %v12416_v16  ;;  %v4748_v17 = vpack.c.bf16 %v4739_v0, %v4738_v19  ;;  %v5024_v18 = vmul.f32 1.442695, %v5000_v50  ;;  %v4957_v35 = vpop.f32.mrf.mxu2 }
0x118f   : > { %v12468_v12 = vadd.f32 %v4957_v35, %v13673_v21 }
0x1193   : > { %v5453_v29 = vpop.permute.xlu0 %5452 }
0x1194   : > { %5480 = vmatpush.bf16.msra.mxu3 %v5453_v29 }
0x1196   : > { %5392 = vadd.xlane.f32.xlu2 %v12420_v49 }
0x1198   : > { %v12425_v43 = vpop.xlane.xlu1 %5380  ;;  %5481 = vmatpush.bf16.msra.mxu3 %v5451_v20 }
0x119d   : > { %4458 = vmatmul.bf16.gmra.mxu0 %v4394_v6  ;;  %4812 = vmatmul.bf16.gmra.mxu3 %v4748_v17 }
0x119e   : > { %5328 = vmax.xlane.f32.xlu2 %v12430_v1 }
0x11a0   : > { %v12433_v56 = vpop.xlane.xlu1 %5042  ;;  %v12444_v5 = vpop.f32.mrf.mxu3 }
0x11a6   : > { %4988 = vmax.xlane.f32.xlu2 %v12436_v44 }
0x11a8   : > { %v12439_v59 = vpop.xlane.xlu1 %5382  ;;  %v12453_v13 = vpop.f32.mrf.mxu3 }
0x11aa   : > { %v12470_v50 = vpop.f32.mrf.mxu0 }
0x11b0   : > { %v12441_v58 = vpop.xlane.xlu1 %5044 }
0x11b8   : > { %v12448_v27 = vpop.xlane.xlu1 %5384 }
0x11b9   : > { %v5317_v32 = vpop.xlane.xlu2 %5316 }
0x11ba   : > { %v5339_v52 = vsub.f32 %v12275_v46, %v5317_v32  ;;  %v13675_v46 = vld [vmem:[#allocation38_spill] sm:$0xff] }
0x11bb   : > { %v5341_v19 = vsub.f32 %v13675_v46, %v5321_v23 }
0x11bc   : > { %v5364_v29 = vmul.f32 1.442695, %v5339_v52 }
0x11bd   : > { %v5368_v17 = vmul.f32 1.442695, %v5341_v19 }
0x11be   : > { %8405 = vpow2.f32 %v5364_v29  ;;  %v5315_v34 = vpop.xlane.xlu0 %5314 }
0x11bf   : > { %v5338_v47 = vsub.f32 %v12287_v30, %v5315_v34 }
0x11c0   : > { %v4981_v9 = vpop.xlane.xlu1 %4980  ;;  %v12463_v32 = vpop.f32.mrf.mxu3 }
0x11c1   : > { %v5362_v0 = vmul.f32 1.442695, %v5338_v47  ;;  %v4353_v20 = vpop.xlane.xlu2 %4352  ;;  %v5002_v19 = vsub.f32 %v12290_v40, %v4981_v9 }
0x11c3   : > { %8407 = vpow2.f32 %v5362_v0  ;;  %v13676_v0 = vld [vmem:[#allocation39_spill] sm:$0xff]  ;;  %v5028_v35 = vmul.f32 1.442695, %v5002_v19 }
0x11c4   : > { %v12451_v57 = vpop.eup %8405  ;;  %8409 = vpow2.f32 %v5024_v18 }
0x11c5   : > { %5396 = vadd.xlane.f32.xlu1 %v12451_v57  ;;  %8411 = vrcp.f32 %v12406_v51 }
0x11c6   : > { %v5379_v31 = vpop.xlane.xlu0 %5378 }
0x11c9   : > { %v12458_v6 = vpop.eup %8407  ;;  %v4709_v30 = vpop.xlane.xlu2 %4708 }
0x11ca   : > { %8413 = vrcp.f32 %v4709_v30  ;;  %5394 = vadd.xlane.f32.xlu0 %v12458_v6  ;;  %v12461_v25 = vpop.eup %8409  ;;  %v12475_v30 = vpop.xlane.xlu1 %4986 }
0x11cb   : > { %v8412_v52 = vpop.eup %8411  ;;  %8415 = vpow2.f32 %v5368_v17 }
0x11cc   : > { %8417 = vrcp.f32 %v4353_v20  ;;  %v4740_v18 = vmul.f32 %v8412_v52, %v13676_v0 }
0x11cd   : > { %5056 = vadd.xlane.f32.xlu1 %v12461_v25 }
0x11ce   : > { %v4979_v23 = vpop.xlane.xlu0 %4978 }
0x11cf   : > { %v5001_v51 = vsub.f32 %v12319_v3, %v4979_v23  ;;  %v12481_v23 = vpop.f32.mrf.mxu3 }
0x11d0   : > { %v8414_v29 = vpop.eup %8413 }
0x11d1   : > { %v5026_v34 = vmul.f32 1.442695, %v5001_v51  ;;  %v4355_v47 = vpop.xlane.xlu2 %4354  ;;  %v4741_v46 = vmul.f32 %v8414_v29, %v12299_v11  ;;  %v12478_v17 = vpop.eup %8415 }
0x11d2   : > { %8419 = vrcp.f32 %v4355_v47  ;;  %4990 = vmax.xlane.f32.xlu0 %v12468_v12  ;;  %v8418_v20 = vpop.eup %8417 }
0x11d3   : > { %8421 = vpow2.f32 %v5026_v34  ;;  %v4749_v3 = vpack.c.bf16 %v4741_v46, %v4740_v18  ;;  %v4386_v34 = vmul.f32 %v8418_v20, %v12293_v33 }
0x11d4   : > { %8423 = vrcp.f32 %v5379_v31  ;;  %v12492_v31 = vpop.f32.mrf.mxu0 }
0x11d5   : > { %4817 = vmatmul.bf16.gmra.mxu3 %v4749_v3  ;;  %5400 = vadd.xlane.f32.xlu1 %v12478_v17  ;;  %8425 = vrcp.f32 %v12425_v43 }
0x11d6   : > { %v5319_v52 = vpop.xlane.xlu0 %5318  ;;  %8427 = vpow2.f32 %v5028_v35 }
0x11d7   : > { %v5340_v40 = vsub.f32 %v12336_v41, %v5319_v52 }
0x11d8   : > { %v8420_v11 = vpop.eup %8419  ;;  %v12489_v0 = vpop.xlane.xlu1 %5050 }
0x11d9   : > { %v12485_v9 = vpop.eup %8421  ;;  %v5366_v51 = vmul.f32 1.442695, %v5340_v40  ;;  %v5041_v29 = vpop.xlane.xlu2 %5040  ;;  %v4387_v47 = vmul.f32 %v8420_v11, %v12327_v54 }
0x11da   : > { %5058 = vadd.xlane.f32.xlu2 %v12485_v9  ;;  %v8424_v18 = vpop.eup %8423 }
0x11db   : > { %8429 = vpow2.f32 %v5366_v51  ;;  %v4395_v41 = vpack.c.bf16 %v4387_v47, %v4386_v34  ;;  %v8426_v43 = vpop.eup %8425  ;;  %v5426_v19 = vmul.f32 %v8424_v18, %v12301_v38 }
0x11dc   : > { %8431 = vrcp.f32 %v5041_v29  ;;  %v12499_v54 = vpop.eup %8427  ;;  %v5427_v20 = vmul.f32 %v8426_v43, %v12232_v42  ;;  %v12508_v11 = vpop.f32.mrf.mxu0 }
0x11dd   : > { %4463 = vmatmul.bf16.gmra.mxu0 %v4395_v41  ;;  %8433 = vrcp.f32 %v12433_v56 }
0x11de   : > { %v12494_v46 = vpop.xlane.xlu0 %5048  ;;  %v5442_v40 = vpack.c.bf16 %v5427_v20, %v5426_v19  ;;  %8435 = vrcp.f32 %v12448_v27 }
0x11e0   : > { %v12497_v33 = vpop.f32.mrf.mxu3 }
0x11e1   : > { %v12502_v3 = vpop.eup %8429  ;;  %v4983_v35 = vpop.xlane.xlu2 %4982 }
0x11e2   : > { %v5003_v52 = vsub.f32 %v12358_v7, %v4983_v35  ;;  %5398 = vadd.xlane.f32.xlu0 %v12502_v3  ;;  %5060 = vadd.xlane.f32.xlu2 %v12499_v54  ;;  %v8432_v38 = vpop.eup %8431  ;;  %v12510_v51 = vpop.xlane.xlu1 %5390 }
0x11e3   : > { %v8434_v56 = vpop.eup %8433  ;;  %v5088_v34 = vmul.f32 %v8432_v38, %v12343_v37 }
0x11e4   : > { %v5030_v29 = vmul.f32 1.442695, %v5003_v52  ;;  %v5089_v47 = vmul.f32 %v8434_v56, %v12244_v63  ;;  %v8436_v43 = vpop.eup %8435  ;;  %v12521_v35 = vpop.f32.mrf.mxu0  ;;  %v5005_v52 = vsub.f32 %v12304_v28, %v12475_v30 }
0x11e5   : > { %5482 = vmatmul.bf16.vlgmr.msra.gmra.mxu3 %v5442_v40  ;;  %v5429_v38 = vmul.f32 %v8436_v43, %v12269_v60 }
0x11e6   : > { %8437 = vpow2.f32 %v5030_v29  ;;  %v5389_v42 = vpop.xlane.xlu0 %5388  ;;  %v5104_v19 = vpack.c.bf16 %v5089_v47, %v5088_v34  ;;  %v13677_v47 = vld [vmem:[#allocation37_spill] sm:$0xff] }
0x11e7   : > { %8439 = vrcp.f32 %v12439_v59 }
0x11e8   : > { %v12514_v7 = vpop.f32.mrf.mxu3 }
0x11e9   : > { %v5323_v41 = vpop.xlane.xlu2 %5322 }
0x11ea   : > { %v5342_v18 = vsub.f32 %v12376_v24, %v5323_v41  ;;  %v5327_v59 = vpop.xlane.xlu1 %5326 }
0x11eb   : > { %v5344_v29 = vsub.f32 %v12369_v61, %v5327_v59 }
0x11ec   : > { %v12519_v20 = vpop.eup %8437  ;;  %v5370_v27 = vmul.f32 1.442695, %v5342_v18  ;;  %v5034_v18 = vmul.f32 1.442695, %v5005_v52 }
0x11ed   : > { %5062 = vadd.xlane.f32.xlu0 %v12519_v20  ;;  %5120 = vmatmul.bf16.vlgmr.msrb.gmra.mxu0 %v5104_v19  ;;  %v8440_v37 = vpop.eup %8439  ;;  %v5374_v19 = vmul.f32 1.442695, %v5344_v29 }
0x11ee   : > { %8441 = vpow2.f32 %v5370_v27  ;;  %v5325_v63 = vpop.xlane.xlu0 %5324  ;;  %v5428_v41 = vmul.f32 %v8440_v37, %v13677_v47  ;;  %v12539_v27 = vpop.f32.mrf.mxu0 }
0x11ef   : > { %v5343_v40 = vsub.f32 %v12385_v55, %v5325_v63  ;;  %8443 = vrcp.f32 %v12441_v58  ;;  %v13678_v63 = vld [vmem:[#allocation36_spill] sm:$0xff] }
0x11f0   : > { %v12527_v24 = vpop.f32.mrf.mxu3  ;;  %v5443_v28 = vpack.c.bf16 %v5429_v38, %v5428_v41 }
0x11f1   : > { %v5372_v56 = vmul.f32 1.442695, %v5343_v40  ;;  %v5047_v34 = vpop.xlane.xlu2 %5046 }
0x11f2   : > { %8445 = vrcp.f32 %v5047_v34 }
0x11f3   : > { %8447 = vpow2.f32 %v5372_v56 }
0x11f4   : > { %v12533_v30 = vpop.eup %8441  ;;  %8449 = vpow2.f32 %v5034_v18 }
0x11f5   : > { %5402 = vadd.xlane.f32.xlu1 %v12533_v30  ;;  %5487 = vmatmul.bf16.gmra.mxu3 %v5443_v28  ;;  %v8444_v55 = vpop.eup %8443  ;;  %8451 = vrcp.f32 %v5389_v42 }
0x11f6   : > { %v4985_v60 = vpop.xlane.xlu0 %4984  ;;  %8453 = vpow2.f32 %v5374_v19  ;;  %v5090_v40 = vmul.f32 %v8444_v55, %v13678_v63  ;;  %v12559_v19 = vpop.f32.mrf.mxu0 }
0x11f7   : > { %v5004_v58 = vsub.f32 %v12401_v62, %v4985_v60 }
0x11f8   : > { %v12537_v61 = vpop.f32.mrf.mxu3  ;;  %v8446_v43 = vpop.eup %8445 }
0x11f9   : > { %v12541_v37 = vpop.eup %8447  ;;  %v5032_v52 = vmul.f32 1.442695, %v5004_v58  ;;  %v5387_v59 = vpop.xlane.xlu2 %5386  ;;  %v5091_v38 = vmul.f32 %v8446_v43, %v12392_v53 }
0x11fa   : > { %8455 = vrcp.f32 %v5387_v59  ;;  %5404 = vadd.xlane.f32.xlu2 %v12541_v37  ;;  %v12546_v29 = vpop.eup %8449 }
0x11fb   : > { %8457 = vpow2.f32 %v5032_v52  ;;  %v5105_v62 = vpack.c.bf16 %v5091_v38, %v5090_v40  ;;  %v8452_v42 = vpop.eup %8451 }
0x11fc   : > { %8459 = vrcp.f32 %v12494_v46  ;;  %v12550_v56 = vpop.eup %8453  ;;  %v5431_v28 = vmul.f32 %v8452_v42, %v12364_v15 }
0x11fd   : > { %5125 = vmatmul.bf16.gmra.mxu0 %v5105_v62  ;;  %5066 = vadd.xlane.f32.xlu1 %v12546_v29  ;;  %8461 = vrcp.f32 %v12489_v0 }
0x11fe   : > { %8463 = vrcp.f32 %v12510_v51  ;;  %v12570_v59 = vpop.f32.mrf.mxu0  ;;  %v5055_v63 = vpop.xlane.xlu0 %5054 }
0x1200   : > { %v12552_v34 = vpop.f32.mrf.mxu3  ;;  %v8456_v47 = vpop.eup %8455 }
0x1201   : > { %v12555_v53 = vpop.eup %8457  ;;  %v5053_v41 = vpop.xlane.xlu2 %5052  ;;  %v5430_v18 = vmul.f32 %v8456_v47, %v12397_v4 }
0x1202   : > { %5064 = vadd.xlane.f32.xlu0 %v12555_v53  ;;  %5406 = vadd.xlane.f32.xlu2 %v12550_v56  ;;  %v8460_v55 = vpop.eup %8459 }
0x1203   : > { %v5444_v46 = vpack.c.bf16 %v5431_v28, %v5430_v18  ;;  %v8462_v60 = vpop.eup %8461  ;;  %v5092_v0 = vmul.f32 %v8460_v55, %v12351_v14 }
0x1204   : > { %v5093_v43 = vmul.f32 %v8462_v60, %v12338_v2  ;;  %v8464_v40 = vpop.eup %8463 }
0x1205   : > { %5492 = vmatmul.bf16.gmra.mxu3 %v5444_v46  ;;  %v5432_v51 = vmul.f32 %v8464_v40, %v12354_v22 }
0x1206   : > { %v5106_v52 = vpack.c.bf16 %v5093_v43, %v5092_v0  ;;  %v12577_v55 = vpop.f32.mrf.mxu0 }
0x1208   : > { %v12563_v58 = vpop.f32.mrf.mxu3 }
0x1209   : > { %v7801_v4 = vpack.i.bf16 %v12563_v58, %v12552_v34  ;;  %v5393_v15 = vpop.xlane.xlu2 %5392 }
0x120a   : > { %8465 = vrcp.f32 %v5393_v15 }
0x120b   : > { %8467 = vrcp.f32 %v5053_v41 }
0x120c   : > { %8469 = vrcp.f32 %v5055_v63 }
0x120d   : > { %5130 = vmatmul.bf16.gmra.mxu0 %v5106_v52 }
0x120e   : > { %v12591_v40 = vpop.f32.mrf.mxu0 }
0x1210   : > { %v12572_v38 = vpop.f32.mrf.mxu3  ;;  %v8466_v62 = vpop.eup %8465 }
0x1211   : > { %v5329_v14 = vpop.xlane.xlu2 %5328  ;;  %v5433_v42 = vmul.f32 %v8466_v62, %v12420_v49  ;;  %v8468_v18 = vpop.eup %8467 }
0x1212   : > { %v5345_v47 = vsub.f32 %v12430_v1, %v5329_v14  ;;  %v8470_v46 = vpop.eup %8469  ;;  %v5094_v60 = vmul.f32 %v8468_v18, %v12416_v16  ;;  %v7741_v14 = vpack.i.bf16 %v12453_v13, %v12444_v5 }
0x1213   : > { %v5445_v2 = vpack.c.bf16 %v5433_v42, %v5432_v51  ;;  %v5095_v49 = vmul.f32 %v8470_v46, %v12413_v48  ;;  %v7756_v42 = vpack.i.bf16 %v12481_v23, %v12463_v32 }
0x1214   : > { %v5376_v28 = vmul.f32 1.442695, %v5345_v47 }
0x1215   : > { %5497 = vmatmul.bf16.gmra.mxu3 %v5445_v2  ;;  %v5107_v15 = vpack.c.bf16 %v5095_v49, %v5094_v60 }
0x1216   : > { %8471 = vpow2.f32 %v5376_v28 }
0x1218   : > { %v12579_v41 = vpop.f32.mrf.mxu3 }
0x1219   : > { %v7816_v0 = vpack.i.bf16 %v12579_v41, %v12572_v38  ;;  %v4989_v22 = vpop.xlane.xlu2 %4988 }
0x121a   : > { %v5006_v1 = vsub.f32 %v12436_v44, %v4989_v22  ;;  %v12600_v44 = vpop.f32.mrf.mxu0 }
0x121c   : > { %v12586_v43 = vpop.eup %8471  ;;  %v5036_v52 = vmul.f32 1.442695, %v5006_v1 }
0x121d   : > { %5408 = vadd.xlane.f32.xlu0 %v12586_v43  ;;  %5135 = vmatmul.bf16.gmra.mxu0 %v5107_v15 }
0x121e   : > { %8473 = vpow2.f32 %v5036_v52 }
0x1220   : > { %v12589_v63 = vpop.f32.mrf.mxu3 }
0x1222   : > { %v12605_v51 = vpop.f32.mrf.mxu0 }
0x1224   : > { %v12593_v16 = vpop.eup %8473 }
0x1225   : > { %5068 = vadd.xlane.f32.xlu1 %v12593_v16 }
0x1228   : > { %v12596_v62 = vpop.f32.mrf.mxu3 }
0x122a   : > { %v12610_v18 = vpop.f32.mrf.mxu0 }
0x1231   : > { %7742 = vrot.lane.b32.xlu0 %v7741_v14, %s8715_s1 }
0x1232   : > { %v12615_v32 = vpop.f32.mrf.mxu0 }
0x1238   : > { %v5397_v47 = vpop.xlane.xlu1 %5396 }
0x1239   : > { %7757 = vrot.lane.b32.xlu0 %v7756_v42, %s8715_s1  ;;  %8475 = vrcp.f32 %v5397_v47 }
0x123a   : > { %v12620_v42 = vpop.f32.mrf.mxu0 }
0x123d   : > { %v5395_v2 = vpop.xlane.xlu0 %5394 }
0x123e   : > { %8477 = vrcp.f32 %v5395_v2 }
0x123f   : > { %v8476_v28 = vpop.eup %8475 }
0x1240   : > { %v5435_v13 = vmul.f32 %v8476_v28, %v12451_v57  ;;  %v5057_v49 = vpop.xlane.xlu1 %5056 }
0x1244   : > { %v8478_v46 = vpop.eup %8477 }
0x1245   : > { %v4991_v60 = vpop.xlane.xlu0 %4990  ;;  %v5434_v5 = vmul.f32 %v8478_v46, %v12458_v6 }
0x1246   : > { %v5007_v22 = vsub.f32 %v12468_v12, %v4991_v60 }
0x1247   : > { %v5446_v1 = vpack.c.bf16 %v5435_v13, %v5434_v5 }
0x1248   : > { %v5038_v23 = vmul.f32 1.442695, %v5007_v22  ;;  %v5401_v14 = vpop.xlane.xlu1 %5400 }
0x1249   : > { %5502 = vmatmul.bf16.gmra.mxu3 %v5446_v1 }
0x124a   : > { %8479 = vpow2.f32 %v5038_v23 }
0x124b   : > { %8481 = vrcp.f32 %v5057_v49 }
0x124d   : > { %v5059_v15 = vpop.xlane.xlu2 %5058 }
0x124e   : > { %8483 = vrcp.f32 %v5059_v15 }
0x124f   : > { %8485 = vrcp.f32 %v5401_v14 }
0x1250   : > { %v12617_v52 = vpop.eup %8479 }
0x1251   : > { %5070 = vadd.xlane.f32.xlu2 %v12617_v52  ;;  %v8482_v6 = vpop.eup %8481 }
0x1252   : > { %v5096_v47 = vmul.f32 %v8482_v6, %v12461_v25 }
0x1254   : > { %v8484_v57 = vpop.eup %8483 }
0x1255   : > { %v5399_v12 = vpop.xlane.xlu0 %5398  ;;  %v5097_v2 = vmul.f32 %v8484_v57, %v12485_v9  ;;  %v8486_v60 = vpop.eup %8485 }
0x1256   : > { %8487 = vrcp.f32 %v5399_v12  ;;  %v5061_v22 = vpop.xlane.xlu2 %5060  ;;  %v5437_v1 = vmul.f32 %v8486_v60, %v12478_v17 }
0x1257   : > { %v5108_v28 = vpack.c.bf16 %v5097_v2, %v5096_v47  ;;  %8489 = vrcp.f32 %v5061_v22 }
0x1258   : > { %v12624_v46 = vpop.f32.mrf.mxu3 }
0x1259   : > { %5140 = vmatmul.bf16.gmra.mxu0 %v5108_v28 }
0x125a   : > { %v12626_v5 = vpop.f32.mrf.mxu0 }
0x125c   : > { %v8488_v13 = vpop.eup %8487 }
0x125d   : > { %v5436_v49 = vmul.f32 %v8488_v13, %v12502_v3  ;;  %v8490_v6 = vpop.eup %8489 }
0x125e   : > { %v5098_v3 = vmul.f32 %v8490_v6, %v12499_v54 }
0x125f   : > { %v5447_v23 = vpack.c.bf16 %v5437_v1, %v5436_v49 }
0x1260   : > { %v5063_v15 = vpop.xlane.xlu0 %5062  ;;  %v12630_v25 = vpop.f32.mrf.mxu3 }
0x1261   : > { %8491 = vrcp.f32 %v5063_v15  ;;  %5507 = vmatmul.bf16.gmra.mxu3 %v5447_v23 }
0x1262   : > { %v12634_v14 = vpop.f32.mrf.mxu0 }
0x1267   : > { %v8492_v57 = vpop.eup %8491 }
0x1268   : > { %v5483_v12 = vpop.f32.mrf.mxu3  ;;  %v5403_v47 = vpop.xlane.xlu1 %5402  ;;  %v5099_v17 = vmul.f32 %v8492_v57, %v12519_v20 }
0x1269   : > { %8493 = vrcp.f32 %v5403_v47 }
0x126a   : > { %v5121_v2 = vpop.f32.mrf.mxu0  ;;  %v5109_v28 = vpack.c.bf16 %v5099_v17, %v5098_v3 }
0x126c   : > { %5145 = vmatmul.bf16.gmra.mxu0 %v5109_v28 }
0x126d   : > { %v5405_v60 = vpop.xlane.xlu2 %5404 }
0x126e   : > { %8495 = vrcp.f32 %v5405_v60 }
0x126f   : > { %v8494_v1 = vpop.eup %8493 }
0x1270   : > { %v5485_v13 = vpop.f32.mrf.mxu3  ;;  %v5067_v49 = vpop.xlane.xlu1 %5066  ;;  %v5438_v54 = vmul.f32 %v8494_v1, %v12533_v30 }
0x1271   : > { %v7751_v22 = vpack.i.bf16 %v5485_v13, %v5483_v12  ;;  %8497 = vrcp.f32 %v5067_v49  ;;  %v7771_v12 = vpack.i.bf16 %v12514_v7, %v12497_v33  ;;  %v7427_v13 = vld [vmem:[%s10714_s27 + $0x98] sm:$0xff] }
0x1272   : > { %v5123_v23 = vpop.f32.mrf.mxu0  ;;  %5823 = vmatpush.bf16.msra.mxu2 %v7427_v13 }
0x1273   : > { %v7746_v15 = vpack.i.bf16 %v5123_v23, %v5121_v2  ;;  %7752 = vrot.lane.b32.xlu2 %v7751_v22, %s8717_s23 }
0x1274   : > { %v8496_v9 = vpop.eup %8495 }
0x1275   : > { %v5065_v48 = vpop.xlane.xlu0 %5064  ;;  %7747 = vrot.lane.b32.xlu1 %v7746_v15, %s8716_s22  ;;  %v5439_v20 = vmul.f32 %v8496_v9, %v12541_v37  ;;  %v7786_v37 = vpack.i.bf16 %v12537_v61, %v12527_v24 }
0x1276   : > { %8499 = vrcp.f32 %v5065_v48 }
0x1277   : > { %v5448_v6 = vpack.c.bf16 %v5439_v20, %v5438_v54  ;;  %v8498_v47 = vpop.eup %8497 }
0x1278   : > { %v5488_v57 = vpop.f32.mrf.mxu3  ;;  %v5101_v28 = vmul.f32 %v8498_v47, %v12546_v29  ;;  %v5407_v29 = vpop.xlane.xlu2 %5406 }
0x1279   : > { %5512 = vmatmul.bf16.gmra.mxu3 %v5448_v6  ;;  %8501 = vrcp.f32 %v5407_v29  ;;  %v13679_v6 = vpack.i.bf16 %v12596_v62, %v12589_v63 }
0x127a   : > { %v5126_v3 = vpop.f32.mrf.mxu0 }
0x127b   : > { %7772 = vrot.lane.b32.xlu2 %v7771_v12, %s8715_s1  ;;  %v7425_v12 = vld [vmem:[%s10714_s27 + $0x88] sm:$0xff] }
0x127c   : > { %v8500_v17 = vpop.eup %8499 }
0x127d   : > { %v5100_v2 = vmul.f32 %v8500_v17, %v12555_v53  ;;  %v7424_v17 = vld [vmem:[%s10714_s27 + $0x80] sm:$0xff] }
0x127f   : > { %v5110_v30 = vpack.c.bf16 %v5101_v28, %v5100_v2  ;;  %v8502_v23 = vpop.eup %8501 }
0x1280   : > { %v5490_v60 = vpop.f32.mrf.mxu3 }
0x1281   : > { %v7766_v48 = vpack.i.bf16 %v5490_v60, %v5488_v57  ;;  %5150 = vmatmul.bf16.gmra.mxu0 %v5110_v30 }
0x1282   : > { %v5128_v9 = vpop.f32.mrf.mxu0 }
0x1283   : > { %v7761_v33 = vpack.i.bf16 %v5128_v9, %v5126_v3  ;;  %7767 = vrot.lane.b32.xlu0 %v7766_v48, %s8717_s23  ;;  %7787 = vrot.lane.b32.xlu2 %v7786_v37, %s8715_s1 }
0x1285   : > { %7762 = vrot.lane.b32.xlu1 %v7761_v33, %s8716_s22 }
0x1288   : > { %v5493_v7 = vpop.f32.mrf.mxu3 }
0x128a   : > { %v5131_v53 = vpop.f32.mrf.mxu0 }
0x128b   : > { %7802 = vrot.lane.b32.xlu2 %v7801_v4, %s8715_s1  ;;  %v5440_v4 = vmul.f32 %v8502_v23, %v12550_v56  ;;  %v13680_v56 = vpack.i.bf16 %v12630_v25, %v12624_v46 }
0x1290   : > { %v5409_v24 = vpop.xlane.xlu0 %5408  ;;  %v5495_v61 = vpop.f32.mrf.mxu3 }
0x1291   : > { %8503 = vrcp.f32 %v5409_v24  ;;  %v7781_v22 = vpack.i.bf16 %v5495_v61, %v5493_v7 }
0x1292   : > { %v5133_v49 = vpop.f32.mrf.mxu0 }
0x1293   : > { %v7776_v1 = vpack.i.bf16 %v5133_v49, %v5131_v53  ;;  %7782 = vrot.lane.b32.xlu0 %v7781_v22, %s8717_s23  ;;  %7817 = vrot.lane.b32.xlu2 %v7816_v0, %s8715_s1 }
0x1295   : > { %7777 = vrot.lane.b32.xlu1 %v7776_v1, %s8716_s22 }
0x1297   : > { %v8504_v34 = vpop.eup %8503 }
0x1298   : > { %v5498_v58 = vpop.f32.mrf.mxu3  ;;  %v5441_v15 = vmul.f32 %v8504_v34, %v12586_v43  ;;  %v7426_v43 = vld [vmem:[%s10714_s27 + $0x90] sm:$0xff]  ;;  %v5069_v63 = vpop.xlane.xlu1 %5068 }
0x1299   : > { %5824 = vmatpush.bf16.msra.mxu2 %v7426_v43  ;;  %8505 = vrcp.f32 %v5069_v63 }
0x129a   : > { %v5136_v54 = vpop.f32.mrf.mxu0  ;;  %v5449_v20 = vpack.c.bf16 %v5441_v15, %v5440_v4 }
0x129b   : > { %7832 = vrot.lane.b32.xlu2 %v13679_v6, %s8715_s1 }
0x129c   : > { %5517 = vmatmul.bf16.gmra.mxu3 %v5449_v20 }
0x129d   : > { %5825 = vmatpush.bf16.msra.mxu2 %v7425_v12 }
0x129f   : > { %v8506_v47 = vpop.eup %8505 }
0x12a0   : > { %v5500_v38 = vpop.f32.mrf.mxu3  ;;  %v5102_v28 = vmul.f32 %v8506_v47, %v12593_v16 }
0x12a1   : > { %v7796_v41 = vpack.i.bf16 %v5500_v38, %v5498_v58  ;;  %5826 = vmatpush.bf16.msra.mxu2 %v7424_v17 }
0x12a2   : > { %v5138_v0 = vpop.f32.mrf.mxu0 }
0x12a3   : > { %v7791_v57 = vpack.i.bf16 %v5138_v0, %v5136_v54  ;;  %7797 = vrot.lane.b32.xlu0 %v7796_v41, %s8717_s23  ;;  %7847 = vrot.lane.b32.xlu2 %v13680_v56, %s8715_s1  ;;  %v7743_v33 = vpop.permute.xlu0 %7742 }
0x12a4   : > { %v7745_v53 = vunpack.i.h.bf16 %v7743_v33  ;;  %v7744_v29 = vunpack.i.l.bf16 %v7743_v33 }
0x12a5   : > { %7792 = vrot.lane.b32.xlu1 %v7791_v57, %s8716_s22 }
0x12a6   : > { %v5716_v61 = vsel %vm1049_vm5, %v12492_v31, %v7745_v53  ;;  %v5715_v22 = vsel %vm1049_vm5, %v12470_v50, %v7744_v29 }
0x12ab   : > { %v7758_v38 = vpop.permute.xlu0 %7757 }
0x12ac   : > { %v7760_v41 = vunpack.i.h.bf16 %v7758_v38  ;;  %v7759_v0 = vunpack.i.l.bf16 %v7758_v38 }
0x12ae   : > { %v5717_v12 = vsel %vm1049_vm5, %v12508_v11, %v7759_v0 }
0x12c4   : > { %v5071_v62 = vpop.xlane.xlu2 %5070 }
0x12c5   : > { %8507 = vrcp.f32 %v5071_v62  ;;  %v5718_v62 = vsel %vm1049_vm5, %v12521_v35, %v7760_v41 }
0x12cb   : > { %v8508_v3 = vpop.eup %8507 }
0x12cc   : > { %v5503_v2 = vpop.f32.mrf.mxu3  ;;  %v5103_v30 = vmul.f32 %v8508_v3, %v12617_v52 }
0x12cd   : > { %v7753_v13 = vpop.permute.xlu2 %7752 }
0x12ce   : > { %v5111_v46 = vpack.c.bf16 %v5103_v30, %v5102_v28  ;;  %v7755_v49 = vunpack.i.h.bf16 %v7753_v13  ;;  %v7754_v1 = vunpack.i.l.bf16 %v7753_v13 }
0x12d0   : > { %5155 = vmatmul.bf16.gmra.mxu0 %v5111_v46 }
0x12d4   : > { %v5505_v25 = vpop.f32.mrf.mxu3 }
0x12d5   : > { %v7811_v60 = vpack.i.bf16 %v5505_v25, %v5503_v2 }
0x12d6   : > { %v5141_v37 = vpop.f32.mrf.mxu0 }
0x12d7   : > { %7812 = vrot.lane.b32.xlu0 %v7811_v60, %s8717_s23 }
0x12de   : > { %v5143_v48 = vpop.f32.mrf.mxu0 }
0x12df   : > { %v7806_v9 = vpack.i.bf16 %v5143_v48, %v5141_v37  ;;  %v7773_v37 = vpop.permute.xlu2 %7772 }
0x12e0   : > { %v7775_v48 = vunpack.i.h.bf16 %v7773_v37 }
0x12e1   : > { %7807 = vrot.lane.b32.xlu1 %v7806_v9, %s8716_s22  ;;  %v7774_v9 = vunpack.i.l.bf16 %v7773_v37 }
0x12e4   : > { %v5508_v7 = vpop.f32.mrf.mxu3 }
0x12e7   : > { %v7748_v16 = vpop.permute.xlu1 %7747 }
0x12e8   : > { %v7750_v24 = vunpack.i.h.bf16 %v7748_v16  ;;  %v7749_v52 = vunpack.i.l.bf16 %v7748_v16 }
0x12e9   : > { %v5146_v23 = vpop.f32.mrf.mxu0 }
0x12ea   : > { %v5732_v34 = vsel %vm2634_vm6, %v5716_v61, %v7750_v24  ;;  %v5731_v58 = vsel %vm2634_vm6, %v5715_v22, %v7749_v52  ;;  %v5720_v24 = vsel %vm1049_vm5, %v12559_v19, %v7775_v48  ;;  %v5719_v52 = vsel %vm1049_vm5, %v12539_v27, %v7774_v9 }
0x12eb   : > { %v5748_v4 = vsel %vm2651_vm7, %v5732_v34, %v7755_v49  ;;  %v5747_v15 = vsel %vm2651_vm7, %v5731_v58, %v7754_v1 }
0x12ec   : > { %v5763_v54 = vpack.c.bf16 %v5748_v4, %v5747_v15  ;;  %v5510_v20 = vpop.f32.mrf.mxu3  ;;  %v7788_v4 = vpop.permute.xlu2 %7787 }
0x12ed   : > { %v7826_v6 = vpack.i.bf16 %v5510_v20, %v5508_v7  ;;  %v7790_v19 = vunpack.i.h.bf16 %v7788_v4  ;;  %v7789_v15 = vunpack.i.l.bf16 %v7788_v4 }
0x12ee   : > { %7280 = vmatmul.msk.bf16.vlgmr.msra.gmra.mxu2 %vm482_vm0, %v5763_v54 }
0x12ef   : > { %7827 = vrot.lane.b32.xlu0 %v7826_v6, %s8717_s23  ;;  %v5722_v38 = vsel %vm1049_vm5, %v12577_v55, %v7790_v19 }
0x12f1   : > { %v5148_v50 = vpop.f32.mrf.mxu0 }
0x12f2   : > { %v7821_v31 = vpack.i.bf16 %v5148_v50, %v5146_v23  ;;  %v5721_v50 = vsel %vm1049_vm5, %v12570_v59, %v7789_v15 }
0x12f4   : > { %7822 = vrot.lane.b32.xlu1 %v7821_v31, %s8716_s22  ;;  %v7803_v59 = vpop.permute.xlu2 %7802 }
0x12f5   : > { %v7768_v57 = vpop.permute.xlu0 %7767 }
0x12f6   : > { %v7770_v47 = vunpack.i.h.bf16 %v7768_v57  ;;  %v7769_v3 = vunpack.i.l.bf16 %v7768_v57 }
0x12f7   : > { %v7763_v56 = vpop.permute.xlu1 %7762 }
0x12f8   : > { %v7765_v43 = vunpack.i.h.bf16 %v7763_v56  ;;  %v7764_v63 = vunpack.i.l.bf16 %v7763_v56 }
0x12fa   : > { %v5734_v17 = vsel %vm2634_vm6, %v5718_v62, %v7765_v43  ;;  %v5733_v2 = vsel %vm2634_vm6, %v5717_v12, %v7764_v63 }
0x12fb   : > { %v5749_v28 = vsel %vm2651_vm7, %v5733_v2, %v7769_v3  ;;  %v5750_v30 = vsel %vm2651_vm7, %v5734_v17, %v7770_v47  ;;  %v7805_v3 = vunpack.i.h.bf16 %v7803_v59  ;;  %v7804_v17 = vunpack.i.l.bf16 %v7803_v59 }
0x12fc   : > { %v5513_v46 = vpop.f32.mrf.mxu3  ;;  %v5764_v25 = vpack.c.bf16 %v5750_v30, %v5749_v28 }
0x12fe   : > { %v5151_v60 = vpop.f32.mrf.mxu0  ;;  %7281 = vmatmul.msk.bf16.gmra.mxu2 %vm482_vm0, %v5764_v25  ;;  %v5724_v25 = vsel %vm1049_vm5, %v12600_v44, %v7805_v3  ;;  %v7818_v44 = vpop.permute.xlu2 %7817 }
0x1304   : > { %v5515_v35 = vpop.f32.mrf.mxu3 }
0x1305   : > { %v7841_v11 = vpack.i.bf16 %v5515_v35, %v5513_v46  ;;  %v7783_v33 = vpop.permute.xlu0 %7782 }
0x1306   : > { %v5153_v7 = vpop.f32.mrf.mxu0  ;;  %v7785_v61 = vunpack.i.h.bf16 %v7783_v33  ;;  %v7784_v22 = vunpack.i.l.bf16 %v7783_v33 }
0x1307   : > { %v7836_v53 = vpack.i.bf16 %v5153_v7, %v5151_v60  ;;  %7842 = vrot.lane.b32.xlu0 %v7841_v11, %s8717_s23  ;;  %v7778_v29 = vpop.permute.xlu1 %7777  ;;  %v5723_v60 = vsel %vm1049_vm5, %v12591_v40, %v7804_v17  ;;  %v7819_v40 = vunpack.i.l.bf16 %v7818_v44 }
0x1308   : > { %v7780_v13 = vunpack.i.h.bf16 %v7778_v29  ;;  %v7779_v16 = vunpack.i.l.bf16 %v7778_v29 }
0x1309   : > { %7837 = vrot.lane.b32.xlu1 %v7836_v53, %s8716_s22 }
0x130a   : > { %v5736_v49 = vsel %vm2634_vm6, %v5720_v24, %v7780_v13  ;;  %v5735_v1 = vsel %vm2634_vm6, %v5719_v52, %v7779_v16  ;;  %v7820_v13 = vunpack.i.h.bf16 %v7818_v44 }
0x130b   : > { %v5751_v23 = vsel %vm2651_vm7, %v5735_v1, %v7784_v22  ;;  %v5752_v34 = vsel %vm2651_vm7, %v5736_v49, %v7785_v61  ;;  %v5725_v49 = vsel %vm1049_vm5, %v12605_v51, %v7819_v40 }
0x130c   : > { %v5765_v58 = vpack.c.bf16 %v5752_v34, %v5751_v23  ;;  %v5726_v22 = vsel %vm1049_vm5, %v12610_v18, %v7820_v13  ;;  %v13681_v18 = vld [vmem:[#allocation63_spill] sm:$0xff] }
0x130e   : > { %7282 = vmatmul.msk.bf16.gmra.mxu2 %vm482_vm0, %v5765_v58 }
0x1315   : > { %v7798_v54 = vpop.permute.xlu0 %7797 }
0x1316   : > { %v7800_v31 = vunpack.i.h.bf16 %v7798_v54  ;;  %v7799_v41 = vunpack.i.l.bf16 %v7798_v54  ;;  %v12743_v54 = vld [vmem:[%s10743_s29 + $0x4] ss:$0 sm:$0xff] }
0x1317   : > { %v7793_v27 = vpop.permute.xlu1 %7792 }
0x1318   : > { %v7795_v20 = vunpack.i.h.bf16 %v7793_v27  ;;  %v7794_v6 = vunpack.i.l.bf16 %v7793_v27 }
0x131a   : > { %v5738_v0 = vsel %vm2634_vm6, %v5722_v38, %v7795_v20  ;;  %v5737_v57 = vsel %vm2634_vm6, %v5721_v50, %v7794_v6  ;;  %v7833_v6 = vpop.permute.xlu2 %7832 }
0x131b   : > { %v5753_v56 = vsel %vm2651_vm7, %v5737_v57, %v7799_v41  ;;  %v5754_v43 = vsel %vm2651_vm7, %v5738_v0, %v7800_v31  ;;  %v7835_v50 = vunpack.i.h.bf16 %v7833_v6  ;;  %v7834_v31 = vunpack.i.l.bf16 %v7833_v6  ;;  %v13682_v57 = vld [vmem:[#allocation60_spill] sm:$0xff] }
0x131c   : > { %v5766_v63 = vpack.c.bf16 %v5754_v43, %v5753_v56 }
0x131e   : > { %7283 = vmatmul.msk.bf16.gmra.mxu2 %vm482_vm0, %v5766_v63  ;;  %v5728_v63 = vsel %vm1049_vm5, %v12620_v42, %v7835_v50 }
0x131f   : > { %v5518_v62 = vpop.f32.mrf.mxu3 }
0x1327   : > { %v5520_v12 = vpop.f32.mrf.mxu3 }
0x1328   : > { %v7856_v47 = vpack.i.bf16 %v5520_v12, %v5518_v62 }
0x132a   : > { %7857 = vrot.lane.b32.xlu0 %v7856_v47, %s8717_s23  ;;  %v5727_v47 = vsel %vm1049_vm5, %v12615_v32, %v7834_v31 }
0x1349   : > { %v7813_v2 = vpop.permute.xlu0 %7812 }
0x134a   : > { %v7815_v37 = vunpack.i.h.bf16 %v7813_v2  ;;  %v7814_v35 = vunpack.i.l.bf16 %v7813_v2 }
0x134d   : > { %v5156_v55 = vpop.f32.mrf.mxu0 }
0x1353   : > { %v7808_v28 = vpop.permute.xlu1 %7807 }
0x1354   : > { %v7810_v30 = vunpack.i.h.bf16 %v7808_v28  ;;  %v7809_v46 = vunpack.i.l.bf16 %v7808_v28 }
0x1355   : > { %v5158_v48 = vpop.f32.mrf.mxu0 }
0x1356   : > { %v5740_v9 = vsel %vm2634_vm6, %v5724_v25, %v7810_v30  ;;  %v5739_v11 = vsel %vm2634_vm6, %v5723_v60, %v7809_v46  ;;  %v7851_v33 = vpack.i.bf16 %v5158_v48, %v5156_v55  ;;  %v13683_v60 = vld [vmem:[#allocation65_spill] sm:$0xff] }
0x1357   : > { %v5755_v7 = vsel %vm2651_vm7, %v5739_v11, %v7814_v35  ;;  %v5756_v53 = vsel %vm2651_vm7, %v5740_v9, %v7815_v37  ;;  %v13684_v9 = vld [vmem:[#allocation67_spill] sm:$0xff] }
0x1358   : > { %7852 = vrot.lane.b32.xlu1 %v7851_v33, %s8716_s22  ;;  %v5767_v29 = vpack.c.bf16 %v5756_v53, %v5755_v7 }
0x135a   : > { %7284 = vmatmul.msk.bf16.gmra.mxu2 %vm482_vm0, %v5767_v29  ;;  %v13685_v29 = vld [vmem:[#allocation69_spill] sm:$0xff] }
0x1361   : > { %v7828_v16 = vpop.permute.xlu0 %7827 }
0x1362   : > { %v7830_v1 = vunpack.i.h.bf16 %v7828_v16  ;;  %v7829_v23 = vunpack.i.l.bf16 %v7828_v16 }
0x1366   : > { %v7823_v24 = vpop.permute.xlu1 %7822 }
0x1367   : > { %v7825_v52 = vunpack.i.h.bf16 %v7823_v24  ;;  %v7824_v61 = vunpack.i.l.bf16 %v7823_v24  ;;  %v13686_v24 = vld [vmem:[#allocation59_spill] sm:$0xff] }
0x1369   : > { %v5742_v34 = vsel %vm2634_vm6, %v5726_v22, %v7825_v52  ;;  %v5741_v58 = vsel %vm2634_vm6, %v5725_v49, %v7824_v61 }
0x136a   : > { %v5757_v4 = vsel %vm2651_vm7, %v5741_v58, %v7829_v23  ;;  %v5758_v19 = vsel %vm2651_vm7, %v5742_v34, %v7830_v1  ;;  %v13687_v1 = vld [vmem:[#allocation58_spill] sm:$0xff] }
0x136b   : > { %v5768_v15 = vpack.c.bf16 %v5758_v19, %v5757_v4  ;;  %v7848_v4 = vpop.permute.xlu2 %7847 }
0x136c   : > { %v7850_v19 = vunpack.i.h.bf16 %v7848_v4 }
0x136d   : > { %7285 = vmatmul.msk.bf16.gmra.mxu2 %vm482_vm0, %v5768_v15  ;;  %v7849_v15 = vunpack.i.l.bf16 %v7848_v4 }
0x136f   : > { %v5729_v50 = vsel %vm1049_vm5, %v12626_v5, %v7849_v15 }
0x1371   : > { %v5828_v27 = vpop.f32.mrf.mxu2 }
0x1372   : > { %v5868_v20 = vadd.f32 %v5828_v27, %v13681_v18 }
0x1374   : > { %v12747_v51 = vadd.f32 %v12743_v54, %v5868_v20 }
0x1376   : > { %v5903_v38 = vsel %vm482_vm0, %v12747_v51, 0.0 }
0x1377   : > { %5904 = vadd.xlane.f32.xlu2 %v5903_v38  ;;  %v5730_v38 = vsel %vm1049_vm5, %v12634_v14, %v7850_v19 }
0x1379   : > { %v5830_v41 = vpop.f32.mrf.mxu2  ;;  %v7843_v0 = vpop.permute.xlu0 %7842 }
0x137a   : > { %v5869_v56 = vadd.f32 %v5830_v41, %v13682_v57  ;;  %v7845_v55 = vunpack.i.h.bf16 %v7843_v0  ;;  %v7844_v59 = vunpack.i.l.bf16 %v7843_v0 }
0x137b   : > { %v7838_v43 = vpop.permute.xlu1 %7837 }
0x137c   : > { %v7840_v62 = vunpack.i.h.bf16 %v7838_v43  ;;  %v7839_v12 = vunpack.i.l.bf16 %v7838_v43  ;;  %v12757_v3 = vadd.f32 %v12743_v54, %v5869_v56 }
0x137e   : > { %v5744_v17 = vsel %vm2634_vm6, %v5728_v63, %v7840_v62  ;;  %v5743_v2 = vsel %vm2634_vm6, %v5727_v47, %v7839_v12  ;;  %v5906_v25 = vsel %vm482_vm0, %v12757_v3, 0.0  ;;  %v13688_v47 = vld [vmem:[#allocation50_spill] sm:$0xff] }
0x137f   : > { %v5759_v28 = vsel %vm2651_vm7, %v5743_v2, %v7844_v59  ;;  %v5760_v30 = vsel %vm2651_vm7, %v5744_v17, %v7845_v55  ;;  %v13689_v17 = vld [vmem:[#allocation61_spill] sm:$0xff] }
0x1380   : > { %v5769_v46 = vpack.c.bf16 %v5760_v30, %v5759_v28 }
0x1381   : > { %v5833_v42 = vpop.f32.mrf.mxu2 }
0x1382   : > { %v5870_v32 = vadd.f32 %v5833_v42, %v13683_v60  ;;  %7286 = vmatmul.msk.bf16.gmra.mxu2 %vm482_vm0, %v5769_v46  ;;  %5907 = vadd.xlane.f32.xlu1 %v5906_v25  ;;  %v13690_v60 = vld [vmem:[#allocation57_spill] sm:$0xff] }
0x1384   : > { %v12768_v37 = vadd.f32 %v12743_v54, %v5870_v32 }
0x1386   : > { %v5909_v35 = vsel %vm482_vm0, %v12768_v37, 0.0 }
0x1387   : > { %5910 = vadd.xlane.f32.xlu0 %v5909_v35 }
0x1389   : > { %v5835_v48 = vpop.f32.mrf.mxu2 }
0x138a   : > { %v5871_v11 = vadd.f32 %v5835_v48, %v13684_v9 }
0x138c   : > { %v12774_v33 = vadd.f32 %v12743_v54, %v5871_v11 }
0x138e   : > { %v5912_v7 = vsel %vm482_vm0, %v12774_v33, 0.0 }
0x138f   : > { %5913 = vadd.xlane.f32.xlu2 %v5912_v7 }
0x1391   : > { %v5838_v53 = vpop.f32.mrf.mxu2 }
0x1392   : > { %v5872_v44 = vadd.f32 %v5838_v53, %v13685_v29 }
0x1394   : > { %v12780_v13 = vadd.f32 %v12743_v54, %v5872_v44 }
0x1396   : > { %v5915_v40 = vsel %vm482_vm0, %v12780_v13, 0.0 }
0x1397   : > { %5916 = vadd.xlane.f32.xlu1 %v5915_v40 }
0x1399   : > { %v5840_v16 = vpop.f32.mrf.mxu2 }
0x139a   : > { %v5873_v52 = vadd.f32 %v5840_v16, %v13686_v24 }
0x139c   : > { %v12786_v61 = vadd.f32 %v12743_v54, %v5873_v52  ;;  %v7858_v27 = vpop.permute.xlu0 %7857 }
0x139d   : > { %v7860_v31 = vunpack.i.h.bf16 %v7858_v27  ;;  %v7859_v41 = vunpack.i.l.bf16 %v7858_v27 }
0x139e   : > { %v5918_v22 = vsel %vm482_vm0, %v12786_v61, 0.0 }
0x139f   : > { %5919 = vadd.xlane.f32.xlu2 %v5918_v22 }
0x13a1   : > { %v5843_v49 = vpop.f32.mrf.mxu2 }
0x13a2   : > { %v5874_v23 = vadd.f32 %v5843_v49, %v13687_v1  ;;  %v13691_v49 = vld [vmem:[#allocation52_spill] sm:$0xff] }
0x13a4   : > { %v12792_v34 = vadd.f32 %v12743_v54, %v5874_v23 }
0x13a6   : > { %v5921_v58 = vsel %vm482_vm0, %v12792_v34, 0.0 }
0x13a7   : > { %5922 = vadd.xlane.f32.xlu2 %v5921_v58 }
0x13a9   : > { %v5845_v62 = vpop.f32.mrf.mxu2 }
0x13aa   : > { %v5875_v2 = vadd.f32 %v5845_v62, %v13689_v17 }
0x13ac   : > { %v12814_v30 = vadd.f32 %v12743_v54, %v5875_v2  ;;  %v13694_v2 = vld [vmem:[#allocation55_spill] sm:$0xff] }
0x13ae   : > { %v5924_v35 = vsel %vm482_vm0, %v12814_v30, 0.0 }
0x13ca   : > { %v7853_v18 = vpop.permute.xlu1 %7852 }
0x13cb   : > { %v7855_v20 = vunpack.i.h.bf16 %v7853_v18  ;;  %v7854_v6 = vunpack.i.l.bf16 %v7853_v18 }
0x13cd   : > { %v5746_v0 = vsel %vm2634_vm6, %v5730_v38, %v7855_v20  ;;  %v5745_v57 = vsel %vm2634_vm6, %v5729_v50, %v7854_v6  ;;  %v13692_v20 = vld [vmem:[#allocation53_spill] sm:$0xff] }
0x13ce   : > { %v5761_v56 = vsel %vm2651_vm7, %v5745_v57, %v7859_v41  ;;  %v5762_v43 = vsel %vm2651_vm7, %v5746_v0, %v7860_v31  ;;  %v13693_v57 = vld [vmem:[#allocation51_spill] sm:$0xff] }
0x13cf   : > { %v5770_v63 = vpack.c.bf16 %v5762_v43, %v5761_v56 }
0x13d1   : > { %7287 = vmatmul.msk.bf16.gmra.mxu2 %vm482_vm0, %v5770_v63 }
0x13dd   : > { %v5848_v59 = vpop.f32.mrf.mxu2 }
0x13de   : > { %v5876_v32 = vadd.f32 %v5848_v59, %v13690_v60 }
0x13e0   : > { %v12828_v29 = vadd.f32 %v12743_v54, %v5876_v32 }
0x13e2   : > { %v5927_v16 = vsel %vm482_vm0, %v12828_v29, 0.0 }
0x13e5   : > { %v5850_v48 = vpop.f32.mrf.mxu2 }
0x13e6   : > { %v5877_v1 = vadd.f32 %v5850_v48, %v13691_v49  ;;  %v13696_v49 = vld [vmem:[#allocation54_spill] sm:$0xff] }
0x13e8   : > { %v12846_v19 = vadd.f32 %v12743_v54, %v5877_v1 }
0x13ea   : > { %v5905_v12 = vpop.xlane.xlu2 %5904  ;;  %v5930_v50 = vsel %vm482_vm0, %v12846_v19, 0.0 }
0x13eb   : > { %v5951_v14 = vmul.f32 %v5905_v12, %v13688_v47 }
0x13ed   : > { %v12807_v55 = vsub.f32 %v12747_v51, %v5951_v14 }
0x13ef   : > { %v5983_v5 = vmul.f32 %v12807_v55, %v12807_v55 }
0x13f0   : > { %v5853_v24 = vpop.f32.mrf.mxu2 }
0x13f1   : > { %v5999_v28 = vsel %vm482_vm0, %v5983_v5, 0.0  ;;  %v5878_v6 = vadd.f32 %v5853_v24, %v13692_v20 }
0x13f2   : > { %6000 = vadd.xlane.f32.xlu0 %v5999_v28 }
0x13f3   : > { %v12859_v0 = vadd.f32 %v12743_v54, %v5878_v6 }
0x13f5   : > { %v5908_v46 = vpop.xlane.xlu1 %5907  ;;  %v5933_v14 = vsel %vm482_vm0, %v12859_v0, 0.0 }
0x13f6   : > { %v5952_v42 = vmul.f32 %v5908_v46, %v13688_v47 }
0x13f8   : > { %v12818_v25 = vsub.f32 %v12757_v3, %v5952_v42  ;;  %v5855_v38 = vpop.f32.mrf.mxu2 }
0x13f9   : > { %v5879_v56 = vadd.f32 %v5855_v38, %v13693_v57 }
0x13fa   : > { %v5911_v9 = vpop.xlane.xlu0 %5910  ;;  %5925 = vadd.xlane.f32.xlu0 %v5924_v35  ;;  %v5984_v11 = vmul.f32 %v12818_v25, %v12818_v25 }
0x13fb   : > { %v5953_v7 = vmul.f32 %v5911_v9, %v13688_v47  ;;  %v12867_v5 = vadd.f32 %v12743_v54, %v5879_v56 }
0x13fc   : > { %v6002_v53 = vsel %vm482_vm0, %v5984_v11, 0.0 }
0x13fd   : > { %v12831_v44 = vsub.f32 %v12768_v37, %v5953_v7  ;;  %6003 = vadd.xlane.f32.xlu1 %v6002_v53  ;;  %v5936_v42 = vsel %vm482_vm0, %v12867_v5, 0.0  ;;  %v13695_v7 = vld [vmem:[#allocation62_spill] sm:$0xff] }
0x13ff   : > { %v5985_v40 = vmul.f32 %v12831_v44, %v12831_v44 }
0x1401   : > { %v6005_v23 = vsel %vm482_vm0, %v5985_v40, 0.0 }
0x1402   : > { %v5914_v52 = vpop.xlane.xlu2 %5913  ;;  %5928 = vadd.xlane.f32.xlu0 %v5927_v16 }
0x1403   : > { %v5954_v22 = vmul.f32 %v5914_v52, %v13688_v47 }
0x1405   : > { %v12841_v58 = vsub.f32 %v12774_v33, %v5954_v22  ;;  %6006 = vadd.xlane.f32.xlu1 %v6005_v23  ;;  %v5858_v12 = vpop.f32.mrf.mxu2 }
0x1406   : > { %v5880_v28 = vadd.f32 %v5858_v12, %v13694_v2 }
0x1407   : > { %v5986_v4 = vmul.f32 %v12841_v58, %v12841_v58 }
0x1408   : > { %v12880_v35 = vadd.f32 %v12743_v54, %v5880_v28 }
0x1409   : > { %v6008_v15 = vsel %vm482_vm0, %v5986_v4, 0.0 }
0x140a   : > { %v5917_v27 = vpop.xlane.xlu1 %5916  ;;  %6009 = vadd.xlane.f32.xlu2 %v6008_v15  ;;  %v5939_v16 = vsel %vm482_vm0, %v12880_v35, 0.0  ;;  %v7431_v15 = vld [vmem:[%s10952_s18 + $0x98] sm:$0xff] }
0x140b   : > { %v5955_v18 = vmul.f32 %v5917_v27, %v13688_v47  ;;  %6318 = vmatpush.bf16.msra.mxu0 %v7431_v15  ;;  %v7430_v27 = vld [vmem:[%s10952_s18 + $0x90] sm:$0xff] }
0x140d   : > { %v12854_v31 = vsub.f32 %v12780_v13, %v5955_v18  ;;  %5931 = vadd.xlane.f32.xlu1 %v5930_v50  ;;  %v5860_v9 = vpop.f32.mrf.mxu2  ;;  %v7429_v18 = vld [vmem:[%s10952_s18 + $0x88] sm:$0xff]  ;;  %v7428_v50 = vld [vmem:[%s10952_s18 + $0x80] sm:$0xff] }
0x140e   : > { %v5881_v53 = vadd.f32 %v5860_v9, %v13695_v7 }
0x140f   : > { %v5987_v41 = vmul.f32 %v12854_v31, %v12854_v31  ;;  %6319 = vmatpush.bf16.msra.mxu0 %v7430_v27 }
0x1410   : > { %v12892_v24 = vadd.f32 %v12743_v54, %v5881_v53 }
0x1411   : > { %v6011_v43 = vsel %vm482_vm0, %v5987_v41, 0.0 }
0x1412   : > { %v5920_v63 = vpop.xlane.xlu2 %5919  ;;  %6012 = vadd.xlane.f32.xlu2 %v6011_v43  ;;  %v5942_v52 = vsel %vm482_vm0, %v12892_v24, 0.0 }
0x1413   : > { %v5956_v62 = vmul.f32 %v5920_v63, %v13688_v47  ;;  %6320 = vmatpush.bf16.msra.mxu0 %v7429_v18 }
0x1415   : > { %v12870_v59 = vsub.f32 %v12786_v61, %v5956_v62  ;;  %5934 = vadd.xlane.f32.xlu1 %v5933_v14 }
0x1417   : > { %v5988_v17 = vmul.f32 %v12870_v59, %v12870_v59  ;;  %6321 = vmatpush.bf16.msra.mxu0 %v7428_v50 }
0x1419   : > { %v6014_v46 = vsel %vm482_vm0, %v5988_v17, 0.0 }
0x141a   : > { %v5923_v60 = vpop.xlane.xlu2 %5922  ;;  %6015 = vadd.xlane.f32.xlu0 %v6014_v46  ;;  %5937 = vadd.xlane.f32.xlu2 %v5936_v42 }
0x141b   : > { %v5957_v32 = vmul.f32 %v5923_v60, %v13688_v47 }
0x141d   : > { %v12883_v48 = vsub.f32 %v12792_v34, %v5957_v32 }
0x141f   : > { %v5989_v11 = vmul.f32 %v12883_v48, %v12883_v48 }
0x1421   : > { %v6017_v40 = vsel %vm482_vm0, %v5989_v11, 0.0 }
0x1422   : > { %6018 = vadd.xlane.f32.xlu0 %v6017_v40  ;;  %5940 = vadd.xlane.f32.xlu2 %v5939_v16  ;;  %v13697_v16 = vld [vmem:[#allocation49_spill] sm:$0xff] }
0x142a   : > { %5943 = vadd.xlane.f32.xlu0 %v5942_v52 }
0x1454   : > { %v5863_v22 = vpop.f32.mrf.mxu2 }
0x1455   : > { %v5882_v1 = vadd.f32 %v5863_v22, %v13696_v49 }
0x1457   : > { %v12898_v23 = vadd.f32 %v12743_v54, %v5882_v1 }
0x1459   : > { %v5945_v4 = vsel %vm482_vm0, %v12898_v23, 0.0 }
0x145a   : > { %5946 = vadd.xlane.f32.xlu0 %v5945_v4 }
0x145c   : > { %v5865_v60 = vpop.f32.mrf.mxu2 }
0x145d   : > { %v5883_v52 = vadd.f32 %v5865_v60, %v13697_v16 }
0x1465   : > { %v6001_v20 = vpop.xlane.xlu0 %6000 }
0x1466   : > { %v6047_v6 = vmul.f32 %v6001_v20, %v13688_v47  ;;  %v12929_v20 = vadd.f32 %v12743_v54, %v5883_v52 }
0x1468   : > { %v6063_v38 = vadd.f32 1e-06, %v6047_v6  ;;  %v5948_v54 = vsel %vm482_vm0, %v12929_v20, 0.0 }
0x146a   : > { %8509 = vrsqrt.f32 %v6063_v38  ;;  %vm6085_vm6 = vweird.f32 %v6063_v38 }
0x146d   : > { %v5926_v41 = vpop.xlane.xlu0 %5925 }
0x146e   : > { %v5958_v57 = vmul.f32 %v5926_v41, %v13688_v47 }
0x1470   : > { %v8510_v56 = vpop.eup %8509  ;;  %v12909_v43 = vsub.f32 %v12814_v30, %v5958_v57  ;;  %v6004_v63 = vpop.xlane.xlu1 %6003 }
0x1471   : > { %v6080_v62 = vmul.f32 %v8510_v56, %v6063_v38  ;;  %v6048_v12 = vmul.f32 %v6004_v63, %v13688_v47  ;;  %vm6086_vm5 = vweird.f32 %v8510_v56 }
0x1472   : > { %v5990_v14 = vmul.f32 %v12909_v43, %v12909_v43  ;;  %vm6087_vm8 = vmor %vm6085_vm6, %vm6086_vm5 }
0x1473   : > { %v6064_v17 = vadd.f32 1e-06, %v6048_v12  ;;  %v6081_v2 = vmul.f32 %v8510_v56, %v6080_v62 }
0x1474   : > { %v6020_v28 = vsel %vm482_vm0, %v5990_v14, 0.0 }
0x1475   : > { %8511 = vrsqrt.f32 %v6064_v17  ;;  %v5929_v46 = vpop.xlane.xlu0 %5928  ;;  %6021 = vadd.xlane.f32.xlu1 %v6020_v28  ;;  %v6082_v32 = vmul.f32 0.5, %v6081_v2  ;;  %vm6095_vm9 = vweird.f32 %v6064_v17 }
0x1476   : > { %v5959_v42 = vmul.f32 %v5929_v46, %v13688_v47 }
0x1477   : > { %v6083_v49 = vsub.f32 1.5, %v6082_v32 }
0x1478   : > { %v12917_v9 = vsub.f32 %v12828_v29, %v5959_v42  ;;  %v6007_v11 = vpop.xlane.xlu1 %6006 }
0x1479   : > { %v6049_v7 = vmul.f32 %v6007_v11, %v13688_v47  ;;  %v6084_v6 = vmul.f32 %v8510_v56, %v6083_v49 }
0x147a   : > { %v5991_v53 = vmul.f32 %v12917_v9, %v12917_v9 }
0x147b   : > { %v8512_v40 = vpop.eup %8511  ;;  %v12923_v22 = vadd.f32 1e-06, %v6049_v7  ;;  %v6088_v2 = vsel %vm6087_vm8, %v8510_v56, %v6084_v6 }
0x147c   : > { %v6090_v1 = vmul.f32 %v8512_v40, %v6064_v17  ;;  %v6023_v4 = vsel %vm482_vm0, %v5991_v53, 0.0  ;;  %vm6096_vm7 = vweird.f32 %v8512_v40  ;;  %v6239_v7 = vmul.f32 %v6088_v2, %v12807_v55 }
0x147d   : > { %8513 = vrsqrt.f32 %v12923_v22  ;;  %v6010_v15 = vpop.xlane.xlu2 %6009  ;;  %6024 = vadd.xlane.f32.xlu1 %v6023_v4  ;;  %vm6097_vm10 = vmor %vm6095_vm9, %vm6096_vm7  ;;  %vm6105_vm14 = vweird.f32 %v12923_v22 }
0x147e   : > { %v6091_v27 = vmul.f32 %v8512_v40, %v6090_v1  ;;  %v6050_v18 = vmul.f32 %v6010_v15, %v13688_v47 }
0x1480   : > { %v6092_v50 = vmul.f32 0.5, %v6091_v27  ;;  %v6066_v41 = vadd.f32 1e-06, %v6050_v18  ;;  %v5932_v57 = vpop.xlane.xlu1 %5931 }
0x1481   : > { %v5960_v63 = vmul.f32 %v5932_v57, %v13688_v47 }
0x1482   : > { %v6093_v62 = vsub.f32 1.5, %v6092_v50  ;;  %8515 = vrsqrt.f32 %v6066_v41  ;;  %vm6115_vm13 = vweird.f32 %v6066_v41 }
0x1483   : > { %v12932_v12 = vpop.eup %8513  ;;  %v12935_v14 = vsub.f32 %v12846_v19, %v5960_v63 }
0x1484   : > { %v6094_v28 = vmul.f32 %v8512_v40, %v6093_v62  ;;  %v6100_v46 = vmul.f32 %v12932_v12, %v12923_v22  ;;  %vm6106_vm12 = vweird.f32 %v12932_v12 }
0x1485   : > { %v6013_v38 = vpop.xlane.xlu2 %6012  ;;  %5949 = vadd.xlane.f32.xlu1 %v5948_v54  ;;  %v5992_v42 = vmul.f32 %v12935_v14, %v12935_v14  ;;  %vm6107_vm1 = vmor %vm6105_vm14, %vm6106_vm12 }
0x1486   : > { %v6098_v60 = vsel %vm6097_vm10, %v8512_v40, %v6094_v28  ;;  %v6101_v32 = vmul.f32 %v12932_v12, %v6100_v46  ;;  %v6051_v11 = vmul.f32 %v6013_v38, %v13688_v47 }
0x1487   : > { %v6240_v56 = vmul.f32 %v6098_v60, %v12818_v25  ;;  %v6026_v17 = vsel %vm482_vm0, %v5992_v42, 0.0 }
0x1488   : > { %v8516_v53 = vpop.eup %8515  ;;  %v6102_v16 = vmul.f32 0.5, %v6101_v32  ;;  %v12948_v52 = vadd.f32 1e-06, %v6051_v11  ;;  %v5935_v49 = vpop.xlane.xlu1 %5934  ;;  %6027 = vadd.xlane.f32.xlu2 %v6026_v17 }
0x1489   : > { %v6255_v1 = vpack.c.bf16 %v6240_v56, %v6239_v7  ;;  %v6110_v4 = vmul.f32 %v8516_v53, %v6066_v41  ;;  %v5961_v40 = vmul.f32 %v5935_v49, %v13688_v47  ;;  %vm6116_vm11 = vweird.f32 %v8516_v53 }
0x148a   : > { %8517 = vrsqrt.f32 %v12948_v52  ;;  %v6103_v55 = vsub.f32 1.5, %v6102_v16  ;;  %vm6117_vm15 = vmor %vm6115_vm13, %vm6116_vm11  ;;  %vm6125_vm5 = vweird.f32 %v12948_v52 }
0x148b   : > { %v6111_v15 = vmul.f32 %v8516_v53, %v6110_v4  ;;  %v12953_v27 = vsub.f32 %v12859_v0, %v5961_v40  ;;  %7304 = vmatmul.msk.bf16.vlgmr.msra.gmra.mxu0 %vm482_vm0, %v6255_v1 }
0x148c   : > { %v6104_v28 = vmul.f32 %v12932_v12, %v6103_v55 }
0x148d   : > { %v6112_v25 = vmul.f32 0.5, %v6111_v15  ;;  %v6016_v18 = vpop.xlane.xlu0 %6015  ;;  %v5938_v6 = vpop.xlane.xlu2 %5937  ;;  %v5993_v50 = vmul.f32 %v12953_v27, %v12953_v27 }
0x148e   : > { %v6052_v57 = vmul.f32 %v6016_v18, %v13688_v47  ;;  %v5962_v63 = vmul.f32 %v5938_v6, %v13688_v47  ;;  %v6108_v7 = vsel %vm6107_vm1, %v12932_v12, %v6104_v28 }
0x148f   : > { %v6113_v62 = vsub.f32 1.5, %v6112_v25  ;;  %v6029_v54 = vsel %vm482_vm0, %v5993_v50, 0.0  ;;  %v6241_v22 = vmul.f32 %v6108_v7, %v12831_v44 }
0x1490   : > { %v8518_v2 = vpop.eup %8517  ;;  %v6068_v46 = vadd.f32 1e-06, %v6052_v57  ;;  %v12964_v38 = vsub.f32 %v12867_v5, %v5962_v63  ;;  %6030 = vadd.xlane.f32.xlu2 %v6029_v54 }
0x1491   : > { %v6114_v42 = vmul.f32 %v8516_v53, %v6113_v62  ;;  %v6120_v60 = vmul.f32 %v8518_v2, %v12948_v52  ;;  %vm6126_vm3 = vweird.f32 %v8518_v2 }
0x1492   : > { %8519 = vrsqrt.f32 %v6068_v46  ;;  %v5994_v32 = vmul.f32 %v12964_v38, %v12964_v38  ;;  %vm6135_vm4 = vweird.f32 %v6068_v46  ;;  %vm6127_vm7 = vmor %vm6125_vm5, %vm6126_vm3 }
0x1493   : > { %v6118_v11 = vsel %vm6117_vm15, %v8516_v53, %v6114_v42  ;;  %v6121_v56 = vmul.f32 %v8518_v2, %v6120_v60 }
0x1494   : > { %v6032_v17 = vsel %vm482_vm0, %v5994_v32, 0.0  ;;  %v6242_v41 = vmul.f32 %v6118_v11, %v12841_v58 }
0x1495   : > { %v6019_v16 = vpop.xlane.xlu0 %6018  ;;  %v5941_v49 = vpop.xlane.xlu2 %5940  ;;  %6033 = vadd.xlane.f32.xlu0 %v6032_v17  ;;  %v6122_v40 = vmul.f32 0.5, %v6121_v56 }
0x1496   : > { %v5963_v1 = vmul.f32 %v5941_v49, %v13688_v47  ;;  %v6256_v55 = vpack.c.bf16 %v6242_v41, %v6241_v22  ;;  %v6053_v41 = vmul.f32 %v6019_v16, %v13688_v47 }
0x1497   : > { %v6123_v18 = vsub.f32 1.5, %v6122_v40 }
0x1498   : > { %v8520_v4 = vpop.eup %8519  ;;  %v12976_v15 = vsub.f32 %v12880_v35, %v5963_v1 }
0x1499   : > { %v6130_v53 = vmul.f32 %v8520_v4, %v6068_v46  ;;  %vm6136_vm2 = vweird.f32 %v8520_v4  ;;  %v6124_v63 = vmul.f32 %v8518_v2, %v6123_v18 }
0x149a   : > { %v5995_v12 = vmul.f32 %v12976_v15, %v12976_v15  ;;  %vm6137_vm6 = vmor %vm6135_vm4, %vm6136_vm2 }
0x149b   : > { %v6131_v25 = vmul.f32 %v8520_v4, %v6130_v53  ;;  %7305 = vmatmul.msk.bf16.gmra.mxu0 %vm482_vm0, %v6256_v55  ;;  %v6128_v60 = vsel %vm6127_vm7, %v8518_v2, %v6124_v63 }
0x149c   : > { %v6035_v58 = vsel %vm482_vm0, %v5995_v12, 0.0  ;;  %v6243_v7 = vmul.f32 %v6128_v60, %v12854_v31 }
0x149d   : > { %v6132_v6 = vmul.f32 0.5, %v6131_v25  ;;  %v5944_v50 = vpop.xlane.xlu0 %5943  ;;  %6036 = vadd.xlane.f32.xlu1 %v6035_v58 }
0x149e   : > { %v5964_v44 = vmul.f32 %v5944_v50, %v13688_v47 }
0x149f   : > { %v6133_v57 = vsub.f32 1.5, %v6132_v6 }
0x14a0   : > { %v12984_v62 = vsub.f32 %v12892_v24, %v5964_v44 }
0x14a1   : > { %v6134_v54 = vmul.f32 %v8520_v4, %v6133_v57 }
0x14a2   : > { %v5996_v28 = vmul.f32 %v12984_v62, %v12984_v62 }
0x14a3   : > { %v6138_v42 = vsel %vm6137_vm6, %v8520_v4, %v6134_v54 }
0x14a4   : > { %v6038_v32 = vsel %vm482_vm0, %v5996_v28, 0.0  ;;  %v6244_v11 = vmul.f32 %v6138_v42, %v12870_v59  ;;  %v6069_v59 = vadd.f32 1e-06, %v6053_v41 }
0x14a5   : > { %6039 = vadd.xlane.f32.xlu2 %v6038_v32 }
0x14a6   : > { %v6257_v56 = vpack.c.bf16 %v6244_v11, %v6243_v7  ;;  %8521 = vrsqrt.f32 %v6069_v59  ;;  %vm6145_vm9 = vweird.f32 %v6069_v59 }
0x14ab   : > { %7306 = vmatmul.msk.bf16.gmra.mxu0 %vm482_vm0, %v6257_v56 }
0x14ac   : > { %v8522_v31 = vpop.eup %8521 }
0x14ad   : > { %v6140_v1 = vmul.f32 %v8522_v31, %v6069_v59  ;;  %vm6146_vm8 = vweird.f32 %v8522_v31 }
0x14ae   : > { %vm13007_vm10 = vmor %vm6145_vm9, %vm6146_vm8 }
0x14af   : > { %v6141_v40 = vmul.f32 %v8522_v31, %v6140_v1 }
0x14b1   : > { %v6142_v55 = vmul.f32 0.5, %v6141_v40 }
0x14b3   : > { %v6143_v58 = vsub.f32 1.5, %v6142_v55 }
0x14b5   : > { %v6144_v44 = vmul.f32 %v8522_v31, %v6143_v58  ;;  %v7433_v58 = vld [vmem:[%s11064_s17 + $0x88] sm:$0xff] }
0x14b7   : > { %v6148_v32 = vsel %vm13007_vm10, %v8522_v31, %v6144_v44 }
0x14cd   : > { %v5947_v46 = vpop.xlane.xlu0 %5946 }
0x14ce   : > { %v5965_v52 = vmul.f32 %v5947_v46, %v13688_v47 }
0x14d0   : > { %v12995_v17 = vsub.f32 %v12898_v23, %v5965_v52 }
0x14d2   : > { %v5997_v49 = vmul.f32 %v12995_v17, %v12995_v17 }
0x14d4   : > { %v6041_v2 = vsel %vm482_vm0, %v5997_v49, 0.0 }
0x14d5   : > { %6042 = vadd.xlane.f32.xlu0 %v6041_v2  ;;  %v7435_v2 = vld [vmem:[%s11064_s17 + $0x98] sm:$0xff] }
0x14d6   : > { %6570 = vmatpush.bf16.msra.mxu1 %v7435_v2 }
0x14e8   : > { %v6022_v22 = vpop.xlane.xlu1 %6021 }
0x14e9   : > { %v6054_v4 = vmul.f32 %v6022_v22, %v13688_v47  ;;  %v6245_v22 = vmul.f32 %v6148_v32, %v12883_v48 }
0x14eb   : > { %v6070_v53 = vadd.f32 1e-06, %v6054_v4 }
0x14ed   : > { %8523 = vrsqrt.f32 %v6070_v53  ;;  %vm6155_vm12 = vweird.f32 %v6070_v53 }
0x14f0   : > { %v6025_v12 = vpop.xlane.xlu1 %6024 }
0x14f1   : > { %v6055_v25 = vmul.f32 %v6025_v12, %v13688_v47 }
0x14f3   : > { %v8524_v18 = vpop.eup %8523  ;;  %v13003_v6 = vadd.f32 1e-06, %v6055_v25 }
0x14f4   : > { %v6150_v50 = vmul.f32 %v8524_v18, %v6070_v53  ;;  %vm6156_vm11 = vweird.f32 %v8524_v18  ;;  %v7434_v53 = vld [vmem:[%s11064_s17 + $0x90] sm:$0xff] }
0x14f5   : > { %8525 = vrsqrt.f32 %v13003_v6  ;;  %vm6157_vm13 = vmor %vm6155_vm12, %vm6156_vm11  ;;  %6571 = vmatpush.bf16.msra.mxu1 %v7434_v53  ;;  %vm6165_vm15 = vweird.f32 %v13003_v6 }
0x14f6   : > { %v6151_v16 = vmul.f32 %v8524_v18, %v6150_v50 }
0x14f8   : > { %v6152_v57 = vmul.f32 0.5, %v6151_v16  ;;  %v5950_v63 = vpop.xlane.xlu1 %5949 }
0x14f9   : > { %v5966_v54 = vmul.f32 %v5950_v63, %v13688_v47  ;;  %6572 = vmatpush.bf16.msra.mxu1 %v7433_v58 }
0x14fa   : > { %v6153_v42 = vsub.f32 1.5, %v6152_v57 }
0x14fb   : > { %v13011_v60 = vpop.eup %8525  ;;  %v13016_v11 = vsub.f32 %v12929_v20, %v5966_v54  ;;  %v6028_v7 = vpop.xlane.xlu2 %6027 }
0x14fc   : > { %v6154_v56 = vmul.f32 %v8524_v18, %v6153_v42  ;;  %v6160_v46 = vmul.f32 %v13011_v60, %v13003_v6  ;;  %v6056_v52 = vmul.f32 %v6028_v7, %v13688_v47  ;;  %v7432_v42 = vld [vmem:[%s11064_s17 + $0x80] sm:$0xff]  ;;  %vm6166_vm14 = vweird.f32 %v13011_v60 }
0x14fd   : > { %v5998_v49 = vmul.f32 %v13016_v11, %v13016_v11  ;;  %6573 = vmatpush.bf16.msra.mxu1 %v7432_v42  ;;  %vm6167_vm2 = vmor %vm6165_vm15, %vm6166_vm14 }
0x14fe   : > { %v6158_v41 = vsel %vm6157_vm13, %v8524_v18, %v6154_v56  ;;  %v6072_v59 = vadd.f32 1e-06, %v6056_v52  ;;  %v6161_v31 = vmul.f32 %v13011_v60, %v6160_v46  ;;  %v13032_v18 = vld [vmem:[%s10992_s28 + $0x4] ss:$0 sm:$0xff] }
0x14ff   : > { %v6044_v1 = vsel %vm482_vm0, %v5998_v49, 0.0  ;;  %v6246_v4 = vmul.f32 %v6158_v41, %v12909_v43 }
0x1500   : > { %8527 = vrsqrt.f32 %v6072_v59  ;;  %6045 = vadd.xlane.f32.xlu1 %v6044_v1  ;;  %v6162_v55 = vmul.f32 0.5, %v6161_v31  ;;  %vm6175_vm3 = vweird.f32 %v6072_v59 }
0x1501   : > { %v6258_v40 = vpack.c.bf16 %v6246_v4, %v6245_v22 }
0x1502   : > { %v6163_v43 = vsub.f32 1.5, %v6162_v55 }
0x1503   : > { %7307 = vmatmul.msk.bf16.gmra.mxu0 %vm482_vm0, %v6258_v40  ;;  %v6031_v12 = vpop.xlane.xlu2 %6030 }
0x1504   : > { %v6057_v25 = vmul.f32 %v6031_v12, %v13688_v47  ;;  %v6164_v32 = vmul.f32 %v13011_v60, %v6163_v43 }
0x1506   : > { %v8528_v50 = vpop.eup %8527  ;;  %v13035_v48 = vadd.f32 1e-06, %v6057_v25  ;;  %v6168_v41 = vsel %vm6167_vm2, %v13011_v60, %v6164_v32 }
0x1507   : > { %v6170_v16 = vmul.f32 %v8528_v50, %v6072_v59  ;;  %vm6176_vm1 = vweird.f32 %v8528_v50  ;;  %v6247_v60 = vmul.f32 %v6168_v41, %v12917_v9 }
0x1508   : > { %8529 = vrsqrt.f32 %v13035_v48  ;;  %v6323_v44 = vpop.f32.mrf.mxu0  ;;  %v6034_v57 = vpop.xlane.xlu0 %6033  ;;  %vm6177_vm4 = vmor %vm6175_vm3, %vm6176_vm1  ;;  %vm6185_vm8 = vweird.f32 %v13035_v48 }
0x1509   : > { %v6171_v63 = vmul.f32 %v8528_v50, %v6170_v16  ;;  %v13039_v54 = vadd.f32 %v13032_v18, %v6323_v44  ;;  %v6058_v28 = vmul.f32 %v6034_v57, %v13688_v47 }
0x150b   : > { %v6172_v7 = vmul.f32 0.5, %v6171_v63  ;;  %v6363_v56 = vmul.f32 %v13039_v54, %v13039_v54  ;;  %v6074_v46 = vadd.f32 1e-06, %v6058_v28 }
0x150d   : > { %v6173_v52 = vsub.f32 1.5, %v6172_v7  ;;  %v6379_v49 = vmul.f32 %v6363_v56, %v13039_v54  ;;  %8531 = vrsqrt.f32 %v6074_v46  ;;  %vm6195_vm7 = vweird.f32 %v6074_v46 }
0x150e   : > { %v13049_v2 = vpop.eup %8529 }
0x150f   : > { %v6174_v31 = vmul.f32 %v8528_v50, %v6173_v52  ;;  %v6180_v1 = vmul.f32 %v13049_v2, %v13035_v48  ;;  %v6395_v22 = vmul.f32 0.044715, %v6379_v49  ;;  %vm6186_vm5 = vweird.f32 %v13049_v2 }
0x1510   : > { %v6325_v4 = vpop.f32.mrf.mxu0  ;;  %v6037_v40 = vpop.xlane.xlu1 %6036  ;;  %vm6187_vm10 = vmor %vm6185_vm8, %vm6186_vm5 }
0x1511   : > { %v6178_v6 = vsel %vm6177_vm4, %v8528_v50, %v6174_v31  ;;  %v6181_v53 = vmul.f32 %v13049_v2, %v6180_v1  ;;  %v6411_v55 = vadd.f32 %v6395_v22, %v13039_v54  ;;  %v13057_v12 = vadd.f32 %v13032_v18, %v6325_v4 }
0x1512   : > { %v6059_v59 = vmul.f32 %v6037_v40, %v13688_v47  ;;  %v6248_v25 = vmul.f32 %v6178_v6, %v12935_v14 }
0x1513   : > { %v8532_v58 = vpop.eup %8531  ;;  %v6182_v43 = vmul.f32 0.5, %v6181_v53  ;;  %v6427_v16 = vmul.f32 0.7978846, %v6411_v55  ;;  %v6364_v44 = vmul.f32 %v13057_v12, %v13057_v12 }
0x1514   : > { %v6190_v50 = vmul.f32 %v8532_v58, %v6074_v46  ;;  %v13064_v57 = vadd.f32 1e-06, %v6059_v59  ;;  %v6259_v63 = vpack.c.bf16 %v6248_v25, %v6247_v60  ;;  %vm6196_vm6 = vweird.f32 %v8532_v58 }
0x1515   : > { %v6380_v28 = vmul.f32 %v6364_v44, %v13057_v12  ;;  %v6183_v9 = vsub.f32 1.5, %v6182_v43  ;;  %vm6197_vm9 = vmor %vm6195_vm7, %vm6196_vm6 }
0x1516   : > { %v6191_v42 = vmul.f32 %v8532_v58, %v6190_v50  ;;  %8533 = vrsqrt.f32 %v13064_v57  ;;  %7308 = vmatmul.msk.bf16.gmra.mxu0 %vm482_vm0, %v6259_v63  ;;  %vm6205_vm13 = vweird.f32 %v13064_v57 }
0x1517   : > { %8535 = vtanh.f32 %v6427_v16  ;;  %v6396_v14 = vmul.f32 0.044715, %v6380_v28  ;;  %v6184_v1 = vmul.f32 %v13049_v2, %v6183_v9 }
0x1518   : > { %v6192_v32 = vmul.f32 0.5, %v6191_v42  ;;  %v6328_v7 = vpop.f32.mrf.mxu0  ;;  %v6040_v56 = vpop.xlane.xlu2 %6039 }
0x1519   : > { %v6412_v52 = vadd.f32 %v6396_v14, %v13057_v12  ;;  %v13071_v49 = vadd.f32 %v13032_v18, %v6328_v7  ;;  %v6060_v41 = vmul.f32 %v6040_v56, %v13688_v47  ;;  %v6188_v43 = vsel %vm6187_vm10, %v13049_v2, %v6184_v1 }
0x151a   : > { %v6193_v31 = vsub.f32 1.5, %v6192_v32  ;;  %v6249_v42 = vmul.f32 %v6188_v43, %v12953_v27 }
0x151b   : > { %v6428_v22 = vmul.f32 0.7978846, %v6412_v52  ;;  %v6365_v4 = vmul.f32 %v13071_v49, %v13071_v49  ;;  %v6076_v40 = vadd.f32 1e-06, %v6060_v41 }
0x151c   : > { %v13078_v6 = vpop.eup %8533  ;;  %v6194_v53 = vmul.f32 %v8532_v58, %v6193_v31 }
0x151d   : > { %v8536_v55 = vpop.eup %8535  ;;  %8537 = vtanh.f32 %v6428_v22  ;;  %v6200_v59 = vmul.f32 %v13078_v6, %v13064_v57  ;;  %v6381_v60 = vmul.f32 %v6365_v4, %v13071_v49  ;;  %vm6206_vm11 = vweird.f32 %v13078_v6 }
0x151e   : > { %v6198_v25 = vsel %vm6197_vm9, %v8532_v58, %v6194_v53  ;;  %8539 = vrsqrt.f32 %v6076_v40  ;;  %v6459_v44 = vadd.f32 1.0, %v8536_v55  ;;  %vm6207_vm14 = vmor %vm6205_vm13, %vm6206_vm11  ;;  %vm6215_vm15 = vweird.f32 %v6076_v40 }
0x151f   : > { %v6201_v16 = vmul.f32 %v13078_v6, %v6200_v59  ;;  %v6397_v46 = vmul.f32 0.044715, %v6381_v60  ;;  %v6250_v48 = vmul.f32 %v6198_v25, %v12964_v38 }
0x1520   : > { %v6330_v50 = vpop.f32.mrf.mxu0  ;;  %v6475_v7 = vmul.f32 0.5, %v6459_v44 }
0x1521   : > { %v6413_v63 = vadd.f32 %v6397_v46, %v13071_v49  ;;  %v6331_v28 = vadd.f32 %v13032_v18, %v6330_v50  ;;  %v6202_v14 = vmul.f32 0.5, %v6201_v16  ;;  %v6260_v52 = vpack.c.bf16 %v6250_v48, %v6249_v42 }
0x1522   : > { %v6491_v4 = vmul.f32 %v6475_v7, %v13039_v54 }
0x1523   : > { %v8538_v9 = vpop.eup %8537  ;;  %v6366_v32 = vmul.f32 %v6331_v28, %v6331_v28  ;;  %v6429_v2 = vmul.f32 0.7978846, %v6413_v63  ;;  %v6203_v38 = vsub.f32 1.5, %v6202_v14 }
0x1524   : > { %v8540_v58 = vpop.eup %8539  ;;  %v6460_v56 = vadd.f32 1.0, %v8538_v9 }
0x1525   : > { %v6210_v41 = vmul.f32 %v8540_v58, %v6076_v40  ;;  %v6382_v1 = vmul.f32 %v6366_v32, %v6331_v28  ;;  %8541 = vtanh.f32 %v6429_v2  ;;  %v6204_v16 = vmul.f32 %v13078_v6, %v6203_v38 }
0x1526   : > { %v6476_v31 = vmul.f32 0.5, %v6460_v56  ;;  %7309 = vmatmul.msk.bf16.gmra.mxu0 %vm482_vm0, %v6260_v52  ;;  %vm6216_vm12 = vweird.f32 %v8540_v58 }
0x1527   : > { %v6211_v22 = vmul.f32 %v8540_v58, %v6210_v41  ;;  %v6398_v27 = vmul.f32 0.044715, %v6382_v1  ;;  %vm6217_vm1 = vmor %vm6215_vm15, %vm6216_vm12  ;;  %v6208_v63 = vsel %vm6207_vm14, %v13078_v6, %v6204_v16 }
0x1528   : > { %v6492_v53 = vmul.f32 %v6476_v31, %v13057_v12  ;;  %v6333_v55 = vpop.f32.mrf.mxu0  ;;  %v6251_v2 = vmul.f32 %v6208_v63, %v12976_v15 }
0x1529   : > { %v6212_v59 = vmul.f32 0.5, %v6211_v22  ;;  %v6334_v60 = vadd.f32 %v13032_v18, %v6333_v55  ;;  %v6414_v43 = vadd.f32 %v6398_v27, %v6331_v28 }
0x152a   : > { %v6507_v25 = vpack.c.bf16 %v6492_v53, %v6491_v4 }
0x152b   : > { %v6213_v46 = vsub.f32 1.5, %v6212_v59  ;;  %v6367_v44 = vmul.f32 %v6334_v60, %v6334_v60  ;;  %v6430_v54 = vmul.f32 0.7978846, %v6414_v43  ;;  %v8542_v48 = vpop.eup %8541 }
0x152c   : > { %7328 = vmatmul.msk.bf16.vlgmr.msra.gmra.mxu1 %vm482_vm0, %v6507_v25  ;;  %v6461_v7 = vadd.f32 1.0, %v8542_v48 }
0x152d   : > { %v6214_v12 = vmul.f32 %v8540_v58, %v6213_v46  ;;  %v6383_v50 = vmul.f32 %v6367_v44, %v6334_v60  ;;  %8543 = vtanh.f32 %v6430_v54 }
0x152e   : > { %v6477_v1 = vmul.f32 0.5, %v6461_v7 }
0x152f   : > { %v6218_v42 = vsel %vm6217_vm1, %v8540_v58, %v6214_v12  ;;  %v6399_v9 = vmul.f32 0.044715, %v6383_v50 }
0x1530   : > { %v6335_v14 = vpop.f32.mrf.mxu0  ;;  %v6252_v32 = vmul.f32 %v6218_v42, %v12984_v62  ;;  %v6493_v62 = vmul.f32 %v6477_v1, %v13071_v49 }
0x1531   : > { %v6415_v56 = vadd.f32 %v6399_v9, %v6334_v60  ;;  %v6336_v57 = vadd.f32 %v13032_v18, %v6335_v14 }
0x1532   : > { %v6261_v31 = vpack.c.bf16 %v6252_v32, %v6251_v2 }
0x1533   : > { %v6431_v52 = vmul.f32 0.7978846, %v6415_v56  ;;  %v6368_v41 = vmul.f32 %v6336_v57, %v6336_v57  ;;  %v8544_v40 = vpop.eup %8543 }
0x1534   : > { %v6462_v38 = vadd.f32 1.0, %v8544_v40 }
0x1535   : > { %v6384_v22 = vmul.f32 %v6368_v41, %v6336_v57  ;;  %8545 = vtanh.f32 %v6431_v52 }
0x1536   : > { %7310 = vmatmul.msk.bf16.gmra.mxu0 %vm482_vm0, %v6261_v31  ;;  %v6478_v6 = vmul.f32 0.5, %v6462_v38 }
0x1537   : > { %v6400_v58 = vmul.f32 0.044715, %v6384_v22 }
0x1538   : > { %v6494_v4 = vmul.f32 %v6478_v6, %v6331_v28 }
0x1539   : > { %v6416_v53 = vadd.f32 %v6400_v58, %v6336_v57 }
0x153a   : > { %v6508_v55 = vpack.c.bf16 %v6494_v4, %v6493_v62 }
0x153b   : > { %v6432_v27 = vmul.f32 0.7978846, %v6416_v53  ;;  %v8546_v59 = vpop.eup %8545 }
0x153c   : > { %7329 = vmatmul.msk.bf16.gmra.mxu1 %vm482_vm0, %v6508_v55  ;;  %v6463_v15 = vadd.f32 1.0, %v8546_v59 }
0x153d   : > { %8547 = vtanh.f32 %v6432_v27 }
0x153e   : > { %v6479_v43 = vmul.f32 0.5, %v6463_v15 }
0x1540   : > { %v6495_v44 = vmul.f32 %v6479_v43, %v6334_v60 }
0x1543   : > { %v8548_v25 = vpop.eup %8547 }
0x1544   : > { %v6464_v16 = vadd.f32 1.0, %v8548_v25 }
0x1546   : > { %v6480_v46 = vmul.f32 0.5, %v6464_v16 }
0x1548   : > { %v6496_v54 = vmul.f32 %v6480_v46, %v6336_v57  ;;  %v6043_v50 = vpop.xlane.xlu0 %6042 }
0x1549   : > { %v6061_v49 = vmul.f32 %v6043_v50, %v13688_v47 }
0x154a   : > { %v6509_v12 = vpack.c.bf16 %v6496_v54, %v6495_v44 }
0x154b   : > { %v6077_v28 = vadd.f32 1e-06, %v6061_v49 }
0x154c   : > { %7330 = vmatmul.msk.bf16.gmra.mxu1 %vm482_vm0, %v6509_v12 }
0x154d   : > { %8549 = vrsqrt.f32 %v6077_v28  ;;  %vm6225_vm3 = vweird.f32 %v6077_v28 }
0x1553   : > { %v8550_v48 = vpop.eup %8549 }
0x1554   : > { %v6220_v63 = vmul.f32 %v8550_v48, %v6077_v28  ;;  %vm6226_vm2 = vweird.f32 %v8550_v48 }
0x1555   : > { %vm6227_vm5 = vmor %vm6225_vm3, %vm6226_vm2 }
0x1556   : > { %v6221_v32 = vmul.f32 %v8550_v48, %v6220_v63 }
0x1558   : > { %v6222_v7 = vmul.f32 0.5, %v6221_v32 }
0x155a   : > { %v6223_v60 = vsub.f32 1.5, %v6222_v7 }
0x155c   : > { %v6224_v40 = vmul.f32 %v8550_v48, %v6223_v60 }
0x1573   : > { %v6046_v42 = vpop.xlane.xlu1 %6045 }
0x1574   : > { %v6062_v9 = vmul.f32 %v6046_v42, %v13688_v47  ;;  %v6228_v47 = vsel %vm6227_vm5, %v8550_v48, %v6224_v40 }
0x1575   : > { %v6253_v55 = vmul.f32 %v6228_v47, %v12995_v17 }
0x1576   : > { %v6078_v14 = vadd.f32 1e-06, %v6062_v9 }
0x1578   : > { %8551 = vrsqrt.f32 %v6078_v14  ;;  %vm6235_vm6 = vweird.f32 %v6078_v14 }
0x157e   : > { %v8552_v56 = vpop.eup %8551 }
0x157f   : > { %v6230_v57 = vmul.f32 %v8552_v56, %v6078_v14  ;;  %vm6236_vm4 = vweird.f32 %v8552_v56 }
0x1580   : > { %v6338_v2 = vpop.f32.mrf.mxu0  ;;  %vm6237_vm7 = vmor %vm6235_vm6, %vm6236_vm4 }
0x1581   : > { %v6231_v52 = vmul.f32 %v8552_v56, %v6230_v57  ;;  %v6339_v41 = vadd.f32 %v13032_v18, %v6338_v2 }
0x1583   : > { %v6232_v31 = vmul.f32 0.5, %v6231_v52  ;;  %v6369_v1 = vmul.f32 %v6339_v41, %v6339_v41 }
0x1585   : > { %v6233_v38 = vsub.f32 1.5, %v6232_v31  ;;  %v6385_v22 = vmul.f32 %v6369_v1, %v6339_v41 }
0x1587   : > { %v6234_v6 = vmul.f32 %v8552_v56, %v6233_v38  ;;  %v6401_v58 = vmul.f32 0.044715, %v6385_v22 }
0x1588   : > { %v6340_v62 = vpop.f32.mrf.mxu0 }
0x1589   : > { %v6238_v4 = vsel %vm6237_vm7, %v8552_v56, %v6234_v6  ;;  %v6417_v53 = vadd.f32 %v6401_v58, %v6339_v41  ;;  %v6341_v27 = vadd.f32 %v13032_v18, %v6340_v62  ;;  %v13120_v62 = vld [vmem:[%s11081_s26 + $0x4] ss:$0 sm:$0xff] }
0x158a   : > { %v6254_v59 = vmul.f32 %v6238_v4, %v13016_v11 }
0x158b   : > { %v6433_v15 = vmul.f32 0.7978846, %v6417_v53  ;;  %v6370_v25 = vmul.f32 %v6341_v27, %v6341_v27 }
0x158c   : > { %v6262_v43 = vpack.c.bf16 %v6254_v59, %v6253_v55 }
0x158d   : > { %v6386_v16 = vmul.f32 %v6370_v25, %v6341_v27  ;;  %8553 = vtanh.f32 %v6433_v15 }
0x158e   : > { %7311 = vmatmul.msk.bf16.gmra.mxu0 %vm482_vm0, %v6262_v43 }
0x158f   : > { %v6402_v46 = vmul.f32 0.044715, %v6386_v16 }
0x1591   : > { %v6418_v44 = vadd.f32 %v6402_v46, %v6341_v27 }
0x1593   : > { %v6434_v54 = vmul.f32 0.7978846, %v6418_v44  ;;  %v6343_v12 = vpop.f32.mrf.mxu0  ;;  %v8554_v49 = vpop.eup %8553 }
0x1594   : > { %v6344_v50 = vadd.f32 %v13032_v18, %v6343_v12  ;;  %v6465_v48 = vadd.f32 1.0, %v8554_v49 }
0x1595   : > { %8555 = vtanh.f32 %v6434_v54 }
0x1596   : > { %v6371_v28 = vmul.f32 %v6344_v50, %v6344_v50  ;;  %v6481_v9 = vmul.f32 0.5, %v6465_v48 }
0x1598   : > { %v6387_v17 = vmul.f32 %v6371_v28, %v6344_v50  ;;  %v6497_v2 = vmul.f32 %v6481_v9, %v6339_v41 }
0x159a   : > { %v6403_v63 = vmul.f32 0.044715, %v6387_v17 }
0x159b   : > { %v8556_v11 = vpop.eup %8555  ;;  %v6345_v42 = vpop.f32.mrf.mxu0 }
0x159c   : > { %v6466_v14 = vadd.f32 1.0, %v8556_v11  ;;  %v6419_v32 = vadd.f32 %v6403_v63, %v6344_v50  ;;  %v6346_v7 = vadd.f32 %v13032_v18, %v6345_v42 }
0x159e   : > { %v6482_v56 = vmul.f32 0.5, %v6466_v14  ;;  %v6435_v60 = vmul.f32 0.7978846, %v6419_v32  ;;  %v6372_v57 = vmul.f32 %v6346_v7, %v6346_v7 }
0x15a0   : > { %v6498_v52 = vmul.f32 %v6482_v56, %v6341_v27  ;;  %v6388_v40 = vmul.f32 %v6372_v57, %v6346_v7  ;;  %8557 = vtanh.f32 %v6435_v60 }
0x15a2   : > { %v6404_v31 = vmul.f32 0.044715, %v6388_v40  ;;  %v6510_v1 = vpack.c.bf16 %v6498_v52, %v6497_v2 }
0x15a3   : > { %v6348_v38 = vpop.f32.mrf.mxu0 }
0x15a4   : > { %v6420_v22 = vadd.f32 %v6404_v31, %v6346_v7  ;;  %v6349_v47 = vadd.f32 %v13032_v18, %v6348_v38  ;;  %7331 = vmatmul.msk.bf16.gmra.mxu1 %vm482_vm0, %v6510_v1 }
0x15a6   : > { %v6436_v6 = vmul.f32 0.7978846, %v6420_v22  ;;  %v6373_v58 = vmul.f32 %v6349_v47, %v6349_v47  ;;  %v8558_v4 = vpop.eup %8557 }
0x15a7   : > { %v6467_v59 = vadd.f32 1.0, %v8558_v4 }
0x15a8   : > { %8559 = vtanh.f32 %v6436_v6  ;;  %v6389_v53 = vmul.f32 %v6373_v58, %v6349_v47 }
0x15a9   : > { %v6575_v55 = vpop.f32.mrf.mxu1  ;;  %v6483_v12 = vmul.f32 0.5, %v6467_v59 }
0x15aa   : > { %v6405_v41 = vmul.f32 0.044715, %v6389_v53  ;;  %v6576_v27 = vadd.f32 %v13120_v62, %v6575_v55 }
0x15ab   : > { %v6350_v15 = vpop.f32.mrf.mxu0  ;;  %v6499_v42 = vmul.f32 %v6483_v12, %v6344_v50 }
0x15ac   : > { %v6421_v25 = vadd.f32 %v6405_v41, %v6349_v47  ;;  %v13124_v4 = vadd.f32 %v6576_v27, %v12747_v51   ;;  %v6351_v16 = vadd.f32 %v13032_v18, %v6350_v15 }
0x15ae   : > { %v13700_v43 = vmov %v13124_v4  ;;  %v8560_v46 = vpop.eup %8559  ;;  %v6437_v44 = vmul.f32 0.7978846, %v6421_v25  ;;  %v6374_v54 = vmul.f32 %v6351_v16, %v6351_v16 }
0x15af   : > { %v6468_v49 = vadd.f32 1.0, %v8560_v46 }
0x15b0   : > { %v6390_v28 = vmul.f32 %v6374_v54, %v6351_v16  ;;  %8561 = vtanh.f32 %v6437_v44 }
0x15b1   : > { %v6484_v48 = vmul.f32 0.5, %v6468_v49  ;;  %v6577_v17 = vpop.f32.mrf.mxu1 }
0x15b2   : > { %v6406_v63 = vmul.f32 0.044715, %v6390_v28  ;;  %v6578_v11 = vadd.f32 %v13120_v62, %v6577_v17 }
0x15b3   : > { %v6500_v9 = vmul.f32 %v6484_v48, %v6346_v7  ;;  %v6353_v14 = vpop.f32.mrf.mxu0 }
0x15b4   : > { %v6422_v32 = vadd.f32 %v6406_v63, %v6351_v16  ;;  %v13129_v12 = vadd.f32 %v6578_v11, %v12757_v3   ;;  %v6354_v56 = vadd.f32 %v13032_v18, %v6353_v14 }
0x15b5   : > { %v6511_v60 = vpack.c.bf16 %v6500_v9, %v6499_v42 }
0x15b6   : > { %v13701_v51 = vmov %v13129_v12  ;;  %v6438_v57 = vmul.f32 0.7978846, %v6422_v32  ;;  %v6375_v2 = vmul.f32 %v6354_v56, %v6354_v56  ;;  %v8562_v52 = vpop.eup %8561 }
0x15b7   : > { %7332 = vmatmul.msk.bf16.gmra.mxu1 %vm482_vm0, %v6511_v60  ;;  %v6469_v38 = vadd.f32 1.0, %v8562_v52  ;;  %v6631_v45 = vpack.c.bf16 (%p13188_p0), %v13701_v51, %v13700_v43 }
0x15b8   : > { %8563 = vtanh.f32 %v6438_v57  ;;  %v6391_v40 = vmul.f32 %v6375_v2, %v6354_v56 }
0x15b9   : > { %v6580_v1 = vpop.f32.mrf.mxu1  ;;  %v6485_v55 = vmul.f32 0.5, %v6469_v38 }
0x15ba   : > { %v6407_v31 = vmul.f32 0.044715, %v6391_v40  ;;  %v6581_v50 = vadd.f32 %v13120_v62, %v6580_v1 }
0x15bb   : > { %v6355_v7 = vpop.f32.mrf.mxu0  ;;  %v6501_v46 = vmul.f32 %v6485_v55, %v6349_v47 }
0x15bc   : > { %v6423_v22 = vadd.f32 %v6407_v31, %v6354_v56  ;;  %v6356_v3 = vadd.f32 %v13032_v18, %v6355_v7  ;;  %v13136_v6 = vadd.f32 %v6581_v50, %v12768_v37  }
0x15be   : > { %v8564_v58 = vpop.eup %8563  ;;  %v6439_v4 = vmul.f32 0.7978846, %v6423_v22  ;;  %v6376_v53 = vmul.f32 %v6356_v3, %v6356_v3 }
0x15bf   : > { %v6470_v41 = vadd.f32 1.0, %v8564_v58 }
0x15c0   : > { %v6392_v27 = vmul.f32 %v6376_v53, %v6356_v3  ;;  %8565 = vtanh.f32 %v6439_v4 }
0x15c1   : > { %v6486_v59 = vmul.f32 0.5, %v6470_v41  ;;  %v6582_v25 = vpop.f32.mrf.mxu1 }
0x15c2   : > { %v6408_v15 = vmul.f32 0.044715, %v6392_v27  ;;  %v6583_v54 = vadd.f32 %v13120_v62, %v6582_v25 }
0x15c3   : > { %v6502_v44 = vmul.f32 %v6486_v59, %v6351_v16 }
0x15c4   : > { %v6424_v12 = vadd.f32 %v6408_v15, %v6356_v3  ;;  %v13140_v28 = vadd.f32 %v6583_v54, %v12774_v33  }
0x15c5   : > { %v6512_v37 = vpack.c.bf16 %v6502_v44, %v6501_v46 }
0x15c6   : > { %v13702_v49 = vmov %v13140_v28  ;;  %v6440_v48 = vmul.f32 0.7978846, %v6424_v12  ;;  %v8566_v17 = vpop.eup %8565 }
0x15c7   : > { %7333 = vmatmul.msk.bf16.gmra.mxu1 %vm482_vm0, %v6512_v37  ;;  %v6471_v11 = vadd.f32 1.0, %v8566_v17  ;;  %v6632_v8 = vpack.c.bf16 (%p13188_p0), %v13702_v49, %v13136_v6 }
0x15c8   : > { %8567 = vtanh.f32 %v6440_v48 }
0x15c9   : > { %v6585_v63 = vpop.f32.mrf.mxu1  ;;  %v6487_v9 = vmul.f32 0.5, %v6471_v11 }
0x15ca   : > { %v6586_v42 = vadd.f32 %v13120_v62, %v6585_v63 }
0x15cb   : > { %v6503_v33 = vmul.f32 %v6487_v9, %v6354_v56 }
0x15cc   : > { %v13145_v42 = vadd.f32 %v6586_v42, %v12780_v13  }
0x15ce   : > { %v13703_v47 = vmov %v13145_v42  ;;  %v8568_v16 = vpop.eup %8567 }
0x15cf   : > { %v6472_v14 = vadd.f32 1.0, %v8568_v16 }
0x15d1   : > { %v6488_v32 = vmul.f32 0.5, %v6472_v14  ;;  %v6587_v60 = vpop.f32.mrf.mxu1 }
0x15d2   : > { %v6588_v57 = vadd.f32 %v13120_v62, %v6587_v60 }
0x15d3   : > { %v6504_v28 = vmul.f32 %v6488_v32, %v6356_v3 }
0x15d4   : > { %v13149_v14 = vadd.f32 %v6588_v57, %v12786_v61  }
0x15d5   : > { %v6513_v2 = vpack.c.bf16 %v6504_v28, %v6503_v33 }
0x15d6   : > { %v13704_v52 = vmov %v13149_v14 }
0x15d7   : > { %7334 = vmatmul.msk.bf16.gmra.mxu1 %vm482_vm0, %v6513_v2  ;;  %v6633_v36 = vpack.c.bf16 (%p13188_p0), %v13704_v52, %v13703_v47 }
0x160b   : > { %v6358_v40 = vpop.f32.mrf.mxu0 }
0x160c   : > { %v6359_v31 = vadd.f32 %v13032_v18, %v6358_v40 }
0x160e   : > { %v6377_v13 = vmul.f32 %v6359_v31, %v6359_v31 }
0x1610   : > { %v6393_v1 = vmul.f32 %v6377_v13, %v6359_v31 }
0x1612   : > { %v6409_v38 = vmul.f32 0.044715, %v6393_v1 }
0x1613   : > { %v6360_v50 = vpop.f32.mrf.mxu0 }
0x1614   : > { %v6425_v7 = vadd.f32 %v6409_v38, %v6359_v31  ;;  %v6361_v22 = vadd.f32 %v13032_v18, %v6360_v50 }
0x1616   : > { %v6441_v56 = vmul.f32 0.7978846, %v6425_v7  ;;  %v6378_v3 = vmul.f32 %v6361_v22, %v6361_v22 }
0x1618   : > { %v6394_v58 = vmul.f32 %v6378_v3, %v6361_v22  ;;  %8569 = vtanh.f32 %v6441_v56 }
0x161a   : > { %v6410_v4 = vmul.f32 0.044715, %v6394_v58 }
0x161c   : > { %v6426_v61 = vadd.f32 %v6410_v4, %v6361_v22  ;;  %v13727_v4 = vmov %v13700_v43 }
0x161e   : > { %v6442_v53 = vmul.f32 0.7978846, %v6426_v61  ;;  %v8570_v55 = vpop.eup %8569 }
0x161f   : > { %v6473_v59 = vadd.f32 1.0, %v8570_v55 }
0x1620   : > { %8571 = vtanh.f32 %v6442_v53 }
0x1621   : > { %v6590_v41 = vpop.f32.mrf.mxu1  ;;  %v6489_v46 = vmul.f32 0.5, %v6473_v59 }
0x1622   : > { %v6591_v27 = vadd.f32 %v13120_v62, %v6590_v41 }
0x1623   : > { %v6505_v37 = vmul.f32 %v6489_v46, %v6359_v31 }
0x1624   : > { %v13156_v27 = vadd.f32 %v6591_v27, %v12792_v34  }
0x1626   : > { %v13705_v15 = vmov %v13156_v27  ;;  %v8572_v25 = vpop.eup %8571 }
0x1627   : > { %v6474_v44 = vadd.f32 1.0, %v8572_v25  ;;  %v13721_v27 = vmov %v13705_v15 }
0x1629   : > { %v6490_v18 = vmul.f32 0.5, %v6474_v44  ;;  %v6592_v54 = vpop.f32.mrf.mxu1 }
0x162a   : > { %v6593_v12 = vadd.f32 %v13120_v62, %v6592_v54 }
0x162b   : > { %v6506_v48 = vmul.f32 %v6490_v18, %v6361_v22 }
0x162c   : > { %v13160_v56 = vadd.f32 %v6593_v12, %v12814_v30   ;;  %v13726_v12 = vmov %v13701_v51 }
0x162d   : > { %v6514_v17 = vpack.c.bf16 %v6506_v48, %v6505_v37 }
0x162e   : > { %v13706_v63 = vmov %v13160_v56 }
0x162f   : > { %7335 = vmatmul.msk.bf16.gmra.mxu1 %vm482_vm0, %v6514_v17  ;;  %v13720_v56 = vmov %v13706_v63  ;;  %v6634_v21 = vpack.c.bf16 (%p13188_p0), %v13706_v63, %v13705_v15 }
0x1634   : > { %v6595_v11 = vpop.f32.mrf.mxu1 }
0x1635   : > { %v6596_v42 = vadd.f32 %v13120_v62, %v6595_v11 }
0x1637   : > { %v13165_v9 = vadd.f32 %v6596_v42, %v12828_v29   ;;  %v13723_v42 = vmov %v13703_v47 }
0x1639   : > { %v13707_v16 = vmov %v13165_v9 }
0x163c   : > { %v6597_v34 = vpop.f32.mrf.mxu1 }
0x163d   : > { %v6598_v14 = vadd.f32 %v13120_v62, %v6597_v34 }
0x163f   : > { %v13169_v17 = vadd.f32 %v6598_v14, %v12846_v19   ;;  %v13722_v14 = vmov %v13704_v52 }
0x1641   : > { %v13708_v32 = vmov %v13169_v17 }
0x1642   : > { %v13718_v17 = vmov %v13708_v32  ;;  %v6635_v26 = vpack.c.bf16 (%p13188_p0), %v13708_v32, %v13707_v16 }
0x1644   : > { %v6600_v60 = vpop.f32.mrf.mxu1 }
0x1645   : > { %v6601_v33 = vadd.f32 %v13120_v62, %v6600_v60 }
0x1647   : > { %v13173_v25 = vadd.f32 %v6601_v33, %v12859_v0  }
0x1649   : > { %v13709_v30 = vmov %v13173_v25 }
0x164a   : > { %v13717_v25 = vmov %v13709_v30 }
0x164c   : > { %v6602_v28 = vpop.f32.mrf.mxu1 }
0x164d   : > { %v6603_v57 = vadd.f32 %v13120_v62, %v6602_v28  ;;  %v13724_v28 = vmov %v13702_v49 }
0x164f   : > { %v13177_v33 = vadd.f32 %v6603_v57, %v12867_v5  }
0x1651   : > { %v13710_v40 = vmov %v13177_v33 }
0x1652   : > { %v13716_v33 = vmov %v13710_v40 }
0x1654   : > { %v6605_v29 = vpop.f32.mrf.mxu1 }
0x1655   : > { %v6606_v9 = vadd.f32 %v13120_v62, %v6605_v29 }
0x1657   : > { %v6627_v31 = vadd.f32 %v6606_v9, %v12880_v35   ;;  %v13719_v9 = vmov %v13707_v16  ;;  %v7439_v35 = vld [vmem:[%s13332_s13 + $0x18] sm:$0xff] (%p13188_p0) }
0x1658   :  { %6704 = vmatpush.bf16.msra.mxu0 (%p13188_p0), %v7439_v35  ;;  %7464 = vmatpush.bf16.msra.mxu1 (%p13188_p0), %v7439_v35 }
0x1659   :  { %7465 = vmatpush.bf16.msra.mxu2 (%p13188_p0), %v7439_v35  ;;  %7466 = vmatpush.bf16.msra.mxu3 (%p13188_p0), %v7439_v35 }
0x165c   : > { %v6607_v2 = vpop.f32.mrf.mxu1 }
0x165d   : > { %v6608_v19 = vadd.f32 %v13120_v62, %v6607_v2  ;;  %v13715_v2 = vmov %v6627_v31 }
0x165f   : > { %v6628_v13 = vadd.f32 %v6608_v19, %v12892_v24   ;;  %v7438_v24 = vld [vmem:[%s13332_s13 + $0x10] sm:$0xff] (%p13188_p0) }
0x1660   :  { %6705 = vmatpush.bf16.msra.mxu0 (%p13188_p0), %v7438_v24  ;;  %7467 = vmatpush.bf16.msra.mxu1 (%p13188_p0), %v7438_v24 }
0x1661   :  { %7468 = vmatpush.bf16.msra.mxu2 (%p13188_p0), %v7438_v24  ;;  %7469 = vmatpush.bf16.msra.mxu3 (%p13188_p0), %v7438_v24  ;;  %v6637_v10 = vpack.c.bf16 (%p13188_p0), %v6628_v13, %v6627_v31 }
0x16ac   : > { %v6610_v1 = vpop.f32.mrf.mxu1 }
0x16ad   : > { %v6611_v0 = vadd.f32 %v13120_v62, %v6610_v1 }
0x16af   : > { %v6629_v38 = vadd.f32 %v6611_v0, %v12898_v23   ;;  %v13714_v23 = vmov %v6628_v13 }
0x16b1   : > { %v13713_v34 = vmov %v6629_v38 }
0x16b4   : > { %v6612_v50 = vpop.f32.mrf.mxu1 }
0x16b5   : > { %v6613_v7 = vadd.f32 %v13120_v62, %v6612_v50  ;;  %413 = sbr.rel (!%p13188_p0) target bundleno = 224 (0xe0), region = 103  ;;  %v7437_v62 = vld [vmem:[%s13332_s13 + $0x8] sm:$0xff] (%p13188_p0) }
0x16b6   :  { %6706 = vmatpush.bf16.msra.mxu0 (%p13188_p0), %v7437_v62  ;;  %7470 = vmatpush.bf16.msra.mxu1 (%p13188_p0), %v7437_v62 }
0x16b7   : > { %v6630_v22 = vadd.f32 %v6613_v7, %v12929_v20   ;;  %v13725_v20 = vmov %v13136_v6  ;;  %7471 = vmatpush.bf16.msra.mxu2 (%p13188_p0), %v7437_v62  ;;  %7472 = vmatpush.bf16.msra.mxu3 (%p13188_p0), %v7437_v62 }
0x16b8   :  { %v8573_v20 = vld [vmem:[%s13333_s14] ss:$0 sm:$0xff] (%p13188_p0) }
0x16b9   : > { %v13712_v5 = vmov %v6630_v22  ;;  %v6638_v23 = vpack.c.bf16 (%p13188_p0), %v6630_v22, %v6629_v38 }
0x16ba   :  { %6707 = vmatpush.bf16.msra.mxu0 %v7436_v39  ;;  %7473 = vmatpush.bf16.msra.mxu1 %v7436_v39  ;;  %v6636_v5 = vpack.c.bf16 %v13710_v40, %v13709_v30 }
0x16bb   :  { %7474 = vmatpush.bf16.msra.mxu2 %v7436_v39  ;;  %7475 = vmatpush.bf16.msra.mxu3 %v7436_v39 }
0x16bd   :  { %7352 = vmatmul.msk.bf16.vlgmr.msra.gmra.mxu0 %vm482_vm0, %v6631_v45  ;;  %7354 = vmatmul.msk.bf16.vlgmr.msra.gmra.mxu1 %vm482_vm0, %v6633_v36 }
0x16be   :  { %7356 = vmatmul.msk.bf16.vlgmr.msra.gmra.mxu2 %vm482_vm0, %v6635_v26  ;;  %7358 = vmatmul.msk.bf16.vlgmr.msra.gmra.mxu3 %vm482_vm0, %v6637_v10 }
0x16cd   :  { %7353 = vmatmul.msk.bf16.gmra.mxu0 %vm482_vm0, %v6632_v8  ;;  %7355 = vmatmul.msk.bf16.gmra.mxu1 %vm482_vm0, %v6634_v21 }
0x16ce   :  { %7357 = vmatmul.msk.bf16.gmra.mxu2 %vm482_vm0, %v6636_v5  ;;  %7359 = vmatmul.msk.bf16.gmra.mxu3 %vm482_vm0, %v6638_v23 }
0x173a   :  { %v6709_v43 = vpop.f32.mrf.mxu0  ;;  %v6719_v51 = vpop.f32.mrf.mxu1 }
0x173b   :  { %v6710_v6 = vadd.f32 %v8573_v20, %v6709_v43  ;;  %v6720_v49 = vadd.f32 %v8573_v20, %v6719_v51 }
0x173d   :  { %6749 = vst [vmem:[%s13334_s15] sm:$0xff] %v6710_v6 }
0x173e   :  { %6753 = vst [vmem:[%s13334_s15 + $0x20] sm:$0xff] %v6720_v49 }
0x1741   :  { %v6729_v47 = vpop.f32.mrf.mxu2  ;;  %v6739_v52 = vpop.f32.mrf.mxu3 }
0x1742   :  { %v6730_v56 = vadd.f32 %v8573_v20, %v6729_v47  ;;  %v6740_v3 = vadd.f32 %v8573_v20, %v6739_v52  ;;  %v6711_v58 = vpop.f32.mrf.mxu0  ;;  %v6721_v4 = vpop.f32.mrf.mxu1 }
0x1743   :  { %v6712_v61 = vadd.f32 %v8573_v20, %v6711_v58  ;;  %v6722_v53 = vadd.f32 %v8573_v20, %v6721_v4 }
0x1744   :  { %6757 = vst [vmem:[%s13334_s15 + $0x40] sm:$0xff] %v6730_v56 }
0x1745   :  { %6761 = vst [vmem:[%s13334_s15 + $0x60] sm:$0xff] %v6740_v3 }
0x1746   :  { %6750 = vst [vmem:[%s13334_s15 + $0x8] sm:$0xff] %v6712_v61 }
0x1747   :  { %6754 = vst [vmem:[%s13334_s15 + $0x28] sm:$0xff] %v6722_v53 }
0x1749   :  { %v6731_v55 = vpop.f32.mrf.mxu2  ;;  %v6741_v41 = vpop.f32.mrf.mxu3 }
0x174a   :  { %v6732_v27 = vadd.f32 %v8573_v20, %v6731_v55  ;;  %v6742_v59 = vadd.f32 %v8573_v20, %v6741_v41  ;;  %v6714_v15 = vpop.f32.mrf.mxu0  ;;  %v6724_v25 = vpop.f32.mrf.mxu1 }
0x174b   :  { %v6715_v46 = vadd.f32 %v8573_v20, %v6714_v15  ;;  %v6725_v44 = vadd.f32 %v8573_v20, %v6724_v25 }
0x174c   :  { %6758 = vst [vmem:[%s13334_s15 + $0x48] sm:$0xff] %v6732_v27 }
0x174d   :  { %6762 = vst [vmem:[%s13334_s15 + $0x68] sm:$0xff] %v6742_v59 }
0x174e   :  { %6751 = vst [vmem:[%s13334_s15 + $0x10] sm:$0xff] %v6715_v46 }
0x174f   :  { %6755 = vst [vmem:[%s13334_s15 + $0x30] sm:$0xff] %v6725_v44 }
0x1751   :  { %v6734_v18 = vpop.f32.mrf.mxu2  ;;  %v6744_v54 = vpop.f32.mrf.mxu3 }
0x1752   :  { %v6735_v12 = vadd.f32 %v8573_v20, %v6734_v18  ;;  %v6745_v37 = vadd.f32 %v8573_v20, %v6744_v54  ;;  %v6716_v48 = vpop.f32.mrf.mxu0  ;;  %v6726_v63 = vpop.f32.mrf.mxu1 }
0x1753   :  { %v6717_v17 = vadd.f32 %v8573_v20, %v6716_v48  ;;  %v6727_v11 = vadd.f32 %v8573_v20, %v6726_v63 }
0x1754   :  { %6759 = vst [vmem:[%s13334_s15 + $0x50] sm:$0xff] %v6735_v12 }
0x1755   :  { %6763 = vst [vmem:[%s13334_s15 + $0x70] sm:$0xff] %v6745_v37 }
0x1756   :  { %6752 = vst [vmem:[%s13334_s15 + $0x18] sm:$0xff] %v6717_v17 }
0x1757   :  { %6756 = vst [vmem:[%s13334_s15 + $0x38] sm:$0xff] %v6727_v11 }
0x1759   :  { %v6736_v42 = vpop.f32.mrf.mxu2  ;;  %v6746_v16 = vpop.f32.mrf.mxu3 }
0x175a   :  { %v6737_v34 = vadd.f32 %v8573_v20, %v6736_v42  ;;  %v6747_v14 = vadd.f32 %v8573_v20, %v6746_v16 }
0x175c   :  { %6760 = vst [vmem:[%s13334_s15 + $0x58] sm:$0xff] %v6737_v34 }
0x175d   :  { %6764 = vst [vmem:[%s13334_s15 + $0x78] sm:$0xff] %v6747_v14 }

</bundles_post_ra>
